<compile_context>
chip_gen: v7x
topology: tpu7x:2x2x1
jax: 0.10.0
libtpu: 0.0.40
codegen_flags: <defaults>
</compile_context>

<pallas_src>
import functools

import jax
import jax.numpy as jnp
from jax.experimental import pallas as pl
from jax.experimental.pallas import tpu as pltpu

nc, ngf, nz = 3, 64, 100
BN_EPS = 1e-5

# Phase decomposition tables for ConvTranspose2d(k=4, stride=2, padding=1):
# output row oy = 2q + py uses padded-input rows q + OFF[py][dy] with kernel rows
# KK[py][dy] (and identically for columns).
OFF = ((0, 1), (1, 2))
KK = ((3, 1), (2, 0))


def _round_up(x, m):
    return (x + m - 1) // m * m


def _pick_tile(dim, candidates):
    """Largest candidate that divides dim; falls back to the full dim."""
    for c in candidates:
        if c <= dim and dim % c == 0:
            return c
    return dim


# --------------- phase-stacked MXU matmul with fused BN-stats epilogue ---------------
def _bmm_kernel(a_ref, b_ref, o_ref, *rest, activation, with_stats):
    if with_stats:
        sum_ref, ssq_ref, acc_ref = rest
    else:
        (acc_ref,) = rest
    i = pl.program_id(2)          # M-tile index (stats reduce over it)
    k = pl.program_id(3)          # K-tile index

    @pl.when(k == 0)
    def _():
        acc_ref[...] = jnp.zeros_like(acc_ref)

    acc_ref[...] += jnp.dot(a_ref[0], b_ref[0], preferred_element_type=jnp.float32)

    if with_stats:
        # Stats block (p, 0, j) stays VMEM-resident across all (i, k) steps for a
        # fixed (p, j); zero it the first time it is touched.
        @pl.when(jnp.logical_and(i == 0, k == 0))
        def _():
            sum_ref[...] = jnp.zeros_like(sum_ref)
            ssq_ref[...] = jnp.zeros_like(ssq_ref)

    @pl.when(k == pl.num_programs(3) - 1)
    def _():
        r = acc_ref[...]
        if activation == "tanh":
            r = jnp.tanh(r)                       # EUP slot, free under the matmul
        o_ref[0] = r.astype(o_ref.dtype)
        if with_stats:
            sum_ref[0] += jnp.sum(r, axis=0, keepdims=True)
            ssq_ref[0] += jnp.sum(r * r, axis=0, keepdims=True)


def batched_matmul(a, b, *, activation="none", with_stats=False):
    """a: (P, M, K) bf16, b: (P, K, N) bf16.

    Returns y (P, M, N); bf16 for BN layers (with per-phase column sum / sum-sq
    (P, 1, N) f32 computed from the f32 accumulator), f32 for the tanh layer."""
    P, M, K = a.shape
    Pb, Kb, N = b.shape
    assert P == Pb and K == Kb
    tm = _pick_tile(M, (512, 256, 128, 64, 32, 16, 8))
    tk = _pick_tile(K, (2048, 1024, 512, 256, 128))       # every layer: 1 k-step
    tn = _pick_tile(N, (1024, 512, 256, 128))
    out_dtype = jnp.float32 if activation == "tanh" else jnp.bfloat16

    # Grid order (phase, n, m, k): stats accumulate over (m, k) -> "arbitrary";
    # phase / n-tiles stay "parallel" (megacore / 2-TC split on v7x).
    grid = (P, N // tn, M // tm, K // tk)
    a_spec = pl.BlockSpec((1, tm, tk), lambda p, j, i, k: (p, i, k))
    b_spec = pl.BlockSpec((1, tk, tn), lambda p, j, i, k: (p, k, j))
    y_spec = pl.BlockSpec((1, tm, tn), lambda p, j, i, k: (p, i, j))

    if with_stats:
        stat_spec = pl.BlockSpec((1, 1, tn), lambda p, j, i, k: (p, 0, j))
        out_shape = (jax.ShapeDtypeStruct((P, M, N), out_dtype),
                     jax.ShapeDtypeStruct((P, 1, N), jnp.float32),
                     jax.ShapeDtypeStruct((P, 1, N), jnp.float32))
        out_specs = (y_spec, stat_spec, stat_spec)
        sem = ("parallel", "parallel", "arbitrary", "arbitrary")
    else:
        out_shape = jax.ShapeDtypeStruct((P, M, N), out_dtype)
        out_specs = y_spec
        sem = ("parallel", "parallel", "parallel", "arbitrary")

    return pl.pallas_call(
        functools.partial(_bmm_kernel, activation=activation, with_stats=with_stats),
        out_shape=out_shape,
        grid_spec=pltpu.PrefetchScalarGridSpec(
            num_scalar_prefetch=0,
            grid=grid,
            in_specs=[a_spec, b_spec],
            out_specs=out_specs,
            scratch_shapes=[pltpu.VMEM((tm, tn), jnp.float32)],
        ),
        compiler_params=pltpu.CompilerParams(
            dimension_semantics=sem,
            vmem_limit_bytes=32 * 1024 * 1024,
        ),
    )(a, b)


# ----------------------- BN apply (affine) + ReLU, one tiled pass ---------------------
def _affine_relu_kernel(x_ref, scale_ref, shift_ref, o_ref):
    y = x_ref[...].astype(jnp.float32) * scale_ref[...] + shift_ref[...]
    o_ref[...] = jnp.maximum(y, 0.0).astype(o_ref.dtype)


def affine_relu(x2d, scale, shift, out_dtype=jnp.bfloat16):
    """x2d: (M, C) bf16; scale/shift: (C,) f32.  Returns normalized+ReLU bf16."""
    M, C = x2d.shape
    tm = _pick_tile(M, (1024, 512, 256, 128, 64, 32, 16, 8))
    col = pl.BlockSpec((1, C), lambda i: (0, 0))
    return pl.pallas_call(
        _affine_relu_kernel,
        out_shape=jax.ShapeDtypeStruct((M, C), out_dtype),
        grid_spec=pltpu.PrefetchScalarGridSpec(
            num_scalar_prefetch=0,
            grid=(M // tm,),
            in_specs=[pl.BlockSpec((tm, C), lambda i: (i, 0)), col, col],
            out_specs=pl.BlockSpec((tm, C), lambda i: (i, 0)),
        ),
        compiler_params=pltpu.CompilerParams(
            dimension_semantics=("parallel",),
            vmem_limit_bytes=32 * 1024 * 1024,
        ),
    )(x2d, scale.reshape(1, C), shift.reshape(1, C))


def bn_scale_shift(col_sum, col_ssq, count, gamma, beta):
    """Fold train-mode BN stats into a per-channel affine (tiny O(C) XLA op)."""
    mean = col_sum / count
    var = jnp.maximum(col_ssq / count - mean * mean, 0.0)   # guard cancellation
    inv = jax.lax.rsqrt(var + BN_EPS)
    scale = gamma * inv
    shift = beta - mean * scale
    return scale, shift


# -------------------- phase-decomposed transposed-conv glue (im2col) ------------------
def build_phase_lhs(x):
    """x: (N, H, W, Cin) bf16 -> A: (4, N*H*W, 4*Cin) bf16 (per-output-phase im2col)."""
    N, H, W, Cin = x.shape
    xp = jnp.pad(x, ((0, 0), (1, 1), (1, 1), (0, 0)))
    mats = []
    for py in range(2):
        for px in range(2):
            taps = [
                xp[:, OFF[py][dy]:OFF[py][dy] + H, OFF[px][dx]:OFF[px][dx] + W, :]
                for dy in range(2) for dx in range(2)
            ]
            mats.append(jnp.concatenate(taps, axis=-1).reshape(N * H * W, 4 * Cin))
    return jnp.stack(mats, axis=0)


def assemble_phases(y, N, H, W, C):
    """y: (4, N*H*W, C) -> (N, 2H, 2W, C) by interleaving the 2x2 output phases."""
    y = y.reshape(2, 2, N, H, W, C)
    y = jnp.transpose(y, (2, 3, 0, 4, 1, 5))
    return y.reshape(N, 2 * H, 2 * W, C)


# ------------------------ weight preparation (done once at init) ----------------------
def _phase_weights(w, cin_pad, cout_pad):
    """w: (Cin, Cout, 4, 4) -> (4, 4*cin_pad, cout_pad) bf16; rows ordered (dy, dx, ci)."""
    Cin, Cout = w.shape[0], w.shape[1]
    mats = []
    for py in range(2):
        for px in range(2):
            blocks = []
            for dy in range(2):
                for dx in range(2):
                    wk = w[:, :, KK[py][dy], KK[px][dx]]           # (Cin, Cout)
                    wk = jnp.pad(wk, ((0, cin_pad - Cin), (0, cout_pad - Cout)))
                    blocks.append(wk)
            mats.append(jnp.concatenate(blocks, axis=0))
    return jnp.stack(mats, axis=0).astype(jnp.bfloat16)


def _proj_weights(w, cin_pad):
    """Layer 0 (1x1 input): w (nz, Cout, 4, 4) -> (1, cin_pad, 16*Cout) bf16."""
    Cin, Cout = w.shape[0], w.shape[1]
    b = jnp.transpose(w, (0, 2, 3, 1)).reshape(Cin, 16 * Cout)     # cols (ky, kx, co)
    b = jnp.pad(b, ((0, cin_pad - Cin), (0, 0)))
    return b[None].astype(jnp.bfloat16)


def init_params(key):
    chans = [nz, ngf * 8, ngf * 4, ngf * 2, ngf, nc]
    # Output-channel padding: lane-dense 128-multiples, EXCEPT ngf=64 which is kept
    # un-padded (full-dim 64-lane blocks) to halve layer-3/layer-4 HBM bytes.
    cout_pads = []
    for i in range(5):
        cout = chans[i + 1]
        cout_pads.append(cout if (cout % 128 == 0 or cout == 64) else _round_up(cout, 128))
    cin_pads = [_round_up(chans[0], 128)] + cout_pads[:-1]

    keys = jax.random.split(key, 3 * 5)
    params = []
    for i in range(5):
        kw, kg, kb = keys[3 * i], keys[3 * i + 1], keys[3 * i + 2]
        cin, cout = chans[i], chans[i + 1]
        w = (0.02 * jax.random.normal(kw, (cin, cout, 4, 4))).astype(jnp.float32)
        if i == 0:
            B = _proj_weights(w, cin_pads[i])                       # (1, 128, 16*512)
        else:
            B = _phase_weights(w, cin_pads[i], cout_pads[i])        # (4, 4*cin_pad, cout_pad)
        if i < 4:  # layers followed by BatchNorm2d + ReLU
            g = (1.0 + 0.02 * jax.random.normal(kg, (cout,))).astype(jnp.float32)
            b = (0.02 * jax.random.normal(kb, (cout,))).astype(jnp.float32)
            g = jnp.pad(g, (0, cout_pads[i] - cout))
            b = jnp.pad(b, (0, cout_pads[i] - cout))
        else:
            g, b = None, None
        params.append({"B": B, "gamma": g, "beta": b})
    return params


# ---------------------------------- Generator forward ---------------------------------
def generator_forward(params, z_nchw):
    N = z_nchw.shape[0]

    # Layer 0: ConvTranspose2d(nz, 512, 4) on a 1x1 input == projection z @ W.
    p0 = params[0]
    cin_pad0 = p0["B"].shape[1]
    cout0 = p0["B"].shape[2] // 16
    z = z_nchw.reshape(N, nz).astype(jnp.bfloat16)
    Mp = _round_up(N, 8)
    a0 = jnp.zeros((1, Mp, cin_pad0), jnp.bfloat16).at[0, :N, :nz].set(z)
    y, s, ss = batched_matmul(a0, p0["B"], with_stats=True)         # (1, Mp, 8192) bf16
    # Columns are ordered (ky, kx, c); padded rows contribute exact zeros.
    s = s.reshape(16, cout0).sum(axis=0)
    ss = ss.reshape(16, cout0).sum(axis=0)
    scale, shift = bn_scale_shift(s, ss, N * 16, p0["gamma"], p0["beta"])
    x = affine_relu(y[0, :N].reshape(N * 16, cout0), scale, shift)
    x = x.reshape(N, 4, 4, cout0)                                    # NHWC, bf16

    # Layers 1..4: k=4, stride=2, pad=1 transposed conv, phase-decomposed (K = 4*Cin).
    for i in range(1, 5):
        p = params[i]
        Nb, H, W, _ = x.shape
        C = p["B"].shape[2]                                          # output channels
        A = build_phase_lhs(x)                                       # (4, Nb*H*W, 4*Cin) bf16
        if i < 4:
            y, s, ss = batched_matmul(A, p["B"], with_stats=True)    # bf16 + per-phase stats
            scale, shift = bn_scale_shift(
                s.sum(axis=0)[0], ss.sum(axis=0)[0], 4 * Nb * H * W,
                p["gamma"], p["beta"])
            y = affine_relu(y.reshape(4 * Nb * H * W, C), scale, shift)
            x = assemble_phases(y.reshape(4, Nb * H * W, C), Nb, H, W, C)
        else:
            y = batched_matmul(A, p["B"], activation="tanh")         # (4, M, 128) f32
            y = y[..., :nc]                    # slice channels BEFORE the interleave
            x = assemble_phases(y, Nb, H, W, nc)

    return jnp.transpose(x, (0, 3, 1, 2))                            # NHWC -> NCHW, f32


if __name__ == "__main__":
    key = jax.random.PRNGKey(0)
    pkey, xkey = jax.random.split(key)
    params = init_params(pkey)
    z = jax.random.normal(xkey, (2, nz, 1, 1), dtype=jnp.float32)    # DCGAN latent, NCHW

    fwd = jax.jit(generator_forward)
    out = jax.block_until_ready(fwd(params, z))

    assert out.shape == (2, nc, 64, 64), out.shape
    assert out.dtype == jnp.float32, out.dtype
    assert bool(jnp.all(jnp.isfinite(out)))
    assert bool(jnp.all(jnp.abs(out) <= 1.0 + 1e-5))  # tanh range
    print("KERNEL_OK")
</pallas_src>

<mosaic_0001>
module attributes {stable_mosaic.version = 11 : i64} {
  func.func @_bmm_kernel(%arg0: i32, %arg1: i32, %arg2: i32, %arg3: i32, %arg4: memref<1x8x128xbf16, #tpu.memory_space<vmem>>, %arg5: memref<1x128x1024xbf16, #tpu.memory_space<vmem>>, %arg6: memref<1x8x1024xbf16, #tpu.memory_space<vmem>>, %arg7: memref<1x1x1024xf32, #tpu.memory_space<vmem>>, %arg8: memref<1x1x1024xf32, #tpu.memory_space<vmem>>, %arg9: memref<8x1024xf32, #tpu.memory_space<vmem>>) attributes {dimension_semantics = [#tpu.dimension_semantics<parallel>, #tpu.dimension_semantics<parallel>, #tpu.dimension_semantics<arbitrary>, #tpu.dimension_semantics<arbitrary>], iteration_bounds = array<i64: 1, 8, 1, 1>, scalar_prefetch = 0 : i64, scratch_operands = 1 : i64, tpu.core_type = #tpu.core_type<tc>, window_params = [{transform_indices = @transform_0, window_bounds = array<i64: 1, 8, 128>}, {transform_indices = @transform_1, window_bounds = array<i64: 1, 128, 1024>}, {transform_indices = @transform_2, window_bounds = array<i64: 1, 8, 1024>}, {transform_indices = @transform_3, window_bounds = array<i64: 1, 1, 1024>}, {transform_indices = @transform_4, window_bounds = array<i64: 1, 1, 1024>}]} {
    %c0_i32 = arith.constant 0 : i32
    %0 = arith.cmpi eq, %arg3, %c0_i32 : i32
    %1 = arith.extui %0 : i1 to i32
    %c0_i32_0 = arith.constant 0 : i32
    %2 = arith.cmpi ne, %1, %c0_i32_0 : i32
    scf.if %2 {
      %cst_15 = arith.constant 0.000000e+00 : f32
      %19 = vector.broadcast %cst_15 : f32 to vector<8x1024xf32>
      %c0_16 = arith.constant 0 : index
      %c0_17 = arith.constant 0 : index
      %20 = vector.load %arg9[%c0_16, %c0_17] : memref<8x1024xf32, #tpu.memory_space<vmem>>, vector<8x1024xf32>
      tpu.vector_store %arg9[%c0_16, %c0_17], %19 {strides = array<i32>} : memref<8x1024xf32, #tpu.memory_space<vmem>>, vector<8x1024xf32>,
    } else {
    }
    %c0 = arith.constant 0 : index
    %c0_1 = arith.constant 0 : index
    %3 = vector.load %arg9[%c0, %c0_1] : memref<8x1024xf32, #tpu.memory_space<vmem>>, vector<8x1024xf32>
    %c0_2 = arith.constant 0 : index
    %c0_3 = arith.constant 0 : index
    %c0_4 = arith.constant 0 : index
    %4 = vector.load %arg4[%c0_2, %c0_3, %c0_4] : memref<1x8x128xbf16, #tpu.memory_space<vmem>>, vector<1x8x128xbf16>
    %5 = vector.shape_cast %4 : vector<1x8x128xbf16> to vector<8x128xbf16>
    %c0_5 = arith.constant 0 : index
    %c0_6 = arith.constant 0 : index
    %c0_7 = arith.constant 0 : index
    %6 = vector.load %arg5[%c0_5, %c0_6, %c0_7] : memref<1x128x1024xbf16, #tpu.memory_space<vmem>>, vector<1x128x1024xbf16>
    %7 = vector.shape_cast %6 : vector<1x128x1024xbf16> to vector<128x1024xbf16>
    %cst = arith.constant dense<0.000000e+00> : vector<8x1024xf32>
    %8 = tpu.matmul %5, %7, %cst {dimension_numbers = #tpu.dot_dimension_numbers<[1], [0], [0], [1], [0, 0, 1, 1], [], []>} : vector<8x128xbf16>, vector<128x1024xbf16>, vector<8x1024xf32> -> vector<8x1024xf32>
    %9 = arith.addf %3, %8 : vector<8x1024xf32>
    %c0_8 = arith.constant 0 : index
    %c0_9 = arith.constant 0 : index
    %10 = vector.load %arg9[%c0_8, %c0_9] : memref<8x1024xf32, #tpu.memory_space<vmem>>, vector<8x1024xf32>
    tpu.vector_store %arg9[%c0_8, %c0_9], %9 {strides = array<i32>} : memref<8x1024xf32, #tpu.memory_space<vmem>>, vector<8x1024xf32>,
    %c0_i32_10 = arith.constant 0 : i32
    %11 = arith.cmpi eq, %arg2, %c0_i32_10 : i32
    %c0_i32_11 = arith.constant 0 : i32
    %12 = arith.cmpi eq, %arg3, %c0_i32_11 : i32
    %13 = arith.andi %11, %12 : i1
    %14 = arith.extui %13 : i1 to i32
    %c0_i32_12 = arith.constant 0 : i32
    %15 = arith.cmpi ne, %14, %c0_i32_12 : i32
    scf.if %15 {
      %cst_15 = arith.constant 0.000000e+00 : f32
      %19 = vector.broadcast %cst_15 : f32 to vector<1x1x1024xf32>
      %c0_16 = arith.constant 0 : index
      %c0_17 = arith.constant 0 : index
      %c0_18 = arith.constant 0 : index
      %20 = vector.load %arg7[%c0_16, %c0_17, %c0_18] : memref<1x1x1024xf32, #tpu.memory_space<vmem>>, vector<1x1x1024xf32>
      tpu.vector_store %arg7[%c0_16, %c0_17, %c0_18], %19 {strides = array<i32>} : memref<1x1x1024xf32, #tpu.memory_space<vmem>>, vector<1x1x1024xf32>,
      %cst_19 = arith.constant 0.000000e+00 : f32
      %21 = vector.broadcast %cst_19 : f32 to vector<1x1x1024xf32>
      %c0_20 = arith.constant 0 : index
      %c0_21 = arith.constant 0 : index
      %c0_22 = arith.constant 0 : index
      %22 = vector.load %arg8[%c0_20, %c0_21, %c0_22] : memref<1x1x1024xf32, #tpu.memory_space<vmem>>, vector<1x1x1024xf32>
      tpu.vector_store %arg8[%c0_20, %c0_21, %c0_22], %21 {strides = array<i32>} : memref<1x1x1024xf32, #tpu.memory_space<vmem>>, vector<1x1x1024xf32>,
    } else {
    }
    %c0_i32_13 = arith.constant 0 : i32
    %16 = arith.cmpi eq, %arg3, %c0_i32_13 : i32
    %17 = arith.extui %16 : i1 to i32
    %c0_i32_14 = arith.constant 0 : i32
    %18 = arith.cmpi ne, %17, %c0_i32_14 : i32
    scf.if %18 {
      %c0_15 = arith.constant 0 : index
      %c0_16 = arith.constant 0 : index
      %19 = vector.load %arg9[%c0_15, %c0_16] : memref<8x1024xf32, #tpu.memory_space<vmem>>, vector<8x1024xf32>
      %20 = arith.truncf %19 : vector<8x1024xf32> to vector<8x1024xbf16>
      %c0_17 = arith.constant 0 : index
      %c0_18 = arith.constant 0 : index
      %c0_19 = arith.constant 0 : index
      %21 = vector.load %arg6[%c0_17, %c0_18, %c0_19] : memref<1x8x1024xbf16, #tpu.memory_space<vmem>>, vector<1x8x1024xbf16>
      %22 = vector.shape_cast %21 : vector<1x8x1024xbf16> to vector<8x1024xbf16>
      %23 = vector.shape_cast %20 : vector<8x1024xbf16> to vector<1x8x1024xbf16>
      tpu.vector_store %arg6[%c0_17, %c0_18, %c0_19], %23 {strides = array<i32>} : memref<1x8x1024xbf16, #tpu.memory_space<vmem>>, vector<1x8x1024xbf16>,
      %c0_20 = arith.constant 0 : index
      %c0_21 = arith.constant 0 : index
      %c0_22 = arith.constant 0 : index
      %24 = vector.load %arg7[%c0_20, %c0_21, %c0_22] : memref<1x1x1024xf32, #tpu.memory_space<vmem>>, vector<1x1x1024xf32>
      %25 = vector.shape_cast %24 : vector<1x1x1024xf32> to vector<1x1024xf32>
      %cst_23 = arith.constant dense<0.000000e+00> : vector<1024xf32>
      %26 = vector.multi_reduction <add>, %19, %cst_23 [0] : vector<8x1024xf32> to vector<1024xf32>
      %27 = vector.shape_cast %26 : vector<1024xf32> to vector<1x1024xf32>
      %28 = arith.addf %25, %27 : vector<1x1024xf32>
      %c0_24 = arith.constant 0 : index
      %c0_25 = arith.constant 0 : index
      %c0_26 = arith.constant 0 : index
      %29 = vector.load %arg7[%c0_24, %c0_25, %c0_26] : memref<1x1x1024xf32, #tpu.memory_space<vmem>>, vector<1x1x1024xf32>
      %30 = vector.shape_cast %29 : vector<1x1x1024xf32> to vector<1x1024xf32>
      %31 = vector.shape_cast %28 : vector<1x1024xf32> to vector<1x1x1024xf32>
      tpu.vector_store %arg7[%c0_24, %c0_25, %c0_26], %31 {strides = array<i32>} : memref<1x1x1024xf32, #tpu.memory_space<vmem>>, vector<1x1x1024xf32>,
      %c0_27 = arith.constant 0 : index
      %c0_28 = arith.constant 0 : index
      %c0_29 = arith.constant 0 : index
      %32 = vector.load %arg8[%c0_27, %c0_28, %c0_29] : memref<1x1x1024xf32, #tpu.memory_space<vmem>>, vector<1x1x1024xf32>
      %33 = vector.shape_cast %32 : vector<1x1x1024xf32> to vector<1x1024xf32>
      %34 = arith.mulf %19, %19 : vector<8x1024xf32>
      %cst_30 = arith.constant dense<0.000000e+00> : vector<1024xf32>
      %35 = vector.multi_reduction <add>, %34, %cst_30 [0] : vector<8x1024xf32> to vector<1024xf32>
      %36 = vector.shape_cast %35 : vector<1024xf32> to vector<1x1024xf32>
      %37 = arith.addf %33, %36 : vector<1x1024xf32>
      %c0_31 = arith.constant 0 : index
      %c0_32 = arith.constant 0 : index
      %c0_33 = arith.constant 0 : index
      %38 = vector.load %arg8[%c0_31, %c0_32, %c0_33] : memref<1x1x1024xf32, #tpu.memory_space<vmem>>, vector<1x1x1024xf32>
      %39 = vector.shape_cast %38 : vector<1x1x1024xf32> to vector<1x1024xf32>
      %40 = vector.shape_cast %37 : vector<1x1024xf32> to vector<1x1x1024xf32>
      tpu.vector_store %arg8[%c0_31, %c0_32, %c0_33], %40 {strides = array<i32>} : memref<1x1x1024xf32, #tpu.memory_space<vmem>>, vector<1x1x1024xf32>,
    } else {
    }
    return
  }
  func.func @transform_0(%arg0: i32, %arg1: i32, %arg2: i32, %arg3: i32) -> (i32, i32, i32) {
    %c0_i32 = arith.constant 0 : i32
    return %arg0, %arg2, %arg3 : i32, i32, i32
  }
  func.func @transform_1(%arg0: i32, %arg1: i32, %arg2: i32, %arg3: i32) -> (i32, i32, i32) {
    %c0_i32 = arith.constant 0 : i32
    return %arg0, %arg3, %arg1 : i32, i32, i32
  }
  func.func @transform_2(%arg0: i32, %arg1: i32, %arg2: i32, %arg3: i32) -> (i32, i32, i32) {
    %c0_i32 = arith.constant 0 : i32
    return %arg0, %arg2, %arg1 : i32, i32, i32
  }
  func.func @transform_3(%arg0: i32, %arg1: i32, %arg2: i32, %arg3: i32) -> (i32, i32, i32) {
    %c0_i32 = arith.constant 0 : i32
    %c0_i32_0 = arith.constant 0 : i32
    return %arg0, %c0_i32, %arg1 : i32, i32, i32
  }
  func.func @transform_4(%arg0: i32, %arg1: i32, %arg2: i32, %arg3: i32) -> (i32, i32, i32) {
    %c0_i32 = arith.constant 0 : i32
    %c0_i32_0 = arith.constant 0 : i32
    return %arg0, %c0_i32, %arg1 : i32, i32, i32
  }
}

module attributes {stable_mosaic.version = 11 : i64} {
  func.func @_affine_relu_kernel(%arg0: i32, %arg1: memref<32x512xbf16, #tpu.memory_space<vmem>>, %arg2: memref<1x512xf32, #tpu.memory_space<vmem>>, %arg3: memref<1x512xf32, #tpu.memory_space<vmem>>, %arg4: memref<32x512xbf16, #tpu.memory_space<vmem>>) attributes {dimension_semantics = [#tpu.dimension_semantics<parallel>], iteration_bounds = array<i64: 1>, scalar_prefetch = 0 : i64, scratch_operands = 0 : i64, tpu.core_type = #tpu.core_type<tc>, window_params = [{transform_indices = @transform_0, window_bounds = array<i64: 32, 512>}, {pipeline_mode = #tpu.pipeline_mode<synchronous>, transform_indices = @transform_1, window_bounds = array<i64: 1, 512>}, {pipeline_mode = #tpu.pipeline_mode<synchronous>, transform_indices = @transform_2, window_bounds = array<i64: 1, 512>}, {transform_indices = @transform_3, window_bounds = array<i64: 32, 512>}]} {
    %c0 = arith.constant 0 : index
    %c0_0 = arith.constant 0 : index
    %0 = vector.load %arg1[%c0, %c0_0] : memref<32x512xbf16, #tpu.memory_space<vmem>>, vector<32x512xbf16>
    %1 = arith.extf %0 : vector<32x512xbf16> to vector<32x512xf32>
    %c0_1 = arith.constant 0 : index
    %c0_2 = arith.constant 0 : index
    %2 = vector.load %arg2[%c0_1, %c0_2] : memref<1x512xf32, #tpu.memory_space<vmem>>, vector<1x512xf32>
    %3 = vector.broadcast %2 : vector<1x512xf32> to vector<32x512xf32>
    %4 = arith.mulf %1, %3 : vector<32x512xf32>
    %c0_3 = arith.constant 0 : index
    %c0_4 = arith.constant 0 : index
    %5 = vector.load %arg3[%c0_3, %c0_4] : memref<1x512xf32, #tpu.memory_space<vmem>>, vector<1x512xf32>
    %6 = vector.broadcast %5 : vector<1x512xf32> to vector<32x512xf32>
    %7 = arith.addf %4, %6 : vector<32x512xf32>
    %cst = arith.constant 0.000000e+00 : f32
    %8 = vector.broadcast %cst : f32 to vector<32x512xf32>
    %9 = arith.maximumf %7, %8 : vector<32x512xf32>
    %10 = arith.truncf %9 : vector<32x512xf32> to vector<32x512xbf16>
    %c0_5 = arith.constant 0 : index
    %c0_6 = arith.constant 0 : index
    %11 = vector.load %arg4[%c0_5, %c0_6] : memref<32x512xbf16, #tpu.memory_space<vmem>>, vector<32x512xbf16>
    tpu.vector_store %arg4[%c0_5, %c0_6], %10 {strides = array<i32>} : memref<32x512xbf16, #tpu.memory_space<vmem>>, vector<32x512xbf16>,
    return
  }
  func.func @transform_0(%arg0: i32) -> (i32, i32) {
    %c0_i32 = arith.constant 0 : i32
    %c0_i32_0 = arith.constant 0 : i32
    return %arg0, %c0_i32 : i32, i32
  }
  func.func @transform_1(%arg0: i32) -> (i32, i32) {
    %c0_i32 = arith.constant 0 : i32
    %c0_i32_0 = arith.constant 0 : i32
    %c0_i32_1 = arith.constant 0 : i32
    return %c0_i32, %c0_i32_0 : i32, i32
  }
  func.func @transform_2(%arg0: i32) -> (i32, i32) {
    %c0_i32 = arith.constant 0 : i32
    %c0_i32_0 = arith.constant 0 : i32
    %c0_i32_1 = arith.constant 0 : i32
    return %c0_i32, %c0_i32_0 : i32, i32
  }
  func.func @transform_3(%arg0: i32) -> (i32, i32) {
    %c0_i32 = arith.constant 0 : i32
    %c0_i32_0 = arith.constant 0 : i32
    return %arg0, %c0_i32 : i32, i32
  }
}

module attributes {stable_mosaic.version = 11 : i64} {
  func.func @_bmm_kernel(%arg0: i32, %arg1: i32, %arg2: i32, %arg3: i32, %arg4: memref<1x32x2048xbf16, #tpu.memory_space<vmem>>, %arg5: memref<1x2048x256xbf16, #tpu.memory_space<vmem>>, %arg6: memref<1x32x256xbf16, #tpu.memory_space<vmem>>, %arg7: memref<1x1x256xf32, #tpu.memory_space<vmem>>, %arg8: memref<1x1x256xf32, #tpu.memory_space<vmem>>, %arg9: memref<32x256xf32, #tpu.memory_space<vmem>>) attributes {dimension_semantics = [#tpu.dimension_semantics<parallel>, #tpu.dimension_semantics<parallel>, #tpu.dimension_semantics<arbitrary>, #tpu.dimension_semantics<arbitrary>], iteration_bounds = array<i64: 4, 1, 1, 1>, scalar_prefetch = 0 : i64, scratch_operands = 1 : i64, tpu.core_type = #tpu.core_type<tc>, window_params = [{transform_indices = @transform_0, window_bounds = array<i64: 1, 32, 2048>}, {transform_indices = @transform_1, window_bounds = array<i64: 1, 2048, 256>}, {transform_indices = @transform_2, window_bounds = array<i64: 1, 32, 256>}, {transform_indices = @transform_3, window_bounds = array<i64: 1, 1, 256>}, {transform_indices = @transform_4, window_bounds = array<i64: 1, 1, 256>}]} {
    %c0_i32 = arith.constant 0 : i32
    %0 = arith.cmpi eq, %arg3, %c0_i32 : i32
    %1 = arith.extui %0 : i1 to i32
    %c0_i32_0 = arith.constant 0 : i32
    %2 = arith.cmpi ne, %1, %c0_i32_0 : i32
    scf.if %2 {
      %cst_15 = arith.constant 0.000000e+00 : f32
      %19 = vector.broadcast %cst_15 : f32 to vector<32x256xf32>
      %c0_16 = arith.constant 0 : index
      %c0_17 = arith.constant 0 : index
      %20 = vector.load %arg9[%c0_16, %c0_17] : memref<32x256xf32, #tpu.memory_space<vmem>>, vector<32x256xf32>
      tpu.vector_store %arg9[%c0_16, %c0_17], %19 {strides = array<i32>} : memref<32x256xf32, #tpu.memory_space<vmem>>, vector<32x256xf32>,
    } else {
    }
    %c0 = arith.constant 0 : index
    %c0_1 = arith.constant 0 : index
    %3 = vector.load %arg9[%c0, %c0_1] : memref<32x256xf32, #tpu.memory_space<vmem>>, vector<32x256xf32>
    %c0_2 = arith.constant 0 : index
    %c0_3 = arith.constant 0 : index
    %c0_4 = arith.constant 0 : index
    %4 = vector.load %arg4[%c0_2, %c0_3, %c0_4] : memref<1x32x2048xbf16, #tpu.memory_space<vmem>>, vector<1x32x2048xbf16>
    %5 = vector.shape_cast %4 : vector<1x32x2048xbf16> to vector<32x2048xbf16>
    %c0_5 = arith.constant 0 : index
    %c0_6 = arith.constant 0 : index
    %c0_7 = arith.constant 0 : index
    %6 = vector.load %arg5[%c0_5, %c0_6, %c0_7] : memref<1x2048x256xbf16, #tpu.memory_space<vmem>>, vector<1x2048x256xbf16>
    %7 = vector.shape_cast %6 : vector<1x2048x256xbf16> to vector<2048x256xbf16>
    %cst = arith.constant dense<0.000000e+00> : vector<32x256xf32>
    %8 = tpu.matmul %5, %7, %cst {dimension_numbers = #tpu.dot_dimension_numbers<[1], [0], [0], [1], [0, 0, 1, 1], [], []>} : vector<32x2048xbf16>, vector<2048x256xbf16>, vector<32x256xf32> -> vector<32x256xf32>
    %9 = arith.addf %3, %8 : vector<32x256xf32>
    %c0_8 = arith.constant 0 : index
    %c0_9 = arith.constant 0 : index
    %10 = vector.load %arg9[%c0_8, %c0_9] : memref<32x256xf32, #tpu.memory_space<vmem>>, vector<32x256xf32>
    tpu.vector_store %arg9[%c0_8, %c0_9], %9 {strides = array<i32>} : memref<32x256xf32, #tpu.memory_space<vmem>>, vector<32x256xf32>,
    %c0_i32_10 = arith.constant 0 : i32
    %11 = arith.cmpi eq, %arg2, %c0_i32_10 : i32
    %c0_i32_11 = arith.constant 0 : i32
    %12 = arith.cmpi eq, %arg3, %c0_i32_11 : i32
    %13 = arith.andi %11, %12 : i1
    %14 = arith.extui %13 : i1 to i32
    %c0_i32_12 = arith.constant 0 : i32
    %15 = arith.cmpi ne, %14, %c0_i32_12 : i32
    scf.if %15 {
      %cst_15 = arith.constant 0.000000e+00 : f32
      %19 = vector.broadcast %cst_15 : f32 to vector<1x1x256xf32>
      %c0_16 = arith.constant 0 : index
      %c0_17 = arith.constant 0 : index
      %c0_18 = arith.constant 0 : index
      %20 = vector.load %arg7[%c0_16, %c0_17, %c0_18] : memref<1x1x256xf32, #tpu.memory_space<vmem>>, vector<1x1x256xf32>
      tpu.vector_store %arg7[%c0_16, %c0_17, %c0_18], %19 {strides = array<i32>} : memref<1x1x256xf32, #tpu.memory_space<vmem>>, vector<1x1x256xf32>,
      %cst_19 = arith.constant 0.000000e+00 : f32
      %21 = vector.broadcast %cst_19 : f32 to vector<1x1x256xf32>
      %c0_20 = arith.constant 0 : index
      %c0_21 = arith.constant 0 : index
      %c0_22 = arith.constant 0 : index
      %22 = vector.load %arg8[%c0_20, %c0_21, %c0_22] : memref<1x1x256xf32, #tpu.memory_space<vmem>>, vector<1x1x256xf32>
      tpu.vector_store %arg8[%c0_20, %c0_21, %c0_22], %21 {strides = array<i32>} : memref<1x1x256xf32, #tpu.memory_space<vmem>>, vector<1x1x256xf32>,
    } else {
    }
    %c0_i32_13 = arith.constant 0 : i32
    %16 = arith.cmpi eq, %arg3, %c0_i32_13 : i32
    %17 = arith.extui %16 : i1 to i32
    %c0_i32_14 = arith.constant 0 : i32
    %18 = arith.cmpi ne, %17, %c0_i32_14 : i32
    scf.if %18 {
      %c0_15 = arith.constant 0 : index
      %c0_16 = arith.constant 0 : index
      %19 = vector.load %arg9[%c0_15, %c0_16] : memref<32x256xf32, #tpu.memory_space<vmem>>, vector<32x256xf32>
      %20 = arith.truncf %19 : vector<32x256xf32> to vector<32x256xbf16>
      %c0_17 = arith.constant 0 : index
      %c0_18 = arith.constant 0 : index
      %c0_19 = arith.constant 0 : index
      %21 = vector.load %arg6[%c0_17, %c0_18, %c0_19] : memref<1x32x256xbf16, #tpu.memory_space<vmem>>, vector<1x32x256xbf16>
      %22 = vector.shape_cast %21 : vector<1x32x256xbf16> to vector<32x256xbf16>
      %23 = vector.shape_cast %20 : vector<32x256xbf16> to vector<1x32x256xbf16>
      tpu.vector_store %arg6[%c0_17, %c0_18, %c0_19], %23 {strides = array<i32>} : memref<1x32x256xbf16, #tpu.memory_space<vmem>>, vector<1x32x256xbf16>,
      %c0_20 = arith.constant 0 : index
      %c0_21 = arith.constant 0 : index
      %c0_22 = arith.constant 0 : index
      %24 = vector.load %arg7[%c0_20, %c0_21, %c0_22] : memref<1x1x256xf32, #tpu.memory_space<vmem>>, vector<1x1x256xf32>
      %25 = vector.shape_cast %24 : vector<1x1x256xf32> to vector<1x256xf32>
      %cst_23 = arith.constant dense<0.000000e+00> : vector<256xf32>
      %26 = vector.multi_reduction <add>, %19, %cst_23 [0] : vector<32x256xf32> to vector<256xf32>
      %27 = vector.shape_cast %26 : vector<256xf32> to vector<1x256xf32>
      %28 = arith.addf %25, %27 : vector<1x256xf32>
      %c0_24 = arith.constant 0 : index
      %c0_25 = arith.constant 0 : index
      %c0_26 = arith.constant 0 : index
      %29 = vector.load %arg7[%c0_24, %c0_25, %c0_26] : memref<1x1x256xf32, #tpu.memory_space<vmem>>, vector<1x1x256xf32>
      %30 = vector.shape_cast %29 : vector<1x1x256xf32> to vector<1x256xf32>
      %31 = vector.shape_cast %28 : vector<1x256xf32> to vector<1x1x256xf32>
      tpu.vector_store %arg7[%c0_24, %c0_25, %c0_26], %31 {strides = array<i32>} : memref<1x1x256xf32, #tpu.memory_space<vmem>>, vector<1x1x256xf32>,
      %c0_27 = arith.constant 0 : index
      %c0_28 = arith.constant 0 : index
      %c0_29 = arith.constant 0 : index
      %32 = vector.load %arg8[%c0_27, %c0_28, %c0_29] : memref<1x1x256xf32, #tpu.memory_space<vmem>>, vector<1x1x256xf32>
      %33 = vector.shape_cast %32 : vector<1x1x256xf32> to vector<1x256xf32>
      %34 = arith.mulf %19, %19 : vector<32x256xf32>
      %cst_30 = arith.constant dense<0.000000e+00> : vector<256xf32>
      %35 = vector.multi_reduction <add>, %34, %cst_30 [0] : vector<32x256xf32> to vector<256xf32>
      %36 = vector.shape_cast %35 : vector<256xf32> to vector<1x256xf32>
      %37 = arith.addf %33, %36 : vector<1x256xf32>
      %c0_31 = arith.constant 0 : index
      %c0_32 = arith.constant 0 : index
      %c0_33 = arith.constant 0 : index
      %38 = vector.load %arg8[%c0_31, %c0_32, %c0_33] : memref<1x1x256xf32, #tpu.memory_space<vmem>>, vector<1x1x256xf32>
      %39 = vector.shape_cast %38 : vector<1x1x256xf32> to vector<1x256xf32>
      %40 = vector.shape_cast %37 : vector<1x256xf32> to vector<1x1x256xf32>
      tpu.vector_store %arg8[%c0_31, %c0_32, %c0_33], %40 {strides = array<i32>} : memref<1x1x256xf32, #tpu.memory_space<vmem>>, vector<1x1x256xf32>,
    } else {
    }
    return
  }
  func.func @transform_0(%arg0: i32, %arg1: i32, %arg2: i32, %arg3: i32) -> (i32, i32, i32) {
    %c0_i32 = arith.constant 0 : i32
    return %arg0, %arg2, %arg3 : i32, i32, i32
  }
  func.func @transform_1(%arg0: i32, %arg1: i32, %arg2: i32, %arg3: i32) -> (i32, i32, i32) {
    %c0_i32 = arith.constant 0 : i32
    return %arg0, %arg3, %arg1 : i32, i32, i32
  }
  func.func @transform_2(%arg0: i32, %arg1: i32, %arg2: i32, %arg3: i32) -> (i32, i32, i32) {
    %c0_i32 = arith.constant 0 : i32
    return %arg0, %arg2, %arg1 : i32, i32, i32
  }
  func.func @transform_3(%arg0: i32, %arg1: i32, %arg2: i32, %arg3: i32) -> (i32, i32, i32) {
    %c0_i32 = arith.constant 0 : i32
    %c0_i32_0 = arith.constant 0 : i32
    return %arg0, %c0_i32, %arg1 : i32, i32, i32
  }
  func.func @transform_4(%arg0: i32, %arg1: i32, %arg2: i32, %arg3: i32) -> (i32, i32, i32) {
    %c0_i32 = arith.constant 0 : i32
    %c0_i32_0 = arith.constant 0 : i32
    return %arg0, %c0_i32, %arg1 : i32, i32, i32
  }
}

module attributes {stable_mosaic.version = 11 : i64} {
  func.func @_affine_relu_kernel(%arg0: i32, %arg1: memref<128x256xbf16, #tpu.memory_space<vmem>>, %arg2: memref<1x256xf32, #tpu.memory_space<vmem>>, %arg3: memref<1x256xf32, #tpu.memory_space<vmem>>, %arg4: memref<128x256xbf16, #tpu.memory_space<vmem>>) attributes {dimension_semantics = [#tpu.dimension_semantics<parallel>], iteration_bounds = array<i64: 1>, scalar_prefetch = 0 : i64, scratch_operands = 0 : i64, tpu.core_type = #tpu.core_type<tc>, window_params = [{transform_indices = @transform_0, window_bounds = array<i64: 128, 256>}, {pipeline_mode = #tpu.pipeline_mode<synchronous>, transform_indices = @transform_1, window_bounds = array<i64: 1, 256>}, {pipeline_mode = #tpu.pipeline_mode<synchronous>, transform_indices = @transform_2, window_bounds = array<i64: 1, 256>}, {transform_indices = @transform_3, window_bounds = array<i64: 128, 256>}]} {
    %c0 = arith.constant 0 : index
    %c0_0 = arith.constant 0 : index
    %0 = vector.load %arg1[%c0, %c0_0] : memref<128x256xbf16, #tpu.memory_space<vmem>>, vector<128x256xbf16>
    %1 = arith.extf %0 : vector<128x256xbf16> to vector<128x256xf32>
    %c0_1 = arith.constant 0 : index
    %c0_2 = arith.constant 0 : index
    %2 = vector.load %arg2[%c0_1, %c0_2] : memref<1x256xf32, #tpu.memory_space<vmem>>, vector<1x256xf32>
    %3 = vector.broadcast %2 : vector<1x256xf32> to vector<128x256xf32>
    %4 = arith.mulf %1, %3 : vector<128x256xf32>
    %c0_3 = arith.constant 0 : index
    %c0_4 = arith.constant 0 : index
    %5 = vector.load %arg3[%c0_3, %c0_4] : memref<1x256xf32, #tpu.memory_space<vmem>>, vector<1x256xf32>
    %6 = vector.broadcast %5 : vector<1x256xf32> to vector<128x256xf32>
    %7 = arith.addf %4, %6 : vector<128x256xf32>
    %cst = arith.constant 0.000000e+00 : f32
    %8 = vector.broadcast %cst : f32 to vector<128x256xf32>
    %9 = arith.maximumf %7, %8 : vector<128x256xf32>
    %10 = arith.truncf %9 : vector<128x256xf32> to vector<128x256xbf16>
    %c0_5 = arith.constant 0 : index
    %c0_6 = arith.constant 0 : index
    %11 = vector.load %arg4[%c0_5, %c0_6] : memref<128x256xbf16, #tpu.memory_space<vmem>>, vector<128x256xbf16>
    tpu.vector_store %arg4[%c0_5, %c0_6], %10 {strides = array<i32>} : memref<128x256xbf16, #tpu.memory_space<vmem>>, vector<128x256xbf16>,
    return
  }
  func.func @transform_0(%arg0: i32) -> (i32, i32) {
    %c0_i32 = arith.constant 0 : i32
    %c0_i32_0 = arith.constant 0 : i32
    return %arg0, %c0_i32 : i32, i32
  }
  func.func @transform_1(%arg0: i32) -> (i32, i32) {
    %c0_i32 = arith.constant 0 : i32
    %c0_i32_0 = arith.constant 0 : i32
    %c0_i32_1 = arith.constant 0 : i32
    return %c0_i32, %c0_i32_0 : i32, i32
  }
  func.func @transform_2(%arg0: i32) -> (i32, i32) {
    %c0_i32 = arith.constant 0 : i32
    %c0_i32_0 = arith.constant 0 : i32
    %c0_i32_1 = arith.constant 0 : i32
    return %c0_i32, %c0_i32_0 : i32, i32
  }
  func.func @transform_3(%arg0: i32) -> (i32, i32) {
    %c0_i32 = arith.constant 0 : i32
    %c0_i32_0 = arith.constant 0 : i32
    return %arg0, %c0_i32 : i32, i32
  }
}

module attributes {stable_mosaic.version = 11 : i64} {
  func.func @_affine_relu_kernel(%arg0: i32, %arg1: memref<512x128xbf16, #tpu.memory_space<vmem>>, %arg2: memref<1x128xf32, #tpu.memory_space<vmem>>, %arg3: memref<1x128xf32, #tpu.memory_space<vmem>>, %arg4: memref<512x128xbf16, #tpu.memory_space<vmem>>) attributes {dimension_semantics = [#tpu.dimension_semantics<parallel>], iteration_bounds = array<i64: 1>, scalar_prefetch = 0 : i64, scratch_operands = 0 : i64, tpu.core_type = #tpu.core_type<tc>, window_params = [{transform_indices = @transform_0, window_bounds = array<i64: 512, 128>}, {pipeline_mode = #tpu.pipeline_mode<synchronous>, transform_indices = @transform_1, window_bounds = array<i64: 1, 128>}, {pipeline_mode = #tpu.pipeline_mode<synchronous>, transform_indices = @transform_2, window_bounds = array<i64: 1, 128>}, {transform_indices = @transform_3, window_bounds = array<i64: 512, 128>}]} {
    %c0 = arith.constant 0 : index
    %c0_0 = arith.constant 0 : index
    %0 = vector.load %arg1[%c0, %c0_0] : memref<512x128xbf16, #tpu.memory_space<vmem>>, vector<512x128xbf16>
    %1 = arith.extf %0 : vector<512x128xbf16> to vector<512x128xf32>
    %c0_1 = arith.constant 0 : index
    %c0_2 = arith.constant 0 : index
    %2 = vector.load %arg2[%c0_1, %c0_2] : memref<1x128xf32, #tpu.memory_space<vmem>>, vector<1x128xf32>
    %3 = vector.broadcast %2 : vector<1x128xf32> to vector<512x128xf32>
    %4 = arith.mulf %1, %3 : vector<512x128xf32>
    %c0_3 = arith.constant 0 : index
    %c0_4 = arith.constant 0 : index
    %5 = vector.load %arg3[%c0_3, %c0_4] : memref<1x128xf32, #tpu.memory_space<vmem>>, vector<1x128xf32>
    %6 = vector.broadcast %5 : vector<1x128xf32> to vector<512x128xf32>
    %7 = arith.addf %4, %6 : vector<512x128xf32>
    %cst = arith.constant 0.000000e+00 : f32
    %8 = vector.broadcast %cst : f32 to vector<512x128xf32>
    %9 = arith.maximumf %7, %8 : vector<512x128xf32>
    %10 = arith.truncf %9 : vector<512x128xf32> to vector<512x128xbf16>
    %c0_5 = arith.constant 0 : index
    %c0_6 = arith.constant 0 : index
    %11 = vector.load %arg4[%c0_5, %c0_6] : memref<512x128xbf16, #tpu.memory_space<vmem>>, vector<512x128xbf16>
    tpu.vector_store %arg4[%c0_5, %c0_6], %10 {strides = array<i32>} : memref<512x128xbf16, #tpu.memory_space<vmem>>, vector<512x128xbf16>,
    return
  }
  func.func @transform_0(%arg0: i32) -> (i32, i32) {
    %c0_i32 = arith.constant 0 : i32
    %c0_i32_0 = arith.constant 0 : i32
    return %arg0, %c0_i32 : i32, i32
  }
  func.func @transform_1(%arg0: i32) -> (i32, i32) {
    %c0_i32 = arith.constant 0 : i32
    %c0_i32_0 = arith.constant 0 : i32
    %c0_i32_1 = arith.constant 0 : i32
    return %c0_i32, %c0_i32_0 : i32, i32
  }
  func.func @transform_2(%arg0: i32) -> (i32, i32) {
    %c0_i32 = arith.constant 0 : i32
    %c0_i32_0 = arith.constant 0 : i32
    %c0_i32_1 = arith.constant 0 : i32
    return %c0_i32, %c0_i32_0 : i32, i32
  }
  func.func @transform_3(%arg0: i32) -> (i32, i32) {
    %c0_i32 = arith.constant 0 : i32
    %c0_i32_0 = arith.constant 0 : i32
    return %arg0, %c0_i32 : i32, i32
  }
}

module attributes {stable_mosaic.version = 11 : i64} {
  func.func @_bmm_kernel(%arg0: i32, %arg1: i32, %arg2: i32, %arg3: i32, %arg4: memref<1x128x1024xbf16, #tpu.memory_space<vmem>>, %arg5: memref<1x1024x128xbf16, #tpu.memory_space<vmem>>, %arg6: memref<1x128x128xbf16, #tpu.memory_space<vmem>>, %arg7: memref<1x1x128xf32, #tpu.memory_space<vmem>>, %arg8: memref<1x1x128xf32, #tpu.memory_space<vmem>>, %arg9: memref<128x128xf32, #tpu.memory_space<vmem>>) attributes {dimension_semantics = [#tpu.dimension_semantics<parallel>, #tpu.dimension_semantics<parallel>, #tpu.dimension_semantics<arbitrary>, #tpu.dimension_semantics<arbitrary>], iteration_bounds = array<i64: 4, 1, 1, 1>, scalar_prefetch = 0 : i64, scratch_operands = 1 : i64, tpu.core_type = #tpu.core_type<tc>, window_params = [{transform_indices = @transform_0, window_bounds = array<i64: 1, 128, 1024>}, {transform_indices = @transform_1, window_bounds = array<i64: 1, 1024, 128>}, {transform_indices = @transform_2, window_bounds = array<i64: 1, 128, 128>}, {transform_indices = @transform_3, window_bounds = array<i64: 1, 1, 128>}, {transform_indices = @transform_4, window_bounds = array<i64: 1, 1, 128>}]} {
    %c0_i32 = arith.constant 0 : i32
    %0 = arith.cmpi eq, %arg3, %c0_i32 : i32
    %1 = arith.extui %0 : i1 to i32
    %c0_i32_0 = arith.constant 0 : i32
    %2 = arith.cmpi ne, %1, %c0_i32_0 : i32
    scf.if %2 {
      %cst_15 = arith.constant 0.000000e+00 : f32
      %19 = vector.broadcast %cst_15 : f32 to vector<128x128xf32>
      %c0_16 = arith.constant 0 : index
      %c0_17 = arith.constant 0 : index
      %20 = vector.load %arg9[%c0_16, %c0_17] : memref<128x128xf32, #tpu.memory_space<vmem>>, vector<128x128xf32>
      tpu.vector_store %arg9[%c0_16, %c0_17], %19 {strides = array<i32>} : memref<128x128xf32, #tpu.memory_space<vmem>>, vector<128x128xf32>,
    } else {
    }
    %c0 = arith.constant 0 : index
    %c0_1 = arith.constant 0 : index
    %3 = vector.load %arg9[%c0, %c0_1] : memref<128x128xf32, #tpu.memory_space<vmem>>, vector<128x128xf32>
    %c0_2 = arith.constant 0 : index
    %c0_3 = arith.constant 0 : index
    %c0_4 = arith.constant 0 : index
    %4 = vector.load %arg4[%c0_2, %c0_3, %c0_4] : memref<1x128x1024xbf16, #tpu.memory_space<vmem>>, vector<1x128x1024xbf16>
    %5 = vector.shape_cast %4 : vector<1x128x1024xbf16> to vector<128x1024xbf16>
    %c0_5 = arith.constant 0 : index
    %c0_6 = arith.constant 0 : index
    %c0_7 = arith.constant 0 : index
    %6 = vector.load %arg5[%c0_5, %c0_6, %c0_7] : memref<1x1024x128xbf16, #tpu.memory_space<vmem>>, vector<1x1024x128xbf16>
    %7 = vector.shape_cast %6 : vector<1x1024x128xbf16> to vector<1024x128xbf16>
    %cst = arith.constant dense<0.000000e+00> : vector<128x128xf32>
    %8 = tpu.matmul %5, %7, %cst {dimension_numbers = #tpu.dot_dimension_numbers<[1], [0], [0], [1], [0, 0, 1, 1], [], []>} : vector<128x1024xbf16>, vector<1024x128xbf16>, vector<128x128xf32> -> vector<128x128xf32>
    %9 = arith.addf %3, %8 : vector<128x128xf32>
    %c0_8 = arith.constant 0 : index
    %c0_9 = arith.constant 0 : index
    %10 = vector.load %arg9[%c0_8, %c0_9] : memref<128x128xf32, #tpu.memory_space<vmem>>, vector<128x128xf32>
    tpu.vector_store %arg9[%c0_8, %c0_9], %9 {strides = array<i32>} : memref<128x128xf32, #tpu.memory_space<vmem>>, vector<128x128xf32>,
    %c0_i32_10 = arith.constant 0 : i32
    %11 = arith.cmpi eq, %arg2, %c0_i32_10 : i32
    %c0_i32_11 = arith.constant 0 : i32
    %12 = arith.cmpi eq, %arg3, %c0_i32_11 : i32
    %13 = arith.andi %11, %12 : i1
    %14 = arith.extui %13 : i1 to i32
    %c0_i32_12 = arith.constant 0 : i32
    %15 = arith.cmpi ne, %14, %c0_i32_12 : i32
    scf.if %15 {
      %cst_15 = arith.constant 0.000000e+00 : f32
      %19 = vector.broadcast %cst_15 : f32 to vector<1x1x128xf32>
      %c0_16 = arith.constant 0 : index
      %c0_17 = arith.constant 0 : index
      %c0_18 = arith.constant 0 : index
      %20 = vector.load %arg7[%c0_16, %c0_17, %c0_18] : memref<1x1x128xf32, #tpu.memory_space<vmem>>, vector<1x1x128xf32>
      tpu.vector_store %arg7[%c0_16, %c0_17, %c0_18], %19 {strides = array<i32>} : memref<1x1x128xf32, #tpu.memory_space<vmem>>, vector<1x1x128xf32>,
      %cst_19 = arith.constant 0.000000e+00 : f32
      %21 = vector.broadcast %cst_19 : f32 to vector<1x1x128xf32>
      %c0_20 = arith.constant 0 : index
      %c0_21 = arith.constant 0 : index
      %c0_22 = arith.constant 0 : index
      %22 = vector.load %arg8[%c0_20, %c0_21, %c0_22] : memref<1x1x128xf32, #tpu.memory_space<vmem>>, vector<1x1x128xf32>
      tpu.vector_store %arg8[%c0_20, %c0_21, %c0_22], %21 {strides = array<i32>} : memref<1x1x128xf32, #tpu.memory_space<vmem>>, vector<1x1x128xf32>,
    } else {
    }
    %c0_i32_13 = arith.constant 0 : i32
    %16 = arith.cmpi eq, %arg3, %c0_i32_13 : i32
    %17 = arith.extui %16 : i1 to i32
    %c0_i32_14 = arith.constant 0 : i32
    %18 = arith.cmpi ne, %17, %c0_i32_14 : i32
    scf.if %18 {
      %c0_15 = arith.constant 0 : index
      %c0_16 = arith.constant 0 : index
      %19 = vector.load %arg9[%c0_15, %c0_16] : memref<128x128xf32, #tpu.memory_space<vmem>>, vector<128x128xf32>
      %20 = arith.truncf %19 : vector<128x128xf32> to vector<128x128xbf16>
      %c0_17 = arith.constant 0 : index
      %c0_18 = arith.constant 0 : index
      %c0_19 = arith.constant 0 : index
      %21 = vector.load %arg6[%c0_17, %c0_18, %c0_19] : memref<1x128x128xbf16, #tpu.memory_space<vmem>>, vector<1x128x128xbf16>
      %22 = vector.shape_cast %21 : vector<1x128x128xbf16> to vector<128x128xbf16>
      %23 = vector.shape_cast %20 : vector<128x128xbf16> to vector<1x128x128xbf16>
      tpu.vector_store %arg6[%c0_17, %c0_18, %c0_19], %23 {strides = array<i32>} : memref<1x128x128xbf16, #tpu.memory_space<vmem>>, vector<1x128x128xbf16>,
      %c0_20 = arith.constant 0 : index
      %c0_21 = arith.constant 0 : index
      %c0_22 = arith.constant 0 : index
      %24 = vector.load %arg7[%c0_20, %c0_21, %c0_22] : memref<1x1x128xf32, #tpu.memory_space<vmem>>, vector<1x1x128xf32>
      %25 = vector.shape_cast %24 : vector<1x1x128xf32> to vector<1x128xf32>
      %cst_23 = arith.constant dense<0.000000e+00> : vector<128xf32>
      %26 = vector.multi_reduction <add>, %19, %cst_23 [0] : vector<128x128xf32> to vector<128xf32>
      %27 = vector.shape_cast %26 : vector<128xf32> to vector<1x128xf32>
      %28 = arith.addf %25, %27 : vector<1x128xf32>
      %c0_24 = arith.constant 0 : index
      %c0_25 = arith.constant 0 : index
      %c0_26 = arith.constant 0 : index
      %29 = vector.load %arg7[%c0_24, %c0_25, %c0_26] : memref<1x1x128xf32, #tpu.memory_space<vmem>>, vector<1x1x128xf32>
      %30 = vector.shape_cast %29 : vector<1x1x128xf32> to vector<1x128xf32>
      %31 = vector.shape_cast %28 : vector<1x128xf32> to vector<1x1x128xf32>
      tpu.vector_store %arg7[%c0_24, %c0_25, %c0_26], %31 {strides = array<i32>} : memref<1x1x128xf32, #tpu.memory_space<vmem>>, vector<1x1x128xf32>,
      %c0_27 = arith.constant 0 : index
      %c0_28 = arith.constant 0 : index
      %c0_29 = arith.constant 0 : index
      %32 = vector.load %arg8[%c0_27, %c0_28, %c0_29] : memref<1x1x128xf32, #tpu.memory_space<vmem>>, vector<1x1x128xf32>
      %33 = vector.shape_cast %32 : vector<1x1x128xf32> to vector<1x128xf32>
      %34 = arith.mulf %19, %19 : vector<128x128xf32>
      %cst_30 = arith.constant dense<0.000000e+00> : vector<128xf32>
      %35 = vector.multi_reduction <add>, %34, %cst_30 [0] : vector<128x128xf32> to vector<128xf32>
      %36 = vector.shape_cast %35 : vector<128xf32> to vector<1x128xf32>
      %37 = arith.addf %33, %36 : vector<1x128xf32>
      %c0_31 = arith.constant 0 : index
      %c0_32 = arith.constant 0 : index
      %c0_33 = arith.constant 0 : index
      %38 = vector.load %arg8[%c0_31, %c0_32, %c0_33] : memref<1x1x128xf32, #tpu.memory_space<vmem>>, vector<1x1x128xf32>
      %39 = vector.shape_cast %38 : vector<1x1x128xf32> to vector<1x128xf32>
      %40 = vector.shape_cast %37 : vector<1x128xf32> to vector<1x1x128xf32>
      tpu.vector_store %arg8[%c0_31, %c0_32, %c0_33], %40 {strides = array<i32>} : memref<1x1x128xf32, #tpu.memory_space<vmem>>, vector<1x1x128xf32>,
    } else {
    }
    return
  }
  func.func @transform_0(%arg0: i32, %arg1: i32, %arg2: i32, %arg3: i32) -> (i32, i32, i32) {
    %c0_i32 = arith.constant 0 : i32
    return %arg0, %arg2, %arg3 : i32, i32, i32
  }
  func.func @transform_1(%arg0: i32, %arg1: i32, %arg2: i32, %arg3: i32) -> (i32, i32, i32) {
    %c0_i32 = arith.constant 0 : i32
    return %arg0, %arg3, %arg1 : i32, i32, i32
  }
  func.func @transform_2(%arg0: i32, %arg1: i32, %arg2: i32, %arg3: i32) -> (i32, i32, i32) {
    %c0_i32 = arith.constant 0 : i32
    return %arg0, %arg2, %arg1 : i32, i32, i32
  }
  func.func @transform_3(%arg0: i32, %arg1: i32, %arg2: i32, %arg3: i32) -> (i32, i32, i32) {
    %c0_i32 = arith.constant 0 : i32
    %c0_i32_0 = arith.constant 0 : i32
    return %arg0, %c0_i32, %arg1 : i32, i32, i32
  }
  func.func @transform_4(%arg0: i32, %arg1: i32, %arg2: i32, %arg3: i32) -> (i32, i32, i32) {
    %c0_i32 = arith.constant 0 : i32
    %c0_i32_0 = arith.constant 0 : i32
    return %arg0, %c0_i32, %arg1 : i32, i32, i32
  }
}

module attributes {stable_mosaic.version = 11 : i64} {
  func.func @_bmm_kernel(%arg0: i32, %arg1: i32, %arg2: i32, %arg3: i32, %arg4: memref<1x512x512xbf16, #tpu.memory_space<vmem>>, %arg5: memref<1x512x64xbf16, #tpu.memory_space<vmem>>, %arg6: memref<1x512x64xbf16, #tpu.memory_space<vmem>>, %arg7: memref<1x1x64xf32, #tpu.memory_space<vmem>>, %arg8: memref<1x1x64xf32, #tpu.memory_space<vmem>>, %arg9: memref<512x64xf32, #tpu.memory_space<vmem>>) attributes {dimension_semantics = [#tpu.dimension_semantics<parallel>, #tpu.dimension_semantics<parallel>, #tpu.dimension_semantics<arbitrary>, #tpu.dimension_semantics<arbitrary>], iteration_bounds = array<i64: 4, 1, 1, 1>, scalar_prefetch = 0 : i64, scratch_operands = 1 : i64, tpu.core_type = #tpu.core_type<tc>, window_params = [{transform_indices = @transform_0, window_bounds = array<i64: 1, 512, 512>}, {transform_indices = @transform_1, window_bounds = array<i64: 1, 512, 64>}, {transform_indices = @transform_2, window_bounds = array<i64: 1, 512, 64>}, {transform_indices = @transform_3, window_bounds = array<i64: 1, 1, 64>}, {transform_indices = @transform_4, window_bounds = array<i64: 1, 1, 64>}]} {
    %c0_i32 = arith.constant 0 : i32
    %0 = arith.cmpi eq, %arg3, %c0_i32 : i32
    %1 = arith.extui %0 : i1 to i32
    %c0_i32_0 = arith.constant 0 : i32
    %2 = arith.cmpi ne, %1, %c0_i32_0 : i32
    scf.if %2 {
      %cst_15 = arith.constant 0.000000e+00 : f32
      %19 = vector.broadcast %cst_15 : f32 to vector<512x64xf32>
      %c0_16 = arith.constant 0 : index
      %c0_17 = arith.constant 0 : index
      %20 = vector.load %arg9[%c0_16, %c0_17] : memref<512x64xf32, #tpu.memory_space<vmem>>, vector<512x64xf32>
      tpu.vector_store %arg9[%c0_16, %c0_17], %19 {strides = array<i32>} : memref<512x64xf32, #tpu.memory_space<vmem>>, vector<512x64xf32>,
    } else {
    }
    %c0 = arith.constant 0 : index
    %c0_1 = arith.constant 0 : index
    %3 = vector.load %arg9[%c0, %c0_1] : memref<512x64xf32, #tpu.memory_space<vmem>>, vector<512x64xf32>
    %c0_2 = arith.constant 0 : index
    %c0_3 = arith.constant 0 : index
    %c0_4 = arith.constant 0 : index
    %4 = vector.load %arg4[%c0_2, %c0_3, %c0_4] : memref<1x512x512xbf16, #tpu.memory_space<vmem>>, vector<1x512x512xbf16>
    %5 = vector.shape_cast %4 : vector<1x512x512xbf16> to vector<512x512xbf16>
    %c0_5 = arith.constant 0 : index
    %c0_6 = arith.constant 0 : index
    %c0_7 = arith.constant 0 : index
    %6 = vector.load %arg5[%c0_5, %c0_6, %c0_7] : memref<1x512x64xbf16, #tpu.memory_space<vmem>>, vector<1x512x64xbf16>
    %7 = vector.shape_cast %6 : vector<1x512x64xbf16> to vector<512x64xbf16>
    %cst = arith.constant dense<0.000000e+00> : vector<512x64xf32>
    %8 = tpu.matmul %5, %7, %cst {dimension_numbers = #tpu.dot_dimension_numbers<[1], [0], [0], [1], [0, 0, 1, 1], [], []>} : vector<512x512xbf16>, vector<512x64xbf16>, vector<512x64xf32> -> vector<512x64xf32>
    %9 = arith.addf %3, %8 : vector<512x64xf32>
    %c0_8 = arith.constant 0 : index
    %c0_9 = arith.constant 0 : index
    %10 = vector.load %arg9[%c0_8, %c0_9] : memref<512x64xf32, #tpu.memory_space<vmem>>, vector<512x64xf32>
    tpu.vector_store %arg9[%c0_8, %c0_9], %9 {strides = array<i32>} : memref<512x64xf32, #tpu.memory_space<vmem>>, vector<512x64xf32>,
    %c0_i32_10 = arith.constant 0 : i32
    %11 = arith.cmpi eq, %arg2, %c0_i32_10 : i32
    %c0_i32_11 = arith.constant 0 : i32
    %12 = arith.cmpi eq, %arg3, %c0_i32_11 : i32
    %13 = arith.andi %11, %12 : i1
    %14 = arith.extui %13 : i1 to i32
    %c0_i32_12 = arith.constant 0 : i32
    %15 = arith.cmpi ne, %14, %c0_i32_12 : i32
    scf.if %15 {
      %cst_15 = arith.constant 0.000000e+00 : f32
      %19 = vector.broadcast %cst_15 : f32 to vector<1x1x64xf32>
      %c0_16 = arith.constant 0 : index
      %c0_17 = arith.constant 0 : index
      %c0_18 = arith.constant 0 : index
      %20 = vector.load %arg7[%c0_16, %c0_17, %c0_18] : memref<1x1x64xf32, #tpu.memory_space<vmem>>, vector<1x1x64xf32>
      tpu.vector_store %arg7[%c0_16, %c0_17, %c0_18], %19 {strides = array<i32>} : memref<1x1x64xf32, #tpu.memory_space<vmem>>, vector<1x1x64xf32>,
      %cst_19 = arith.constant 0.000000e+00 : f32
      %21 = vector.broadcast %cst_19 : f32 to vector<1x1x64xf32>
      %c0_20 = arith.constant 0 : index
      %c0_21 = arith.constant 0 : index
      %c0_22 = arith.constant 0 : index
      %22 = vector.load %arg8[%c0_20, %c0_21, %c0_22] : memref<1x1x64xf32, #tpu.memory_space<vmem>>, vector<1x1x64xf32>
      tpu.vector_store %arg8[%c0_20, %c0_21, %c0_22], %21 {strides = array<i32>} : memref<1x1x64xf32, #tpu.memory_space<vmem>>, vector<1x1x64xf32>,
    } else {
    }
    %c0_i32_13 = arith.constant 0 : i32
    %16 = arith.cmpi eq, %arg3, %c0_i32_13 : i32
    %17 = arith.extui %16 : i1 to i32
    %c0_i32_14 = arith.constant 0 : i32
    %18 = arith.cmpi ne, %17, %c0_i32_14 : i32
    scf.if %18 {
      %c0_15 = arith.constant 0 : index
      %c0_16 = arith.constant 0 : index
      %19 = vector.load %arg9[%c0_15, %c0_16] : memref<512x64xf32, #tpu.memory_space<vmem>>, vector<512x64xf32>
      %20 = arith.truncf %19 : vector<512x64xf32> to vector<512x64xbf16>
      %c0_17 = arith.constant 0 : index
      %c0_18 = arith.constant 0 : index
      %c0_19 = arith.constant 0 : index
      %21 = vector.load %arg6[%c0_17, %c0_18, %c0_19] : memref<1x512x64xbf16, #tpu.memory_space<vmem>>, vector<1x512x64xbf16>
      %22 = vector.shape_cast %21 : vector<1x512x64xbf16> to vector<512x64xbf16>
      %23 = vector.shape_cast %20 : vector<512x64xbf16> to vector<1x512x64xbf16>
      tpu.vector_store %arg6[%c0_17, %c0_18, %c0_19], %23 {strides = array<i32>} : memref<1x512x64xbf16, #tpu.memory_space<vmem>>, vector<1x512x64xbf16>,
      %c0_20 = arith.constant 0 : index
      %c0_21 = arith.constant 0 : index
      %c0_22 = arith.constant 0 : index
      %24 = vector.load %arg7[%c0_20, %c0_21, %c0_22] : memref<1x1x64xf32, #tpu.memory_space<vmem>>, vector<1x1x64xf32>
      %25 = vector.shape_cast %24 : vector<1x1x64xf32> to vector<1x64xf32>
      %cst_23 = arith.constant dense<0.000000e+00> : vector<64xf32>
      %26 = vector.multi_reduction <add>, %19, %cst_23 [0] : vector<512x64xf32> to vector<64xf32>
      %27 = vector.shape_cast %26 : vector<64xf32> to vector<1x64xf32>
      %28 = arith.addf %25, %27 : vector<1x64xf32>
      %c0_24 = arith.constant 0 : index
      %c0_25 = arith.constant 0 : index
      %c0_26 = arith.constant 0 : index
      %29 = vector.load %arg7[%c0_24, %c0_25, %c0_26] : memref<1x1x64xf32, #tpu.memory_space<vmem>>, vector<1x1x64xf32>
      %30 = vector.shape_cast %29 : vector<1x1x64xf32> to vector<1x64xf32>
      %31 = vector.shape_cast %28 : vector<1x64xf32> to vector<1x1x64xf32>
      tpu.vector_store %arg7[%c0_24, %c0_25, %c0_26], %31 {strides = array<i32>} : memref<1x1x64xf32, #tpu.memory_space<vmem>>, vector<1x1x64xf32>,
      %c0_27 = arith.constant 0 : index
      %c0_28 = arith.constant 0 : index
      %c0_29 = arith.constant 0 : index
      %32 = vector.load %arg8[%c0_27, %c0_28, %c0_29] : memref<1x1x64xf32, #tpu.memory_space<vmem>>, vector<1x1x64xf32>
      %33 = vector.shape_cast %32 : vector<1x1x64xf32> to vector<1x64xf32>
      %34 = arith.mulf %19, %19 : vector<512x64xf32>
      %cst_30 = arith.constant dense<0.000000e+00> : vector<64xf32>
      %35 = vector.multi_reduction <add>, %34, %cst_30 [0] : vector<512x64xf32> to vector<64xf32>
      %36 = vector.shape_cast %35 : vector<64xf32> to vector<1x64xf32>
      %37 = arith.addf %33, %36 : vector<1x64xf32>
      %c0_31 = arith.constant 0 : index
      %c0_32 = arith.constant 0 : index
      %c0_33 = arith.constant 0 : index
      %38 = vector.load %arg8[%c0_31, %c0_32, %c0_33] : memref<1x1x64xf32, #tpu.memory_space<vmem>>, vector<1x1x64xf32>
      %39 = vector.shape_cast %38 : vector<1x1x64xf32> to vector<1x64xf32>
      %40 = vector.shape_cast %37 : vector<1x64xf32> to vector<1x1x64xf32>
      tpu.vector_store %arg8[%c0_31, %c0_32, %c0_33], %40 {strides = array<i32>} : memref<1x1x64xf32, #tpu.memory_space<vmem>>, vector<1x1x64xf32>,
    } else {
    }
    return
  }
  func.func @transform_0(%arg0: i32, %arg1: i32, %arg2: i32, %arg3: i32) -> (i32, i32, i32) {
    %c0_i32 = arith.constant 0 : i32
    return %arg0, %arg2, %arg3 : i32, i32, i32
  }
  func.func @transform_1(%arg0: i32, %arg1: i32, %arg2: i32, %arg3: i32) -> (i32, i32, i32) {
    %c0_i32 = arith.constant 0 : i32
    return %arg0, %arg3, %arg1 : i32, i32, i32
  }
  func.func @transform_2(%arg0: i32, %arg1: i32, %arg2: i32, %arg3: i32) -> (i32, i32, i32) {
    %c0_i32 = arith.constant 0 : i32
    return %arg0, %arg2, %arg1 : i32, i32, i32
  }
  func.func @transform_3(%arg0: i32, %arg1: i32, %arg2: i32, %arg3: i32) -> (i32, i32, i32) {
    %c0_i32 = arith.constant 0 : i32
    %c0_i32_0 = arith.constant 0 : i32
    return %arg0, %c0_i32, %arg1 : i32, i32, i32
  }
  func.func @transform_4(%arg0: i32, %arg1: i32, %arg2: i32, %arg3: i32) -> (i32, i32, i32) {
    %c0_i32 = arith.constant 0 : i32
    %c0_i32_0 = arith.constant 0 : i32
    return %arg0, %c0_i32, %arg1 : i32, i32, i32
  }
}

module attributes {stable_mosaic.version = 11 : i64} {
  func.func @_affine_relu_kernel(%arg0: i32, %arg1: memref<1024x64xbf16, #tpu.memory_space<vmem>>, %arg2: memref<1x64xf32, #tpu.memory_space<vmem>>, %arg3: memref<1x64xf32, #tpu.memory_space<vmem>>, %arg4: memref<1024x64xbf16, #tpu.memory_space<vmem>>) attributes {dimension_semantics = [#tpu.dimension_semantics<parallel>], iteration_bounds = array<i64: 2>, scalar_prefetch = 0 : i64, scratch_operands = 0 : i64, tpu.core_type = #tpu.core_type<tc>, window_params = [{transform_indices = @transform_0, window_bounds = array<i64: 1024, 64>}, {pipeline_mode = #tpu.pipeline_mode<synchronous>, transform_indices = @transform_1, window_bounds = array<i64: 1, 64>}, {pipeline_mode = #tpu.pipeline_mode<synchronous>, transform_indices = @transform_2, window_bounds = array<i64: 1, 64>}, {transform_indices = @transform_3, window_bounds = array<i64: 1024, 64>}]} {
    %c0 = arith.constant 0 : index
    %c0_0 = arith.constant 0 : index
    %0 = vector.load %arg1[%c0, %c0_0] : memref<1024x64xbf16, #tpu.memory_space<vmem>>, vector<1024x64xbf16>
    %1 = arith.extf %0 : vector<1024x64xbf16> to vector<1024x64xf32>
    %c0_1 = arith.constant 0 : index
    %c0_2 = arith.constant 0 : index
    %2 = vector.load %arg2[%c0_1, %c0_2] : memref<1x64xf32, #tpu.memory_space<vmem>>, vector<1x64xf32>
    %3 = vector.broadcast %2 : vector<1x64xf32> to vector<1024x64xf32>
    %4 = arith.mulf %1, %3 : vector<1024x64xf32>
    %c0_3 = arith.constant 0 : index
    %c0_4 = arith.constant 0 : index
    %5 = vector.load %arg3[%c0_3, %c0_4] : memref<1x64xf32, #tpu.memory_space<vmem>>, vector<1x64xf32>
    %6 = vector.broadcast %5 : vector<1x64xf32> to vector<1024x64xf32>
    %7 = arith.addf %4, %6 : vector<1024x64xf32>
    %cst = arith.constant 0.000000e+00 : f32
    %8 = vector.broadcast %cst : f32 to vector<1024x64xf32>
    %9 = arith.maximumf %7, %8 : vector<1024x64xf32>
    %10 = arith.truncf %9 : vector<1024x64xf32> to vector<1024x64xbf16>
    %c0_5 = arith.constant 0 : index
    %c0_6 = arith.constant 0 : index
    %11 = vector.load %arg4[%c0_5, %c0_6] : memref<1024x64xbf16, #tpu.memory_space<vmem>>, vector<1024x64xbf16>
    tpu.vector_store %arg4[%c0_5, %c0_6], %10 {strides = array<i32>} : memref<1024x64xbf16, #tpu.memory_space<vmem>>, vector<1024x64xbf16>,
    return
  }
  func.func @transform_0(%arg0: i32) -> (i32, i32) {
    %c0_i32 = arith.constant 0 : i32
    %c0_i32_0 = arith.constant 0 : i32
    return %arg0, %c0_i32 : i32, i32
  }
  func.func @transform_1(%arg0: i32) -> (i32, i32) {
    %c0_i32 = arith.constant 0 : i32
    %c0_i32_0 = arith.constant 0 : i32
    %c0_i32_1 = arith.constant 0 : i32
    return %c0_i32, %c0_i32_0 : i32, i32
  }
  func.func @transform_2(%arg0: i32) -> (i32, i32) {
    %c0_i32 = arith.constant 0 : i32
    %c0_i32_0 = arith.constant 0 : i32
    %c0_i32_1 = arith.constant 0 : i32
    return %c0_i32, %c0_i32_0 : i32, i32
  }
  func.func @transform_3(%arg0: i32) -> (i32, i32) {
    %c0_i32 = arith.constant 0 : i32
    %c0_i32_0 = arith.constant 0 : i32
    return %arg0, %c0_i32 : i32, i32
  }
}

module attributes {stable_mosaic.version = 11 : i64} {
  func.func @_bmm_kernel(%arg0: i32, %arg1: i32, %arg2: i32, %arg3: i32, %arg4: memref<1x512x256xbf16, #tpu.memory_space<vmem>>, %arg5: memref<1x256x128xbf16, #tpu.memory_space<vmem>>, %arg6: memref<1x512x128xf32, #tpu.memory_space<vmem>>, %arg7: memref<512x128xf32, #tpu.memory_space<vmem>>) attributes {dimension_semantics = [#tpu.dimension_semantics<parallel>, #tpu.dimension_semantics<parallel>, #tpu.dimension_semantics<parallel>, #tpu.dimension_semantics<arbitrary>], iteration_bounds = array<i64: 4, 1, 4, 1>, scalar_prefetch = 0 : i64, scratch_operands = 1 : i64, tpu.core_type = #tpu.core_type<tc>, window_params = [{transform_indices = @transform_0, window_bounds = array<i64: 1, 512, 256>}, {transform_indices = @transform_1, window_bounds = array<i64: 1, 256, 128>}, {transform_indices = @transform_2, window_bounds = array<i64: 1, 512, 128>}]} {
    %c0_i32 = arith.constant 0 : i32
    %0 = arith.cmpi eq, %arg3, %c0_i32 : i32
    %1 = arith.extui %0 : i1 to i32
    %c0_i32_0 = arith.constant 0 : i32
    %2 = arith.cmpi ne, %1, %c0_i32_0 : i32
    scf.if %2 {
      %cst_12 = arith.constant 0.000000e+00 : f32
      %14 = vector.broadcast %cst_12 : f32 to vector<512x128xf32>
      %c0_13 = arith.constant 0 : index
      %c0_14 = arith.constant 0 : index
      %15 = vector.load %arg7[%c0_13, %c0_14] : memref<512x128xf32, #tpu.memory_space<vmem>>, vector<512x128xf32>
      tpu.vector_store %arg7[%c0_13, %c0_14], %14 {strides = array<i32>} : memref<512x128xf32, #tpu.memory_space<vmem>>, vector<512x128xf32>,
    } else {
    }
    %c0 = arith.constant 0 : index
    %c0_1 = arith.constant 0 : index
    %3 = vector.load %arg7[%c0, %c0_1] : memref<512x128xf32, #tpu.memory_space<vmem>>, vector<512x128xf32>
    %c0_2 = arith.constant 0 : index
    %c0_3 = arith.constant 0 : index
    %c0_4 = arith.constant 0 : index
    %4 = vector.load %arg4[%c0_2, %c0_3, %c0_4] : memref<1x512x256xbf16, #tpu.memory_space<vmem>>, vector<1x512x256xbf16>
    %5 = vector.shape_cast %4 : vector<1x512x256xbf16> to vector<512x256xbf16>
    %c0_5 = arith.constant 0 : index
    %c0_6 = arith.constant 0 : index
    %c0_7 = arith.constant 0 : index
    %6 = vector.load %arg5[%c0_5, %c0_6, %c0_7] : memref<1x256x128xbf16, #tpu.memory_space<vmem>>, vector<1x256x128xbf16>
    %7 = vector.shape_cast %6 : vector<1x256x128xbf16> to vector<256x128xbf16>
    %cst = arith.constant dense<0.000000e+00> : vector<512x128xf32>
    %8 = tpu.matmul %5, %7, %cst {dimension_numbers = #tpu.dot_dimension_numbers<[1], [0], [0], [1], [0, 0, 1, 1], [], []>} : vector<512x256xbf16>, vector<256x128xbf16>, vector<512x128xf32> -> vector<512x128xf32>
    %9 = arith.addf %3, %8 : vector<512x128xf32>
    %c0_8 = arith.constant 0 : index
    %c0_9 = arith.constant 0 : index
    %10 = vector.load %arg7[%c0_8, %c0_9] : memref<512x128xf32, #tpu.memory_space<vmem>>, vector<512x128xf32>
    tpu.vector_store %arg7[%c0_8, %c0_9], %9 {strides = array<i32>} : memref<512x128xf32, #tpu.memory_space<vmem>>, vector<512x128xf32>,
    %c0_i32_10 = arith.constant 0 : i32
    %11 = arith.cmpi eq, %arg3, %c0_i32_10 : i32
    %12 = arith.extui %11 : i1 to i32
    %c0_i32_11 = arith.constant 0 : i32
    %13 = arith.cmpi ne, %12, %c0_i32_11 : i32
    scf.if %13 {
      %c0_12 = arith.constant 0 : index
      %c0_13 = arith.constant 0 : index
      %14 = vector.load %arg7[%c0_12, %c0_13] : memref<512x128xf32, #tpu.memory_space<vmem>>, vector<512x128xf32>
      %15 = math.tanh %14 : vector<512x128xf32>
      %c0_14 = arith.constant 0 : index
      %c0_15 = arith.constant 0 : index
      %c0_16 = arith.constant 0 : index
      %16 = vector.load %arg6[%c0_14, %c0_15, %c0_16] : memref<1x512x128xf32, #tpu.memory_space<vmem>>, vector<1x512x128xf32>
      %17 = vector.shape_cast %16 : vector<1x512x128xf32> to vector<512x128xf32>
      %18 = vector.shape_cast %15 : vector<512x128xf32> to vector<1x512x128xf32>
      tpu.vector_store %arg6[%c0_14, %c0_15, %c0_16], %18 {strides = array<i32>} : memref<1x512x128xf32, #tpu.memory_space<vmem>>, vector<1x512x128xf32>,
    } else {
    }
    return
  }
  func.func @transform_0(%arg0: i32, %arg1: i32, %arg2: i32, %arg3: i32) -> (i32, i32, i32) {
    %c0_i32 = arith.constant 0 : i32
    return %arg0, %arg2, %arg3 : i32, i32, i32
  }
  func.func @transform_1(%arg0: i32, %arg1: i32, %arg2: i32, %arg3: i32) -> (i32, i32, i32) {
    %c0_i32 = arith.constant 0 : i32
    return %arg0, %arg3, %arg1 : i32, i32, i32
  }
  func.func @transform_2(%arg0: i32, %arg1: i32, %arg2: i32, %arg3: i32) -> (i32, i32, i32) {
    %c0_i32 = arith.constant 0 : i32
    return %arg0, %arg2, %arg1 : i32, i32, i32
  }
}

</mosaic_0001>

<bundles_post_ra>
// kernel: squeeze.7
= control target key start
LH: loop header
LB: loop body
LE: loop exit
PB: predicated region body
PF: predicated region fallthrough
CT: control target
= control target key end

     0   :  { %s1946_s0 = inlined_call_operand.vmem [shape: bf16[1,2,8192], index: 0, kind: input, shape index: {}]   ;;  %s1947_s1 = inlined_call_operand.vmem [shape: bf16[32,512], index: 1, kind: output, shape index: {}]  }
   0x1   :  { %v1595_v0 = vld [vmem:[%s1946_s0 + $0x3f] sm:$0x1]  ;;  %v1596_v1 = vld [vmem:[%s1946_s0 + $0x3e] sm:$0x1]  ;;  %v1597_v2 = vld [vmem:[%s1946_s0 + $0x3d] sm:$0x1] }
   0x2   :  { %v17_v3 = vunpack.c.l.bf16 %v1595_v0  ;;  %v33_v4 = vunpack.c.l.bf16 %v1596_v1  ;;  %v49_v5 = vunpack.c.l.bf16 %v1597_v2  ;;  %v1598_v6 = vld [vmem:[%s1946_s0 + $0x3c] sm:$0x1]  ;;  %v1599_v7 = vld [vmem:[%s1946_s0 + $0x3b] sm:$0x1]  ;;  %v1600_v8 = vld [vmem:[%s1946_s0 + $0x3a] sm:$0x1] }
   0x3   :  { %v65_v9 = vunpack.c.l.bf16 %v1598_v6  ;;  %v81_v10 = vunpack.c.l.bf16 %v1599_v7  ;;  %v97_v11 = vunpack.c.l.bf16 %v1600_v8  ;;  %v1601_v12 = vld [vmem:[%s1946_s0 + $0x39] sm:$0x1]  ;;  %v1602_v13 = vld [vmem:[%s1946_s0 + $0x38] sm:$0x1]  ;;  %v1603_v14 = vld [vmem:[%s1946_s0 + $0x37] sm:$0x1] }
   0x4   :  { %20 = vst [vmem:[#allocation1 + $0x1f8] sm:$0x3] %v17_v3  ;;  %36 = vst [vmem:[#allocation1 + $0x1f0] sm:$0x3] %v33_v4  ;;  %v113_v15 = vunpack.c.l.bf16 %v1601_v12  ;;  %v129_v16 = vunpack.c.l.bf16 %v1602_v13  ;;  %v145_v17 = vunpack.c.l.bf16 %v1603_v14  ;;  %v1604_v18 = vld [vmem:[%s1946_s0 + $0x36] sm:$0x1] }
   0x5   :  { %52 = vst [vmem:[#allocation1 + $0x1e8] sm:$0x3] %v49_v5  ;;  %v1605_v19 = vld [vmem:[%s1946_s0 + $0x35] sm:$0x1]  ;;  %v1606_v20 = vld [vmem:[%s1946_s0 + $0x34] sm:$0x1]  ;;  %v161_v21 = vunpack.c.l.bf16 %v1604_v18 }
   0x6   :  { %68 = vst [vmem:[#allocation1 + $0x1e0] sm:$0x3] %v65_v9  ;;  %84 = vst [vmem:[#allocation1 + $0x1d8] sm:$0x3] %v81_v10  ;;  %v177_v22 = vunpack.c.l.bf16 %v1605_v19  ;;  %v193_v23 = vunpack.c.l.bf16 %v1606_v20  ;;  %v1607_v24 = vld [vmem:[%s1946_s0 + $0x33] sm:$0x1] }
   0x7   :  { %100 = vst [vmem:[#allocation1 + $0x1d0] sm:$0x3] %v97_v11  ;;  %v1608_v25 = vld [vmem:[%s1946_s0 + $0x32] sm:$0x1]  ;;  %v1609_v26 = vld [vmem:[%s1946_s0 + $0x31] sm:$0x1]  ;;  %v209_v27 = vunpack.c.l.bf16 %v1607_v24 }
   0x8   :  { %116 = vst [vmem:[#allocation1 + $0x1c8] sm:$0x3] %v113_v15  ;;  %132 = vst [vmem:[#allocation1 + $0x1c0] sm:$0x3] %v129_v16  ;;  %v225_v28 = vunpack.c.l.bf16 %v1608_v25  ;;  %v241_v29 = vunpack.c.l.bf16 %v1609_v26  ;;  %v1610_v30 = vld [vmem:[%s1946_s0 + $0x30] sm:$0x1] }
   0x9   :  { %148 = vst [vmem:[#allocation1 + $0x1b8] sm:$0x3] %v145_v17  ;;  %v1611_v31 = vld [vmem:[%s1946_s0 + $0x2f] sm:$0x1]  ;;  %v1612_v32 = vld [vmem:[%s1946_s0 + $0x2e] sm:$0x1]  ;;  %v257_v33 = vunpack.c.l.bf16 %v1610_v30 }
   0xa   :  { %164 = vst [vmem:[#allocation1 + $0x1b0] sm:$0x3] %v161_v21  ;;  %180 = vst [vmem:[#allocation1 + $0x1a8] sm:$0x3] %v177_v22  ;;  %v273_v34 = vunpack.c.l.bf16 %v1611_v31  ;;  %v289_v35 = vunpack.c.l.bf16 %v1612_v32  ;;  %v1613_v36 = vld [vmem:[%s1946_s0 + $0x2d] sm:$0x1] }
   0xb   :  { %196 = vst [vmem:[#allocation1 + $0x1a0] sm:$0x3] %v193_v23  ;;  %v1614_v37 = vld [vmem:[%s1946_s0 + $0x2c] sm:$0x1]  ;;  %v1615_v38 = vld [vmem:[%s1946_s0 + $0x2b] sm:$0x1]  ;;  %v305_v39 = vunpack.c.l.bf16 %v1613_v36 }
   0xc   :  { %212 = vst [vmem:[#allocation1 + $0x198] sm:$0x3] %v209_v27  ;;  %228 = vst [vmem:[#allocation1 + $0x190] sm:$0x3] %v225_v28  ;;  %v321_v40 = vunpack.c.l.bf16 %v1614_v37  ;;  %v337_v41 = vunpack.c.l.bf16 %v1615_v38  ;;  %v1616_v42 = vld [vmem:[%s1946_s0 + $0x2a] sm:$0x1] }
   0xd   :  { %244 = vst [vmem:[#allocation1 + $0x188] sm:$0x3] %v241_v29  ;;  %v1617_v43 = vld [vmem:[%s1946_s0 + $0x29] sm:$0x1]  ;;  %v1618_v44 = vld [vmem:[%s1946_s0 + $0x28] sm:$0x1]  ;;  %v353_v45 = vunpack.c.l.bf16 %v1616_v42 }
   0xe   :  { %260 = vst [vmem:[#allocation1 + $0x180] sm:$0x3] %v257_v33  ;;  %276 = vst [vmem:[#allocation1 + $0x178] sm:$0x3] %v273_v34  ;;  %v369_v46 = vunpack.c.l.bf16 %v1617_v43  ;;  %v385_v47 = vunpack.c.l.bf16 %v1618_v44  ;;  %v1619_v48 = vld [vmem:[%s1946_s0 + $0x27] sm:$0x1] }
   0xf   :  { %292 = vst [vmem:[#allocation1 + $0x170] sm:$0x3] %v289_v35  ;;  %v1620_v49 = vld [vmem:[%s1946_s0 + $0x26] sm:$0x1]  ;;  %v1621_v50 = vld [vmem:[%s1946_s0 + $0x25] sm:$0x1]  ;;  %v401_v51 = vunpack.c.l.bf16 %v1619_v48 }
  0x10   :  { %308 = vst [vmem:[#allocation1 + $0x168] sm:$0x3] %v305_v39  ;;  %324 = vst [vmem:[#allocation1 + $0x160] sm:$0x3] %v321_v40  ;;  %v417_v52 = vunpack.c.l.bf16 %v1620_v49  ;;  %v433_v53 = vunpack.c.l.bf16 %v1621_v50  ;;  %v1622_v54 = vld [vmem:[%s1946_s0 + $0x24] sm:$0x1] }
  0x11   :  { %340 = vst [vmem:[#allocation1 + $0x158] sm:$0x3] %v337_v41  ;;  %v1623_v55 = vld [vmem:[%s1946_s0 + $0x23] sm:$0x1]  ;;  %v1624_v56 = vld [vmem:[%s1946_s0 + $0x22] sm:$0x1]  ;;  %v449_v57 = vunpack.c.l.bf16 %v1622_v54 }
  0x12   :  { %356 = vst [vmem:[#allocation1 + $0x150] sm:$0x3] %v353_v45  ;;  %372 = vst [vmem:[#allocation1 + $0x148] sm:$0x3] %v369_v46  ;;  %v465_v58 = vunpack.c.l.bf16 %v1623_v55  ;;  %v481_v59 = vunpack.c.l.bf16 %v1624_v56  ;;  %v1625_v60 = vld [vmem:[%s1946_s0 + $0x21] sm:$0x1] }
  0x13   :  { %388 = vst [vmem:[#allocation1 + $0x140] sm:$0x3] %v385_v47  ;;  %v1626_v61 = vld [vmem:[%s1946_s0 + $0x20] sm:$0x1]  ;;  %v1627_v62 = vld [vmem:[%s1946_s0 + $0x1f] sm:$0x1]  ;;  %v497_v63 = vunpack.c.l.bf16 %v1625_v60 }
  0x14   :  { %404 = vst [vmem:[#allocation1 + $0x138] sm:$0x3] %v401_v51  ;;  %420 = vst [vmem:[#allocation1 + $0x130] sm:$0x3] %v417_v52  ;;  %v513_v0 = vunpack.c.l.bf16 %v1626_v61  ;;  %v529_v1 = vunpack.c.l.bf16 %v1627_v62  ;;  %v1628_v2 = vld [vmem:[%s1946_s0 + $0x1e] sm:$0x1] }
  0x15   :  { %436 = vst [vmem:[#allocation1 + $0x128] sm:$0x3] %v433_v53  ;;  %v1629_v3 = vld [vmem:[%s1946_s0 + $0x1d] sm:$0x1]  ;;  %v1630_v4 = vld [vmem:[%s1946_s0 + $0x1c] sm:$0x1]  ;;  %v545_v5 = vunpack.c.l.bf16 %v1628_v2 }
  0x16   :  { %452 = vst [vmem:[#allocation1 + $0x120] sm:$0x3] %v449_v57  ;;  %468 = vst [vmem:[#allocation1 + $0x118] sm:$0x3] %v465_v58  ;;  %v561_v6 = vunpack.c.l.bf16 %v1629_v3  ;;  %v577_v7 = vunpack.c.l.bf16 %v1630_v4  ;;  %v1631_v8 = vld [vmem:[%s1946_s0 + $0x1b] sm:$0x1] }
  0x17   :  { %484 = vst [vmem:[#allocation1 + $0x110] sm:$0x3] %v481_v59  ;;  %v1632_v9 = vld [vmem:[%s1946_s0 + $0x1a] sm:$0x1]  ;;  %v1633_v10 = vld [vmem:[%s1946_s0 + $0x19] sm:$0x1]  ;;  %v593_v11 = vunpack.c.l.bf16 %v1631_v8 }
  0x18   :  { %500 = vst [vmem:[#allocation1 + $0x108] sm:$0x3] %v497_v63  ;;  %516 = vst [vmem:[#allocation1 + $0x100] sm:$0x3] %v513_v0  ;;  %v609_v12 = vunpack.c.l.bf16 %v1632_v9  ;;  %v625_v13 = vunpack.c.l.bf16 %v1633_v10  ;;  %v1634_v14 = vld [vmem:[%s1946_s0 + $0x18] sm:$0x1] }
  0x19   :  { %532 = vst [vmem:[#allocation1 + $0xf8] sm:$0x3] %v529_v1  ;;  %v1635_v15 = vld [vmem:[%s1946_s0 + $0x17] sm:$0x1]  ;;  %v1636_v16 = vld [vmem:[%s1946_s0 + $0x16] sm:$0x1]  ;;  %v641_v17 = vunpack.c.l.bf16 %v1634_v14 }
  0x1a   :  { %548 = vst [vmem:[#allocation1 + $0xf0] sm:$0x3] %v545_v5  ;;  %564 = vst [vmem:[#allocation1 + $0xe8] sm:$0x3] %v561_v6  ;;  %v657_v18 = vunpack.c.l.bf16 %v1635_v15  ;;  %v673_v19 = vunpack.c.l.bf16 %v1636_v16  ;;  %v1637_v20 = vld [vmem:[%s1946_s0 + $0x15] sm:$0x1] }
  0x1b   :  { %580 = vst [vmem:[#allocation1 + $0xe0] sm:$0x3] %v577_v7  ;;  %v1638_v21 = vld [vmem:[%s1946_s0 + $0x14] sm:$0x1]  ;;  %v1639_v22 = vld [vmem:[%s1946_s0 + $0x13] sm:$0x1]  ;;  %v689_v23 = vunpack.c.l.bf16 %v1637_v20 }
  0x1c   :  { %596 = vst [vmem:[#allocation1 + $0xd8] sm:$0x3] %v593_v11  ;;  %612 = vst [vmem:[#allocation1 + $0xd0] sm:$0x3] %v609_v12  ;;  %v705_v24 = vunpack.c.l.bf16 %v1638_v21  ;;  %v721_v25 = vunpack.c.l.bf16 %v1639_v22  ;;  %v1640_v26 = vld [vmem:[%s1946_s0 + $0x12] sm:$0x1] }
  0x1d   :  { %628 = vst [vmem:[#allocation1 + $0xc8] sm:$0x3] %v625_v13  ;;  %v1641_v27 = vld [vmem:[%s1946_s0 + $0x11] sm:$0x1]  ;;  %v1642_v28 = vld [vmem:[%s1946_s0 + $0x10] sm:$0x1]  ;;  %v737_v29 = vunpack.c.l.bf16 %v1640_v26 }
  0x1e   :  { %644 = vst [vmem:[#allocation1 + $0xc0] sm:$0x3] %v641_v17  ;;  %660 = vst [vmem:[#allocation1 + $0xb8] sm:$0x3] %v657_v18  ;;  %v753_v30 = vunpack.c.l.bf16 %v1641_v27  ;;  %v769_v31 = vunpack.c.l.bf16 %v1642_v28  ;;  %v1643_v32 = vld [vmem:[%s1946_s0 + $0xf] sm:$0x1] }
  0x1f   :  { %676 = vst [vmem:[#allocation1 + $0xb0] sm:$0x3] %v673_v19  ;;  %v1644_v33 = vld [vmem:[%s1946_s0 + $0xe] sm:$0x1]  ;;  %v1645_v34 = vld [vmem:[%s1946_s0 + $0xd] sm:$0x1]  ;;  %v785_v35 = vunpack.c.l.bf16 %v1643_v32 }
  0x20   :  { %692 = vst [vmem:[#allocation1 + $0xa8] sm:$0x3] %v689_v23  ;;  %708 = vst [vmem:[#allocation1 + $0xa0] sm:$0x3] %v705_v24  ;;  %v801_v36 = vunpack.c.l.bf16 %v1644_v33  ;;  %v817_v37 = vunpack.c.l.bf16 %v1645_v34  ;;  %v1646_v38 = vld [vmem:[%s1946_s0 + $0xc] sm:$0x1] }
  0x21   :  { %724 = vst [vmem:[#allocation1 + $0x98] sm:$0x3] %v721_v25  ;;  %v1647_v39 = vld [vmem:[%s1946_s0 + $0xb] sm:$0x1]  ;;  %v1648_v40 = vld [vmem:[%s1946_s0 + $0xa] sm:$0x1]  ;;  %v833_v41 = vunpack.c.l.bf16 %v1646_v38 }
  0x22   :  { %740 = vst [vmem:[#allocation1 + $0x90] sm:$0x3] %v737_v29  ;;  %756 = vst [vmem:[#allocation1 + $0x88] sm:$0x3] %v753_v30  ;;  %v849_v42 = vunpack.c.l.bf16 %v1647_v39  ;;  %v865_v43 = vunpack.c.l.bf16 %v1648_v40  ;;  %v1649_v44 = vld [vmem:[%s1946_s0 + $0x9] sm:$0x1] }
  0x23   :  { %772 = vst [vmem:[#allocation1 + $0x80] sm:$0x3] %v769_v31  ;;  %v1650_v45 = vld [vmem:[%s1946_s0 + $0x8] sm:$0x1]  ;;  %v1651_v46 = vld [vmem:[%s1946_s0 + $0x7] sm:$0x1]  ;;  %v881_v47 = vunpack.c.l.bf16 %v1649_v44 }
  0x24   :  { %788 = vst [vmem:[#allocation1 + $0x78] sm:$0x3] %v785_v35  ;;  %804 = vst [vmem:[#allocation1 + $0x70] sm:$0x3] %v801_v36  ;;  %v897_v48 = vunpack.c.l.bf16 %v1650_v45  ;;  %v913_v49 = vunpack.c.l.bf16 %v1651_v46  ;;  %v1652_v50 = vld [vmem:[%s1946_s0 + $0x6] sm:$0x1] }
  0x25   :  { %820 = vst [vmem:[#allocation1 + $0x68] sm:$0x3] %v817_v37  ;;  %v1653_v51 = vld [vmem:[%s1946_s0 + $0x5] sm:$0x1]  ;;  %v1654_v52 = vld [vmem:[%s1946_s0 + $0x4] sm:$0x1]  ;;  %v929_v53 = vunpack.c.l.bf16 %v1652_v50 }
  0x26   :  { %836 = vst [vmem:[#allocation1 + $0x60] sm:$0x3] %v833_v41  ;;  %852 = vst [vmem:[#allocation1 + $0x58] sm:$0x3] %v849_v42  ;;  %v945_v54 = vunpack.c.l.bf16 %v1653_v51  ;;  %v961_v55 = vunpack.c.l.bf16 %v1654_v52  ;;  %v1655_v56 = vld [vmem:[%s1946_s0 + $0x3] sm:$0x1] }
  0x27   :  { %868 = vst [vmem:[#allocation1 + $0x50] sm:$0x3] %v865_v43  ;;  %v1656_v57 = vld [vmem:[%s1946_s0 + $0x2] sm:$0x1]  ;;  %v1657_v58 = vld [vmem:[%s1946_s0 + $0x1] sm:$0x1]  ;;  %v977_v59 = vunpack.c.l.bf16 %v1655_v56 }
  0x28   :  { %884 = vst [vmem:[#allocation1 + $0x48] sm:$0x3] %v881_v47  ;;  %900 = vst [vmem:[#allocation1 + $0x40] sm:$0x3] %v897_v48  ;;  %v993_v60 = vunpack.c.l.bf16 %v1656_v57  ;;  %v1008_v61 = vunpack.c.l.bf16 %v1657_v58  ;;  %v1021_v62 = vld [vmem:[%s1946_s0] sm:$0x1] }
  0x29   :  { %916 = vst [vmem:[#allocation1 + $0x38] sm:$0x3] %v913_v49  ;;  %v1192_v63 = vld [vmem:[#allocation1 + $0xe0] sm:$0x3]   ;;  %v1198_v0 = vld [vmem:[#allocation1 + $0xe8] sm:$0x3]   ;;  %v1022_v1 = vunpack.c.l.bf16 %v1021_v62 }
  0x2a   :  { %932 = vst [vmem:[#allocation1 + $0x30] sm:$0x3] %v929_v53  ;;  %948 = vst [vmem:[#allocation1 + $0x28] sm:$0x3] %v945_v54  ;;  %v1174_v2 = vld [vmem:[#allocation1 + $0xc8] sm:$0x3]  }
  0x2b   :  { %964 = vst [vmem:[#allocation1 + $0x20] sm:$0x3] %v961_v55  ;;  %v1180_v3 = vld [vmem:[#allocation1 + $0xd0] sm:$0x3]   ;;  %v1186_v4 = vld [vmem:[#allocation1 + $0xd8] sm:$0x3]  }
  0x2c   :  { %1194 = vst [vmem:[#allocation0 + $0x7] sm:$0x1] %v1192_v63   ;;  %1196 = vst [vmem:[#allocation0 + $0x46] sm:$0x2] %v1192_v63   ;;  %v1156_v5 = vld [vmem:[#allocation1 + $0xb0] sm:$0x3]  }
  0x2d   :  { %1200 = vst [vmem:[#allocation0 + $0xf] sm:$0x1] %v1198_v0   ;;  %1202 = vst [vmem:[#allocation0 + $0x4e] sm:$0x2] %v1198_v0   ;;  %v1162_v6 = vld [vmem:[#allocation1 + $0xb8] sm:$0x3]  }
  0x2e   :  { %980 = vst [vmem:[#allocation1 + $0x18] sm:$0x3] %v977_v59  ;;  %996 = vst [vmem:[#allocation1 + $0x10] sm:$0x3] %v993_v60  ;;  %v1168_v7 = vld [vmem:[#allocation1 + $0xc0] sm:$0x3]  }
  0x2f   :  { %1011 = vst [vmem:[#allocation1 + $0x8] sm:$0x3] %v1008_v61  ;;  %1176 = vst [vmem:[#allocation0 + $0xe] sm:$0x1] %v1174_v2   ;;  %v1138_v8 = vld [vmem:[#allocation1 + $0x98] sm:$0x3]  }
  0x30   :  { %1178 = vst [vmem:[#allocation0 + $0x4d] sm:$0x2] %v1174_v2   ;;  %1182 = vst [vmem:[#allocation0 + $0x16] sm:$0x1] %v1180_v3   ;;  %v1144_v9 = vld [vmem:[#allocation1 + $0xa0] sm:$0x3]  }
  0x31   :  { %1184 = vst [vmem:[#allocation0 + $0x55] sm:$0x2] %v1180_v3   ;;  %1188 = vst [vmem:[#allocation0 + $0x1e] sm:$0x1] %v1186_v4   ;;  %v1150_v10 = vld [vmem:[#allocation1 + $0xa8] sm:$0x3]  }
  0x32   :  { %1190 = vst [vmem:[#allocation0 + $0x5d] sm:$0x2] %v1186_v4   ;;  %1024 = vst [vmem:[#allocation1] sm:$0x3] %v1022_v1  ;;  %v1120_v11 = vld [vmem:[#allocation1 + $0x80] sm:$0x3]  }
  0x33   :  { %1158 = vst [vmem:[#allocation0 + $0x15] sm:$0x1] %v1156_v5   ;;  %1160 = vst [vmem:[#allocation0 + $0x54] sm:$0x2] %v1156_v5   ;;  %v1126_v12 = vld [vmem:[#allocation1 + $0x88] sm:$0x3]  }
  0x34   :  { %1164 = vst [vmem:[#allocation0 + $0x1d] sm:$0x1] %v1162_v6   ;;  %1166 = vst [vmem:[#allocation0 + $0x5c] sm:$0x2] %v1162_v6   ;;  %v1132_v13 = vld [vmem:[#allocation1 + $0x90] sm:$0x3]  }
  0x35   :  { %1170 = vst [vmem:[#allocation0 + $0x6] sm:$0x1] %v1168_v7   ;;  %1172 = vst [vmem:[#allocation0 + $0x45] sm:$0x2] %v1168_v7   ;;  %v1102_v14 = vld [vmem:[#allocation1 + $0x68] sm:$0x3]  }
  0x36   :  { %1140 = vst [vmem:[#allocation0 + $0x1c] sm:$0x1] %v1138_v8   ;;  %1142 = vst [vmem:[#allocation0 + $0x5b] sm:$0x2] %v1138_v8   ;;  %v1108_v15 = vld [vmem:[#allocation1 + $0x70] sm:$0x3]  }
  0x37   :  { %1146 = vst [vmem:[#allocation0 + $0x5] sm:$0x1] %v1144_v9   ;;  %1148 = vst [vmem:[#allocation0 + $0x44] sm:$0x2] %v1144_v9   ;;  %v1114_v16 = vld [vmem:[#allocation1 + $0x78] sm:$0x3]  }
  0x38   :  { %1152 = vst [vmem:[#allocation0 + $0xd] sm:$0x1] %v1150_v10   ;;  %1154 = vst [vmem:[#allocation0 + $0x4c] sm:$0x2] %v1150_v10   ;;  %v1084_v17 = vld [vmem:[#allocation1 + $0x50] sm:$0x3]  }
  0x39   :  { %1122 = vst [vmem:[#allocation0 + $0x4] sm:$0x1] %v1120_v11   ;;  %1124 = vst [vmem:[#allocation0 + $0x43] sm:$0x2] %v1120_v11   ;;  %v1090_v18 = vld [vmem:[#allocation1 + $0x58] sm:$0x3]  }
  0x3a   :  { %1128 = vst [vmem:[#allocation0 + $0xc] sm:$0x1] %v1126_v12   ;;  %1130 = vst [vmem:[#allocation0 + $0x4b] sm:$0x2] %v1126_v12   ;;  %v1096_v19 = vld [vmem:[#allocation1 + $0x60] sm:$0x3]  }
  0x3b   :  { %1134 = vst [vmem:[#allocation0 + $0x14] sm:$0x1] %v1132_v13   ;;  %1136 = vst [vmem:[#allocation0 + $0x53] sm:$0x2] %v1132_v13   ;;  %v1066_v20 = vld [vmem:[#allocation1 + $0x38] sm:$0x3]  }
  0x3c   :  { %1104 = vst [vmem:[#allocation0 + $0xb] sm:$0x1] %v1102_v14   ;;  %1106 = vst [vmem:[#allocation0 + $0x4a] sm:$0x2] %v1102_v14   ;;  %v1072_v21 = vld [vmem:[#allocation1 + $0x40] sm:$0x3]  }
  0x3d   :  { %1110 = vst [vmem:[#allocation0 + $0x13] sm:$0x1] %v1108_v15   ;;  %1112 = vst [vmem:[#allocation0 + $0x52] sm:$0x2] %v1108_v15   ;;  %v1078_v22 = vld [vmem:[#allocation1 + $0x48] sm:$0x3]  }
  0x3e   :  { %1116 = vst [vmem:[#allocation0 + $0x1b] sm:$0x1] %v1114_v16   ;;  %1118 = vst [vmem:[#allocation0 + $0x5a] sm:$0x2] %v1114_v16   ;;  %v1048_v23 = vld [vmem:[#allocation1 + $0x20] sm:$0x3]  }
  0x3f   :  { %1086 = vst [vmem:[#allocation0 + $0x12] sm:$0x1] %v1084_v17   ;;  %1088 = vst [vmem:[#allocation0 + $0x51] sm:$0x2] %v1084_v17   ;;  %v1054_v24 = vld [vmem:[#allocation1 + $0x28] sm:$0x3]  }
  0x40   :  { %1092 = vst [vmem:[#allocation0 + $0x1a] sm:$0x1] %v1090_v18   ;;  %1094 = vst [vmem:[#allocation0 + $0x59] sm:$0x2] %v1090_v18   ;;  %v1060_v25 = vld [vmem:[#allocation1 + $0x30] sm:$0x3]  }
  0x41   :  { %1098 = vst [vmem:[#allocation0 + $0x3] sm:$0x1] %v1096_v19   ;;  %1100 = vst [vmem:[#allocation0 + $0x42] sm:$0x2] %v1096_v19   ;;  %v1030_v26 = vld [vmem:[#allocation1 + $0x8] sm:$0x3]  }
  0x42   :  { %1068 = vst [vmem:[#allocation0 + $0x19] sm:$0x1] %v1066_v20   ;;  %1070 = vst [vmem:[#allocation0 + $0x58] sm:$0x2] %v1066_v20   ;;  %v1036_v27 = vld [vmem:[#allocation1 + $0x10] sm:$0x3]  }
  0x43   :  { %1074 = vst [vmem:[#allocation0 + $0x2] sm:$0x1] %v1072_v21   ;;  %1076 = vst [vmem:[#allocation0 + $0x41] sm:$0x2] %v1072_v21   ;;  %v1042_v28 = vld [vmem:[#allocation1 + $0x18] sm:$0x3]  }
  0x44   :  { %1080 = vst [vmem:[#allocation0 + $0xa] sm:$0x1] %v1078_v22   ;;  %1082 = vst [vmem:[#allocation0 + $0x49] sm:$0x2] %v1078_v22   ;;  %v1025_v29 = vld [vmem:[#allocation1] sm:$0x3]  }
  0x45   :  { %1050 = vst [vmem:[#allocation0 + $0x1] sm:$0x1] %v1048_v23   ;;  %1052 = vst [vmem:[#allocation0 + $0x40] sm:$0x2] %v1048_v23   ;;  %v1204_v30 = vld [vmem:[#allocation1 + $0xf0] sm:$0x3]  }
  0x46   :  { %1056 = vst [vmem:[#allocation0 + $0x9] sm:$0x1] %v1054_v24   ;;  %1058 = vst [vmem:[#allocation0 + $0x48] sm:$0x2] %v1054_v24   ;;  %v1210_v31 = vld [vmem:[#allocation1 + $0xf8] sm:$0x3]  }
  0x47   :  { %1062 = vst [vmem:[#allocation0 + $0x11] sm:$0x1] %v1060_v25   ;;  %1064 = vst [vmem:[#allocation0 + $0x50] sm:$0x2] %v1060_v25   ;;  %v1216_v32 = vld [vmem:[#allocation1 + $0x100] sm:$0x3]  }
  0x48   :  { %1032 = vst [vmem:[#allocation0 + $0x8] sm:$0x1] %v1030_v26   ;;  %1034 = vst [vmem:[#allocation0 + $0x47] sm:$0x2] %v1030_v26   ;;  %v1222_v33 = vld [vmem:[#allocation1 + $0x108] sm:$0x3]  }
  0x49   :  { %1038 = vst [vmem:[#allocation0 + $0x10] sm:$0x1] %v1036_v27   ;;  %1040 = vst [vmem:[#allocation0 + $0x4f] sm:$0x2] %v1036_v27   ;;  %v1228_v34 = vld [vmem:[#allocation1 + $0x110] sm:$0x3]  }
  0x4a   :  { %1044 = vst [vmem:[#allocation0 + $0x18] sm:$0x1] %v1042_v28   ;;  %1046 = vst [vmem:[#allocation0 + $0x57] sm:$0x2] %v1042_v28   ;;  %v1234_v35 = vld [vmem:[#allocation1 + $0x118] sm:$0x3]  }
  0x4b   :  { %1026 = vst [vmem:[#allocation0] sm:$0x1] %v1025_v29   ;;  %1028 = vst [vmem:[#allocation0 + $0x3f] sm:$0x2] %v1025_v29   ;;  %v1240_v36 = vld [vmem:[#allocation1 + $0x120] sm:$0x3]  }
  0x4c   :  { %1206 = vst [vmem:[#allocation0 + $0x17] sm:$0x1] %v1204_v30   ;;  %1208 = vst [vmem:[#allocation0 + $0x56] sm:$0x2] %v1204_v30   ;;  %v1246_v37 = vld [vmem:[#allocation1 + $0x128] sm:$0x3]  }
  0x4d   :  { %1212 = vst [vmem:[#allocation0 + $0x1f] sm:$0x1] %v1210_v31   ;;  %1214 = vst [vmem:[#allocation0 + $0x5e] sm:$0x2] %v1210_v31   ;;  %v1252_v38 = vld [vmem:[#allocation1 + $0x130] sm:$0x3]  }
  0x4e   :  { %1218 = vst [vmem:[#allocation0 + $0x20] sm:$0x1] %v1216_v32   ;;  %1220 = vst [vmem:[#allocation0 + $0x5f] sm:$0x2] %v1216_v32   ;;  %v1258_v39 = vld [vmem:[#allocation1 + $0x138] sm:$0x3]  }
  0x4f   :  { %1224 = vst [vmem:[#allocation0 + $0x28] sm:$0x1] %v1222_v33   ;;  %1226 = vst [vmem:[#allocation0 + $0x67] sm:$0x2] %v1222_v33   ;;  %v1264_v40 = vld [vmem:[#allocation1 + $0x140] sm:$0x3]  }
  0x50   :  { %1230 = vst [vmem:[#allocation0 + $0x30] sm:$0x1] %v1228_v34   ;;  %1232 = vst [vmem:[#allocation0 + $0x6f] sm:$0x2] %v1228_v34   ;;  %v1270_v41 = vld [vmem:[#allocation1 + $0x148] sm:$0x3]  }
  0x51   :  { %1236 = vst [vmem:[#allocation0 + $0x38] sm:$0x1] %v1234_v35   ;;  %1238 = vst [vmem:[#allocation0 + $0x77] sm:$0x2] %v1234_v35   ;;  %v1276_v42 = vld [vmem:[#allocation1 + $0x150] sm:$0x3]  }
  0x52   :  { %1242 = vst [vmem:[#allocation0 + $0x21] sm:$0x1] %v1240_v36   ;;  %1244 = vst [vmem:[#allocation0 + $0x60] sm:$0x2] %v1240_v36   ;;  %v1282_v43 = vld [vmem:[#allocation1 + $0x158] sm:$0x3]  }
  0x53   :  { %1248 = vst [vmem:[#allocation0 + $0x29] sm:$0x1] %v1246_v37   ;;  %1250 = vst [vmem:[#allocation0 + $0x68] sm:$0x2] %v1246_v37   ;;  %v1288_v44 = vld [vmem:[#allocation1 + $0x160] sm:$0x3]  }
  0x54   :  { %1254 = vst [vmem:[#allocation0 + $0x31] sm:$0x1] %v1252_v38   ;;  %1256 = vst [vmem:[#allocation0 + $0x70] sm:$0x2] %v1252_v38   ;;  %v1294_v45 = vld [vmem:[#allocation1 + $0x168] sm:$0x3]  }
  0x55   :  { %1260 = vst [vmem:[#allocation0 + $0x39] sm:$0x1] %v1258_v39   ;;  %1262 = vst [vmem:[#allocation0 + $0x78] sm:$0x2] %v1258_v39   ;;  %v1300_v46 = vld [vmem:[#allocation1 + $0x170] sm:$0x3]  }
  0x56   :  { %1266 = vst [vmem:[#allocation0 + $0x22] sm:$0x1] %v1264_v40   ;;  %1268 = vst [vmem:[#allocation0 + $0x61] sm:$0x2] %v1264_v40   ;;  %v1306_v47 = vld [vmem:[#allocation1 + $0x178] sm:$0x3]  }
  0x57   :  { %1272 = vst [vmem:[#allocation0 + $0x2a] sm:$0x1] %v1270_v41   ;;  %1274 = vst [vmem:[#allocation0 + $0x69] sm:$0x2] %v1270_v41   ;;  %v1312_v48 = vld [vmem:[#allocation1 + $0x180] sm:$0x3]  }
  0x58   :  { %1278 = vst [vmem:[#allocation0 + $0x32] sm:$0x1] %v1276_v42   ;;  %1280 = vst [vmem:[#allocation0 + $0x71] sm:$0x2] %v1276_v42   ;;  %v1318_v49 = vld [vmem:[#allocation1 + $0x188] sm:$0x3]  }
  0x59   :  { %1284 = vst [vmem:[#allocation0 + $0x3a] sm:$0x1] %v1282_v43   ;;  %1286 = vst [vmem:[#allocation0 + $0x79] sm:$0x2] %v1282_v43   ;;  %v1324_v50 = vld [vmem:[#allocation1 + $0x190] sm:$0x3]  }
  0x5a   :  { %1290 = vst [vmem:[#allocation0 + $0x23] sm:$0x1] %v1288_v44   ;;  %1292 = vst [vmem:[#allocation0 + $0x62] sm:$0x2] %v1288_v44   ;;  %v1330_v51 = vld [vmem:[#allocation1 + $0x198] sm:$0x3]  }
  0x5b   :  { %1296 = vst [vmem:[#allocation0 + $0x2b] sm:$0x1] %v1294_v45   ;;  %1298 = vst [vmem:[#allocation0 + $0x6a] sm:$0x2] %v1294_v45   ;;  %v1336_v52 = vld [vmem:[#allocation1 + $0x1a0] sm:$0x3]  }
  0x5c   :  { %1302 = vst [vmem:[#allocation0 + $0x33] sm:$0x1] %v1300_v46   ;;  %1304 = vst [vmem:[#allocation0 + $0x72] sm:$0x2] %v1300_v46   ;;  %v1342_v53 = vld [vmem:[#allocation1 + $0x1a8] sm:$0x3]  }
  0x5d   :  { %1308 = vst [vmem:[#allocation0 + $0x3b] sm:$0x1] %v1306_v47   ;;  %1310 = vst [vmem:[#allocation0 + $0x7a] sm:$0x2] %v1306_v47   ;;  %v1348_v54 = vld [vmem:[#allocation1 + $0x1b0] sm:$0x3]  }
  0x5e   :  { %1314 = vst [vmem:[#allocation0 + $0x24] sm:$0x1] %v1312_v48   ;;  %1316 = vst [vmem:[#allocation0 + $0x63] sm:$0x2] %v1312_v48   ;;  %v1354_v55 = vld [vmem:[#allocation1 + $0x1b8] sm:$0x3]  }
  0x5f   :  { %1320 = vst [vmem:[#allocation0 + $0x2c] sm:$0x1] %v1318_v49   ;;  %1322 = vst [vmem:[#allocation0 + $0x6b] sm:$0x2] %v1318_v49   ;;  %v1360_v56 = vld [vmem:[#allocation1 + $0x1c0] sm:$0x3]  }
  0x60   :  { %1326 = vst [vmem:[#allocation0 + $0x34] sm:$0x1] %v1324_v50   ;;  %1328 = vst [vmem:[#allocation0 + $0x73] sm:$0x2] %v1324_v50   ;;  %v1366_v57 = vld [vmem:[#allocation1 + $0x1c8] sm:$0x3]  }
  0x61   :  { %1332 = vst [vmem:[#allocation0 + $0x3c] sm:$0x1] %v1330_v51   ;;  %1334 = vst [vmem:[#allocation0 + $0x7b] sm:$0x2] %v1330_v51   ;;  %v1372_v58 = vld [vmem:[#allocation1 + $0x1d0] sm:$0x3]  }
  0x62   :  { %1338 = vst [vmem:[#allocation0 + $0x25] sm:$0x1] %v1336_v52   ;;  %1340 = vst [vmem:[#allocation0 + $0x64] sm:$0x2] %v1336_v52   ;;  %v1378_v59 = vld [vmem:[#allocation1 + $0x1d8] sm:$0x3]  }
  0x63   :  { %1344 = vst [vmem:[#allocation0 + $0x2d] sm:$0x1] %v1342_v53   ;;  %1346 = vst [vmem:[#allocation0 + $0x6c] sm:$0x2] %v1342_v53   ;;  %v1384_v60 = vld [vmem:[#allocation1 + $0x1e0] sm:$0x3]  }
  0x64   :  { %1350 = vst [vmem:[#allocation0 + $0x35] sm:$0x1] %v1348_v54   ;;  %1352 = vst [vmem:[#allocation0 + $0x74] sm:$0x2] %v1348_v54   ;;  %v1390_v61 = vld [vmem:[#allocation1 + $0x1e8] sm:$0x3]  }
  0x65   :  { %1356 = vst [vmem:[#allocation0 + $0x3d] sm:$0x1] %v1354_v55   ;;  %1358 = vst [vmem:[#allocation0 + $0x7c] sm:$0x2] %v1354_v55   ;;  %v1396_v62 = vld [vmem:[#allocation1 + $0x1f0] sm:$0x3]  }
  0x66   :  { %1362 = vst [vmem:[#allocation0 + $0x26] sm:$0x1] %v1360_v56   ;;  %1364 = vst [vmem:[#allocation0 + $0x65] sm:$0x2] %v1360_v56   ;;  %v1402_v63 = vld [vmem:[#allocation1 + $0x1f8] sm:$0x3]  }
  0x67   :  { %1368 = vst [vmem:[#allocation0 + $0x2e] sm:$0x1] %v1366_v57   ;;  %1370 = vst [vmem:[#allocation0 + $0x6d] sm:$0x2] %v1366_v57   ;;  %v1411_v0 = vld [vmem:[#allocation0] sm:$0xff]  ;;  %v1416_v1 = vld [vmem:[#allocation0 + $0x8] sm:$0xff] }
  0x68   :  { %1374 = vst [vmem:[#allocation0 + $0x36] sm:$0x1] %v1372_v58   ;;  %1376 = vst [vmem:[#allocation0 + $0x75] sm:$0x2] %v1372_v58   ;;  %v1422_v2 = vld [vmem:[#allocation0 + $0x10] sm:$0xff]  ;;  %v1429_v3 = vld [vmem:[#allocation0 + $0x18] sm:$0xff]  ;;  %v1676_v4 = vpack.c.bf16 %v1416_v1, %v1411_v0 }
  0x69   :  { %1380 = vst [vmem:[#allocation0 + $0x3e] sm:$0x1] %v1378_v59   ;;  %1382 = vst [vmem:[#allocation0 + $0x7d] sm:$0x2] %v1378_v59   ;;  %v1681_v5 = vpack.c.bf16 %v1429_v3, %v1422_v2  ;;  %v1464_v6 = vld [vmem:[#allocation0 + $0x40] sm:$0xff]  ;;  %v1471_v7 = vld [vmem:[#allocation0 + $0x48] sm:$0xff] }
  0x6a   :  { %1386 = vst [vmem:[#allocation0 + $0x27] sm:$0x1] %v1384_v60   ;;  %1388 = vst [vmem:[#allocation0 + $0x66] sm:$0x2] %v1384_v60   ;;  %v1478_v8 = vld [vmem:[#allocation0 + $0x50] sm:$0xff]  ;;  %v1696_v9 = vpack.c.bf16 %v1471_v7, %v1464_v6  ;;  %v1485_v10 = vld [vmem:[#allocation0 + $0x58] sm:$0xff] }
  0x6b   :  { %1392 = vst [vmem:[#allocation0 + $0x2f] sm:$0x1] %v1390_v61   ;;  %1394 = vst [vmem:[#allocation0 + $0x6e] sm:$0x2] %v1390_v61   ;;  %v1701_v11 = vpack.c.bf16 %v1485_v10, %v1478_v8 }
  0x6c   :  { %1398 = vst [vmem:[#allocation0 + $0x37] sm:$0x1] %v1396_v62   ;;  %1400 = vst [vmem:[#allocation0 + $0x76] sm:$0x2] %v1396_v62  }
  0x6d   :  { %1404 = vst [vmem:[#allocation0 + $0x3f] sm:$0x1] %v1402_v63   ;;  %1406 = vst [vmem:[#allocation0 + $0x7e] sm:$0x2] %v1402_v63  }
  0x6e   :  { %1677 = vst [vmem:[%s1947_s1] sm:$0xff] %v1676_v4   ;;  %1713 = vst [vmem:[%s1947_s1 + $0x8] sm:$0xff] %v1681_v5  }
  0x6f   :  { %1716 = vst [vmem:[%s1947_s1 + $0x20] sm:$0xff] %v1696_v9   ;;  %1717 = vst [vmem:[%s1947_s1 + $0x28] sm:$0xff] %v1701_v11  }
  0x71   :  { %v1436_v12 = vld [vmem:[#allocation0 + $0x20] sm:$0xff] }
  0x72   :  { %v1443_v13 = vld [vmem:[#allocation0 + $0x28] sm:$0xff]  ;;  %v1492_v14 = vld [vmem:[#allocation0 + $0x60] sm:$0xff] }
  0x73   :  { %v1686_v15 = vpack.c.bf16 %v1443_v13, %v1436_v12  ;;  %v1450_v16 = vld [vmem:[#allocation0 + $0x30] sm:$0xff]  ;;  %v1499_v18 = vld [vmem:[#allocation0 + $0x68] sm:$0xff] }
  0x74   :  { %v1457_v17 = vld [vmem:[#allocation0 + $0x38] sm:$0xff]  ;;  %v1706_v20 = vpack.c.bf16 %v1499_v18, %v1492_v14  ;;  %v1506_v21 = vld [vmem:[#allocation0 + $0x70] sm:$0xff] }
  0x75   :  { %v1691_v19 = vpack.c.bf16 %v1457_v17, %v1450_v16  ;;  %v1513_v22 = vld [vmem:[#allocation0 + $0x78] sm:$0xff]  ;;  %1714 = vst [vmem:[%s1947_s1 + $0x10] sm:$0xff] %v1686_v15  }
  0x76   :  { %v1711_v23 = vpack.c.bf16 %v1513_v22, %v1506_v21  ;;  %1718 = vst [vmem:[%s1947_s1 + $0x30] sm:$0xff] %v1706_v20  }
  0x77   :  { %1715 = vst [vmem:[%s1947_s1 + $0x18] sm:$0xff] %v1691_v19  }
  0x78   :  { %1719 = vst [vmem:[%s1947_s1 + $0x38] sm:$0xff] %v1711_v23  }

// kernel: generator_forward.10
= control target key start
LH: loop header
LB: loop body
LE: loop exit
PB: predicated region body
PF: predicated region fallthrough
CT: control target
= control target key end

     0   :  { %v40_v0 = vlaneseq  ;;  %s304_s0 = inlined_call_operand.vmem [shape: bf16[32,512], index: 0, kind: input, shape index: {}]   ;;  %s305_s1 = inlined_call_operand.vmem [shape: f32[1,512], index: 1, kind: input, shape index: {}]   ;;  %s306_s2 = inlined_call_operand.vmem [shape: f32[1,512], index: 2, kind: input, shape index: {}]   ;;  %s307_s3 = inlined_call_operand.vmem [shape: bf16[32,512], index: 3, kind: output, shape index: {}]  }
   0x1   :  { %v14_v1 = vld [vmem:[%s304_s0] sm:$0xff]  ;;  %v15_v5 = vld [vmem:[%s304_s0 + $0x8] sm:$0xff]  ;;  %v16_v6 = vld [vmem:[%s304_s0 + $0x10] sm:$0xff] }
   0x2   :  { %v22_v2 = vunpack.c.l.bf16 %v14_v1  ;;  %v23_v3 = vunpack.c.h.bf16 %v14_v1  ;;  %v41_v4 = vshrl.u32 %v40_v0, 7  ;;  %v17_v7 = vld [vmem:[%s304_s0 + $0x18] sm:$0xff]  ;;  %v38_v8 = vld [vmem:[%s305_s1] sm:$0xf]  ;;  %v24_v10 = vunpack.c.l.bf16 %v15_v5  ;;  %v19_v51 = vld [vmem:[%s304_s0 + $0x28] sm:$0xff] }
   0x3   :  { %v76_v9 = vld [vmem:[%s306_s2] sm:$0xf]  ;;  %v25_v11 = vunpack.c.h.bf16 %v15_v5  ;;  %v26_v12 = vunpack.c.l.bf16 %v16_v6  ;;  %v27_v13 = vunpack.c.h.bf16 %v16_v6  ;;  %v28_v19 = vunpack.c.l.bf16 %v17_v7  ;;  %v20_v56 = vld [vmem:[%s304_s0 + $0x30] sm:$0xff]  ;;  %v21_v61 = vld [vmem:[%s304_s0 + $0x38] sm:$0xff] }
   0x4   :  { %v18_v14 = vld [vmem:[%s304_s0 + $0x20] sm:$0xff]  ;;  %v42_v15 = vsub.s32 0, %v41_v4  ;;  %v46_v16 = vsub.s32 1, %v41_v4  ;;  %v50_v17 = vsub.s32 2, %v41_v4  ;;  %v54_v18 = vsub.s32 3, %v41_v4 }
   0x5   :  { %v29_v20 = vunpack.c.h.bf16 %v17_v7  ;;  %v30_v21 = vunpack.c.l.bf16 %v18_v14  ;;  %v31_v22 = vunpack.c.h.bf16 %v18_v14  ;;  %v32_v0 = vunpack.c.l.bf16 %v19_v51 }
   0x6   :  { %v43_v23 = vrot.slane %v38_v8, %v42_v15  ;;  %v47_v24 = vrot.slane %v38_v8, %v46_v16  ;;  %v247_v25 = vrot.slane %v76_v9, %v42_v15  ;;  %v249_v26 = vrot.slane %v76_v9, %v46_v16 }
   0x7   :  { %v51_v27 = vrot.slane %v38_v8, %v50_v17  ;;  %v55_v28 = vrot.slane %v38_v8, %v54_v18  ;;  %v251_v29 = vrot.slane %v76_v9, %v50_v17  ;;  %v253_v30 = vrot.slane %v76_v9, %v54_v18 }
   0x8   :  { %v60_v31 = vmul.f32 %v43_v23, %v22_v2  ;;  %v61_v32 = vmul.f32 %v47_v24, %v23_v3  ;;  %v64_v33 = vmul.f32 %v43_v23, %v26_v12  ;;  %v65_v34 = vmul.f32 %v47_v24, %v27_v13 }
   0x9   :  { %v62_v35 = vmul.f32 %v51_v27, %v24_v10  ;;  %v63_v36 = vmul.f32 %v55_v28, %v25_v11  ;;  %v66_v37 = vmul.f32 %v51_v27, %v28_v19  ;;  %v67_v38 = vmul.f32 %v55_v28, %v29_v20 }
   0xa   :  { %v98_v39 = vadd.f32 %v247_v25, %v60_v31  ;;  %v99_v40 = vadd.f32 %v249_v26, %v61_v32  ;;  %v102_v41 = vadd.f32 %v247_v25, %v64_v33  ;;  %v103_v42 = vadd.f32 %v249_v26, %v65_v34 }
   0xb   :  { %v100_v43 = vadd.f32 %v251_v29, %v62_v35  ;;  %v101_v44 = vadd.f32 %v253_v30, %v63_v36  ;;  %v104_v45 = vadd.f32 %v251_v29, %v66_v37  ;;  %v105_v46 = vadd.f32 %v253_v30, %v67_v38 }
   0xc   :  { %v114_v47 = vmax.f32 %v98_v39, 0.0  ;;  %v115_v48 = vmax.f32 %v99_v40, 0.0  ;;  %v118_v49 = vmax.f32 %v102_v41, 0.0  ;;  %v119_v50 = vmax.f32 %v103_v42, 0.0 }
   0xd   :  { %v116_v52 = vmax.f32 %v100_v43, 0.0  ;;  %v117_v53 = vmax.f32 %v101_v44, 0.0  ;;  %v120_v54 = vmax.f32 %v104_v45, 0.0  ;;  %v121_v55 = vmax.f32 %v105_v46, 0.0 }
   0xe   :  { %v198_v57 = vpack.c.bf16 %v115_v48, %v114_v47  ;;  %v200_v58 = vpack.c.bf16 %v119_v50, %v118_v49  ;;  %v68_v59 = vmul.f32 %v43_v23, %v30_v21  ;;  %v69_v60 = vmul.f32 %v47_v24, %v31_v22 }
   0xf   :  { %v199_v62 = vpack.c.bf16 %v117_v53, %v116_v52  ;;  %v201_v63 = vpack.c.bf16 %v121_v55, %v120_v54  ;;  %v33_v1 = vunpack.c.h.bf16 %v19_v51  ;;  %v34_v4 = vunpack.c.l.bf16 %v20_v56 }
  0x10   :  { %178 = vst [vmem:[%s307_s3] sm:$0xff] %v198_v57  ;;  %180 = vst [vmem:[%s307_s3 + $0x10] sm:$0xff] %v200_v58  ;;  %v106_v2 = vadd.f32 %v247_v25, %v68_v59  ;;  %v107_v3 = vadd.f32 %v249_v26, %v69_v60  ;;  %v35_v5 = vunpack.c.h.bf16 %v20_v56  ;;  %v70_v6 = vmul.f32 %v51_v27, %v32_v0 }
  0x11   :  { %179 = vst [vmem:[%s307_s3 + $0x8] sm:$0xff] %v199_v62  ;;  %181 = vst [vmem:[%s307_s3 + $0x18] sm:$0xff] %v201_v63  ;;  %v71_v7 = vmul.f32 %v55_v28, %v33_v1  ;;  %v36_v8 = vunpack.c.l.bf16 %v21_v61  ;;  %v37_v9 = vunpack.c.h.bf16 %v21_v61  ;;  %v72_v12 = vmul.f32 %v43_v23, %v34_v4 }
  0x12   :  { %v122_v10 = vmax.f32 %v106_v2, 0.0  ;;  %v123_v11 = vmax.f32 %v107_v3, 0.0  ;;  %v73_v13 = vmul.f32 %v47_v24, %v35_v5  ;;  %v108_v14 = vadd.f32 %v251_v29, %v70_v6 }
  0x13   :  { %v109_v15 = vadd.f32 %v253_v30, %v71_v7  ;;  %v74_v16 = vmul.f32 %v51_v27, %v36_v8  ;;  %v75_v17 = vmul.f32 %v55_v28, %v37_v9  ;;  %v110_v19 = vadd.f32 %v247_v25, %v72_v12 }
  0x14   :  { %v202_v18 = vpack.c.bf16 %v123_v11, %v122_v10  ;;  %v111_v20 = vadd.f32 %v249_v26, %v73_v13  ;;  %v124_v21 = vmax.f32 %v108_v14, 0.0 }
  0x15   :  { %v125_v22 = vmax.f32 %v109_v15, 0.0  ;;  %v112_v31 = vadd.f32 %v251_v29, %v74_v16  ;;  %v113_v32 = vadd.f32 %v253_v30, %v75_v17  ;;  %v126_v23 = vmax.f32 %v110_v19, 0.0 }
  0x16   :  { %182 = vst [vmem:[%s307_s3 + $0x20] sm:$0xff] %v202_v18  ;;  %v127_v24 = vmax.f32 %v111_v20, 0.0 }
  0x17   :  { %v203_v33 = vpack.c.bf16 %v125_v22, %v124_v21  ;;  %v128_v27 = vmax.f32 %v112_v31, 0.0  ;;  %v129_v28 = vmax.f32 %v113_v32, 0.0 }
  0x18   :  { %v204_v34 = vpack.c.bf16 %v127_v24, %v126_v23 }
  0x19   :  { %183 = vst [vmem:[%s307_s3 + $0x28] sm:$0xff] %v203_v33  ;;  %v205_v25 = vpack.c.bf16 %v129_v28, %v128_v27 }
  0x1a   :  { %184 = vst [vmem:[%s307_s3 + $0x30] sm:$0xff] %v204_v34 }
  0x1b   :  { %185 = vst [vmem:[%s307_s3 + $0x38] sm:$0xff] %v205_v25 }

// kernel: generator_forward.9
= control target key start
LH: loop header
LB: loop body
LE: loop exit
PB: predicated region body
PF: predicated region fallthrough
CT: control target
= control target key end

     0   :  { %10 = vsyncpa [#allocation4], 0  ;;  %s1968_s0 = inlined_call_operand.vmem [shape: bf16[1,8,128], index: 0, kind: input, shape index: {}]   ;;  %s1969_s1 = inlined_call_operand.hbm [shape: bf16[1,128,8192], index: 1, kind: input, shape index: {}]   ;;  %s1970_s2 = inlined_call_operand.vmem [shape: bf16[1,8,8192], index: 2, kind: output, shape index: {0}]   ;;  %s1971_s3 = inlined_call_operand.vmem [shape: f32[1,1,8192], index: 3, kind: output, shape index: {1}]   ;;  %s1972_s4 = inlined_call_operand.vmem [shape: f32[1,1,8192], index: 4, kind: output, shape index: {2}]  }
   0x1   :  { %12 = vsyncpa [#allocation4 + $0x1], 0  ;;  %s1715_s15 = smov 0   ;;  %s1717_s16 = smov 0  }
   0x2   :  { %s1719_s17 = smov 0   ;;  %s1721_s18 = smov 0  }
   0x3   :  { %s1723_s19 = smov 0   ;;  %s1725_s20 = smov 0  }
   0x4 LB: > { %s1452_s21 = sadd.s32 4294967295, %s1682_s20   ;;  %s40_s22 = sadd.s32 1, %s1678_s19  ;;  %s1682_s20 = sphi %s1725_s20, %s18_s20   ;;  %s1678_s19 = sphi %s1723_s19, %s1981_s19   ;;  %s1674_s18 = sphi %s1721_s18, %s1980_s18   ;;  %s1670_s17 = sphi %s1719_s17, %s1979_s17   ;;  %s1666_s16 = sphi %s1717_s16, %s1978_s16   ;;  %s1662_s15 = sphi %s1715_s15, %s1977_s15  }
   0x5   : > { %p42_p0 = scmp.ge.s32.totalorder %s40_s22, 8  ;;  %s85_s23 = sadd.s32 1, %s1670_s17 }
   0x6   : > { %p92_p1 = scmp.ne.s32.totalorder %s1670_s17, %s1666_s16  ;;  %p93_p2 = scmp.eq.s32.totalorder %s1682_s20, 0 }
   0x7   : > { %s1983_s22 = smov (%p42_p0, %s40_s22), 0  ;;  %p98_p4 = scmp.ne.s32.totalorder %s1666_s16, %s1662_s15 }
   0x8   : > { %p1751_p3 = por %p93_p2, %p92_p1  ;;  %s81_s25 = ssub.s32 %s1678_s19, %s1983_s22 }
   0x9   : > { %p99_p5 = scmp.eq.s32.totalorder %s1452_s21, 0  ;;  %p83_p6 = scmp.eq.s32.totalorder %s81_s25, 0 }
   0xa   : > { %p1547_p8 = scmp.lt.s32.totalorder %s1682_s20, 8  ;;  %s221_s28 = sand.u32 1, %s1670_s17  }
   0xb   : > { %p1758_p7 = por %p99_p5, %p98_p4  ;;  %s1536_s29 = sshll.u32 %s1678_s19, 9 }
   0xc   : > { %s1764_s27 = scalar_select %p83_p6, %s1670_s17, %s85_s23  }
   0xd   : > { %s1457_s30 = sshll.u32 %s221_s28, 9  ;;  %s1771_s7 = scalar_lea.hbm %s1969_s1, %s1536_s29 }
   0xe   : > { %s225_s8 = scalar_lea.vmem [#allocation3], %s1457_s30  ;;  %p1775_p9 = pnand %p1547_p8, %p1751_p3 }
   0xf   : > { %s237_s9 = sshll.u32 %s225_s8, 4  ;;  %s1782_s11 = scalar_lea.sflag [#allocation4], %s221_s28  ;;  %s1779_s9 = int_to_ptr.vmem [resolvable:$true] %s237_s9 }
  0x10   : > { %s1602_s12 = scalar_lea.hbm %s1771_s7, 8192  ;;  %p1604_p12 = pneg %p1775_p9 }
  0x11   : > { %p1603_p11 = scmp.ne.s32.totalorder %s1771_s7, %s1602_s12  ;;  %s1607_s15 = scalar_lea.hbm %s1969_s1, 65536 }
  0x12   : > { %p1608_p1 = scmp.lt.u32.totalorder %s1771_s7, %s1969_s1  ;;  %p1609_p2 = scmp.lt.u32.totalorder %s1607_s15, %s1602_s12 }
  0x13   : > { %p1605_p13 = pnand %p1604_p12, %p1603_p11  ;;  %p1611_p4 = scmp.lt.u32.totalorder %s1602_s12, %s1771_s7 }
  0x14   : > { %p1610_p3 = por %p1609_p2, %p1608_p1 }
  0x15   : > { %p1606_p0 = pneg %p1605_p13 }
  0x16   : > { %p1612_p5 = por %p1611_p4, %p1610_p3 }
  0x18   : > { %p1613_p6 = pnand %p1612_p5, %p1606_p0 }
  0x1a   : > { %1616 = shalt.err (!%p1613_p6)
}
  0x1b   : > { %s1617_s24 = scalar_lea.vmem %s1779_s9, 8192  ;;  %s1684_s25 = smov [#allocation3]  }
  0x1c   : > { %p1618_p8 = scmp.ne.s32.totalorder %s1779_s9, %s1617_s24  ;;  %s1622_s28 = sshll.u32 %s1684_s25, 4  ;;  %s1623_s28 = int_to_ptr.vmem [resolvable:$false] %s1622_s28 }
  0x1d   : > { %s1624_s29 = scalar_lea.vmem %s1623_s28, 16384  ;;  %p1625_p10 = scmp.lt.s32.totalorder %s1779_s9, %s1623_s28 }
  0x1e   : > { %p1620_p11 = pnand %p1618_p8, %p1604_p12  ;;  %p1626_p1 = scmp.lt.s32.totalorder %s1624_s29, %s1617_s24 }
  0x20   : > { %p1621_p13 = pneg %p1620_p11  ;;  %p1627_p2 = por %p1626_p1, %p1625_p10 }
  0x22   : > { %p1628_p3 = pnand %p1627_p2, %p1621_p13 }
  0x24   : > { %1631 = shalt.err (!%p1628_p3)
}
  0x25   : > { %s1685_s30 = smov 4096   ;;  %s1686_s5 = smov 512  }
  0x26   : > { %s1687_s6 = smov 32   ;;  %p245_p12 = scmp.lt.s32.totalorder %s1682_s20, 9 }
  0x27   : > { %1546 = dma.hbm_to_vmem [thread:$0]  (!%p1775_p9), %s1771_s7, 8192, %s1779_s9, %s1782_s11, %s1685_s30, %s1686_s5, %s1687_s6  }
  0x28   : > { %p1976_p0 = scmp.ge.s32.totalorder %s1682_s20, 1 }
  0x2a   : > { %p246_p4 = pnand %p1976_p0, %p245_p12 }
  0x2b   : > { %s251_s8 = sand.u32 (!%p246_p4), 1, %s1666_s16  }
  0x2c   : > { %249 = sbr.rel (%p246_p4) target bundleno = 360 (0x168), region = 28  ;;  %s1461_s12 = sshll.u32 (!%p246_p4), %s251_s8, 9 }
  0x2d   : > { %s252_s13 = scalar_lea.sflag (!%p246_p4), [#allocation4], %s251_s8  ;;  %s1814_s14 = scalar_lea.vmem (!%p246_p4), [#allocation3], %s1461_s12 }
  0x33   : > { %1657 = dma.done.wait (%p1758_p7), %s252_s13, 8192  }
  0x34   : > { %1659 = vsyncadd (%p1758_p7), %s252_s13, 4294959104  ;;  %v1688_v0 = vmov 0   ;;  %v380_v1 = vld [vmem:[%s1814_s14] sm:$0xff]  ;;  %v381_v3 = vld [vmem:[%s1814_s14 + $0x8] sm:$0xff]  ;;  %s1462_s9 = sshll.u32 %s1674_s18, 3 }
  0x35   : > { %796 = vmatprep.mubr.bf16.mxu0 %v1688_v0  ;;  %837 = vmatprep.mubr.bf16.mxu1 %v1688_v0  ;;  %v384_v2 = vld [vmem:[%s1814_s14 + $0x20] sm:$0xff]  ;;  %v385_v5 = vld [vmem:[%s1814_s14 + $0x28] sm:$0xff]  ;;  %v382_v63 = vld [vmem:[%s1814_s14 + $0x10] sm:$0xff]  ;;  %p331_p7 = scmp.lt.s32.totalorder %s1462_s9, 63 }
  0x36   : > { %v1467_v4 = vcombine.high %v380_v1, %v384_v2  ;;  %v1466_v6 = vcombine.low %v380_v1, %v384_v2  ;;  %v388_v7 = vld [vmem:[%s1814_s14 + $0x40] sm:$0xff]  ;;  %v1469_v9 = vcombine.high %v381_v3, %v385_v5  ;;  %v1468_v10 = vcombine.low %v381_v3, %v385_v5  ;;  %v389_v12 = vld [vmem:[%s1814_s14 + $0x48] sm:$0xff]  ;;  %v386_v1 = vld [vmem:[%s1814_s14 + $0x30] sm:$0xff] }
  0x37   : > { %v392_v8 = vld [vmem:[%s1814_s14 + $0x60] sm:$0xff]  ;;  %v393_v13 = vld [vmem:[%s1814_s14 + $0x68] sm:$0xff]  ;;  %v383_v2 = vld [vmem:[%s1814_s14 + $0x18] sm:$0xff]  ;;  %s1985_s9 = smov (!%p331_p7, %s1462_s9), 63 }
  0x38   : > { %v1475_v11 = vcombine.high %v388_v7, %v392_v8  ;;  %v396_v14 = vld [vmem:[%s1814_s14 + $0x80] sm:$0xff]  ;;  %764 = vmatprep.subr.bf16.mxu0 %v1467_v4  ;;  %v1477_v15 = vcombine.high %v389_v12, %v393_v13  ;;  %v397_v17 = vld [vmem:[%s1814_s14 + $0x88] sm:$0xff]  ;;  %805 = vmatprep.subr.bf16.mxu1 %v1469_v9  ;;  %v1474_v19 = vcombine.low %v388_v7, %v392_v8  ;;  %v387_v3 = vld [vmem:[%s1814_s14 + $0x38] sm:$0xff]  ;;  %s1463_s10 = sshll.u32 %s1985_s9, 2  ;;  %s347_s24 = scalar_lea.vmem %s1971_s3, %s1985_s9 }
  0x39   : > { %v400_v16 = vld [vmem:[%s1814_s14 + $0xa0] sm:$0xff]  ;;  %v401_v18 = vld [vmem:[%s1814_s14 + $0xa8] sm:$0xff]  ;;  %765 = vmatpush1.bf16.msra.mxu0 %v1466_v6  ;;  %806 = vmatpush1.bf16.msra.mxu1 %v1468_v10  ;;  %v1476_v20 = vcombine.low %v389_v12, %v393_v13  ;;  %v1471_v6 = vcombine.high %v382_v63, %v386_v1  ;;  %v1473_v7 = vcombine.high %v383_v2, %v387_v3  ;;  %v390_v8 = vld [vmem:[%s1814_s14 + $0x50] sm:$0xff]  ;;  %s1904_s21 = scalar_lea.vmem %s1970_s2, %s1463_s10  ;;  %s356_s29 = scalar_lea.vmem %s1972_s4, %s1985_s9 }
  0x3a   : > { %766 = vmatprep.subr.bf16.mxu0 %v1475_v11  ;;  %v1483_v21 = vcombine.high %v396_v14, %v400_v16  ;;  %807 = vmatprep.subr.bf16.mxu1 %v1477_v15  ;;  %v1485_v22 = vcombine.high %v397_v17, %v401_v18  ;;  %v404_v23 = vld [vmem:[%s1814_s14 + $0xc0] sm:$0xff]  ;;  %v405_v25 = vld [vmem:[%s1814_s14 + $0xc8] sm:$0xff]  ;;  %v1482_v27 = vcombine.low %v396_v14, %v400_v16  ;;  %v394_v9 = vld [vmem:[%s1814_s14 + $0x70] sm:$0xff] }
  0x3b   : > { %v408_v24 = vld [vmem:[%s1814_s14 + $0xe0] sm:$0xff]  ;;  %v409_v26 = vld [vmem:[%s1814_s14 + $0xe8] sm:$0xff]  ;;  %v1484_v28 = vcombine.low %v397_v17, %v401_v18  ;;  %v391_v10 = vld [vmem:[%s1814_s14 + $0x58] sm:$0xff]  ;;  %v1470_v13 = vcombine.low %v382_v63, %v386_v1  ;;  %v1472_v14 = vcombine.low %v383_v2, %v387_v3  ;;  %v1479_v15 = vcombine.high %v390_v8, %v394_v9 }
  0x3c   : > { %v1491_v29 = vcombine.high %v404_v23, %v408_v24  ;;  %v1493_v30 = vcombine.high %v405_v25, %v409_v26  ;;  %v412_v31 = vld [vmem:[%s1814_s14 + $0x100] sm:$0xff]  ;;  %v413_v33 = vld [vmem:[%s1814_s14 + $0x108] sm:$0xff]  ;;  %v1490_v35 = vcombine.low %v404_v23, %v408_v24  ;;  %v1492_v36 = vcombine.low %v405_v25, %v409_v26  ;;  %v395_v11 = vld [vmem:[%s1814_s14 + $0x78] sm:$0xff] }
  0x3d   : > { %767 = vmatpush1.bf16.msra.mxu0 %v1474_v19  ;;  %808 = vmatpush1.bf16.msra.mxu1 %v1476_v20  ;;  %v416_v32 = vld [vmem:[%s1814_s14 + $0x120] sm:$0xff]  ;;  %v417_v34 = vld [vmem:[%s1814_s14 + $0x128] sm:$0xff]  ;;  %v1481_v16 = vcombine.high %v391_v10, %v395_v11  ;;  %v398_v17 = vld [vmem:[%s1814_s14 + $0x90] sm:$0xff]  ;;  %v1689_v3 = vmov 1966171168  }
  0x3e   : > { %768 = vmatprep.subr.bf16.mxu0 %v1483_v21  ;;  %809 = vmatprep.subr.bf16.mxu1 %v1485_v22  ;;  %v1499_v37 = vcombine.high %v412_v31, %v416_v32  ;;  %v1501_v38 = vcombine.high %v413_v33, %v417_v34  ;;  %v420_v39 = vld [vmem:[%s1814_s14 + $0x140] sm:$0xff]  ;;  %v421_v41 = vld [vmem:[%s1814_s14 + $0x148] sm:$0xff]  ;;  %v1498_v43 = vcombine.low %v412_v31, %v416_v32  ;;  %v402_v18 = vld [vmem:[%s1814_s14 + $0xb0] sm:$0xff] }
  0x3f   : > { %v424_v40 = vld [vmem:[%s1814_s14 + $0x160] sm:$0xff]  ;;  %v425_v42 = vld [vmem:[%s1814_s14 + $0x168] sm:$0xff]  ;;  %v1500_v44 = vcombine.low %v413_v33, %v417_v34  ;;  %v399_v19 = vld [vmem:[%s1814_s14 + $0x98] sm:$0xff]  ;;  %v1478_v21 = vcombine.low %v390_v8, %v394_v9  ;;  %v1480_v22 = vcombine.low %v391_v10, %v395_v11  ;;  %v1487_v23 = vcombine.high %v398_v17, %v402_v18 }
  0x40   : > { %v1507_v45 = vcombine.high %v420_v39, %v424_v40  ;;  %v1509_v46 = vcombine.high %v421_v41, %v425_v42  ;;  %v428_v47 = vld [vmem:[%s1814_s14 + $0x180] sm:$0xff]  ;;  %v429_v49 = vld [vmem:[%s1814_s14 + $0x188] sm:$0xff]  ;;  %v1506_v51 = vcombine.low %v420_v39, %v424_v40  ;;  %v1508_v52 = vcombine.low %v421_v41, %v425_v42  ;;  %v403_v20 = vld [vmem:[%s1814_s14 + $0xb8] sm:$0xff] }
  0x41   : > { %769 = vmatpush1.bf16.msra.mxu0 %v1482_v27  ;;  %810 = vmatpush1.bf16.msra.mxu1 %v1484_v28  ;;  %v432_v48 = vld [vmem:[%s1814_s14 + $0x1a0] sm:$0xff]  ;;  %v433_v50 = vld [vmem:[%s1814_s14 + $0x1a8] sm:$0xff]  ;;  %v1489_v24 = vcombine.high %v399_v19, %v403_v20  ;;  %v406_v25 = vld [vmem:[%s1814_s14 + $0xd0] sm:$0xff] }
  0x42   : > { %770 = vmatprep.subr.bf16.mxu0 %v1491_v29  ;;  %811 = vmatprep.subr.bf16.mxu1 %v1493_v30  ;;  %v1515_v53 = vcombine.high %v428_v47, %v432_v48  ;;  %v1517_v54 = vcombine.high %v429_v49, %v433_v50  ;;  %v436_v55 = vld [vmem:[%s1814_s14 + $0x1c0] sm:$0xff]  ;;  %v437_v57 = vld [vmem:[%s1814_s14 + $0x1c8] sm:$0xff]  ;;  %v1514_v59 = vcombine.low %v428_v47, %v432_v48  ;;  %v410_v26 = vld [vmem:[%s1814_s14 + $0xf0] sm:$0xff] }
  0x43   : > { %v440_v56 = vld [vmem:[%s1814_s14 + $0x1e0] sm:$0xff]  ;;  %v441_v58 = vld [vmem:[%s1814_s14 + $0x1e8] sm:$0xff]  ;;  %v1516_v60 = vcombine.low %v429_v49, %v433_v50  ;;  %v407_v27 = vld [vmem:[%s1814_s14 + $0xd8] sm:$0xff]  ;;  %v1486_v29 = vcombine.low %v398_v17, %v402_v18  ;;  %v1488_v30 = vcombine.low %v399_v19, %v403_v20  ;;  %v1495_v31 = vcombine.high %v406_v25, %v410_v26 }
  0x44   : > { %v1523_v61 = vcombine.high %v436_v55, %v440_v56  ;;  %v1525_v62 = vcombine.high %v437_v57, %v441_v58  ;;  %v1522_v4 = vcombine.low %v436_v55, %v440_v56  ;;  %v1524_v5 = vcombine.low %v437_v57, %v441_v58  ;;  %v1865_v12 = vld [vmem:[%s1968_s0] sm:$0xf]  ;;  %v411_v28 = vld [vmem:[%s1814_s14 + $0xf8] sm:$0xff]  ;;  %v414_v33 = vld [vmem:[%s1814_s14 + $0x110] sm:$0xff] }
  0x45   : > { %771 = vmatpush1.bf16.msra.mxu0 %v1490_v35  ;;  %812 = vmatpush1.bf16.msra.mxu1 %v1492_v36  ;;  %v1497_v32 = vcombine.high %v407_v27, %v411_v28  ;;  %v418_v34 = vld [vmem:[%s1814_s14 + $0x130] sm:$0xff]  ;;  %v415_v35 = vld [vmem:[%s1814_s14 + $0x118] sm:$0xff] }
  0x46   : > { %772 = vmatprep.subr.bf16.mxu0 %v1499_v37  ;;  %813 = vmatprep.subr.bf16.mxu1 %v1501_v38  ;;  %v419_v36 = vld [vmem:[%s1814_s14 + $0x138] sm:$0xff]  ;;  %v1494_v37 = vcombine.low %v406_v25, %v410_v26  ;;  %v1503_v38 = vcombine.high %v414_v33, %v418_v34  ;;  %v422_v40 = vld [vmem:[%s1814_s14 + $0x150] sm:$0xff] }
  0x47   : > { %v1505_v39 = vcombine.high %v415_v35, %v419_v36  ;;  %v426_v41 = vld [vmem:[%s1814_s14 + $0x170] sm:$0xff]  ;;  %v423_v42 = vld [vmem:[%s1814_s14 + $0x158] sm:$0xff] }
  0x48   : > { %v430_v48 = vld [vmem:[%s1814_s14 + $0x190] sm:$0xff]  ;;  %v431_v50 = vld [vmem:[%s1814_s14 + $0x198] sm:$0xff] }
  0x49   : > { %773 = vmatpush1.bf16.msra.mxu0 %v1498_v43  ;;  %814 = vmatpush1.bf16.msra.mxu1 %v1500_v44  ;;  %v427_v43 = vld [vmem:[%s1814_s14 + $0x178] sm:$0xff]  ;;  %v1502_v44 = vcombine.low %v414_v33, %v418_v34  ;;  %v434_v49 = vld [vmem:[%s1814_s14 + $0x1b0] sm:$0xff] }
  0x4a   : > { %774 = vmatprep.subr.bf16.mxu0 %v1507_v45  ;;  %815 = vmatprep.subr.bf16.mxu1 %v1509_v46  ;;  %v1504_v45 = vcombine.low %v415_v35, %v419_v36  ;;  %v1511_v46 = vcombine.high %v422_v40, %v426_v41  ;;  %v1513_v47 = vcombine.high %v423_v42, %v427_v43  ;;  %v438_v56 = vld [vmem:[%s1814_s14 + $0x1d0] sm:$0xff]  ;;  %v439_v58 = vld [vmem:[%s1814_s14 + $0x1d8] sm:$0xff] }
  0x4b   : > { %v442_v57 = vld [vmem:[%s1814_s14 + $0x1f0] sm:$0xff] }
  0x4c   : > { %v1526_v1 = vcombine.low %v438_v56, %v442_v57 }
  0x4d   : > { %775 = vmatpush1.bf16.msra.mxu0 %v1506_v51  ;;  %816 = vmatpush1.bf16.msra.mxu1 %v1508_v52  ;;  %v435_v51 = vld [vmem:[%s1814_s14 + $0x1b8] sm:$0xff]  ;;  %v1510_v52 = vcombine.low %v422_v40, %v426_v41 }
  0x4e   : > { %776 = vmatprep.subr.bf16.mxu0 %v1515_v53  ;;  %817 = vmatprep.subr.bf16.mxu1 %v1517_v54  ;;  %v1512_v53 = vcombine.low %v423_v42, %v427_v43  ;;  %v1519_v54 = vcombine.high %v430_v48, %v434_v49  ;;  %v1521_v55 = vcombine.high %v431_v50, %v435_v51 }
  0x51   : > { %777 = vmatpush1.bf16.msra.mxu0 %v1514_v59  ;;  %818 = vmatpush1.bf16.msra.mxu1 %v1516_v60  ;;  %v443_v59 = vld [vmem:[%s1814_s14 + $0x1f8] sm:$0xff]  ;;  %v1518_v60 = vcombine.low %v430_v48, %v434_v49 }
  0x52   : > { %778 = vmatprep.subr.bf16.mxu0 %v1523_v61  ;;  %819 = vmatprep.subr.bf16.mxu1 %v1525_v62  ;;  %v1520_v61 = vcombine.low %v431_v50, %v435_v51  ;;  %v1527_v62 = vcombine.high %v438_v56, %v442_v57  ;;  %v1529_v63 = vcombine.high %v439_v58, %v443_v59 }
  0x53   : > { %v1528_v2 = vcombine.low %v439_v58, %v443_v59 }
  0x55   : > { %779 = vmatpush1.bf16.msra.mxu0 %v1522_v4  ;;  %820 = vmatpush1.bf16.msra.mxu1 %v1524_v5  ;;  %v1060_v4 = vunpack.c.l.s4 %v1689_v3  ;;  %v1062_v5 = vlaneseq }
  0x56   : > { %846 = vmatprep.subr.bf16.mxu0 %v1471_v6  ;;  %887 = vmatprep.subr.bf16.mxu1 %v1473_v7 }
  0x57   : > { %v1061_v6 = vunpack.c.0.s8 %v1060_v4  ;;  %v1063_v7 = vshrl.u32 %v1062_v5, 7 }
  0x58   : > { %797 = vmatmul.mubr.bf16.vlgmr.msra.gmra.mrb[0].mxu0 %v1865_v12  ;;  %838 = vmatmul.mubr.bf16.vlgmr.msra.gmra.mrb[0].mxu1 %v1865_v12 }
  0x59   : > { %847 = vmatpush1.bf16.msra.mxu0 %v1470_v13  ;;  %888 = vmatpush1.bf16.msra.mxu1 %v1472_v14  ;;  %v1906_v13 = vsub.s32 %v1061_v6, %v1063_v7 }
  0x5a   : > { %848 = vmatprep.subr.bf16.mxu0 %v1479_v15  ;;  %889 = vmatprep.subr.bf16.mxu1 %v1481_v16 }
  0x5b   : > { %878 = vmatprep.mubr.bf16.mxu0 %v1688_v0  ;;  %919 = vmatprep.mubr.bf16.mxu1 %v1688_v0  ;;  %v1496_v0 = vcombine.low %v407_v27, %v411_v28 }
  0x5d   : > { %849 = vmatpush1.bf16.msra.mxu0 %v1478_v21  ;;  %890 = vmatpush1.bf16.msra.mxu1 %v1480_v22 }
  0x5e   : > { %850 = vmatprep.subr.bf16.mxu0 %v1487_v23  ;;  %891 = vmatprep.subr.bf16.mxu1 %v1489_v24 }
  0x61   : > { %851 = vmatpush1.bf16.msra.mxu0 %v1486_v29  ;;  %892 = vmatpush1.bf16.msra.mxu1 %v1488_v30 }
  0x62   : > { %852 = vmatprep.subr.bf16.mxu0 %v1495_v31  ;;  %893 = vmatprep.subr.bf16.mxu1 %v1497_v32 }
  0x65   : > { %853 = vmatpush1.bf16.msra.mxu0 %v1494_v37  ;;  %894 = vmatpush1.bf16.msra.mxu1 %v1496_v0 }
  0x66   : > { %854 = vmatprep.subr.bf16.mxu0 %v1503_v38  ;;  %895 = vmatprep.subr.bf16.mxu1 %v1505_v39 }
  0x69   : > { %855 = vmatpush1.bf16.msra.mxu0 %v1502_v44  ;;  %896 = vmatpush1.bf16.msra.mxu1 %v1504_v45 }
  0x6a   : > { %856 = vmatprep.subr.bf16.mxu0 %v1511_v46  ;;  %897 = vmatprep.subr.bf16.mxu1 %v1513_v47 }
  0x6d   : > { %857 = vmatpush1.bf16.msra.mxu0 %v1510_v52  ;;  %898 = vmatpush1.bf16.msra.mxu1 %v1512_v53 }
  0x6e   : > { %858 = vmatprep.subr.bf16.mxu0 %v1519_v54  ;;  %899 = vmatprep.subr.bf16.mxu1 %v1521_v55 }
  0x71   : > { %859 = vmatpush1.bf16.msra.mxu0 %v1518_v60  ;;  %900 = vmatpush1.bf16.msra.mxu1 %v1520_v61 }
  0x72   : > { %860 = vmatprep.subr.bf16.mxu0 %v1527_v62  ;;  %901 = vmatprep.subr.bf16.mxu1 %v1529_v63 }
  0x75   : > { %861 = vmatpush1.bf16.msra.mxu0 %v1526_v1  ;;  %902 = vmatpush1.bf16.msra.mxu1 %v1528_v2 }
  0x78   : > { %879 = vmatmul.mubr.bf16.vlgmr.msra.gmra.mrb[4].mxu0 %v1865_v12  ;;  %920 = vmatmul.mubr.bf16.vlgmr.msra.gmra.mrb[4].mxu1 %v1865_v12 }
 0x12b   : > { %v798_v8 = vpop.f32.mrb[0].mxu0  ;;  %v839_v11 = vpop.f32.mrb[0].mxu1 }
 0x12c   : > { %v999_v9 = vrot.slane %v798_v8, 4  ;;  %v1108_v10 = vmul.f32 %v798_v8, %v798_v8  ;;  %v800_v12 = vpop.f32.mrb[1].mxu0  ;;  %v1011_v14 = vrot.slane %v839_v11, 4  ;;  %v1110_v15 = vmul.f32 %v839_v11, %v839_v11  ;;  %v841_v18 = vpop.f32.mrb[1].mxu1 }
 0x12d   : > { %v1537_v16 = vpack.c.bf16 %v800_v12, %v798_v8  ;;  %v1005_v17 = vrot.slane %v800_v12, 4  ;;  %v802_v19 = vpop.f32.mrb[2].mxu0  ;;  %v1109_v22 = vmul.f32 %v800_v12, %v800_v12  ;;  %v1538_v23 = vpack.c.bf16 %v841_v18, %v839_v11  ;;  %v843_v24 = vpop.f32.mrb[2].mxu1 }
 0x12e   : > { %v1000_v20 = vadd.f32 %v999_v9, %v798_v8  ;;  %v1116_v21 = vrot.slane %v1108_v10, 4  ;;  %v803_v25 = vpop.f32.mrb[3].mxu0  ;;  %v1012_v26 = vadd.f32 %v1011_v14, %v839_v11  ;;  %v1128_v27 = vrot.slane %v1110_v15, 4  ;;  %v844_v30 = vpop.f32.mrb[3].mxu1 }
 0x12f   : > { %994 = vst [vmem:[%s1904_s21] sm:$0xff] %v1537_v16  ;;  %v1006_v28 = vadd.f32 %v1005_v17, %v800_v12  ;;  %v1017_v29 = vrot.slane %v841_v18, 4  ;;  %v1122_v33 = vrot.slane %v1109_v22, 4  ;;  %995 = vst [vmem:[%s1904_s21 + $0x8] sm:$0xff] %v1538_v23  ;;  %v1111_v34 = vmul.f32 %v841_v18, %v841_v18 }
 0x130   : > { %v1001_v31 = vrot.slane %v1000_v20, 2  ;;  %v1117_v32 = vadd.f32 %v1116_v21, %v1108_v10  ;;  %v1013_v35 = vrot.slane %v1012_v26, 2  ;;  %v1129_v36 = vadd.f32 %v1128_v27, %v1110_v15 }
 0x131   : > { %v1007_v37 = vrot.slane %v1006_v28, 2  ;;  %v1018_v0 = vadd.f32 %v1017_v29, %v841_v18  ;;  %v1123_v40 = vadd.f32 %v1122_v33, %v1109_v22  ;;  %v1134_v41 = vrot.slane %v1111_v34, 4 }
 0x132   : > { %v1002_v38 = vadd.f32 %v1001_v31, %v1000_v20  ;;  %v1118_v39 = vrot.slane %v1117_v32, 2  ;;  %v1014_v42 = vadd.f32 %v1013_v35, %v1012_v26  ;;  %v1130_v43 = vrot.slane %v1129_v36, 2 }
 0x133   : > { %v1008_v44 = vadd.f32 %v1007_v37, %v1006_v28  ;;  %v1019_v45 = vrot.slane %v1018_v0, 2  ;;  %v1124_v48 = vrot.slane %v1123_v40, 2  ;;  %v1135_v49 = vadd.f32 %v1134_v41, %v1111_v34 }
 0x134   : > { %v1003_v46 = vrot.slane %v1002_v38, 1  ;;  %v1119_v47 = vadd.f32 %v1118_v39, %v1117_v32  ;;  %v1015_v50 = vrot.slane %v1014_v42, 1  ;;  %v1131_v51 = vadd.f32 %v1130_v43, %v1129_v36 }
 0x135   : > { %v1009_v52 = vrot.slane %v1008_v44, 1  ;;  %v1020_v53 = vadd.f32 %v1019_v45, %v1018_v0  ;;  %v1125_v56 = vadd.f32 %v1124_v48, %v1123_v40  ;;  %v1136_v57 = vrot.slane %v1135_v49, 2 }
 0x136   : > { %v1004_v54 = vadd.f32 %v1003_v46, %v1002_v38  ;;  %v1120_v55 = vrot.slane %v1119_v47, 1  ;;  %v1016_v58 = vadd.f32 %v1015_v50, %v1014_v42  ;;  %v1132_v59 = vrot.slane %v1131_v51, 1 }
 0x137   : > { %v1010_v60 = vadd.f32 %v1009_v52, %v1008_v44  ;;  %v1021_v61 = vrot.slane %v1020_v53, 1  ;;  %v1126_v63 = vrot.slane %v1125_v56, 1  ;;  %v1137_v1 = vadd.f32 %v1136_v57, %v1135_v49 }
 0x138   : > { %v1121_v62 = vadd.f32 %v1120_v55, %v1119_v47  ;;  %v1133_v4 = vadd.f32 %v1132_v59, %v1131_v51 }
 0x139   : > { %v1055_v2 = vcombine.low %v1004_v54, %v1010_v60  ;;  %v1022_v3 = vadd.f32 %v1021_v61, %v1020_v53  ;;  %v1127_v5 = vadd.f32 %v1126_v63, %v1125_v56  ;;  %v1138_v6 = vrot.slane %v1137_v1, 1 }
 0x13b   : > { %v1911_v7 = vrot.slane %v1055_v2, %v1906_v13  ;;  %v1056_v8 = vcombine.low %v1016_v58, %v1022_v3  ;;  %v1172_v9 = vcombine.low %v1121_v62, %v1127_v5  ;;  %v1139_v10 = vadd.f32 %v1138_v6, %v1137_v1 }
 0x13d   : > { %v1914_v11 = vrot.slane %v1056_v8, %v1906_v13  ;;  %v1917_v12 = vrot.slane %v1172_v9, %v1906_v13  ;;  %v1173_v14 = vcombine.low %v1133_v4, %v1139_v10 }
 0x13f   : > { %v1087_v15 = vcombine.low %v1911_v7, %v1914_v11  ;;  %v1922_v16 = vrot.slane %v1173_v14, %v1906_v13 }
 0x141   : > { %v1204_v17 = vcombine.low %v1917_v12, %v1922_v16 }
 0x14b   : > { %v880_v18 = vpop.f32.mrb[4].mxu0  ;;  %v921_v21 = vpop.f32.mrb[4].mxu1 }
 0x14c   : > { %v1023_v19 = vrot.slane %v880_v18, 4  ;;  %v1112_v20 = vmul.f32 %v880_v18, %v880_v18  ;;  %v882_v22 = vpop.f32.mrb[5].mxu0  ;;  %v1035_v23 = vrot.slane %v921_v21, 4  ;;  %v1114_v24 = vmul.f32 %v921_v21, %v921_v21  ;;  %v923_v27 = vpop.f32.mrb[5].mxu1 }
 0x14d   : > { %v1539_v25 = vpack.c.bf16 %v882_v22, %v880_v18  ;;  %v1029_v26 = vrot.slane %v882_v22, 4  ;;  %v884_v28 = vpop.f32.mrb[6].mxu0  ;;  %v1113_v31 = vmul.f32 %v882_v22, %v882_v22  ;;  %v1540_v32 = vpack.c.bf16 %v923_v27, %v921_v21  ;;  %v925_v33 = vpop.f32.mrb[6].mxu1 }
 0x14e   : > { %v1024_v29 = vadd.f32 %v1023_v19, %v880_v18  ;;  %v1140_v30 = vrot.slane %v1112_v20, 4  ;;  %v885_v34 = vpop.f32.mrb[7].mxu0  ;;  %v1036_v35 = vadd.f32 %v1035_v23, %v921_v21  ;;  %v1152_v36 = vrot.slane %v1114_v24, 4  ;;  %v926_v38 = vpop.f32.mrb[7].mxu1 }
 0x14f   : > { %996 = vst [vmem:[%s1904_s21 + $0x10] sm:$0xff] %v1539_v25  ;;  %v1030_v37 = vadd.f32 %v1029_v26, %v882_v22  ;;  %v1041_v0 = vrot.slane %v923_v27, 4  ;;  %v1146_v41 = vrot.slane %v1113_v31, 4  ;;  %997 = vst [vmem:[%s1904_s21 + $0x18] sm:$0xff] %v1540_v32  ;;  %v1115_v42 = vmul.f32 %v923_v27, %v923_v27 }
 0x150   : > { %v1025_v39 = vrot.slane %v1024_v29, 2  ;;  %v1141_v40 = vadd.f32 %v1140_v30, %v1112_v20  ;;  %v1037_v43 = vrot.slane %v1036_v35, 2  ;;  %v1153_v44 = vadd.f32 %v1152_v36, %v1114_v24 }
 0x151   : > { %v1031_v45 = vrot.slane %v1030_v37, 2  ;;  %v1042_v46 = vadd.f32 %v1041_v0, %v923_v27  ;;  %v1147_v49 = vadd.f32 %v1146_v41, %v1113_v31  ;;  %v1158_v50 = vrot.slane %v1115_v42, 4 }
 0x152   : > { %v1026_v47 = vadd.f32 %v1025_v39, %v1024_v29  ;;  %v1142_v48 = vrot.slane %v1141_v40, 2  ;;  %v1038_v51 = vadd.f32 %v1037_v43, %v1036_v35  ;;  %v1154_v52 = vrot.slane %v1153_v44, 2 }
 0x153   : > { %v1032_v53 = vadd.f32 %v1031_v45, %v1030_v37  ;;  %v1043_v54 = vrot.slane %v1042_v46, 2  ;;  %v1148_v57 = vrot.slane %v1147_v49, 2  ;;  %v1159_v58 = vadd.f32 %v1158_v50, %v1115_v42 }
 0x154   : > { %v1027_v55 = vrot.slane %v1026_v47, 1  ;;  %v1143_v56 = vadd.f32 %v1142_v48, %v1141_v40  ;;  %v1039_v59 = vrot.slane %v1038_v51, 1  ;;  %v1155_v60 = vadd.f32 %v1154_v52, %v1153_v44 }
 0x155   : > { %v1033_v61 = vrot.slane %v1032_v53, 1  ;;  %v1044_v62 = vadd.f32 %v1043_v54, %v1042_v46  ;;  %v1149_v2 = vadd.f32 %v1148_v57, %v1147_v49  ;;  %v1160_v3 = vrot.slane %v1159_v58, 2 }
 0x156   : > { %v1028_v63 = vadd.f32 %v1027_v55, %v1026_v47  ;;  %v1144_v1 = vrot.slane %v1143_v56, 1  ;;  %v1040_v4 = vadd.f32 %v1039_v59, %v1038_v51  ;;  %v1156_v5 = vrot.slane %v1155_v60, 1 }
 0x157   : > { %v1034_v6 = vadd.f32 %v1033_v61, %v1032_v53  ;;  %v1045_v8 = vrot.slane %v1044_v62, 1  ;;  %v1150_v10 = vrot.slane %v1149_v2, 1  ;;  %v1161_v14 = vadd.f32 %v1160_v3, %v1159_v58 }
 0x158   : > { %v1145_v9 = vadd.f32 %v1144_v1, %v1143_v56  ;;  %v1157_v20 = vadd.f32 %v1156_v5, %v1155_v60  ;;  %v1095_v32 = vrot.slane %v1087_v15, %v1906_v13  ;;  %v1212_v36 = vrot.slane %v1204_v17, %v1906_v13 }
 0x159   : > { %v1057_v18 = vcombine.low %v1028_v63, %v1034_v6  ;;  %v1046_v19 = vadd.f32 %v1045_v8, %v1044_v62  ;;  %v1151_v21 = vadd.f32 %v1150_v10, %v1149_v2  ;;  %v1162_v22 = vrot.slane %v1161_v14, 1 }
 0x15b   : > { %v1079_v23 = vrot.slane %v1057_v18, %v1906_v13  ;;  %v1058_v24 = vcombine.low %v1040_v4, %v1046_v19  ;;  %v1174_v25 = vcombine.low %v1145_v9, %v1151_v21  ;;  %v1163_v26 = vadd.f32 %v1162_v22, %v1161_v14 }
 0x15d   : > { %v1086_v27 = vrot.slane %v1058_v24, %v1906_v13  ;;  %v1196_v28 = vrot.slane %v1174_v25, %v1906_v13  ;;  %v1175_v29 = vcombine.low %v1157_v20, %v1163_v26 }
 0x15f   : > { %v1088_v30 = vcombine.low %v1079_v23, %v1086_v27  ;;  %v1203_v31 = vrot.slane %v1175_v29, %v1906_v13 }
 0x161   : > { %v1102_v33 = vrot.slane %v1088_v30, %v1906_v13  ;;  %v1205_v34 = vcombine.low %v1196_v28, %v1203_v31 }
 0x163   : > { %v1103_v35 = vcombine.low %v1095_v32, %v1102_v33  ;;  %v1219_v37 = vrot.slane %v1205_v34, %v1906_v13 }
 0x165   : > { %v1220_v0 = vcombine.low %v1212_v36, %v1219_v37  ;;  %1106 = vst [vmem:[%s347_s24] sm:$0xff] %v1103_v35 }
 0x167   : > { %1223 = vst [vmem:[%s356_s29] sm:$0xff] %v1220_v0 }
 0x168 PF: > { %s18_s20 = sadd.s32 1, %s1682_s20   ;;  %s1977_s15 = smov %s1666_s16 }
 0x169   : > { %p15_p9 = scmp.ge.s32.totalorder %s18_s20, 10   ;;  %s1978_s16 = smov %s1670_s17 }
 0x16a   : > { %s1979_s17 = smov %s1764_s27  ;;  %s1980_s18 = smov %s1678_s19 }
 0x16b   : > { %s1981_s19 = smov %s1983_s22  ;;  %17 = sbr.rel (!%p15_p9) target bundleno = 4 (0x4), region = 107 }
 0x172   :  { %1308 = vsyncpa [#allocation4], 1 }
 0x173   :  { %1310 = vsyncpa [#allocation4 + $0x1], 1 }

// kernel: generator_forward.12
= control target key start
LH: loop header
LB: loop body
LE: loop exit
PB: predicated region body
PF: predicated region fallthrough
CT: control target
= control target key end

     0   :  { %v64_v0 = vlaneseq  ;;  %s524_s0 = inlined_call_operand.vmem [shape: bf16[128,256], index: 0, kind: input, shape index: {}]   ;;  %s525_s1 = inlined_call_operand.vmem [shape: f32[1,256], index: 1, kind: input, shape index: {}]   ;;  %s526_s2 = inlined_call_operand.vmem [shape: f32[1,256], index: 2, kind: input, shape index: {}]   ;;  %s527_s3 = inlined_call_operand.vmem [shape: bf16[128,256], index: 3, kind: output, shape index: {}]  }
   0x1   :  { %v14_v1 = vld [vmem:[%s524_s0] sm:$0xff]  ;;  %v15_v6 = vld [vmem:[%s524_s0 + $0x8] sm:$0xff]  ;;  %v16_v7 = vld [vmem:[%s524_s0 + $0x10] sm:$0xff] }
   0x2   :  { %v62_v2 = vld [vmem:[%s525_s1] sm:$0x3]  ;;  %v30_v3 = vunpack.c.l.bf16 %v14_v1  ;;  %v31_v4 = vunpack.c.h.bf16 %v14_v1  ;;  %v65_v5 = vshrl.u32 %v64_v0, 7  ;;  %v17_v8 = vld [vmem:[%s524_s0 + $0x18] sm:$0xff]  ;;  %v32_v10 = vunpack.c.l.bf16 %v15_v6  ;;  %v19_v15 = vld [vmem:[%s524_s0 + $0x28] sm:$0xff] }
   0x3   :  { %v106_v9 = vld [vmem:[%s526_s2] sm:$0x3]  ;;  %v33_v11 = vunpack.c.h.bf16 %v15_v6  ;;  %v34_v12 = vunpack.c.l.bf16 %v16_v7  ;;  %v35_v13 = vunpack.c.h.bf16 %v16_v7  ;;  %v36_v18 = vunpack.c.l.bf16 %v17_v8  ;;  %v20_v20 = vld [vmem:[%s524_s0 + $0x30] sm:$0xff]  ;;  %v21_v21 = vld [vmem:[%s524_s0 + $0x38] sm:$0xff] }
   0x4   :  { %v18_v14 = vld [vmem:[%s524_s0 + $0x20] sm:$0xff]  ;;  %v66_v16 = vsub.s32 0, %v65_v5  ;;  %v70_v17 = vsub.s32 1, %v65_v5  ;;  %v37_v19 = vunpack.c.h.bf16 %v17_v8  ;;  %v40_v24 = vunpack.c.l.bf16 %v19_v15 }
   0x5   :  { %v38_v22 = vunpack.c.l.bf16 %v18_v14  ;;  %v39_v23 = vunpack.c.h.bf16 %v18_v14  ;;  %v41_v25 = vunpack.c.h.bf16 %v19_v15  ;;  %v42_v30 = vunpack.c.l.bf16 %v20_v20 }
   0x6   :  { %v380_v26 = vrot.slane %v62_v2, %v66_v16  ;;  %v382_v27 = vrot.slane %v62_v2, %v70_v17  ;;  %v384_v28 = vrot.slane %v106_v9, %v66_v16  ;;  %v386_v29 = vrot.slane %v106_v9, %v70_v17 }
   0x7   :  { %v43_v31 = vunpack.c.h.bf16 %v20_v20  ;;  %v44_v32 = vunpack.c.l.bf16 %v21_v21  ;;  %v45_v33 = vunpack.c.h.bf16 %v21_v21 }
   0x8   :  { %v74_v34 = vmul.f32 %v380_v26, %v30_v3  ;;  %v75_v35 = vmul.f32 %v382_v27, %v31_v4  ;;  %v76_v36 = vmul.f32 %v380_v26, %v32_v10  ;;  %v77_v37 = vmul.f32 %v382_v27, %v33_v11  ;;  %v22_v10 = vld [vmem:[%s524_s0 + $0x40] sm:$0xff] }
   0x9   :  { %v78_v38 = vmul.f32 %v380_v26, %v34_v12  ;;  %v79_v39 = vmul.f32 %v382_v27, %v35_v13  ;;  %v80_v40 = vmul.f32 %v380_v26, %v36_v18  ;;  %v81_v41 = vmul.f32 %v382_v27, %v37_v19  ;;  %v23_v19 = vld [vmem:[%s524_s0 + $0x48] sm:$0xff] }
   0xa   :  { %v118_v42 = vadd.f32 %v384_v28, %v74_v34  ;;  %v119_v43 = vadd.f32 %v386_v29, %v75_v35  ;;  %v120_v44 = vadd.f32 %v384_v28, %v76_v36  ;;  %v121_v45 = vadd.f32 %v386_v29, %v77_v37 }
   0xb   :  { %v122_v46 = vadd.f32 %v384_v28, %v78_v38  ;;  %v123_v47 = vadd.f32 %v386_v29, %v79_v39  ;;  %v124_v48 = vadd.f32 %v384_v28, %v80_v40  ;;  %v125_v49 = vadd.f32 %v386_v29, %v81_v41 }
   0xc   :  { %v150_v50 = vmax.f32 %v118_v42, 0.0  ;;  %v151_v51 = vmax.f32 %v119_v43, 0.0  ;;  %v152_v52 = vmax.f32 %v120_v44, 0.0  ;;  %v153_v53 = vmax.f32 %v121_v45, 0.0 }
   0xd   :  { %v154_v54 = vmax.f32 %v122_v46, 0.0  ;;  %v155_v55 = vmax.f32 %v123_v47, 0.0  ;;  %v156_v56 = vmax.f32 %v124_v48, 0.0  ;;  %v157_v57 = vmax.f32 %v125_v49, 0.0 }
   0xe   :  { %v314_v58 = vpack.c.bf16 %v151_v51, %v150_v50  ;;  %v315_v59 = vpack.c.bf16 %v153_v53, %v152_v52  ;;  %v82_v60 = vmul.f32 %v380_v26, %v38_v22  ;;  %v83_v61 = vmul.f32 %v382_v27, %v39_v23  ;;  %v26_v50 = vld [vmem:[%s524_s0 + $0x60] sm:$0xff] }
   0xf   :  { %v316_v62 = vpack.c.bf16 %v155_v55, %v154_v54  ;;  %v317_v63 = vpack.c.bf16 %v157_v57, %v156_v56  ;;  %v84_v0 = vmul.f32 %v380_v26, %v40_v24  ;;  %v85_v1 = vmul.f32 %v382_v27, %v41_v25  ;;  %v24_v24 = vld [vmem:[%s524_s0 + $0x50] sm:$0xff] }
  0x10   :  { %278 = vst [vmem:[%s527_s3] sm:$0xff] %v314_v58  ;;  %279 = vst [vmem:[%s527_s3 + $0x8] sm:$0xff] %v315_v59  ;;  %v126_v2 = vadd.f32 %v384_v28, %v82_v60  ;;  %v127_v3 = vadd.f32 %v386_v29, %v83_v61  ;;  %v86_v4 = vmul.f32 %v380_v26, %v42_v30  ;;  %v46_v23 = vunpack.c.l.bf16 %v22_v10 }
  0x11   :  { %v87_v5 = vmul.f32 %v382_v27, %v43_v31  ;;  %280 = vst [vmem:[%s527_s3 + $0x10] sm:$0xff] %v316_v62  ;;  %281 = vst [vmem:[%s527_s3 + $0x18] sm:$0xff] %v317_v63  ;;  %v128_v6 = vadd.f32 %v384_v28, %v84_v0  ;;  %v129_v7 = vadd.f32 %v386_v29, %v85_v1  ;;  %v48_v36 = vunpack.c.l.bf16 %v23_v19  ;;  %v27_v63 = vld [vmem:[%s524_s0 + $0x68] sm:$0xff] }
  0x12   :  { %v88_v8 = vmul.f32 %v380_v26, %v44_v32  ;;  %v89_v9 = vmul.f32 %v382_v27, %v45_v33  ;;  %v158_v11 = vmax.f32 %v126_v2, 0.0  ;;  %v159_v12 = vmax.f32 %v127_v3, 0.0  ;;  %v25_v33 = vld [vmem:[%s524_s0 + $0x58] sm:$0xff] }
  0x13   :  { %v130_v13 = vadd.f32 %v384_v28, %v86_v4  ;;  %v131_v14 = vadd.f32 %v386_v29, %v87_v5  ;;  %v160_v15 = vmax.f32 %v128_v6, 0.0  ;;  %v161_v16 = vmax.f32 %v129_v7, 0.0  ;;  %v28_v4 = vld [vmem:[%s524_s0 + $0x70] sm:$0xff] }
  0x14   :  { %v132_v17 = vadd.f32 %v384_v28, %v88_v8  ;;  %v133_v18 = vadd.f32 %v386_v29, %v89_v9  ;;  %v318_v20 = vpack.c.bf16 %v159_v12, %v158_v11  ;;  %v47_v32 = vunpack.c.h.bf16 %v22_v10  ;;  %v29_v9 = vld [vmem:[%s524_s0 + $0x78] sm:$0xff] }
  0x15   :  { %v162_v21 = vmax.f32 %v130_v13, 0.0  ;;  %v163_v22 = vmax.f32 %v131_v14, 0.0  ;;  %v319_v25 = vpack.c.bf16 %v161_v16, %v160_v15  ;;  %v90_v35 = vmul.f32 %v380_v26, %v46_v23 }
  0x16   :  { %v164_v30 = vmax.f32 %v132_v17, 0.0  ;;  %v165_v31 = vmax.f32 %v133_v18, 0.0  ;;  %282 = vst [vmem:[%s527_s3 + $0x20] sm:$0xff] %v318_v20  ;;  %v49_v37 = vunpack.c.h.bf16 %v23_v19  ;;  %v91_v39 = vmul.f32 %v382_v27, %v47_v32 }
  0x17   :  { %v320_v34 = vpack.c.bf16 %v163_v22, %v162_v21  ;;  %283 = vst [vmem:[%s527_s3 + $0x28] sm:$0xff] %v319_v25  ;;  %v50_v40 = vunpack.c.l.bf16 %v24_v24  ;;  %v51_v41 = vunpack.c.h.bf16 %v24_v24  ;;  %v134_v42 = vadd.f32 %v384_v28, %v90_v35 }
  0x18   :  { %v321_v38 = vpack.c.bf16 %v165_v31, %v164_v30  ;;  %v92_v43 = vmul.f32 %v380_v26, %v48_v36  ;;  %v93_v44 = vmul.f32 %v382_v27, %v49_v37  ;;  %v52_v45 = vunpack.c.l.bf16 %v25_v33 }
  0x19   :  { %284 = vst [vmem:[%s527_s3 + $0x30] sm:$0xff] %v320_v34  ;;  %v135_v46 = vadd.f32 %v386_v29, %v91_v39  ;;  %v94_v47 = vmul.f32 %v380_v26, %v50_v40  ;;  %v95_v48 = vmul.f32 %v382_v27, %v51_v41  ;;  %v53_v49 = vunpack.c.h.bf16 %v25_v33 }
  0x1a   :  { %285 = vst [vmem:[%s527_s3 + $0x38] sm:$0xff] %v321_v38  ;;  %v166_v51 = vmax.f32 %v134_v42, 0.0  ;;  %v136_v52 = vadd.f32 %v384_v28, %v92_v43  ;;  %v137_v53 = vadd.f32 %v386_v29, %v93_v44  ;;  %v96_v54 = vmul.f32 %v380_v26, %v52_v45 }
  0x1b   :  { %v167_v55 = vmax.f32 %v135_v46, 0.0  ;;  %v138_v56 = vadd.f32 %v384_v28, %v94_v47  ;;  %v139_v57 = vadd.f32 %v386_v29, %v95_v48  ;;  %v97_v58 = vmul.f32 %v382_v27, %v53_v49 }
  0x1c   :  { %v168_v59 = vmax.f32 %v136_v52, 0.0  ;;  %v169_v60 = vmax.f32 %v137_v53, 0.0  ;;  %v140_v61 = vadd.f32 %v384_v28, %v96_v54  ;;  %v54_v62 = vunpack.c.l.bf16 %v26_v50 }
  0x1d   :  { %v322_v0 = vpack.c.bf16 %v167_v55, %v166_v51  ;;  %v170_v1 = vmax.f32 %v138_v56, 0.0  ;;  %v171_v2 = vmax.f32 %v139_v57, 0.0  ;;  %v141_v3 = vadd.f32 %v386_v29, %v97_v58 }
  0x1e   :  { %v323_v5 = vpack.c.bf16 %v169_v60, %v168_v59  ;;  %v172_v6 = vmax.f32 %v140_v61, 0.0  ;;  %v55_v7 = vunpack.c.h.bf16 %v26_v50  ;;  %v98_v8 = vmul.f32 %v380_v26, %v54_v62 }
  0x1f   :  { %286 = vst [vmem:[%s527_s3 + $0x40] sm:$0xff] %v322_v0  ;;  %v324_v10 = vpack.c.bf16 %v171_v2, %v170_v1  ;;  %v173_v11 = vmax.f32 %v141_v3, 0.0  ;;  %v56_v12 = vunpack.c.l.bf16 %v27_v63  ;;  %v57_v13 = vunpack.c.h.bf16 %v27_v63 }
  0x20   :  { %287 = vst [vmem:[%s527_s3 + $0x48] sm:$0xff] %v323_v5  ;;  %v99_v14 = vmul.f32 %v382_v27, %v55_v7  ;;  %v142_v15 = vadd.f32 %v384_v28, %v98_v8  ;;  %v58_v16 = vunpack.c.l.bf16 %v28_v4  ;;  %v59_v17 = vunpack.c.h.bf16 %v28_v4 }
  0x21   :  { %288 = vst [vmem:[%s527_s3 + $0x50] sm:$0xff] %v324_v10  ;;  %v325_v18 = vpack.c.bf16 %v173_v11, %v172_v6  ;;  %v100_v19 = vmul.f32 %v380_v26, %v56_v12  ;;  %v101_v20 = vmul.f32 %v382_v27, %v57_v13  ;;  %v60_v21 = vunpack.c.l.bf16 %v29_v9 }
  0x22   :  { %v143_v22 = vadd.f32 %v386_v29, %v99_v14  ;;  %v174_v23 = vmax.f32 %v142_v15, 0.0  ;;  %v102_v24 = vmul.f32 %v380_v26, %v58_v16  ;;  %v103_v25 = vmul.f32 %v382_v27, %v59_v17 }
  0x23   :  { %289 = vst [vmem:[%s527_s3 + $0x58] sm:$0xff] %v325_v18  ;;  %v144_v30 = vadd.f32 %v384_v28, %v100_v19  ;;  %v145_v31 = vadd.f32 %v386_v29, %v101_v20  ;;  %v61_v32 = vunpack.c.h.bf16 %v29_v9  ;;  %v104_v33 = vmul.f32 %v380_v26, %v60_v21 }
  0x24   :  { %v175_v34 = vmax.f32 %v143_v22, 0.0  ;;  %v146_v35 = vadd.f32 %v384_v28, %v102_v24  ;;  %v147_v36 = vadd.f32 %v386_v29, %v103_v25 }
  0x25   :  { %v176_v37 = vmax.f32 %v144_v30, 0.0  ;;  %v177_v38 = vmax.f32 %v145_v31, 0.0  ;;  %v105_v39 = vmul.f32 %v382_v27, %v61_v32  ;;  %v148_v40 = vadd.f32 %v384_v28, %v104_v33 }
  0x26   :  { %v326_v41 = vpack.c.bf16 %v175_v34, %v174_v23  ;;  %v178_v42 = vmax.f32 %v146_v35, 0.0  ;;  %v179_v43 = vmax.f32 %v147_v36, 0.0 }
  0x27   :  { %v327_v44 = vpack.c.bf16 %v177_v38, %v176_v37  ;;  %v149_v45 = vadd.f32 %v386_v29, %v105_v39  ;;  %v180_v46 = vmax.f32 %v148_v40, 0.0 }
  0x28   :  { %290 = vst [vmem:[%s527_s3 + $0x60] sm:$0xff] %v326_v41  ;;  %v328_v26 = vpack.c.bf16 %v179_v43, %v178_v42 }
  0x29   :  { %291 = vst [vmem:[%s527_s3 + $0x68] sm:$0xff] %v327_v44  ;;  %v181_v47 = vmax.f32 %v149_v45, 0.0 }
  0x2a   :  { %292 = vst [vmem:[%s527_s3 + $0x70] sm:$0xff] %v328_v26 }
  0x2b   :  { %v329_v27 = vpack.c.bf16 %v181_v47, %v180_v46 }
  0x2d   :  { %293 = vst [vmem:[%s527_s3 + $0x78] sm:$0xff] %v329_v27 }

// kernel: generator_forward.11
= control target key start
LH: loop header
LB: loop body
LE: loop exit
PB: predicated region body
PF: predicated region fallthrough
CT: control target
= control target key end

     0   :  { %s3770_s15 = smov 0   ;;  %s3772_s16 = smov 0   ;;  %s4188_s0 = inlined_call_operand.vmem [shape: bf16[4,32,2048], index: 0, kind: input, shape index: {}]   ;;  %s4189_s1 = inlined_call_operand.vmem [shape: bf16[4,2048,256], index: 1, kind: input, shape index: {}]   ;;  %s4190_s2 = inlined_call_operand.vmem [shape: bf16[4,32,256], index: 2, kind: output, shape index: {0}]   ;;  %s4191_s3 = inlined_call_operand.vmem [shape: f32[4,1,256], index: 3, kind: output, shape index: {1}]   ;;  %s4192_s4 = inlined_call_operand.vmem [shape: f32[4,1,256], index: 4, kind: output, shape index: {2}]  }
   0x1   :  { %s3774_s17 = smov 0  }
   0x2 LB: > { %s41_s18 = sadd.s32 1, %s3737_s16  ;;  %p2943_p0 = scmp.ge.s32.totalorder %s3741_s17, 1  ;;  %s3741_s17 = sphi %s3774_s17, %s15_s17   ;;  %s3737_s16 = sphi %s3772_s16, %s4196_s16   ;;  %s3733_s15 = sphi %s3770_s15, %s4195_s15  }
   0x3   : > { %p43_p1 = scmp.ge.s32.totalorder %s41_s18, 4  ;;  %p241_p2 = scmp.lt.s32.totalorder %s3741_s17, 5 }
   0x5   : > { %s4198_s18 = smov (%p43_p1, %s41_s18), 0  ;;  %p242_p3 = pnand %p2943_p0, %p241_p2 }
   0x6   : > { %p317_p4 = scmp.lt.s32.totalorder (!%p242_p3), %s3733_s15, 3 }
   0x7   : > { %245 = sbr.rel (%p242_p3) target bundleno = 525 (0x20d), region = 28 }
   0xe   : > { %s4200_s15 = smov (!%p317_p4, %s3733_s15), 3 }
   0xf   : > { %s3247_s19 = sshll.u32 %s4200_s15, 11  ;;  %s3246_s23 = sshll.u32 %s4200_s15, 8 }
  0x10   : > { %s3794_s22 = scalar_lea.vmem %s4189_s1, %s3247_s19  ;;  %s3844_s26 = scalar_lea.vmem %s4188_s0, %s3246_s23 }
  0x11   : > { %v3335_v0 = vld [vmem:[%s3794_s22 + $0x4] ss:$8 sps:$4 sm:$0xff]   ;;  %v3339_v2 = vld [vmem:[%s3794_s22] ss:$8 sps:$4 sm:$0xff]   ;;  %v3341_v4 = vld [vmem:[%s3794_s22 + $0x14] ss:$8 sps:$4 sm:$0xff]  }
  0x12   : > { %v3337_v1 = vld [vmem:[%s3794_s22 + $0x404] ss:$8 sps:$4 sm:$0xff]   ;;  %2129 = vmatprep.subr.bf16.mxu1 %v3335_v0  ;;  %v3340_v3 = vld [vmem:[%s3794_s22 + $0x400] ss:$8 sps:$4 sm:$0xff]   ;;  %v3343_v5 = vld [vmem:[%s3794_s22 + $0x414] ss:$8 sps:$4 sm:$0xff]  }
  0x13   : > { %2341 = vmatprep.subr.bf16.mxu0 %v3337_v1  ;;  %2130 = vmatpush1.bf16.msra.mxu1 %v3339_v2  ;;  %v3345_v6 = vld [vmem:[%s3794_s22 + $0x10] ss:$8 sps:$4 sm:$0xff]   ;;  %v3347_v8 = vld [vmem:[%s3794_s22 + $0x24] ss:$8 sps:$4 sm:$0xff]   ;;  %v3351_v10 = vld [vmem:[%s3794_s22 + $0x20] ss:$8 sps:$4 sm:$0xff]  }
  0x14   : > { %2342 = vmatpush1.bf16.msra.mxu0 %v3340_v3  ;;  %2131 = vmatprep.subr.bf16.mxu1 %v3341_v4  ;;  %v3346_v7 = vld [vmem:[%s3794_s22 + $0x410] ss:$8 sps:$4 sm:$0xff]   ;;  %v3349_v9 = vld [vmem:[%s3794_s22 + $0x424] ss:$8 sps:$4 sm:$0xff]   ;;  %v3352_v11 = vld [vmem:[%s3794_s22 + $0x420] ss:$8 sps:$4 sm:$0xff]  }
  0x15   : > { %2343 = vmatprep.subr.bf16.mxu0 %v3343_v5  ;;  %v3353_v12 = vld [vmem:[%s3794_s22 + $0x34] ss:$8 sps:$4 sm:$0xff]   ;;  %v3357_v14 = vld [vmem:[%s3794_s22 + $0x30] ss:$8 sps:$4 sm:$0xff]   ;;  %v3359_v16 = vld [vmem:[%s3794_s22 + $0x44] ss:$8 sps:$4 sm:$0xff]  }
  0x16   : > { %v3355_v13 = vld [vmem:[%s3794_s22 + $0x434] ss:$8 sps:$4 sm:$0xff]   ;;  %v3358_v15 = vld [vmem:[%s3794_s22 + $0x430] ss:$8 sps:$4 sm:$0xff]   ;;  %v3361_v17 = vld [vmem:[%s3794_s22 + $0x444] ss:$8 sps:$4 sm:$0xff]  }
  0x17   : > { %2132 = vmatpush1.bf16.msra.mxu1 %v3345_v6  ;;  %v3363_v18 = vld [vmem:[%s3794_s22 + $0x40] ss:$8 sps:$4 sm:$0xff]   ;;  %v3365_v20 = vld [vmem:[%s3794_s22 + $0x54] ss:$8 sps:$4 sm:$0xff]   ;;  %v3369_v22 = vld [vmem:[%s3794_s22 + $0x50] ss:$8 sps:$4 sm:$0xff]  }
  0x18   : > { %2344 = vmatpush1.bf16.msra.mxu0 %v3346_v7  ;;  %2133 = vmatprep.subr.bf16.mxu1 %v3347_v8  ;;  %v3364_v19 = vld [vmem:[%s3794_s22 + $0x440] ss:$8 sps:$4 sm:$0xff]   ;;  %v3367_v21 = vld [vmem:[%s3794_s22 + $0x454] ss:$8 sps:$4 sm:$0xff]   ;;  %v3370_v23 = vld [vmem:[%s3794_s22 + $0x450] ss:$8 sps:$4 sm:$0xff]  }
  0x19   : > { %2345 = vmatprep.subr.bf16.mxu0 %v3349_v9  ;;  %v3371_v24 = vld [vmem:[%s3794_s22 + $0x64] ss:$8 sps:$4 sm:$0xff]   ;;  %v3375_v26 = vld [vmem:[%s3794_s22 + $0x60] ss:$8 sps:$4 sm:$0xff]   ;;  %v3377_v28 = vld [vmem:[%s3794_s22 + $0x74] ss:$8 sps:$4 sm:$0xff]  }
  0x1a   : > { %v3373_v25 = vld [vmem:[%s3794_s22 + $0x464] ss:$8 sps:$4 sm:$0xff]   ;;  %v3376_v27 = vld [vmem:[%s3794_s22 + $0x460] ss:$8 sps:$4 sm:$0xff]   ;;  %v3379_v29 = vld [vmem:[%s3794_s22 + $0x474] ss:$8 sps:$4 sm:$0xff]  }
  0x1b   : > { %2134 = vmatpush1.bf16.msra.mxu1 %v3351_v10  ;;  %v3381_v30 = vld [vmem:[%s3794_s22 + $0x70] ss:$8 sps:$4 sm:$0xff]   ;;  %v3383_v32 = vld [vmem:[%s3794_s22 + $0x84] ss:$8 sps:$4 sm:$0xff]   ;;  %v3387_v34 = vld [vmem:[%s3794_s22 + $0x80] ss:$8 sps:$4 sm:$0xff]  }
  0x1c   : > { %2346 = vmatpush1.bf16.msra.mxu0 %v3352_v11  ;;  %2135 = vmatprep.subr.bf16.mxu1 %v3353_v12  ;;  %v3382_v31 = vld [vmem:[%s3794_s22 + $0x470] ss:$8 sps:$4 sm:$0xff]   ;;  %v3385_v33 = vld [vmem:[%s3794_s22 + $0x484] ss:$8 sps:$4 sm:$0xff]   ;;  %v3388_v35 = vld [vmem:[%s3794_s22 + $0x480] ss:$8 sps:$4 sm:$0xff]  }
  0x1d   : > { %2347 = vmatprep.subr.bf16.mxu0 %v3355_v13  ;;  %v3389_v36 = vld [vmem:[%s3794_s22 + $0x94] ss:$8 sps:$4 sm:$0xff]   ;;  %v3393_v38 = vld [vmem:[%s3794_s22 + $0x90] ss:$8 sps:$4 sm:$0xff]   ;;  %v3395_v40 = vld [vmem:[%s3794_s22 + $0xa4] ss:$8 sps:$4 sm:$0xff]  }
  0x1e   : > { %v3391_v37 = vld [vmem:[%s3794_s22 + $0x494] ss:$8 sps:$4 sm:$0xff]   ;;  %v3394_v39 = vld [vmem:[%s3794_s22 + $0x490] ss:$8 sps:$4 sm:$0xff]   ;;  %v3397_v41 = vld [vmem:[%s3794_s22 + $0x4a4] ss:$8 sps:$4 sm:$0xff]  }
  0x1f   : > { %2136 = vmatpush1.bf16.msra.mxu1 %v3357_v14  ;;  %v3399_v42 = vld [vmem:[%s3794_s22 + $0xa0] ss:$8 sps:$4 sm:$0xff]   ;;  %v3401_v44 = vld [vmem:[%s3794_s22 + $0xb4] ss:$8 sps:$4 sm:$0xff]   ;;  %v3405_v46 = vld [vmem:[%s3794_s22 + $0xb0] ss:$8 sps:$4 sm:$0xff]  }
  0x20   : > { %2348 = vmatpush1.bf16.msra.mxu0 %v3358_v15  ;;  %2137 = vmatprep.subr.bf16.mxu1 %v3359_v16  ;;  %v3400_v43 = vld [vmem:[%s3794_s22 + $0x4a0] ss:$8 sps:$4 sm:$0xff]   ;;  %v3403_v45 = vld [vmem:[%s3794_s22 + $0x4b4] ss:$8 sps:$4 sm:$0xff]   ;;  %v3406_v47 = vld [vmem:[%s3794_s22 + $0x4b0] ss:$8 sps:$4 sm:$0xff]  }
  0x21   : > { %2349 = vmatprep.subr.bf16.mxu0 %v3361_v17  ;;  %v401_v48 = vld [vmem:[%s3844_s26] sm:$0xff]  ;;  %v3413_v58 = vld [vmem:[%s3794_s22 + $0xd4] ss:$8 sps:$4 sm:$0xff]   ;;  %v3417_v60 = vld [vmem:[%s3794_s22 + $0xd0] ss:$8 sps:$4 sm:$0xff]   ;;  %s2950_s27 = sshll.u32 %s4200_s15, 1 }
  0x22   : > { %v409_v49 = vld [vmem:[%s3844_s26 + $0x40] sm:$0xff]  ;;  %v3415_v59 = vld [vmem:[%s3794_s22 + $0x4d4] ss:$8 sps:$4 sm:$0xff]   ;;  %v3418_v61 = vld [vmem:[%s3794_s22 + $0x4d0] ss:$8 sps:$4 sm:$0xff]   ;;  %s4142_s30 = scalar_lea.vmem %s4191_s3, %s2950_s27  ;;  %s4155_s7 = scalar_lea.vmem %s4192_s4, %s2950_s27 }
  0x23   : > { %2138 = vmatpush1.bf16.msra.mxu1 %v3363_v18  ;;  %v3407_v50 = vld [vmem:[%s3794_s22 + $0xc4] ss:$8 sps:$4 sm:$0xff]   ;;  %v2953_v52 = vcombine.high %v401_v48, %v409_v49  ;;  %v3411_v56 = vld [vmem:[%s3794_s22 + $0xc0] ss:$8 sps:$4 sm:$0xff]   ;;  %v3425_v2 = vld [vmem:[%s3794_s22 + $0xf4] ss:$8 sps:$4 sm:$0xff]   ;;  %v2952_v8 = vcombine.low %v401_v48, %v409_v49 }
  0x24   : > { %2350 = vmatpush1.bf16.msra.mxu0 %v3364_v19  ;;  %2139 = vmatprep.subr.bf16.mxu1 %v3365_v20  ;;  %v3409_v51 = vld [vmem:[%s3794_s22 + $0x4c4] ss:$8 sps:$4 sm:$0xff]   ;;  %v3412_v57 = vld [vmem:[%s3794_s22 + $0x4c0] ss:$8 sps:$4 sm:$0xff]   ;;  %v3427_v3 = vld [vmem:[%s3794_s22 + $0x4f4] ss:$8 sps:$4 sm:$0xff]  }
  0x25   : > { %2351 = vmatprep.subr.bf16.mxu0 %v3367_v21  ;;  %v405_v53 = vld [vmem:[%s3844_s26 + $0x20] sm:$0xff]  ;;  %2161 = vmatprep.mubr.bf16.mxu1 %v2953_v52  ;;  %v3429_v4 = vld [vmem:[%s3794_s22 + $0xf0] ss:$8 sps:$4 sm:$0xff]   ;;  %v3439_v12 = vld [vmem:[%s3794_s22 + $0x114] ss:$8 sps:$4 sm:$0xff]   ;;  %s3248_s8 = sshll.u32 %s4200_s15, 5 }
  0x26   : > { %v413_v54 = vld [vmem:[%s3844_s26 + $0x60] sm:$0xff]  ;;  %v3430_v5 = vld [vmem:[%s3794_s22 + $0x4f0] ss:$8 sps:$4 sm:$0xff]   ;;  %v3442_v13 = vld [vmem:[%s3794_s22 + $0x514] ss:$8 sps:$4 sm:$0xff]   ;;  %s4164_s11 = scalar_lea.vmem %s4190_s2, %s3248_s8 }
  0x27   : > { %2140 = vmatpush1.bf16.msra.mxu1 %v3369_v22  ;;  %v2961_v55 = vcombine.high %v405_v53, %v413_v54  ;;  %v3419_v62 = vld [vmem:[%s3794_s22 + $0xe4] ss:$8 sps:$4 sm:$0xff]   ;;  %v3423_v0 = vld [vmem:[%s3794_s22 + $0xe0] ss:$8 sps:$4 sm:$0xff]   ;;  %v2960_v10 = vcombine.low %v405_v53, %v413_v54  ;;  %v3437_v14 = vld [vmem:[%s3794_s22 + $0x110] ss:$8 sps:$4 sm:$0xff]  }
  0x28   : > { %2352 = vmatpush1.bf16.msra.mxu0 %v3370_v23  ;;  %2141 = vmatprep.subr.bf16.mxu1 %v3371_v24  ;;  %v3421_v63 = vld [vmem:[%s3794_s22 + $0x4e4] ss:$8 sps:$4 sm:$0xff]   ;;  %v3424_v1 = vld [vmem:[%s3794_s22 + $0x4e0] ss:$8 sps:$4 sm:$0xff]   ;;  %v3440_v15 = vld [vmem:[%s3794_s22 + $0x510] ss:$8 sps:$4 sm:$0xff]  }
  0x29   : > { %2353 = vmatprep.subr.bf16.mxu0 %v3373_v25  ;;  %2373 = vmatprep.mubr.bf16.mxu0 %v2961_v55  ;;  %v3433_v6 = vld [vmem:[%s3794_s22 + $0x104] ss:$8 sps:$4 sm:$0xff]   ;;  %v3431_v9 = vld [vmem:[%s3794_s22 + $0x100] ss:$8 sps:$4 sm:$0xff]   ;;  %v3451_v20 = vld [vmem:[%s3794_s22 + $0x134] ss:$8 sps:$4 sm:$0xff]  }
  0x2a   : > { %v3436_v7 = vld [vmem:[%s3794_s22 + $0x504] ss:$8 sps:$4 sm:$0xff]   ;;  %v3434_v11 = vld [vmem:[%s3794_s22 + $0x500] ss:$8 sps:$4 sm:$0xff]   ;;  %v3454_v21 = vld [vmem:[%s3794_s22 + $0x534] ss:$8 sps:$4 sm:$0xff]  }
  0x2b   : > { %2142 = vmatpush1.bf16.msra.mxu1 %v3375_v26  ;;  %v3445_v16 = vld [vmem:[%s3794_s22 + $0x124] ss:$8 sps:$4 sm:$0xff]   ;;  %v3443_v18 = vld [vmem:[%s3794_s22 + $0x120] ss:$8 sps:$4 sm:$0xff]   ;;  %v3449_v22 = vld [vmem:[%s3794_s22 + $0x130] ss:$8 sps:$4 sm:$0xff]  }
  0x2c   : > { %2354 = vmatpush1.bf16.msra.mxu0 %v3376_v27  ;;  %2143 = vmatprep.subr.bf16.mxu1 %v3377_v28  ;;  %v3448_v17 = vld [vmem:[%s3794_s22 + $0x524] ss:$8 sps:$4 sm:$0xff]   ;;  %v3446_v19 = vld [vmem:[%s3794_s22 + $0x520] ss:$8 sps:$4 sm:$0xff]   ;;  %v3452_v23 = vld [vmem:[%s3794_s22 + $0x530] ss:$8 sps:$4 sm:$0xff]  }
  0x2d   : > { %2355 = vmatprep.subr.bf16.mxu0 %v3379_v29  ;;  %v3457_v24 = vld [vmem:[%s3794_s22 + $0x144] ss:$8 sps:$4 sm:$0xff]   ;;  %v3455_v26 = vld [vmem:[%s3794_s22 + $0x140] ss:$8 sps:$4 sm:$0xff]   ;;  %v3463_v28 = vld [vmem:[%s3794_s22 + $0x154] ss:$8 sps:$4 sm:$0xff]  }
  0x2e   : > { %v3460_v25 = vld [vmem:[%s3794_s22 + $0x544] ss:$8 sps:$4 sm:$0xff]   ;;  %v3458_v27 = vld [vmem:[%s3794_s22 + $0x540] ss:$8 sps:$4 sm:$0xff]   ;;  %v3466_v29 = vld [vmem:[%s3794_s22 + $0x554] ss:$8 sps:$4 sm:$0xff]  }
  0x2f   : > { %2144 = vmatpush1.bf16.msra.mxu1 %v3381_v30  ;;  %v417_v30 = vld [vmem:[%s3844_s26 + $0x80] sm:$0xff]  ;;  %v3913_v49 = vld [vmem:[%s3844_s26 + $0x28] sm:$0xff]  ;;  %v3476_v52 = vld [vmem:[%s3794_s22 + $0x570] ss:$8 sps:$4 sm:$0xff]  }
  0x30   : > { %2356 = vmatpush1.bf16.msra.mxu0 %v3382_v31  ;;  %2145 = vmatprep.subr.bf16.mxu1 %v3383_v32  ;;  %v425_v31 = vld [vmem:[%s3844_s26 + $0xc0] sm:$0xff]  ;;  %v3461_v32 = vld [vmem:[%s3794_s22 + $0x150] ss:$8 sps:$4 sm:$0xff]  }
  0x31   : > { %2357 = vmatprep.subr.bf16.mxu0 %v3385_v33  ;;  %v2969_v33 = vcombine.high %v417_v30, %v425_v31  ;;  %v3481_v54 = vld [vmem:[%s3794_s22 + $0x184] ss:$8 sps:$4 sm:$0xff]  }
  0x32   : > { %v3484_v55 = vld [vmem:[%s3794_s22 + $0x584] ss:$8 sps:$4 sm:$0xff]  }
  0x33   : > { %2146 = vmatpush1.bf16.msra.mxu1 %v3387_v34  ;;  %v3464_v34 = vld [vmem:[%s3794_s22 + $0x550] ss:$8 sps:$4 sm:$0xff]  }
  0x34   : > { %2358 = vmatpush1.bf16.msra.mxu0 %v3388_v35  ;;  %2147 = vmatprep.subr.bf16.mxu1 %v3389_v36  ;;  %v421_v35 = vld [vmem:[%s3844_s26 + $0xa0] sm:$0xff] }
  0x35   : > { %2359 = vmatprep.subr.bf16.mxu0 %v3391_v37  ;;  %v429_v36 = vld [vmem:[%s3844_s26 + $0xe0] sm:$0xff]  ;;  %v2968_v37 = vcombine.low %v417_v30, %v425_v31  ;;  %v3535_v30 = vld [vmem:[%s3794_s22 + $0x214] ss:$8 sps:$4 sm:$0xff]  }
  0x36   : > { %v3538_v31 = vld [vmem:[%s3794_s22 + $0x614] ss:$8 sps:$4 sm:$0xff]  }
  0x37   : > { %2148 = vmatpush1.bf16.msra.mxu1 %v3393_v38  ;;  %v3469_v38 = vld [vmem:[%s3794_s22 + $0x164] ss:$8 sps:$4 sm:$0xff]  }
  0x38   : > { %2360 = vmatpush1.bf16.msra.mxu0 %v3394_v39  ;;  %2149 = vmatprep.subr.bf16.mxu1 %v3395_v40  ;;  %v2977_v39 = vcombine.high %v421_v35, %v429_v36  ;;  %v2976_v40 = vcombine.low %v421_v35, %v429_v36  ;;  %v3533_v36 = vld [vmem:[%s3794_s22 + $0x210] ss:$8 sps:$4 sm:$0xff]  }
  0x39   : > { %2361 = vmatprep.subr.bf16.mxu0 %v3397_v41  ;;  %v3472_v41 = vld [vmem:[%s3794_s22 + $0x564] ss:$8 sps:$4 sm:$0xff]  }
  0x3b   : > { %2150 = vmatpush1.bf16.msra.mxu1 %v3399_v42  ;;  %v3467_v42 = vld [vmem:[%s3794_s22 + $0x160] ss:$8 sps:$4 sm:$0xff]  }
  0x3c   : > { %2362 = vmatpush1.bf16.msra.mxu0 %v3400_v43  ;;  %2151 = vmatprep.subr.bf16.mxu1 %v3401_v44  ;;  %v3470_v43 = vld [vmem:[%s3794_s22 + $0x560] ss:$8 sps:$4 sm:$0xff]  }
  0x3d   : > { %2363 = vmatprep.subr.bf16.mxu0 %v3403_v45  ;;  %v3903_v44 = vld [vmem:[%s3844_s26 + $0x8] sm:$0xff] }
  0x3e   : > { %v3906_v45 = vld [vmem:[%s3844_s26 + $0x48] sm:$0xff] }
  0x3f   : > { %2152 = vmatpush1.bf16.msra.mxu1 %v3405_v46  ;;  %v3475_v46 = vld [vmem:[%s3794_s22 + $0x174] ss:$8 sps:$4 sm:$0xff]   ;;  %v2955_v48 = vcombine.high %v3903_v44, %v3906_v45 }
  0x40   : > { %2364 = vmatpush1.bf16.msra.mxu0 %v3406_v47  ;;  %2153 = vmatprep.subr.bf16.mxu1 %v3407_v50  ;;  %v3478_v47 = vld [vmem:[%s3794_s22 + $0x574] ss:$8 sps:$4 sm:$0xff]   ;;  %v3916_v50 = vld [vmem:[%s3844_s26 + $0x68] sm:$0xff] }
  0x41   : > { %2365 = vmatprep.subr.bf16.mxu0 %v3409_v51  ;;  %v3473_v51 = vld [vmem:[%s3794_s22 + $0x170] ss:$8 sps:$4 sm:$0xff]   ;;  %v2963_v53 = vcombine.high %v3913_v49, %v3916_v50 }
  0x43   : > { %2154 = vmatpush1.bf16.msra.mxu1 %v3411_v56  ;;  %v3479_v56 = vld [vmem:[%s3794_s22 + $0x180] ss:$8 sps:$4 sm:$0xff]  }
  0x44   : > { %2366 = vmatpush1.bf16.msra.mxu0 %v3412_v57  ;;  %2155 = vmatprep.subr.bf16.mxu1 %v3413_v58  ;;  %v3482_v57 = vld [vmem:[%s3794_s22 + $0x580] ss:$8 sps:$4 sm:$0xff]   ;;  %v3487_v58 = vld [vmem:[%s3794_s22 + $0x194] ss:$8 sps:$4 sm:$0xff]  }
  0x45   : > { %2367 = vmatprep.subr.bf16.mxu0 %v3415_v59  ;;  %v3490_v59 = vld [vmem:[%s3794_s22 + $0x594] ss:$8 sps:$4 sm:$0xff]  }
  0x47   : > { %2156 = vmatpush1.bf16.msra.mxu1 %v3417_v60  ;;  %v3485_v60 = vld [vmem:[%s3794_s22 + $0x190] ss:$8 sps:$4 sm:$0xff]  }
  0x48   : > { %2368 = vmatpush1.bf16.msra.mxu0 %v3418_v61  ;;  %2157 = vmatprep.subr.bf16.mxu1 %v3419_v62  ;;  %v3488_v61 = vld [vmem:[%s3794_s22 + $0x590] ss:$8 sps:$4 sm:$0xff]   ;;  %v3493_v62 = vld [vmem:[%s3794_s22 + $0x1a4] ss:$8 sps:$4 sm:$0xff]  }
  0x49   : > { %2369 = vmatprep.subr.bf16.mxu0 %v3421_v63  ;;  %v3496_v63 = vld [vmem:[%s3794_s22 + $0x5a4] ss:$8 sps:$4 sm:$0xff]  }
  0x4b   : > { %2158 = vmatpush1.bf16.msra.mxu1 %v3423_v0  ;;  %v3491_v0 = vld [vmem:[%s3794_s22 + $0x1a0] ss:$8 sps:$4 sm:$0xff]  }
  0x4c   : > { %2370 = vmatpush1.bf16.msra.mxu0 %v3424_v1  ;;  %2159 = vmatprep.subr.bf16.mxu1 %v3425_v2  ;;  %v3494_v1 = vld [vmem:[%s3794_s22 + $0x5a0] ss:$8 sps:$4 sm:$0xff]   ;;  %v3499_v2 = vld [vmem:[%s3794_s22 + $0x1b4] ss:$8 sps:$4 sm:$0xff]  }
  0x4d   : > { %2371 = vmatprep.subr.bf16.mxu0 %v3427_v3  ;;  %v3502_v3 = vld [vmem:[%s3794_s22 + $0x5b4] ss:$8 sps:$4 sm:$0xff]  }
  0x4f   : > { %2160 = vmatpush1.bf16.msra.mxu1 %v3429_v4  ;;  %v3497_v4 = vld [vmem:[%s3794_s22 + $0x1b0] ss:$8 sps:$4 sm:$0xff]  }
  0x50   : > { %2372 = vmatpush1.bf16.msra.mxu0 %v3430_v5  ;;  %2182 = vmatprep.subr.bf16.mxu1 %v3433_v6  ;;  %v3500_v5 = vld [vmem:[%s3794_s22 + $0x5b0] ss:$8 sps:$4 sm:$0xff]   ;;  %v3505_v6 = vld [vmem:[%s3794_s22 + $0x1c4] ss:$8 sps:$4 sm:$0xff]  }
  0x51   : > { %2394 = vmatprep.subr.bf16.mxu0 %v3436_v7  ;;  %v3508_v7 = vld [vmem:[%s3794_s22 + $0x5c4] ss:$8 sps:$4 sm:$0xff]  }
  0x52   : > { %2162 = vmatmul.mubr.bf16.vlgmr.msra.gmra.mrb[0].mxu1 %v2952_v8  ;;  %v3503_v8 = vld [vmem:[%s3794_s22 + $0x1c0] ss:$8 sps:$4 sm:$0xff]  }
  0x53   : > { %2374 = vmatmul.mubr.bf16.vlgmr.msra.gmra.mrb[0].mxu0 %v2960_v10  ;;  %2183 = vmatpush1.bf16.msra.mxu1 %v3431_v9  ;;  %v3506_v9 = vld [vmem:[%s3794_s22 + $0x5c0] ss:$8 sps:$4 sm:$0xff]   ;;  %v3511_v10 = vld [vmem:[%s3794_s22 + $0x1d4] ss:$8 sps:$4 sm:$0xff]  }
  0x54   : > { %2395 = vmatpush1.bf16.msra.mxu0 %v3434_v11  ;;  %2184 = vmatprep.subr.bf16.mxu1 %v3439_v12  ;;  %v3514_v11 = vld [vmem:[%s3794_s22 + $0x5d4] ss:$8 sps:$4 sm:$0xff]   ;;  %v3509_v12 = vld [vmem:[%s3794_s22 + $0x1d0] ss:$8 sps:$4 sm:$0xff]  }
  0x55   : > { %2396 = vmatprep.subr.bf16.mxu0 %v3442_v13  ;;  %2171 = vmatprep.mubr.bf16.mxu1 %v2969_v33  ;;  %v3512_v13 = vld [vmem:[%s3794_s22 + $0x5d0] ss:$8 sps:$4 sm:$0xff]   ;;  %v430_v33 = vld [vmem:[%s3844_s26 + $0xe8] sm:$0xff] }
  0x56   : > { %2383 = vmatprep.mubr.bf16.mxu0 %v2977_v39  ;;  %v3544_v39 = vld [vmem:[%s3794_s22 + $0x624] ss:$8 sps:$4 sm:$0xff]  }
  0x57   : > { %2185 = vmatpush1.bf16.msra.mxu1 %v3437_v14  ;;  %v3517_v14 = vld [vmem:[%s3794_s22 + $0x1e4] ss:$8 sps:$4 sm:$0xff]  }
  0x58   : > { %2397 = vmatpush1.bf16.msra.mxu0 %v3440_v15  ;;  %2186 = vmatprep.subr.bf16.mxu1 %v3445_v16  ;;  %v3520_v15 = vld [vmem:[%s3794_s22 + $0x5e4] ss:$8 sps:$4 sm:$0xff]   ;;  %v3515_v16 = vld [vmem:[%s3794_s22 + $0x1e0] ss:$8 sps:$4 sm:$0xff]  }
  0x59   : > { %2398 = vmatprep.subr.bf16.mxu0 %v3448_v17  ;;  %v3518_v17 = vld [vmem:[%s3794_s22 + $0x5e0] ss:$8 sps:$4 sm:$0xff]  }
  0x5a   : > { %2172 = vmatmul.mubr.bf16.gmra.mrb[4].mxu1 %v2968_v37  ;;  %v3536_v37 = vld [vmem:[%s3794_s22 + $0x610] ss:$8 sps:$4 sm:$0xff]  }
  0x5b   : > { %2187 = vmatpush1.bf16.msra.mxu1 %v3443_v18  ;;  %2384 = vmatmul.mubr.bf16.gmra.mrb[4].mxu0 %v2976_v40  ;;  %v3523_v18 = vld [vmem:[%s3794_s22 + $0x1f4] ss:$8 sps:$4 sm:$0xff]   ;;  %v3539_v40 = vld [vmem:[%s3794_s22 + $0x220] ss:$8 sps:$4 sm:$0xff]  }
  0x5c   : > { %2399 = vmatpush1.bf16.msra.mxu0 %v3446_v19  ;;  %2188 = vmatprep.subr.bf16.mxu1 %v3451_v20  ;;  %v3526_v19 = vld [vmem:[%s3794_s22 + $0x5f4] ss:$8 sps:$4 sm:$0xff]   ;;  %v3521_v20 = vld [vmem:[%s3794_s22 + $0x1f0] ss:$8 sps:$4 sm:$0xff]  }
  0x5d   : > { %2400 = vmatprep.subr.bf16.mxu0 %v3454_v21  ;;  %2214 = vmatprep.mubr.bf16.mxu1 %v2955_v48  ;;  %v3524_v21 = vld [vmem:[%s3794_s22 + $0x5f0] ss:$8 sps:$4 sm:$0xff]   ;;  %v3547_v48 = vld [vmem:[%s3794_s22 + $0x234] ss:$8 sps:$4 sm:$0xff]  }
  0x5e   : > { %2426 = vmatprep.mubr.bf16.mxu0 %v2963_v53  ;;  %v3548_v53 = vld [vmem:[%s3794_s22 + $0x630] ss:$8 sps:$4 sm:$0xff]  }
  0x5f   : > { %2189 = vmatpush1.bf16.msra.mxu1 %v3449_v22  ;;  %v3529_v22 = vld [vmem:[%s3794_s22 + $0x204] ss:$8 sps:$4 sm:$0xff]  }
  0x60   : > { %2401 = vmatpush1.bf16.msra.mxu0 %v3452_v23  ;;  %2190 = vmatprep.subr.bf16.mxu1 %v3457_v24  ;;  %v3532_v23 = vld [vmem:[%s3794_s22 + $0x604] ss:$8 sps:$4 sm:$0xff]   ;;  %v3527_v24 = vld [vmem:[%s3794_s22 + $0x200] ss:$8 sps:$4 sm:$0xff]  }
  0x61   : > { %2402 = vmatprep.subr.bf16.mxu0 %v3460_v25  ;;  %v3530_v25 = vld [vmem:[%s3794_s22 + $0x600] ss:$8 sps:$4 sm:$0xff]  }
  0x63   : > { %2191 = vmatpush1.bf16.msra.mxu1 %v3455_v26  ;;  %v418_v26 = vld [vmem:[%s3844_s26 + $0x88] sm:$0xff] }
  0x64   : > { %2403 = vmatpush1.bf16.msra.mxu0 %v3458_v27  ;;  %2192 = vmatprep.subr.bf16.mxu1 %v3463_v28  ;;  %v2954_v27 = vcombine.low %v3903_v44, %v3906_v45  ;;  %v2962_v28 = vcombine.low %v3913_v49, %v3916_v50  ;;  %v3978_v45 = vld [vmem:[%s3844_s26 + $0x50] sm:$0xff] }
  0x65   : > { %2404 = vmatprep.subr.bf16.mxu0 %v3466_v29  ;;  %v426_v29 = vld [vmem:[%s3844_s26 + $0xc8] sm:$0xff]  ;;  %v3550_v49 = vld [vmem:[%s3794_s22 + $0x634] ss:$8 sps:$4 sm:$0xff]  }
  0x67   : > { %2193 = vmatpush1.bf16.msra.mxu1 %v3461_v32  ;;  %v422_v32 = vld [vmem:[%s3844_s26 + $0xa8] sm:$0xff] }
  0x68   : > { %2405 = vmatpush1.bf16.msra.mxu0 %v3464_v34  ;;  %2194 = vmatprep.subr.bf16.mxu1 %v3469_v38  ;;  %v2971_v34 = vcombine.high %v418_v26, %v426_v29  ;;  %v2979_v35 = vcombine.high %v422_v32, %v430_v33  ;;  %v3541_v38 = vld [vmem:[%s3794_s22 + $0x224] ss:$8 sps:$4 sm:$0xff]   ;;  %v2978_v44 = vcombine.low %v422_v32, %v430_v33  ;;  %v3611_v32 = vld [vmem:[%s3794_s22 + $0x2e0] ss:$8 sps:$4 sm:$0xff]  }
  0x69   : > { %2406 = vmatprep.subr.bf16.mxu0 %v3472_v41  ;;  %v3542_v41 = vld [vmem:[%s3794_s22 + $0x620] ss:$8 sps:$4 sm:$0xff]  }
  0x6a   : > { %v3614_v33 = vld [vmem:[%s3794_s22 + $0x6e0] ss:$8 sps:$4 sm:$0xff]  }
  0x6b   : > { %2195 = vmatpush1.bf16.msra.mxu1 %v3467_v42  ;;  %v3975_v42 = vld [vmem:[%s3844_s26 + $0x10] sm:$0xff] }
  0x6c   : > { %2407 = vmatpush1.bf16.msra.mxu0 %v3470_v43  ;;  %2196 = vmatprep.subr.bf16.mxu1 %v3475_v46  ;;  %v2970_v43 = vcombine.low %v418_v26, %v426_v29  ;;  %v3981_v46 = vld [vmem:[%s3844_s26 + $0x30] sm:$0xff]  ;;  %v2957_v50 = vcombine.high %v3975_v42, %v3978_v45 }
  0x6d   : > { %2408 = vmatprep.subr.bf16.mxu0 %v3478_v47  ;;  %v3984_v47 = vld [vmem:[%s3844_s26 + $0x70] sm:$0xff] }
  0x6e   : > { %v3607_v26 = vld [vmem:[%s3794_s22 + $0x2d4] ss:$8 sps:$4 sm:$0xff]   ;;  %v3608_v29 = vld [vmem:[%s3794_s22 + $0x6d0] ss:$8 sps:$4 sm:$0xff]  }
  0x6f   : > { %2197 = vmatpush1.bf16.msra.mxu1 %v3473_v51  ;;  %v2965_v51 = vcombine.high %v3981_v46, %v3984_v47 }
  0x70   : > { %2409 = vmatpush1.bf16.msra.mxu0 %v3476_v52  ;;  %2198 = vmatprep.subr.bf16.mxu1 %v3481_v54  ;;  %v3545_v52 = vld [vmem:[%s3794_s22 + $0x230] ss:$8 sps:$4 sm:$0xff]   ;;  %v3553_v54 = vld [vmem:[%s3794_s22 + $0x244] ss:$8 sps:$4 sm:$0xff]  }
  0x71   : > { %2410 = vmatprep.subr.bf16.mxu0 %v3484_v55  ;;  %v3556_v55 = vld [vmem:[%s3794_s22 + $0x644] ss:$8 sps:$4 sm:$0xff]  }
  0x73   : > { %2199 = vmatpush1.bf16.msra.mxu1 %v3479_v56  ;;  %v3551_v56 = vld [vmem:[%s3794_s22 + $0x240] ss:$8 sps:$4 sm:$0xff]  }
  0x74   : > { %2411 = vmatpush1.bf16.msra.mxu0 %v3482_v57  ;;  %2200 = vmatprep.subr.bf16.mxu1 %v3487_v58  ;;  %v3554_v57 = vld [vmem:[%s3794_s22 + $0x640] ss:$8 sps:$4 sm:$0xff]   ;;  %v3559_v58 = vld [vmem:[%s3794_s22 + $0x254] ss:$8 sps:$4 sm:$0xff]  }
  0x75   : > { %2412 = vmatprep.subr.bf16.mxu0 %v3490_v59  ;;  %v3562_v59 = vld [vmem:[%s3794_s22 + $0x654] ss:$8 sps:$4 sm:$0xff]  }
  0x77   : > { %2201 = vmatpush1.bf16.msra.mxu1 %v3485_v60  ;;  %v3557_v60 = vld [vmem:[%s3794_s22 + $0x250] ss:$8 sps:$4 sm:$0xff]  }
  0x78   : > { %2413 = vmatpush1.bf16.msra.mxu0 %v3488_v61  ;;  %2202 = vmatprep.subr.bf16.mxu1 %v3493_v62  ;;  %v3560_v61 = vld [vmem:[%s3794_s22 + $0x650] ss:$8 sps:$4 sm:$0xff]   ;;  %v3565_v62 = vld [vmem:[%s3794_s22 + $0x264] ss:$8 sps:$4 sm:$0xff]  }
  0x79   : > { %2414 = vmatprep.subr.bf16.mxu0 %v3496_v63  ;;  %v3568_v63 = vld [vmem:[%s3794_s22 + $0x664] ss:$8 sps:$4 sm:$0xff]  }
  0x7b   : > { %2203 = vmatpush1.bf16.msra.mxu1 %v3491_v0  ;;  %v3563_v0 = vld [vmem:[%s3794_s22 + $0x260] ss:$8 sps:$4 sm:$0xff]  }
  0x7c   : > { %2415 = vmatpush1.bf16.msra.mxu0 %v3494_v1  ;;  %2204 = vmatprep.subr.bf16.mxu1 %v3499_v2  ;;  %v3566_v1 = vld [vmem:[%s3794_s22 + $0x660] ss:$8 sps:$4 sm:$0xff]   ;;  %v3571_v2 = vld [vmem:[%s3794_s22 + $0x274] ss:$8 sps:$4 sm:$0xff]  }
  0x7d   : > { %2416 = vmatprep.subr.bf16.mxu0 %v3502_v3  ;;  %v3574_v3 = vld [vmem:[%s3794_s22 + $0x674] ss:$8 sps:$4 sm:$0xff]  }
  0x7f   : > { %2205 = vmatpush1.bf16.msra.mxu1 %v3497_v4  ;;  %v3569_v4 = vld [vmem:[%s3794_s22 + $0x270] ss:$8 sps:$4 sm:$0xff]  }
  0x80   : > { %2417 = vmatpush1.bf16.msra.mxu0 %v3500_v5  ;;  %2206 = vmatprep.subr.bf16.mxu1 %v3505_v6  ;;  %v3572_v5 = vld [vmem:[%s3794_s22 + $0x670] ss:$8 sps:$4 sm:$0xff]   ;;  %v3577_v6 = vld [vmem:[%s3794_s22 + $0x284] ss:$8 sps:$4 sm:$0xff]  }
  0x81   : > { %2418 = vmatprep.subr.bf16.mxu0 %v3508_v7  ;;  %v3580_v7 = vld [vmem:[%s3794_s22 + $0x684] ss:$8 sps:$4 sm:$0xff]  }
  0x83   : > { %2207 = vmatpush1.bf16.msra.mxu1 %v3503_v8  ;;  %v3575_v8 = vld [vmem:[%s3794_s22 + $0x280] ss:$8 sps:$4 sm:$0xff]  }
  0x84   : > { %2419 = vmatpush1.bf16.msra.mxu0 %v3506_v9  ;;  %2208 = vmatprep.subr.bf16.mxu1 %v3511_v10  ;;  %v3578_v9 = vld [vmem:[%s3794_s22 + $0x680] ss:$8 sps:$4 sm:$0xff]   ;;  %v3583_v10 = vld [vmem:[%s3794_s22 + $0x294] ss:$8 sps:$4 sm:$0xff]  }
  0x85   : > { %2420 = vmatprep.subr.bf16.mxu0 %v3514_v11  ;;  %v3586_v11 = vld [vmem:[%s3794_s22 + $0x694] ss:$8 sps:$4 sm:$0xff]  }
  0x87   : > { %2209 = vmatpush1.bf16.msra.mxu1 %v3509_v12  ;;  %v3581_v12 = vld [vmem:[%s3794_s22 + $0x290] ss:$8 sps:$4 sm:$0xff]  }
  0x88   : > { %2421 = vmatpush1.bf16.msra.mxu0 %v3512_v13  ;;  %2210 = vmatprep.subr.bf16.mxu1 %v3517_v14  ;;  %v3584_v13 = vld [vmem:[%s3794_s22 + $0x690] ss:$8 sps:$4 sm:$0xff]   ;;  %v3589_v14 = vld [vmem:[%s3794_s22 + $0x2a4] ss:$8 sps:$4 sm:$0xff]  }
  0x89   : > { %2422 = vmatprep.subr.bf16.mxu0 %v3520_v15  ;;  %v3592_v15 = vld [vmem:[%s3794_s22 + $0x6a4] ss:$8 sps:$4 sm:$0xff]  }
  0x8b   : > { %2211 = vmatpush1.bf16.msra.mxu1 %v3515_v16  ;;  %v3587_v16 = vld [vmem:[%s3794_s22 + $0x2a0] ss:$8 sps:$4 sm:$0xff]  }
  0x8c   : > { %2423 = vmatpush1.bf16.msra.mxu0 %v3518_v17  ;;  %2212 = vmatprep.subr.bf16.mxu1 %v3523_v18  ;;  %v3590_v17 = vld [vmem:[%s3794_s22 + $0x6a0] ss:$8 sps:$4 sm:$0xff]   ;;  %v3595_v18 = vld [vmem:[%s3794_s22 + $0x2b4] ss:$8 sps:$4 sm:$0xff]  }
  0x8d   : > { %2424 = vmatprep.subr.bf16.mxu0 %v3526_v19  ;;  %v3598_v19 = vld [vmem:[%s3794_s22 + $0x6b4] ss:$8 sps:$4 sm:$0xff]  }
  0x8f   : > { %2213 = vmatpush1.bf16.msra.mxu1 %v3521_v20  ;;  %v3593_v20 = vld [vmem:[%s3794_s22 + $0x2b0] ss:$8 sps:$4 sm:$0xff]  }
  0x90   : > { %2425 = vmatpush1.bf16.msra.mxu0 %v3524_v21  ;;  %2235 = vmatprep.subr.bf16.mxu1 %v3529_v22  ;;  %v3596_v21 = vld [vmem:[%s3794_s22 + $0x6b0] ss:$8 sps:$4 sm:$0xff]   ;;  %v3601_v22 = vld [vmem:[%s3794_s22 + $0x2c4] ss:$8 sps:$4 sm:$0xff]  }
  0x91   : > { %2447 = vmatprep.subr.bf16.mxu0 %v3532_v23  ;;  %v3604_v23 = vld [vmem:[%s3794_s22 + $0x6c4] ss:$8 sps:$4 sm:$0xff]  }
  0x92   : > { %2215 = vmatmul.mubr.bf16.vlgmr.msra.gmra.mrb[0].mxu1 %v2954_v27  ;;  %v3610_v27 = vld [vmem:[%s3794_s22 + $0x6d4] ss:$8 sps:$4 sm:$0xff]  }
  0x93   : > { %2427 = vmatmul.mubr.bf16.vlgmr.msra.gmra.mrb[0].mxu0 %v2962_v28  ;;  %2236 = vmatpush1.bf16.msra.mxu1 %v3527_v24  ;;  %v3599_v24 = vld [vmem:[%s3794_s22 + $0x2c0] ss:$8 sps:$4 sm:$0xff]   ;;  %v3605_v28 = vld [vmem:[%s3794_s22 + $0x2d0] ss:$8 sps:$4 sm:$0xff]  }
  0x94   : > { %2448 = vmatpush1.bf16.msra.mxu0 %v3530_v25  ;;  %2237 = vmatprep.subr.bf16.mxu1 %v3535_v30  ;;  %v3602_v25 = vld [vmem:[%s3794_s22 + $0x6c0] ss:$8 sps:$4 sm:$0xff]   ;;  %v3613_v30 = vld [vmem:[%s3794_s22 + $0x2e4] ss:$8 sps:$4 sm:$0xff]  }
  0x95   : > { %2449 = vmatprep.subr.bf16.mxu0 %v3538_v31  ;;  %2224 = vmatprep.mubr.bf16.mxu1 %v2971_v34  ;;  %v3616_v31 = vld [vmem:[%s3794_s22 + $0x6e4] ss:$8 sps:$4 sm:$0xff]   ;;  %v3619_v34 = vld [vmem:[%s3794_s22 + $0x2f4] ss:$8 sps:$4 sm:$0xff]  }
  0x96   : > { %2436 = vmatprep.mubr.bf16.mxu0 %v2979_v35  ;;  %v3622_v35 = vld [vmem:[%s3794_s22 + $0x6f4] ss:$8 sps:$4 sm:$0xff]  }
  0x97   : > { %2238 = vmatpush1.bf16.msra.mxu1 %v3533_v36  ;;  %v3617_v36 = vld [vmem:[%s3794_s22 + $0x2f0] ss:$8 sps:$4 sm:$0xff]  }
  0x98   : > { %2450 = vmatpush1.bf16.msra.mxu0 %v3536_v37  ;;  %2239 = vmatprep.subr.bf16.mxu1 %v3541_v38  ;;  %v3620_v37 = vld [vmem:[%s3794_s22 + $0x6f0] ss:$8 sps:$4 sm:$0xff]   ;;  %v3625_v38 = vld [vmem:[%s3794_s22 + $0x304] ss:$8 sps:$4 sm:$0xff]  }
  0x99   : > { %2451 = vmatprep.subr.bf16.mxu0 %v3544_v39  ;;  %v3628_v39 = vld [vmem:[%s3794_s22 + $0x704] ss:$8 sps:$4 sm:$0xff]  }
  0x9a   : > { %2225 = vmatmul.mubr.bf16.gmra.mrb[4].mxu1 %v2970_v43  ;;  %v2964_v43 = vcombine.low %v3981_v46, %v3984_v47  ;;  %v3629_v46 = vld [vmem:[%s3794_s22 + $0x310] ss:$8 sps:$4 sm:$0xff]  }
  0x9b   : > { %2437 = vmatmul.mubr.bf16.gmra.mrb[4].mxu0 %v2978_v44  ;;  %2240 = vmatpush1.bf16.msra.mxu1 %v3539_v40  ;;  %v419_v40 = vld [vmem:[%s3844_s26 + $0x90] sm:$0xff] }
  0x9c   : > { %2452 = vmatpush1.bf16.msra.mxu0 %v3542_v41  ;;  %2241 = vmatprep.subr.bf16.mxu1 %v3547_v48  ;;  %v2956_v41 = vcombine.low %v3975_v42, %v3978_v45  ;;  %v427_v44 = vld [vmem:[%s3844_s26 + $0xd0] sm:$0xff] }
  0x9d   : > { %2453 = vmatprep.subr.bf16.mxu0 %v3550_v49  ;;  %2267 = vmatprep.mubr.bf16.mxu1 %v2957_v50  ;;  %v423_v48 = vld [vmem:[%s3844_s26 + $0xb0] sm:$0xff]  ;;  %v3623_v50 = vld [vmem:[%s3794_s22 + $0x300] ss:$8 sps:$4 sm:$0xff]   ;;  %v2973_v42 = vcombine.high %v419_v40, %v427_v44 }
  0x9e   : > { %2479 = vmatprep.mubr.bf16.mxu0 %v2965_v51  ;;  %v431_v49 = vld [vmem:[%s3844_s26 + $0xf0] sm:$0xff]  ;;  %v3626_v51 = vld [vmem:[%s3794_s22 + $0x700] ss:$8 sps:$4 sm:$0xff]  }
  0x9f   : > { %2242 = vmatpush1.bf16.msra.mxu1 %v3545_v52  ;;  %v3631_v52 = vld [vmem:[%s3794_s22 + $0x314] ss:$8 sps:$4 sm:$0xff]   ;;  %v2981_v45 = vcombine.high %v423_v48, %v431_v49  ;;  %v3632_v47 = vld [vmem:[%s3794_s22 + $0x710] ss:$8 sps:$4 sm:$0xff]  }
  0xa0   : > { %2454 = vmatpush1.bf16.msra.mxu0 %v3548_v53  ;;  %2243 = vmatprep.subr.bf16.mxu1 %v3553_v54  ;;  %v3634_v53 = vld [vmem:[%s3794_s22 + $0x714] ss:$8 sps:$4 sm:$0xff]   ;;  %v3637_v54 = vld [vmem:[%s3794_s22 + $0x324] ss:$8 sps:$4 sm:$0xff]  }
  0xa1   : > { %2455 = vmatprep.subr.bf16.mxu0 %v3556_v55  ;;  %v3640_v55 = vld [vmem:[%s3794_s22 + $0x724] ss:$8 sps:$4 sm:$0xff]  }
  0xa3   : > { %2244 = vmatpush1.bf16.msra.mxu1 %v3551_v56  ;;  %v4061_v56 = vld [vmem:[%s3844_s26 + $0x18] sm:$0xff] }
  0xa4   : > { %2456 = vmatpush1.bf16.msra.mxu0 %v3554_v57  ;;  %2245 = vmatprep.subr.bf16.mxu1 %v3559_v58  ;;  %v2972_v57 = vcombine.low %v419_v40, %v427_v44  ;;  %v2980_v58 = vcombine.low %v423_v48, %v431_v49  ;;  %v3695_v40 = vld [vmem:[%s3794_s22 + $0x3c0] ss:$8 sps:$4 sm:$0xff]   ;;  %v3706_v44 = vld [vmem:[%s3794_s22 + $0x7d4] ss:$8 sps:$4 sm:$0xff]   ;;  %v3701_v48 = vld [vmem:[%s3794_s22 + $0x3d0] ss:$8 sps:$4 sm:$0xff]  }
  0xa5   : > { %2457 = vmatprep.subr.bf16.mxu0 %v3562_v59  ;;  %v4064_v59 = vld [vmem:[%s3844_s26 + $0x58] sm:$0xff] }
  0xa6   : > { %v3704_v49 = vld [vmem:[%s3794_s22 + $0x7d0] ss:$8 sps:$4 sm:$0xff]  }
  0xa7   : > { %2246 = vmatpush1.bf16.msra.mxu1 %v3557_v60  ;;  %v4067_v60 = vld [vmem:[%s3844_s26 + $0x38] sm:$0xff] }
  0xa8   : > { %2458 = vmatpush1.bf16.msra.mxu0 %v3560_v61  ;;  %2247 = vmatprep.subr.bf16.mxu1 %v3565_v62  ;;  %v4070_v61 = vld [vmem:[%s3844_s26 + $0x78] sm:$0xff]  ;;  %v3635_v62 = vld [vmem:[%s3794_s22 + $0x320] ss:$8 sps:$4 sm:$0xff]  }
  0xa9   : > { %2459 = vmatprep.subr.bf16.mxu0 %v3568_v63  ;;  %v3638_v63 = vld [vmem:[%s3794_s22 + $0x720] ss:$8 sps:$4 sm:$0xff]  }
  0xab   : > { %2248 = vmatpush1.bf16.msra.mxu1 %v3563_v0  ;;  %v3643_v0 = vld [vmem:[%s3794_s22 + $0x334] ss:$8 sps:$4 sm:$0xff]  }
  0xac   : > { %2460 = vmatpush1.bf16.msra.mxu0 %v3566_v1  ;;  %2249 = vmatprep.subr.bf16.mxu1 %v3571_v2  ;;  %v3646_v1 = vld [vmem:[%s3794_s22 + $0x734] ss:$8 sps:$4 sm:$0xff]   ;;  %v2959_v2 = vcombine.high %v4061_v56, %v4064_v59 }
  0xad   : > { %2461 = vmatprep.subr.bf16.mxu0 %v3574_v3  ;;  %v2967_v3 = vcombine.high %v4067_v60, %v4070_v61 }
  0xaf   : > { %2250 = vmatpush1.bf16.msra.mxu1 %v3569_v4  ;;  %v3641_v4 = vld [vmem:[%s3794_s22 + $0x330] ss:$8 sps:$4 sm:$0xff]  }
  0xb0   : > { %2462 = vmatpush1.bf16.msra.mxu0 %v3572_v5  ;;  %2251 = vmatprep.subr.bf16.mxu1 %v3577_v6  ;;  %v3644_v5 = vld [vmem:[%s3794_s22 + $0x730] ss:$8 sps:$4 sm:$0xff]   ;;  %v3649_v6 = vld [vmem:[%s3794_s22 + $0x344] ss:$8 sps:$4 sm:$0xff]  }
  0xb1   : > { %2463 = vmatprep.subr.bf16.mxu0 %v3580_v7  ;;  %v3652_v7 = vld [vmem:[%s3794_s22 + $0x744] ss:$8 sps:$4 sm:$0xff]  }
  0xb3   : > { %2252 = vmatpush1.bf16.msra.mxu1 %v3575_v8  ;;  %v3647_v8 = vld [vmem:[%s3794_s22 + $0x340] ss:$8 sps:$4 sm:$0xff]  }
  0xb4   : > { %2464 = vmatpush1.bf16.msra.mxu0 %v3578_v9  ;;  %2253 = vmatprep.subr.bf16.mxu1 %v3583_v10  ;;  %v3650_v9 = vld [vmem:[%s3794_s22 + $0x740] ss:$8 sps:$4 sm:$0xff]   ;;  %v3655_v10 = vld [vmem:[%s3794_s22 + $0x354] ss:$8 sps:$4 sm:$0xff]  }
  0xb5   : > { %2465 = vmatprep.subr.bf16.mxu0 %v3586_v11  ;;  %v3658_v11 = vld [vmem:[%s3794_s22 + $0x754] ss:$8 sps:$4 sm:$0xff]  }
  0xb7   : > { %2254 = vmatpush1.bf16.msra.mxu1 %v3581_v12  ;;  %v3653_v12 = vld [vmem:[%s3794_s22 + $0x350] ss:$8 sps:$4 sm:$0xff]  }
  0xb8   : > { %2466 = vmatpush1.bf16.msra.mxu0 %v3584_v13  ;;  %2255 = vmatprep.subr.bf16.mxu1 %v3589_v14  ;;  %v3656_v13 = vld [vmem:[%s3794_s22 + $0x750] ss:$8 sps:$4 sm:$0xff]   ;;  %v3661_v14 = vld [vmem:[%s3794_s22 + $0x364] ss:$8 sps:$4 sm:$0xff]  }
  0xb9   : > { %2467 = vmatprep.subr.bf16.mxu0 %v3592_v15  ;;  %v3664_v15 = vld [vmem:[%s3794_s22 + $0x764] ss:$8 sps:$4 sm:$0xff]  }
  0xbb   : > { %2256 = vmatpush1.bf16.msra.mxu1 %v3587_v16  ;;  %v3659_v16 = vld [vmem:[%s3794_s22 + $0x360] ss:$8 sps:$4 sm:$0xff]  }
  0xbc   : > { %2468 = vmatpush1.bf16.msra.mxu0 %v3590_v17  ;;  %2257 = vmatprep.subr.bf16.mxu1 %v3595_v18  ;;  %v3662_v17 = vld [vmem:[%s3794_s22 + $0x760] ss:$8 sps:$4 sm:$0xff]   ;;  %v3667_v18 = vld [vmem:[%s3794_s22 + $0x374] ss:$8 sps:$4 sm:$0xff]  }
  0xbd   : > { %2469 = vmatprep.subr.bf16.mxu0 %v3598_v19  ;;  %v3670_v19 = vld [vmem:[%s3794_s22 + $0x774] ss:$8 sps:$4 sm:$0xff]  }
  0xbf   : > { %2258 = vmatpush1.bf16.msra.mxu1 %v3593_v20  ;;  %v3665_v20 = vld [vmem:[%s3794_s22 + $0x370] ss:$8 sps:$4 sm:$0xff]  }
  0xc0   : > { %2470 = vmatpush1.bf16.msra.mxu0 %v3596_v21  ;;  %2259 = vmatprep.subr.bf16.mxu1 %v3601_v22  ;;  %v3668_v21 = vld [vmem:[%s3794_s22 + $0x770] ss:$8 sps:$4 sm:$0xff]   ;;  %v3673_v22 = vld [vmem:[%s3794_s22 + $0x384] ss:$8 sps:$4 sm:$0xff]  }
  0xc1   : > { %2471 = vmatprep.subr.bf16.mxu0 %v3604_v23  ;;  %v3676_v23 = vld [vmem:[%s3794_s22 + $0x784] ss:$8 sps:$4 sm:$0xff]  }
  0xc3   : > { %2260 = vmatpush1.bf16.msra.mxu1 %v3599_v24  ;;  %v3671_v24 = vld [vmem:[%s3794_s22 + $0x380] ss:$8 sps:$4 sm:$0xff]  }
  0xc4   : > { %2472 = vmatpush1.bf16.msra.mxu0 %v3602_v25  ;;  %2261 = vmatprep.subr.bf16.mxu1 %v3607_v26  ;;  %v3674_v25 = vld [vmem:[%s3794_s22 + $0x780] ss:$8 sps:$4 sm:$0xff]   ;;  %v3679_v26 = vld [vmem:[%s3794_s22 + $0x394] ss:$8 sps:$4 sm:$0xff]  }
  0xc5   : > { %2473 = vmatprep.subr.bf16.mxu0 %v3610_v27  ;;  %v3682_v27 = vld [vmem:[%s3794_s22 + $0x794] ss:$8 sps:$4 sm:$0xff]  }
  0xc7   : > { %2262 = vmatpush1.bf16.msra.mxu1 %v3605_v28  ;;  %v3677_v28 = vld [vmem:[%s3794_s22 + $0x390] ss:$8 sps:$4 sm:$0xff]  }
  0xc8   : > { %2474 = vmatpush1.bf16.msra.mxu0 %v3608_v29  ;;  %2263 = vmatprep.subr.bf16.mxu1 %v3613_v30  ;;  %v3680_v29 = vld [vmem:[%s3794_s22 + $0x790] ss:$8 sps:$4 sm:$0xff]   ;;  %v3685_v30 = vld [vmem:[%s3794_s22 + $0x3a4] ss:$8 sps:$4 sm:$0xff]  }
  0xc9   : > { %2475 = vmatprep.subr.bf16.mxu0 %v3616_v31  ;;  %v3688_v31 = vld [vmem:[%s3794_s22 + $0x7a4] ss:$8 sps:$4 sm:$0xff]  }
  0xcb   : > { %2264 = vmatpush1.bf16.msra.mxu1 %v3611_v32  ;;  %v3683_v32 = vld [vmem:[%s3794_s22 + $0x3a0] ss:$8 sps:$4 sm:$0xff]  }
  0xcc   : > { %2476 = vmatpush1.bf16.msra.mxu0 %v3614_v33  ;;  %2265 = vmatprep.subr.bf16.mxu1 %v3619_v34  ;;  %v3686_v33 = vld [vmem:[%s3794_s22 + $0x7a0] ss:$8 sps:$4 sm:$0xff]   ;;  %v3691_v34 = vld [vmem:[%s3794_s22 + $0x3b4] ss:$8 sps:$4 sm:$0xff]  }
  0xcd   : > { %2477 = vmatprep.subr.bf16.mxu0 %v3622_v35  ;;  %v3694_v35 = vld [vmem:[%s3794_s22 + $0x7b4] ss:$8 sps:$4 sm:$0xff]  }
  0xcf   : > { %2266 = vmatpush1.bf16.msra.mxu1 %v3617_v36  ;;  %v3689_v36 = vld [vmem:[%s3794_s22 + $0x3b0] ss:$8 sps:$4 sm:$0xff]  }
  0xd0   : > { %2478 = vmatpush1.bf16.msra.mxu0 %v3620_v37  ;;  %2288 = vmatprep.subr.bf16.mxu1 %v3625_v38  ;;  %v3692_v37 = vld [vmem:[%s3794_s22 + $0x7b0] ss:$8 sps:$4 sm:$0xff]   ;;  %v3697_v38 = vld [vmem:[%s3794_s22 + $0x3c4] ss:$8 sps:$4 sm:$0xff]  }
  0xd1   : > { %2500 = vmatprep.subr.bf16.mxu0 %v3628_v39  ;;  %v3700_v39 = vld [vmem:[%s3794_s22 + $0x7c4] ss:$8 sps:$4 sm:$0xff]  }
  0xd2   : > { %2268 = vmatmul.mubr.bf16.vlgmr.msra.gmra.mrb[0].mxu1 %v2956_v41  ;;  %v3698_v41 = vld [vmem:[%s3794_s22 + $0x7c0] ss:$8 sps:$4 sm:$0xff]  }
  0xd3   : > { %2480 = vmatmul.mubr.bf16.vlgmr.msra.gmra.mrb[0].mxu0 %v2964_v43  ;;  %2289 = vmatpush1.bf16.msra.mxu1 %v3623_v50  ;;  %v3703_v43 = vld [vmem:[%s3794_s22 + $0x3d4] ss:$8 sps:$4 sm:$0xff]   ;;  %v3709_v50 = vld [vmem:[%s3794_s22 + $0x3e4] ss:$8 sps:$4 sm:$0xff]  }
  0xd4   : > { %2501 = vmatpush1.bf16.msra.mxu0 %v3626_v51  ;;  %2290 = vmatprep.subr.bf16.mxu1 %v3631_v52  ;;  %v3712_v51 = vld [vmem:[%s3794_s22 + $0x7e4] ss:$8 sps:$4 sm:$0xff]   ;;  %v3707_v52 = vld [vmem:[%s3794_s22 + $0x3e0] ss:$8 sps:$4 sm:$0xff]  }
  0xd5   : > { %2502 = vmatprep.subr.bf16.mxu0 %v3634_v53  ;;  %2277 = vmatprep.mubr.bf16.mxu1 %v2973_v42  ;;  %v3710_v53 = vld [vmem:[%s3794_s22 + $0x7e0] ss:$8 sps:$4 sm:$0xff]   ;;  %v3715_v42 = vld [vmem:[%s3794_s22 + $0x3f4] ss:$8 sps:$4 sm:$0xff]  }
  0xd6   : > { %2489 = vmatprep.mubr.bf16.mxu0 %v2981_v45  ;;  %v3718_v45 = vld [vmem:[%s3794_s22 + $0x7f4] ss:$8 sps:$4 sm:$0xff]  }
  0xd7   : > { %2291 = vmatpush1.bf16.msra.mxu1 %v3629_v46  ;;  %v3713_v46 = vld [vmem:[%s3794_s22 + $0x3f0] ss:$8 sps:$4 sm:$0xff]  }
  0xd8   : > { %2503 = vmatpush1.bf16.msra.mxu0 %v3632_v47  ;;  %2292 = vmatprep.subr.bf16.mxu1 %v3637_v54  ;;  %v3716_v47 = vld [vmem:[%s3794_s22 + $0x7f0] ss:$8 sps:$4 sm:$0xff]  }
  0xd9   : > { %2504 = vmatprep.subr.bf16.mxu0 %v3640_v55  ;;  %v420_v54 = vld [vmem:[%s3844_s26 + $0x98] sm:$0xff] }
  0xda   : > { %2278 = vmatmul.mubr.bf16.gmra.mrb[4].mxu1 %v2972_v57  ;;  %v428_v55 = vld [vmem:[%s3844_s26 + $0xd8] sm:$0xff] }
  0xdb   : > { %2490 = vmatmul.mubr.bf16.gmra.mrb[4].mxu0 %v2980_v58  ;;  %2293 = vmatpush1.bf16.msra.mxu1 %v3635_v62  ;;  %v424_v57 = vld [vmem:[%s3844_s26 + $0xb8] sm:$0xff]  ;;  %v2958_v62 = vcombine.low %v4061_v56, %v4064_v59  ;;  %v3743_v59 = vmov 0.0  }
  0xdc   : > { %2505 = vmatpush1.bf16.msra.mxu0 %v3638_v63  ;;  %2294 = vmatprep.subr.bf16.mxu1 %v3643_v0  ;;  %v432_v58 = vld [vmem:[%s3844_s26 + $0xf8] sm:$0xff]  ;;  %v2966_v63 = vcombine.low %v4067_v60, %v4070_v61  ;;  %v2975_v0 = vcombine.high %v420_v54, %v428_v55 }
  0xdd   : > { %2506 = vmatprep.subr.bf16.mxu0 %v3646_v1  ;;  %2320 = vmatprep.mubr.bf16.mxu1 %v2959_v2  ;;  %v2983_v1 = vcombine.high %v424_v57, %v432_v58  ;;  %v2974_v2 = vcombine.low %v420_v54, %v428_v55 }
  0xde   : > { %2532 = vmatprep.mubr.bf16.mxu0 %v2967_v3  ;;  %v2982_v3 = vcombine.low %v424_v57, %v432_v58  ;;  %v3744_v57 = vmov 1966171168  }
  0xdf   : > { %2295 = vmatpush1.bf16.msra.mxu1 %v3641_v4  ;;  %v2574_v4 = vlaneseq  ;;  %v2642_v58 = vunpack.c.l.s4 %v3744_v57 }
  0xe0   : > { %2507 = vmatpush1.bf16.msra.mxu0 %v3644_v5  ;;  %2296 = vmatprep.subr.bf16.mxu1 %v3649_v6 }
  0xe1   : > { %2508 = vmatprep.subr.bf16.mxu0 %v3652_v7  ;;  %vm4145_vm0 = vcmp.lt.s32.totalorder %v2574_v4, 256 }
  0xe2   : > { %2578 = vst.msk [vmem:[%s4142_s30] sm:$0x3] %vm4145_vm0, %v3743_v59  ;;  %2579 = vst.msk [vmem:[%s4155_s7] sm:$0x3] %vm4145_vm0, %v3743_v59 }
  0xe3   : > { %2297 = vmatpush1.bf16.msra.mxu1 %v3647_v8 }
  0xe4   : > { %2509 = vmatpush1.bf16.msra.mxu0 %v3650_v9  ;;  %2298 = vmatprep.subr.bf16.mxu1 %v3655_v10 }
  0xe5   : > { %2510 = vmatprep.subr.bf16.mxu0 %v3658_v11 }
  0xe7   : > { %2299 = vmatpush1.bf16.msra.mxu1 %v3653_v12 }
  0xe8   : > { %2511 = vmatpush1.bf16.msra.mxu0 %v3656_v13  ;;  %2300 = vmatprep.subr.bf16.mxu1 %v3661_v14 }
  0xe9   : > { %2512 = vmatprep.subr.bf16.mxu0 %v3664_v15 }
  0xeb   : > { %2301 = vmatpush1.bf16.msra.mxu1 %v3659_v16 }
  0xec   : > { %2513 = vmatpush1.bf16.msra.mxu0 %v3662_v17  ;;  %2302 = vmatprep.subr.bf16.mxu1 %v3667_v18 }
  0xed   : > { %2514 = vmatprep.subr.bf16.mxu0 %v3670_v19 }
  0xef   : > { %2303 = vmatpush1.bf16.msra.mxu1 %v3665_v20 }
  0xf0   : > { %2515 = vmatpush1.bf16.msra.mxu0 %v3668_v21  ;;  %2304 = vmatprep.subr.bf16.mxu1 %v3673_v22 }
  0xf1   : > { %2516 = vmatprep.subr.bf16.mxu0 %v3676_v23 }
  0xf3   : > { %2305 = vmatpush1.bf16.msra.mxu1 %v3671_v24 }
  0xf4   : > { %2517 = vmatpush1.bf16.msra.mxu0 %v3674_v25  ;;  %2306 = vmatprep.subr.bf16.mxu1 %v3679_v26 }
  0xf5   : > { %2518 = vmatprep.subr.bf16.mxu0 %v3682_v27 }
  0xf7   : > { %2307 = vmatpush1.bf16.msra.mxu1 %v3677_v28 }
  0xf8   : > { %2519 = vmatpush1.bf16.msra.mxu0 %v3680_v29  ;;  %2308 = vmatprep.subr.bf16.mxu1 %v3685_v30 }
  0xf9   : > { %2520 = vmatprep.subr.bf16.mxu0 %v3688_v31 }
  0xfb   : > { %2309 = vmatpush1.bf16.msra.mxu1 %v3683_v32 }
  0xfc   : > { %2521 = vmatpush1.bf16.msra.mxu0 %v3686_v33  ;;  %2310 = vmatprep.subr.bf16.mxu1 %v3691_v34 }
  0xfd   : > { %2522 = vmatprep.subr.bf16.mxu0 %v3694_v35 }
  0xff   : > { %2311 = vmatpush1.bf16.msra.mxu1 %v3689_v36 }
 0x100   : > { %2523 = vmatpush1.bf16.msra.mxu0 %v3692_v37  ;;  %2312 = vmatprep.subr.bf16.mxu1 %v3697_v38 }
 0x101   : > { %2524 = vmatprep.subr.bf16.mxu0 %v3700_v39 }
 0x103   : > { %2313 = vmatpush1.bf16.msra.mxu1 %v3695_v40 }
 0x104   : > { %2525 = vmatpush1.bf16.msra.mxu0 %v3698_v41  ;;  %2314 = vmatprep.subr.bf16.mxu1 %v3703_v43 }
 0x105   : > { %2526 = vmatprep.subr.bf16.mxu0 %v3706_v44 }
 0x107   : > { %2315 = vmatpush1.bf16.msra.mxu1 %v3701_v48 }
 0x108   : > { %2527 = vmatpush1.bf16.msra.mxu0 %v3704_v49  ;;  %2316 = vmatprep.subr.bf16.mxu1 %v3709_v50 }
 0x109   : > { %2528 = vmatprep.subr.bf16.mxu0 %v3712_v51 }
 0x10b   : > { %2317 = vmatpush1.bf16.msra.mxu1 %v3707_v52 }
 0x10c   : > { %2529 = vmatpush1.bf16.msra.mxu0 %v3710_v53  ;;  %2318 = vmatprep.subr.bf16.mxu1 %v3715_v42 }
 0x10d   : > { %2530 = vmatprep.subr.bf16.mxu0 %v3718_v45 }
 0x10f   : > { %2319 = vmatpush1.bf16.msra.mxu1 %v3713_v46 }
 0x110   : > { %2531 = vmatpush1.bf16.msra.mxu0 %v3716_v47 }
 0x112   : > { %2321 = vmatmul.mubr.bf16.vlgmr.msra.gmra.mrb[0].mxu1 %v2958_v62 }
 0x113   : > { %2533 = vmatmul.mubr.bf16.vlgmr.msra.gmra.mrb[0].mxu0 %v2966_v63  ;;  %2330 = vmatprep.mubr.bf16.mxu1 %v2975_v0 }
 0x114   : > { %2542 = vmatprep.mubr.bf16.mxu0 %v2983_v1 }
 0x11a   : > { %2331 = vmatmul.mubr.bf16.gmra.mrb[4].mxu1 %v2974_v2 }
 0x11b   : > { %2543 = vmatmul.mubr.bf16.gmra.mrb[4].mxu0 %v2982_v3 }
 0x1e5   : > { %v2322_v60 = vpop.f32.mrb[0].mxu1 }
 0x1e6   : > { %v2534_v61 = vpop.f32.mrb[0].mxu0  ;;  %v2324_v6 = vpop.f32.mrb[1].mxu1 }
 0x1e7   : > { %v3253_v5 = vadd.f32 %v2534_v61, %v2322_v60  ;;  %v2536_v7 = vpop.f32.mrb[1].mxu0  ;;  %v2326_v9 = vpop.f32.mrb[2].mxu1  ;;  %v2643_v61 = vunpack.c.0.s8 %v2642_v58 }
 0x1e8   : > { %v3254_v8 = vadd.f32 %v2536_v7, %v2324_v6  ;;  %v2538_v10 = vpop.f32.mrb[2].mxu0  ;;  %v2328_v12 = vpop.f32.mrb[3].mxu1 }
 0x1e9   : > { %v3255_v11 = vadd.f32 %v2538_v10, %v2326_v9  ;;  %v2540_v13 = vpop.f32.mrb[3].mxu0  ;;  %v2663_v16 = vmul.f32 %v3253_v5, %v3253_v5 }
 0x1ea   : > { %v3249_v14 = vpack.c.bf16 %v3254_v8, %v3253_v5  ;;  %v3256_v15 = vadd.f32 %v2540_v13, %v2328_v12  ;;  %v2664_v19 = vmul.f32 %v3254_v8, %v3254_v8 }
 0x1eb   : > { %v2620_v17 = vadd.f32 %v3255_v11, %v3253_v5  ;;  %v2665_v18 = vmul.f32 %v3255_v11, %v3255_v11  ;;  %v2645_v5 = vshrl.u32 %v2574_v4, 7  ;;  %v2619_v4 = vld [vmem:[%s4142_s30] sm:$0x3] }
 0x1ec   : > { %2615 = vst [vmem:[%s4164_s11] sm:$0xff] %v3249_v14  ;;  %v3250_v20 = vpack.c.bf16 %v3256_v15, %v3255_v11  ;;  %v2629_v21 = vadd.f32 %v3256_v15, %v3254_v8  ;;  %v2666_v22 = vmul.f32 %v3256_v15, %v3256_v15 }
 0x1ed   : > { %v2671_v23 = vadd.f32 %v2665_v18, %v2663_v16  ;;  %v2332_v25 = vpop.f32.mrb[4].mxu1  ;;  %v2646_v14 = vsub.s32 %v2643_v61, %v2645_v5 }
 0x1ee   : > { %2616 = vst [vmem:[%s4164_s11 + $0x8] sm:$0xff] %v3250_v20  ;;  %v2680_v24 = vadd.f32 %v2666_v22, %v2664_v19  ;;  %v2544_v26 = vpop.f32.mrb[4].mxu0  ;;  %v2334_v28 = vpop.f32.mrb[5].mxu1 }
 0x1ef   : > { %v3257_v27 = vadd.f32 %v2544_v26, %v2332_v25  ;;  %v2546_v29 = vpop.f32.mrb[5].mxu0  ;;  %v2336_v31 = vpop.f32.mrb[6].mxu1 }
 0x1f0   : > { %v3258_v30 = vadd.f32 %v2546_v29, %v2334_v28  ;;  %v2548_v32 = vpop.f32.mrb[6].mxu0  ;;  %v2338_v36 = vpop.f32.mrb[7].mxu1 }
 0x1f1   : > { %v2621_v33 = vadd.f32 %v3257_v27, %v2620_v17  ;;  %v2667_v34 = vmul.f32 %v3257_v27, %v3257_v27  ;;  %v3259_v35 = vadd.f32 %v2548_v32, %v2336_v31  ;;  %v2550_v37 = vpop.f32.mrb[7].mxu0 }
 0x1f2   : > { %v3251_v38 = vpack.c.bf16 %v3258_v30, %v3257_v27  ;;  %v2630_v39 = vadd.f32 %v3258_v30, %v2629_v21  ;;  %v2668_v40 = vmul.f32 %v3258_v30, %v3258_v30  ;;  %v3260_v41 = vadd.f32 %v2550_v37, %v2338_v36 }
 0x1f3   : > { %v2672_v43 = vadd.f32 %v2671_v23, %v2667_v34  ;;  %v2622_v44 = vadd.f32 %v3259_v35, %v2621_v33  ;;  %v2669_v48 = vmul.f32 %v3259_v35, %v3259_v35  ;;  %v2662_v23 = vld [vmem:[%s4155_s7] sm:$0x3] }
 0x1f4   : > { %2617 = vst [vmem:[%s4164_s11 + $0x10] sm:$0xff] %v3251_v38  ;;  %v2681_v49 = vadd.f32 %v2680_v24, %v2668_v40  ;;  %v3252_v50 = vpack.c.bf16 %v3260_v41, %v3259_v35  ;;  %v2631_v51 = vadd.f32 %v3260_v41, %v2630_v39  ;;  %v2670_v52 = vmul.f32 %v3260_v41, %v3260_v41 }
 0x1f5   : > { %v2623_v53 = vrot.slane %v2622_v44, 4  ;;  %v2673_v42 = vadd.f32 %v2672_v43, %v2669_v48 }
 0x1f6   : > { %2618 = vst [vmem:[%s4164_s11 + $0x18] sm:$0xff] %v3252_v50  ;;  %v2632_v45 = vrot.slane %v2631_v51, 4  ;;  %v2682_v46 = vadd.f32 %v2681_v49, %v2670_v52 }
 0x1f7   : > { %v2624_v47 = vadd.f32 %v2623_v53, %v2622_v44  ;;  %v2674_v54 = vrot.slane %v2673_v42, 4 }
 0x1f8   : > { %v2633_v55 = vadd.f32 %v2632_v45, %v2631_v51  ;;  %v2683_v62 = vrot.slane %v2682_v46, 4 }
 0x1f9   : > { %v2625_v63 = vrot.slane %v2624_v47, 2  ;;  %v2675_v0 = vadd.f32 %v2674_v54, %v2673_v42 }
 0x1fa   : > { %v2634_v1 = vrot.slane %v2633_v55, 2  ;;  %v2684_v2 = vadd.f32 %v2683_v62, %v2682_v46 }
 0x1fb   : > { %v2626_v3 = vadd.f32 %v2625_v63, %v2624_v47  ;;  %v2676_v59 = vrot.slane %v2675_v0, 2 }
 0x1fc   : > { %v2635_v60 = vadd.f32 %v2634_v1, %v2633_v55  ;;  %v2685_v6 = vrot.slane %v2684_v2, 2 }
 0x1fd   : > { %v2627_v7 = vrot.slane %v2626_v3, 1  ;;  %v2677_v8 = vadd.f32 %v2676_v59, %v2675_v0 }
 0x1fe   : > { %v2636_v9 = vrot.slane %v2635_v60, 1  ;;  %v2686_v10 = vadd.f32 %v2685_v6, %v2684_v2 }
 0x1ff   : > { %v2628_v11 = vadd.f32 %v2627_v7, %v2626_v3  ;;  %v2678_v12 = vrot.slane %v2677_v8, 1 }
 0x200   : > { %v2637_v13 = vadd.f32 %v2636_v9, %v2635_v60  ;;  %v2687_v15 = vrot.slane %v2686_v10, 1 }
 0x201   : > { %v2679_v16 = vadd.f32 %v2678_v12, %v2677_v8 }
 0x202   : > { %v2640_v17 = vcombine.low %v2628_v11, %v2637_v13  ;;  %v2688_v18 = vadd.f32 %v2687_v15, %v2686_v10 }
 0x204   : > { %v2647_v19 = vrot.slane %v2640_v17, %v2646_v14  ;;  %v2691_v20 = vcombine.low %v2679_v16, %v2688_v18 }
 0x206   : > { %v2654_v21 = vrot.slane %v2647_v19, %v2646_v14  ;;  %v2698_v22 = vrot.slane %v2691_v20, %v2646_v14 }
 0x208   : > { %v2656_v24 = vadd.f32 %v2654_v21, %v2619_v4  ;;  %v2705_v25 = vrot.slane %v2698_v22, %v2646_v14 }
 0x20a   : > { %2661 = vst.msk [vmem:[%s4142_s30] sm:$0x3] %vm4145_vm0, %v2656_v24  ;;  %v2707_v26 = vadd.f32 %v2705_v25, %v2662_v23 }
 0x20c   : > { %2708 = vst.msk [vmem:[%s4155_s7] sm:$0x3] %vm4145_vm0, %v2707_v26 }
 0x20d PF: > { %s15_s17 = sadd.s32 1, %s3741_s17   ;;  %s4195_s15 = smov %s3737_s16 }
 0x20e   : > { %p12_p5 = scmp.ge.s32.totalorder %s15_s17, 6   ;;  %s4196_s16 = smov %s4198_s18 }
 0x210   :  { %14 = sbr.rel (!%p12_p5) target bundleno = 2 (0x2), region = 97 }

// kernel: generator_forward.14
= control target key start
LH: loop header
LB: loop body
LE: loop exit
PB: predicated region body
PF: predicated region fallthrough
CT: control target
= control target key end

     0   :  { %s1502_s0 = inlined_call_operand.vmem [shape: bf16[512,128], index: 0, kind: input, shape index: {}]   ;;  %s1503_s1 = inlined_call_operand.vmem [shape: f32[1,128], index: 1, kind: input, shape index: {}]   ;;  %s1504_s2 = inlined_call_operand.vmem [shape: f32[1,128], index: 2, kind: input, shape index: {}]   ;;  %s1505_s3 = inlined_call_operand.vmem [shape: bf16[512,128], index: 3, kind: output, shape index: {}]  }
   0x1   :  { %v803_v0 = vld [vmem:[%s1502_s0] sm:$0xff]   ;;  %v1090_v4 = vld [vmem:[%s1502_s0 + $0x8] sm:$0xff]   ;;  %v1091_v5 = vld [vmem:[%s1502_s0 + $0x10] sm:$0xff]  }
   0x2   :  { %v1178_v1 = vld [vmem:[%s1503_s1] ss:$0 sm:$0xff]  ;;  %v804_v2 = vunpack.c.l.bf16 %v803_v0  ;;  %v805_v3 = vunpack.c.h.bf16 %v803_v0  ;;  %v1092_v6 = vld [vmem:[%s1502_s0 + $0x18] sm:$0xff]   ;;  %v808_v8 = vunpack.c.l.bf16 %v1090_v4  ;;  %v809_v9 = vunpack.c.h.bf16 %v1090_v4  ;;  %v1094_v33 = vld [vmem:[%s1502_s0 + $0x28] sm:$0xff]  }
   0x3   :  { %v1192_v7 = vld [vmem:[%s1504_s2] ss:$0 sm:$0xff]  ;;  %v812_v10 = vunpack.c.l.bf16 %v1091_v5  ;;  %v813_v11 = vunpack.c.h.bf16 %v1091_v5  ;;  %v816_v14 = vunpack.c.l.bf16 %v1092_v6  ;;  %v817_v15 = vunpack.c.h.bf16 %v1092_v6  ;;  %v1095_v38 = vld [vmem:[%s1502_s0 + $0x30] sm:$0xff]   ;;  %v1096_v43 = vld [vmem:[%s1502_s0 + $0x38] sm:$0xff]  }
   0x4   :  { %v149_v12 = vmul.f32 %v804_v2, %v1178_v1  ;;  %v150_v13 = vmul.f32 %v805_v3, %v1178_v1  ;;  %v151_v16 = vmul.f32 %v808_v8, %v1178_v1  ;;  %v152_v17 = vmul.f32 %v809_v9, %v1178_v1  ;;  %v1093_v28 = vld [vmem:[%s1502_s0 + $0x20] sm:$0xff]  }
   0x5   :  { %v153_v18 = vmul.f32 %v812_v10, %v1178_v1  ;;  %v154_v19 = vmul.f32 %v813_v11, %v1178_v1  ;;  %v155_v22 = vmul.f32 %v816_v14, %v1178_v1  ;;  %v156_v23 = vmul.f32 %v817_v15, %v1178_v1  ;;  %v1097_v0 = vld [vmem:[%s1502_s0 + $0x40] sm:$0xff]   ;;  %v1098_v11 = vld [vmem:[%s1502_s0 + $0x48] sm:$0xff]  }
   0x6   :  { %v220_v20 = vadd.f32 %v1192_v7, %v149_v12  ;;  %v221_v21 = vadd.f32 %v1192_v7, %v150_v13  ;;  %v222_v24 = vadd.f32 %v1192_v7, %v151_v16  ;;  %v223_v25 = vadd.f32 %v1192_v7, %v152_v17  ;;  %v1099_v16 = vld [vmem:[%s1502_s0 + $0x50] sm:$0xff]  }
   0x7   :  { %v224_v26 = vadd.f32 %v1192_v7, %v153_v18  ;;  %v225_v27 = vadd.f32 %v1192_v7, %v154_v19  ;;  %v226_v31 = vadd.f32 %v1192_v7, %v155_v22  ;;  %v227_v32 = vadd.f32 %v1192_v7, %v156_v23 }
   0x8   :  { %v284_v29 = vmax.f32 %v220_v20, 0.0  ;;  %v285_v30 = vmax.f32 %v221_v21, 0.0  ;;  %v286_v34 = vmax.f32 %v222_v24, 0.0  ;;  %v287_v35 = vmax.f32 %v223_v25, 0.0  ;;  %v1100_v25 = vld [vmem:[%s1502_s0 + $0x58] sm:$0xff]  }
   0x9   :  { %v288_v36 = vmax.f32 %v224_v26, 0.0  ;;  %v289_v37 = vmax.f32 %v225_v27, 0.0  ;;  %v290_v40 = vmax.f32 %v226_v31, 0.0  ;;  %v291_v41 = vmax.f32 %v227_v32, 0.0 }
   0xa   :  { %v933_v39 = vpack.c.bf16 %v285_v30, %v284_v29  ;;  %v820_v42 = vunpack.c.l.bf16 %v1093_v28  ;;  %v938_v44 = vpack.c.bf16 %v287_v35, %v286_v34  ;;  %v821_v46 = vunpack.c.h.bf16 %v1093_v28 }
   0xb   :  { %v943_v45 = vpack.c.bf16 %v289_v37, %v288_v36  ;;  %v824_v47 = vunpack.c.l.bf16 %v1094_v33  ;;  %v948_v48 = vpack.c.bf16 %v291_v41, %v290_v40  ;;  %v825_v50 = vunpack.c.h.bf16 %v1094_v33 }
   0xc   :  { %934 = vst [vmem:[%s1505_s3] sm:$0xff] %v933_v39   ;;  %v157_v49 = vmul.f32 %v820_v42, %v1178_v1  ;;  %v828_v51 = vunpack.c.l.bf16 %v1095_v38  ;;  %1121 = vst [vmem:[%s1505_s3 + $0x8] sm:$0xff] %v938_v44   ;;  %v158_v52 = vmul.f32 %v821_v46, %v1178_v1  ;;  %v829_v54 = vunpack.c.h.bf16 %v1095_v38  ;;  %v1101_v38 = vld [vmem:[%s1502_s0 + $0x60] sm:$0xff]  }
   0xd   :  { %1122 = vst [vmem:[%s1505_s3 + $0x10] sm:$0xff] %v943_v45   ;;  %v159_v53 = vmul.f32 %v824_v47, %v1178_v1  ;;  %v832_v55 = vunpack.c.l.bf16 %v1096_v43  ;;  %1123 = vst [vmem:[%s1505_s3 + $0x18] sm:$0xff] %v948_v48   ;;  %v160_v57 = vmul.f32 %v825_v50, %v1178_v1  ;;  %v833_v59 = vunpack.c.h.bf16 %v1096_v43 }
   0xe   :  { %v228_v56 = vadd.f32 %v1192_v7, %v157_v49  ;;  %v161_v58 = vmul.f32 %v828_v51, %v1178_v1  ;;  %v229_v60 = vadd.f32 %v1192_v7, %v158_v52  ;;  %v162_v62 = vmul.f32 %v829_v54, %v1178_v1  ;;  %v1102_v51 = vld [vmem:[%s1502_s0 + $0x68] sm:$0xff]  }
   0xf   :  { %v230_v61 = vadd.f32 %v1192_v7, %v159_v53  ;;  %v163_v63 = vmul.f32 %v832_v55, %v1178_v1  ;;  %v231_v3 = vadd.f32 %v1192_v7, %v160_v57  ;;  %v164_v5 = vmul.f32 %v833_v59, %v1178_v1 }
  0x10   :  { %v292_v2 = vmax.f32 %v228_v56, 0.0  ;;  %v232_v4 = vadd.f32 %v1192_v7, %v161_v58  ;;  %v293_v6 = vmax.f32 %v229_v60, 0.0  ;;  %v233_v9 = vadd.f32 %v1192_v7, %v162_v62  ;;  %v1103_v60 = vld [vmem:[%s1502_s0 + $0x70] sm:$0xff]  }
  0x11   :  { %v294_v8 = vmax.f32 %v230_v61, 0.0  ;;  %v234_v10 = vadd.f32 %v1192_v7, %v163_v63  ;;  %v295_v12 = vmax.f32 %v231_v3, 0.0  ;;  %v235_v14 = vadd.f32 %v1192_v7, %v164_v5 }
  0x12   :  { %v296_v13 = vmax.f32 %v232_v4, 0.0  ;;  %v836_v15 = vunpack.c.l.bf16 %v1097_v0  ;;  %v953_v17 = vpack.c.bf16 %v293_v6, %v292_v2  ;;  %v297_v18 = vmax.f32 %v233_v9, 0.0  ;;  %v1104_v2 = vld [vmem:[%s1502_s0 + $0x78] sm:$0xff]  }
  0x13   :  { %v298_v19 = vmax.f32 %v234_v10, 0.0  ;;  %v837_v20 = vunpack.c.h.bf16 %v1097_v0  ;;  %v958_v21 = vpack.c.bf16 %v295_v12, %v294_v8  ;;  %v299_v22 = vmax.f32 %v235_v14, 0.0  ;;  %v1105_v12 = vld [vmem:[%s1502_s0 + $0x80] sm:$0xff]  }
  0x14   :  { %v165_v23 = vmul.f32 %v836_v15, %v1178_v1  ;;  %v840_v24 = vunpack.c.l.bf16 %v1098_v11  ;;  %1124 = vst [vmem:[%s1505_s3 + $0x20] sm:$0xff] %v953_v17   ;;  %v963_v26 = vpack.c.bf16 %v297_v18, %v296_v13  ;;  %v841_v28 = vunpack.c.h.bf16 %v1098_v11 }
  0x15   :  { %v166_v27 = vmul.f32 %v837_v20, %v1178_v1  ;;  %v844_v29 = vunpack.c.l.bf16 %v1099_v16  ;;  %1125 = vst [vmem:[%s1505_s3 + $0x28] sm:$0xff] %v958_v21   ;;  %v968_v30 = vpack.c.bf16 %v299_v22, %v298_v19  ;;  %v845_v33 = vunpack.c.h.bf16 %v1099_v16 }
  0x16   :  { %v236_v31 = vadd.f32 %v1192_v7, %v165_v23  ;;  %v167_v32 = vmul.f32 %v840_v24, %v1178_v1  ;;  %1126 = vst [vmem:[%s1505_s3 + $0x30] sm:$0xff] %v963_v26   ;;  %v168_v35 = vmul.f32 %v841_v28, %v1178_v1  ;;  %v848_v37 = vunpack.c.l.bf16 %v1100_v25 }
  0x17   :  { %v237_v34 = vadd.f32 %v1192_v7, %v166_v27  ;;  %v169_v36 = vmul.f32 %v844_v29, %v1178_v1  ;;  %1127 = vst [vmem:[%s1505_s3 + $0x38] sm:$0xff] %v968_v30   ;;  %v170_v41 = vmul.f32 %v845_v33, %v1178_v1  ;;  %v849_v42 = vunpack.c.h.bf16 %v1100_v25  ;;  %v1106_v29 = vld [vmem:[%s1502_s0 + $0x88] sm:$0xff]  }
  0x18   :  { %v300_v39 = vmax.f32 %v236_v31, 0.0  ;;  %v238_v40 = vadd.f32 %v1192_v7, %v167_v32  ;;  %v239_v44 = vadd.f32 %v1192_v7, %v168_v35  ;;  %v171_v46 = vmul.f32 %v848_v37, %v1178_v1 }
  0x19   :  { %v301_v43 = vmax.f32 %v237_v34, 0.0  ;;  %v240_v45 = vadd.f32 %v1192_v7, %v169_v36  ;;  %v241_v48 = vadd.f32 %v1192_v7, %v170_v41  ;;  %v172_v49 = vmul.f32 %v849_v42, %v1178_v1  ;;  %v1107_v34 = vld [vmem:[%s1502_s0 + $0x90] sm:$0xff]  }
  0x1a   :  { %v302_v47 = vmax.f32 %v238_v40, 0.0  ;;  %v852_v50 = vunpack.c.l.bf16 %v1101_v38  ;;  %v303_v53 = vmax.f32 %v239_v44, 0.0  ;;  %v242_v55 = vadd.f32 %v1192_v7, %v171_v46 }
  0x1b   :  { %v973_v52 = vpack.c.bf16 %v301_v43, %v300_v39  ;;  %v304_v54 = vmax.f32 %v240_v45, 0.0  ;;  %v305_v56 = vmax.f32 %v241_v48, 0.0  ;;  %v243_v57 = vadd.f32 %v1192_v7, %v172_v49  ;;  %v1108_v43 = vld [vmem:[%s1502_s0 + $0x98] sm:$0xff]  }
  0x1c   :  { %v853_v58 = vunpack.c.h.bf16 %v1101_v38  ;;  %v173_v59 = vmul.f32 %v852_v50, %v1178_v1  ;;  %v978_v61 = vpack.c.bf16 %v303_v53, %v302_v47  ;;  %v306_v62 = vmax.f32 %v242_v55, 0.0 }
  0x1d   :  { %1128 = vst [vmem:[%s1505_s3 + $0x40] sm:$0xff] %v973_v52   ;;  %v856_v63 = vunpack.c.l.bf16 %v1102_v51  ;;  %v857_v0 = vunpack.c.h.bf16 %v1102_v51  ;;  %v983_v3 = vpack.c.bf16 %v305_v56, %v304_v54  ;;  %v307_v4 = vmax.f32 %v243_v57, 0.0  ;;  %v1109_v56 = vld [vmem:[%s1502_s0 + $0xa0] sm:$0xff]  }
  0x1e   :  { %v174_v5 = vmul.f32 %v853_v58, %v1178_v1  ;;  %v244_v6 = vadd.f32 %v1192_v7, %v173_v59  ;;  %1129 = vst [vmem:[%s1505_s3 + $0x48] sm:$0xff] %v978_v61   ;;  %v860_v10 = vunpack.c.l.bf16 %v1103_v60  ;;  %v861_v11 = vunpack.c.h.bf16 %v1103_v60 }
  0x1f   :  { %v175_v8 = vmul.f32 %v856_v63, %v1178_v1  ;;  %v176_v9 = vmul.f32 %v857_v0, %v1178_v1  ;;  %1130 = vst [vmem:[%s1505_s3 + $0x50] sm:$0xff] %v983_v3   ;;  %v988_v13 = vpack.c.bf16 %v307_v4, %v306_v62  ;;  %v864_v16 = vunpack.c.l.bf16 %v1104_v2 }
  0x20   :  { %v245_v14 = vadd.f32 %v1192_v7, %v174_v5  ;;  %v308_v15 = vmax.f32 %v244_v6, 0.0  ;;  %v177_v19 = vmul.f32 %v860_v10, %v1178_v1  ;;  %v178_v20 = vmul.f32 %v861_v11, %v1178_v1 }
  0x21   :  { %v246_v17 = vadd.f32 %v1192_v7, %v175_v8  ;;  %v247_v18 = vadd.f32 %v1192_v7, %v176_v9  ;;  %1131 = vst [vmem:[%s1505_s3 + $0x58] sm:$0xff] %v988_v13   ;;  %v865_v22 = vunpack.c.h.bf16 %v1104_v2  ;;  %v179_v23 = vmul.f32 %v864_v16, %v1178_v1  ;;  %v1110_v2 = vld [vmem:[%s1502_s0 + $0xa8] sm:$0xff]   ;;  %v1111_v16 = vld [vmem:[%s1502_s0 + $0xb0] sm:$0xff]  }
  0x22   :  { %v309_v21 = vmax.f32 %v245_v14, 0.0  ;;  %v868_v24 = vunpack.c.l.bf16 %v1105_v12  ;;  %v248_v27 = vadd.f32 %v1192_v7, %v177_v19  ;;  %v249_v28 = vadd.f32 %v1192_v7, %v178_v20 }
  0x23   :  { %v310_v25 = vmax.f32 %v246_v17, 0.0  ;;  %v311_v26 = vmax.f32 %v247_v18, 0.0  ;;  %v180_v31 = vmul.f32 %v865_v22, %v1178_v1  ;;  %v250_v32 = vadd.f32 %v1192_v7, %v179_v23 }
  0x24   :  { %v993_v30 = vpack.c.bf16 %v309_v21, %v308_v15  ;;  %v869_v33 = vunpack.c.h.bf16 %v1105_v12  ;;  %v312_v36 = vmax.f32 %v248_v27, 0.0  ;;  %v313_v37 = vmax.f32 %v249_v28, 0.0  ;;  %v1112_v21 = vld [vmem:[%s1502_s0 + $0xb8] sm:$0xff]  }
  0x25   :  { %v998_v35 = vpack.c.bf16 %v311_v26, %v310_v25  ;;  %v181_v38 = vmul.f32 %v868_v24, %v1178_v1  ;;  %v251_v39 = vadd.f32 %v1192_v7, %v180_v31  ;;  %v314_v40 = vmax.f32 %v250_v32, 0.0 }
  0x26   :  { %1132 = vst [vmem:[%s1505_s3 + $0x60] sm:$0xff] %v993_v30   ;;  %v182_v41 = vmul.f32 %v869_v33, %v1178_v1  ;;  %v872_v42 = vunpack.c.l.bf16 %v1106_v29  ;;  %v1003_v44 = vpack.c.bf16 %v313_v37, %v312_v36  ;;  %v873_v46 = vunpack.c.h.bf16 %v1106_v29 }
  0x27   :  { %1133 = vst [vmem:[%s1505_s3 + $0x68] sm:$0xff] %v998_v35   ;;  %v252_v45 = vadd.f32 %v1192_v7, %v181_v38  ;;  %v876_v47 = vunpack.c.l.bf16 %v1107_v34  ;;  %v315_v48 = vmax.f32 %v251_v39, 0.0  ;;  %v877_v51 = vunpack.c.h.bf16 %v1107_v34  ;;  %v1113_v34 = vld [vmem:[%s1502_s0 + $0xc0] sm:$0xff]  }
  0x28   :  { %v253_v49 = vadd.f32 %v1192_v7, %v182_v41  ;;  %v183_v50 = vmul.f32 %v872_v42, %v1178_v1  ;;  %1134 = vst [vmem:[%s1505_s3 + $0x70] sm:$0xff] %v1003_v44   ;;  %v184_v53 = vmul.f32 %v873_v46, %v1178_v1  ;;  %v880_v55 = vunpack.c.l.bf16 %v1108_v43 }
  0x29   :  { %v316_v52 = vmax.f32 %v252_v45, 0.0  ;;  %v185_v54 = vmul.f32 %v876_v47, %v1178_v1  ;;  %v1008_v57 = vpack.c.bf16 %v315_v48, %v314_v40  ;;  %v186_v60 = vmul.f32 %v877_v51, %v1178_v1  ;;  %v1114_v47 = vld [vmem:[%s1502_s0 + $0xc8] sm:$0xff]  }
  0x2a   :  { %v317_v58 = vmax.f32 %v253_v49, 0.0  ;;  %v254_v59 = vadd.f32 %v1192_v7, %v183_v50  ;;  %v255_v61 = vadd.f32 %v1192_v7, %v184_v53  ;;  %v881_v63 = vunpack.c.h.bf16 %v1108_v43 }
  0x2b   :  { %v256_v62 = vadd.f32 %v1192_v7, %v185_v54  ;;  %v187_v0 = vmul.f32 %v880_v55, %v1178_v1  ;;  %1135 = vst [vmem:[%s1505_s3 + $0x78] sm:$0xff] %v1008_v57   ;;  %v257_v5 = vadd.f32 %v1192_v7, %v186_v60  ;;  %v884_v6 = vunpack.c.l.bf16 %v1109_v56 }
  0x2c   :  { %v1013_v3 = vpack.c.bf16 %v317_v58, %v316_v52  ;;  %v318_v4 = vmax.f32 %v254_v59, 0.0  ;;  %v319_v8 = vmax.f32 %v255_v61, 0.0  ;;  %v188_v10 = vmul.f32 %v881_v63, %v1178_v1  ;;  %v1115_v52 = vld [vmem:[%s1502_s0 + $0xd0] sm:$0xff]   ;;  %v1116_v61 = vld [vmem:[%s1502_s0 + $0xd8] sm:$0xff]  }
  0x2d   :  { %v320_v9 = vmax.f32 %v256_v62, 0.0  ;;  %v258_v11 = vadd.f32 %v1192_v7, %v187_v0  ;;  %v321_v12 = vmax.f32 %v257_v5, 0.0  ;;  %v885_v13 = vunpack.c.h.bf16 %v1109_v56 }
  0x2e   :  { %1136 = vst [vmem:[%s1505_s3 + $0x80] sm:$0xff] %v1013_v3   ;;  %v189_v14 = vmul.f32 %v884_v6, %v1178_v1  ;;  %v888_v15 = vunpack.c.l.bf16 %v1110_v2  ;;  %v1018_v17 = vpack.c.bf16 %v319_v8, %v318_v4  ;;  %v259_v18 = vadd.f32 %v1192_v7, %v188_v10 }
  0x2f   :  { %v322_v19 = vmax.f32 %v258_v11, 0.0  ;;  %v889_v20 = vunpack.c.h.bf16 %v1110_v2  ;;  %v1023_v22 = vpack.c.bf16 %v321_v12, %v320_v9  ;;  %v190_v23 = vmul.f32 %v885_v13, %v1178_v1  ;;  %v1117_v12 = vld [vmem:[%s1502_s0 + $0xe0] sm:$0xff]  }
  0x30   :  { %v260_v24 = vadd.f32 %v1192_v7, %v189_v14  ;;  %v191_v25 = vmul.f32 %v888_v15, %v1178_v1  ;;  %1137 = vst [vmem:[%s1505_s3 + $0x88] sm:$0xff] %v1018_v17   ;;  %v323_v26 = vmax.f32 %v259_v18, 0.0  ;;  %v892_v28 = vunpack.c.l.bf16 %v1111_v16 }
  0x31   :  { %v192_v27 = vmul.f32 %v889_v20, %v1178_v1  ;;  %v893_v29 = vunpack.c.h.bf16 %v1111_v16  ;;  %1138 = vst [vmem:[%s1505_s3 + $0x90] sm:$0xff] %v1023_v22   ;;  %v261_v30 = vadd.f32 %v1192_v7, %v190_v23  ;;  %v896_v33 = vunpack.c.l.bf16 %v1112_v21 }
  0x32   :  { %v324_v31 = vmax.f32 %v260_v24, 0.0  ;;  %v262_v32 = vadd.f32 %v1192_v7, %v191_v25  ;;  %v1028_v35 = vpack.c.bf16 %v323_v26, %v322_v19  ;;  %v193_v37 = vmul.f32 %v892_v28, %v1178_v1 }
  0x33   :  { %v263_v36 = vadd.f32 %v1192_v7, %v192_v27  ;;  %v194_v38 = vmul.f32 %v893_v29, %v1178_v1  ;;  %v325_v39 = vmax.f32 %v261_v30, 0.0  ;;  %v897_v41 = vunpack.c.h.bf16 %v1112_v21  ;;  %v1118_v21 = vld [vmem:[%s1502_s0 + $0xe8] sm:$0xff]  }
  0x34   :  { %v326_v40 = vmax.f32 %v262_v32, 0.0  ;;  %v195_v42 = vmul.f32 %v896_v33, %v1178_v1  ;;  %1139 = vst [vmem:[%s1505_s3 + $0x98] sm:$0xff] %v1028_v35   ;;  %v264_v44 = vadd.f32 %v1192_v7, %v193_v37  ;;  %v900_v46 = vunpack.c.l.bf16 %v1113_v34 }
  0x35   :  { %v327_v43 = vmax.f32 %v263_v36, 0.0  ;;  %v265_v45 = vadd.f32 %v1192_v7, %v194_v38  ;;  %v1033_v48 = vpack.c.bf16 %v325_v39, %v324_v31  ;;  %v196_v49 = vmul.f32 %v897_v41, %v1178_v1  ;;  %v1120_v39 = vld [vmem:[%s1502_s0 + $0xf8] sm:$0xff]  }
  0x36   :  { %v266_v50 = vadd.f32 %v1192_v7, %v195_v42  ;;  %v901_v51 = vunpack.c.h.bf16 %v1113_v34  ;;  %v328_v54 = vmax.f32 %v264_v44, 0.0  ;;  %v197_v56 = vmul.f32 %v900_v46, %v1178_v1  ;;  %v1119_v34 = vld [vmem:[%s1502_s0 + $0xf0] sm:$0xff]  }
  0x37   :  { %v1038_v53 = vpack.c.bf16 %v327_v43, %v326_v40  ;;  %v329_v55 = vmax.f32 %v265_v45, 0.0  ;;  %1140 = vst [vmem:[%s1505_s3 + $0xa0] sm:$0xff] %v1033_v48   ;;  %v267_v57 = vadd.f32 %v1192_v7, %v196_v49  ;;  %v904_v60 = vunpack.c.l.bf16 %v1114_v47 }
  0x38   :  { %v330_v58 = vmax.f32 %v266_v50, 0.0  ;;  %v198_v59 = vmul.f32 %v901_v51, %v1178_v1  ;;  %v268_v63 = vadd.f32 %v1192_v7, %v197_v56  ;;  %v905_v0 = vunpack.c.h.bf16 %v1114_v47 }
  0x39   :  { %1141 = vst [vmem:[%s1505_s3 + $0xa8] sm:$0xff] %v1038_v53   ;;  %v1043_v62 = vpack.c.bf16 %v329_v55, %v328_v54  ;;  %v908_v2 = vunpack.c.l.bf16 %v1115_v52  ;;  %v331_v3 = vmax.f32 %v267_v57, 0.0  ;;  %v199_v5 = vmul.f32 %v904_v60, %v1178_v1 }
  0x3a   :  { %v269_v4 = vadd.f32 %v1192_v7, %v198_v59  ;;  %v909_v6 = vunpack.c.h.bf16 %v1115_v52  ;;  %v332_v8 = vmax.f32 %v268_v63, 0.0  ;;  %v200_v9 = vmul.f32 %v905_v0, %v1178_v1 }
  0x3b   :  { %1142 = vst [vmem:[%s1505_s3 + $0xb0] sm:$0xff] %v1043_v62   ;;  %v201_v10 = vmul.f32 %v908_v2, %v1178_v1  ;;  %v912_v11 = vunpack.c.l.bf16 %v1116_v61  ;;  %v1048_v13 = vpack.c.bf16 %v331_v3, %v330_v58  ;;  %v270_v15 = vadd.f32 %v1192_v7, %v199_v5 }
  0x3c   :  { %v333_v14 = vmax.f32 %v269_v4, 0.0  ;;  %v202_v16 = vmul.f32 %v909_v6, %v1178_v1  ;;  %v271_v17 = vadd.f32 %v1192_v7, %v200_v9  ;;  %v913_v19 = vunpack.c.h.bf16 %v1116_v61 }
  0x3d   :  { %v272_v18 = vadd.f32 %v1192_v7, %v201_v10  ;;  %v203_v20 = vmul.f32 %v912_v11, %v1178_v1  ;;  %1143 = vst [vmem:[%s1505_s3 + $0xb8] sm:$0xff] %v1048_v13   ;;  %v334_v23 = vmax.f32 %v270_v15, 0.0  ;;  %v916_v25 = vunpack.c.l.bf16 %v1117_v12 }
  0x3e   :  { %v1053_v22 = vpack.c.bf16 %v333_v14, %v332_v8  ;;  %v273_v24 = vadd.f32 %v1192_v7, %v202_v16  ;;  %v335_v26 = vmax.f32 %v271_v17, 0.0  ;;  %v204_v28 = vmul.f32 %v913_v19, %v1178_v1 }
  0x3f   :  { %v336_v27 = vmax.f32 %v272_v18, 0.0  ;;  %v274_v29 = vadd.f32 %v1192_v7, %v203_v20  ;;  %v917_v31 = vunpack.c.h.bf16 %v1117_v12  ;;  %v205_v32 = vmul.f32 %v916_v25, %v1178_v1 }
  0x40   :  { %1144 = vst [vmem:[%s1505_s3 + $0xc0] sm:$0xff] %v1053_v22   ;;  %v337_v30 = vmax.f32 %v273_v24, 0.0  ;;  %v920_v33 = vunpack.c.l.bf16 %v1118_v21  ;;  %v1058_v35 = vpack.c.bf16 %v335_v26, %v334_v23  ;;  %v275_v36 = vadd.f32 %v1192_v7, %v204_v28 }
  0x41   :  { %v338_v37 = vmax.f32 %v274_v29, 0.0  ;;  %v921_v38 = vunpack.c.h.bf16 %v1118_v21  ;;  %v206_v41 = vmul.f32 %v917_v31, %v1178_v1  ;;  %v276_v42 = vadd.f32 %v1192_v7, %v205_v32 }
  0x42   :  { %v1063_v40 = vpack.c.bf16 %v337_v30, %v336_v27  ;;  %v207_v43 = vmul.f32 %v920_v33, %v1178_v1  ;;  %1145 = vst [vmem:[%s1505_s3 + $0xc8] sm:$0xff] %v1058_v35   ;;  %v339_v44 = vmax.f32 %v275_v36, 0.0  ;;  %v924_v46 = vunpack.c.l.bf16 %v1119_v34 }
  0x43   :  { %v208_v45 = vmul.f32 %v921_v38, %v1178_v1  ;;  %v925_v47 = vunpack.c.h.bf16 %v1119_v34  ;;  %v277_v48 = vadd.f32 %v1192_v7, %v206_v41  ;;  %v340_v49 = vmax.f32 %v276_v42, 0.0 }
  0x44   :  { %1146 = vst [vmem:[%s1505_s3 + $0xd0] sm:$0xff] %v1063_v40   ;;  %v278_v50 = vadd.f32 %v1192_v7, %v207_v43  ;;  %v928_v51 = vunpack.c.l.bf16 %v1120_v39  ;;  %v1068_v52 = vpack.c.bf16 %v339_v44, %v338_v37  ;;  %v209_v54 = vmul.f32 %v924_v46, %v1178_v1 }
  0x45   :  { %v279_v53 = vadd.f32 %v1192_v7, %v208_v45  ;;  %v210_v55 = vmul.f32 %v925_v47, %v1178_v1  ;;  %v341_v56 = vmax.f32 %v277_v48, 0.0  ;;  %v929_v58 = vunpack.c.h.bf16 %v1120_v39 }
  0x46   :  { %v342_v57 = vmax.f32 %v278_v50, 0.0  ;;  %v211_v59 = vmul.f32 %v928_v51, %v1178_v1  ;;  %1147 = vst [vmem:[%s1505_s3 + $0xd8] sm:$0xff] %v1068_v52   ;;  %v280_v61 = vadd.f32 %v1192_v7, %v209_v54 }
  0x47   :  { %v343_v60 = vmax.f32 %v279_v53, 0.0  ;;  %v281_v62 = vadd.f32 %v1192_v7, %v210_v55  ;;  %v1073_v63 = vpack.c.bf16 %v341_v56, %v340_v49  ;;  %v212_v0 = vmul.f32 %v929_v58, %v1178_v1 }
  0x48   :  { %v282_v2 = vadd.f32 %v1192_v7, %v211_v59  ;;  %v344_v4 = vmax.f32 %v280_v61, 0.0 }
  0x49   :  { %v1078_v3 = vpack.c.bf16 %v343_v60, %v342_v57  ;;  %v345_v5 = vmax.f32 %v281_v62, 0.0  ;;  %1148 = vst [vmem:[%s1505_s3 + $0xe0] sm:$0xff] %v1073_v63   ;;  %v283_v6 = vadd.f32 %v1192_v7, %v212_v0 }
  0x4a   :  { %v346_v8 = vmax.f32 %v282_v2, 0.0 }
  0x4b   :  { %1149 = vst [vmem:[%s1505_s3 + $0xe8] sm:$0xff] %v1078_v3   ;;  %v1083_v9 = vpack.c.bf16 %v345_v5, %v344_v4  ;;  %v347_v10 = vmax.f32 %v283_v6, 0.0 }
  0x4d   :  { %1150 = vst [vmem:[%s1505_s3 + $0xf0] sm:$0xff] %v1083_v9   ;;  %v1088_v1 = vpack.c.bf16 %v347_v10, %v346_v8 }
  0x4f   :  { %1151 = vst [vmem:[%s1505_s3 + $0xf8] sm:$0xff] %v1088_v1  }

// kernel: generator_forward.13
= control target key start
LH: loop header
LB: loop body
LE: loop exit
PB: predicated region body
PF: predicated region fallthrough
CT: control target
= control target key end

     0   :  { %s2699_s15 = smov 0   ;;  %s2701_s16 = smov 0   ;;  %s2951_s0 = inlined_call_operand.vmem [shape: bf16[4,128,1024], index: 0, kind: input, shape index: {}]   ;;  %s2952_s1 = inlined_call_operand.vmem [shape: bf16[4,1024,128], index: 1, kind: input, shape index: {}]   ;;  %s2953_s2 = inlined_call_operand.vmem [shape: bf16[4,128,128], index: 2, kind: output, shape index: {0}]   ;;  %s2954_s3 = inlined_call_operand.vmem [shape: f32[4,1,128], index: 3, kind: output, shape index: {1}]   ;;  %s2955_s4 = inlined_call_operand.vmem [shape: f32[4,1,128], index: 4, kind: output, shape index: {2}]  }
   0x1   :  { %s2703_s17 = smov 0  }
   0x2 LB: > { %s41_s18 = sadd.s32 1, %s2667_s16  ;;  %p2085_p0 = scmp.ge.s32.totalorder %s2671_s17, 1  ;;  %s2671_s17 = sphi %s2703_s17, %s15_s17   ;;  %s2667_s16 = sphi %s2701_s16, %s2957_s16   ;;  %s2663_s15 = sphi %s2699_s15, %s2956_s15  }
   0x3   : > { %p43_p1 = scmp.ge.s32.totalorder %s41_s18, 4  ;;  %p238_p2 = scmp.lt.s32.totalorder %s2671_s17, 5 }
   0x5   : > { %s2959_s18 = smov (%p43_p1, %s41_s18), 0  ;;  %p239_p3 = pnand %p2085_p0, %p238_p2 }
   0x6   : > { %p306_p4 = scmp.lt.s32.totalorder (!%p239_p3), %s2663_s15, 3 }
   0x7   : > { %242 = sbr.rel (%p239_p3) target bundleno = 411 (0x19b), region = 28 }
   0xe   : > { %s2961_s15 = smov (!%p306_p4, %s2663_s15), 3 }
   0xf   : > { %s2238_s19 = sshll.u32 %s2961_s15, 9  ;;  %s2866_s28 = scalar_lea.vmem %s2954_s3, %s2961_s15 }
  0x10   : > { %s2725_s22 = scalar_lea.vmem %s2952_s1, %s2238_s19  ;;  %s2762_s25 = scalar_lea.vmem %s2951_s0, %s2238_s19 }
  0x11   : > { %v2585_v0 = vld [vmem:[%s2725_s22 + $0x40] sm:$0xff]   ;;  %v2589_v4 = vld [vmem:[%s2725_s22 + $0x48] sm:$0xff]   ;;  %v2593_v8 = vld [vmem:[%s2725_s22 + $0x50] sm:$0xff]   ;;  %s2872_s5 = scalar_lea.vmem %s2955_s4, %s2961_s15  ;;  %s2240_s6 = sshll.u32 %s2961_s15, 6 }
  0x12   : > { %v2586_v1 = vld [vmem:[%s2725_s22 + $0xc0] sm:$0xff]   ;;  %2304 = vmatprep.subr.bf16.mxu0 %v2585_v0  ;;  %v2590_v5 = vld [vmem:[%s2725_s22 + $0xc8] sm:$0xff]   ;;  %v2594_v9 = vld [vmem:[%s2725_s22 + $0xd0] sm:$0xff]   ;;  %s2914_s9 = scalar_lea.vmem %s2953_s2, %s2240_s6 }
  0x13   : > { %v2587_v2 = vld [vmem:[%s2725_s22] sm:$0xff]   ;;  %2368 = vmatprep.subr.bf16.mxu1 %v2586_v1  ;;  %v2591_v6 = vld [vmem:[%s2725_s22 + $0x8] sm:$0xff]   ;;  %v2595_v10 = vld [vmem:[%s2725_s22 + $0x10] sm:$0xff]  }
  0x14   : > { %v2588_v3 = vld [vmem:[%s2725_s22 + $0x80] sm:$0xff]   ;;  %2305 = vmatpush3.bf16.msra.mxu0 %v2587_v2  ;;  %v2592_v7 = vld [vmem:[%s2725_s22 + $0x88] sm:$0xff]   ;;  %v2596_v11 = vld [vmem:[%s2725_s22 + $0x90] sm:$0xff]  }
  0x15   : > { %2369 = vmatpush3.bf16.msra.mxu1 %v2588_v3  ;;  %2306 = vmatprep.subr.bf16.mxu0 %v2589_v4  ;;  %v2597_v12 = vld [vmem:[%s2725_s22 + $0x58] sm:$0xff]   ;;  %v2601_v16 = vld [vmem:[%s2725_s22 + $0x60] sm:$0xff]   ;;  %v2605_v20 = vld [vmem:[%s2725_s22 + $0x68] sm:$0xff]  }
  0x16   : > { %2370 = vmatprep.subr.bf16.mxu1 %v2590_v5  ;;  %v2598_v13 = vld [vmem:[%s2725_s22 + $0xd8] sm:$0xff]   ;;  %v2602_v17 = vld [vmem:[%s2725_s22 + $0xe0] sm:$0xff]   ;;  %v2606_v21 = vld [vmem:[%s2725_s22 + $0xe8] sm:$0xff]  }
  0x17   : > { %v2599_v14 = vld [vmem:[%s2725_s22 + $0x18] sm:$0xff]   ;;  %v2603_v18 = vld [vmem:[%s2725_s22 + $0x20] sm:$0xff]   ;;  %v2607_v22 = vld [vmem:[%s2725_s22 + $0x28] sm:$0xff]  }
  0x18   : > { %2307 = vmatpush3.bf16.msra.mxu0 %v2591_v6  ;;  %v2600_v15 = vld [vmem:[%s2725_s22 + $0x98] sm:$0xff]   ;;  %v2604_v19 = vld [vmem:[%s2725_s22 + $0xa0] sm:$0xff]   ;;  %v2608_v23 = vld [vmem:[%s2725_s22 + $0xa8] sm:$0xff]  }
  0x19   : > { %2371 = vmatpush3.bf16.msra.mxu1 %v2592_v7  ;;  %2308 = vmatprep.subr.bf16.mxu0 %v2593_v8  ;;  %v2609_v24 = vld [vmem:[%s2725_s22 + $0x70] sm:$0xff]   ;;  %v2613_v28 = vld [vmem:[%s2725_s22 + $0x78] sm:$0xff]   ;;  %v395_v32 = vld [vmem:[%s2762_s25] sm:$0xff] }
  0x1a   : > { %2372 = vmatprep.subr.bf16.mxu1 %v2594_v9  ;;  %v2610_v25 = vld [vmem:[%s2725_s22 + $0xf0] sm:$0xff]   ;;  %v2614_v29 = vld [vmem:[%s2725_s22 + $0xf8] sm:$0xff]   ;;  %v399_v33 = vld [vmem:[%s2762_s25 + $0x20] sm:$0xff] }
  0x1b   : > { %v2611_v26 = vld [vmem:[%s2725_s22 + $0x30] sm:$0xff]   ;;  %v2615_v30 = vld [vmem:[%s2725_s22 + $0x38] sm:$0xff]   ;;  %v396_v34 = vld [vmem:[%s2762_s25 + $0x8] sm:$0xff]  ;;  %v2092_v35 = vcombine.low %v395_v32, %v399_v33  ;;  %v2093_v36 = vcombine.high %v395_v32, %v399_v33 }
  0x1c   : > { %2309 = vmatpush3.bf16.msra.mxu0 %v2595_v10  ;;  %v2612_v27 = vld [vmem:[%s2725_s22 + $0xb0] sm:$0xff]   ;;  %v2616_v31 = vld [vmem:[%s2725_s22 + $0xb8] sm:$0xff]   ;;  %v400_v37 = vld [vmem:[%s2762_s25 + $0x28] sm:$0xff] }
  0x1d   : > { %2373 = vmatpush3.bf16.msra.mxu1 %v2596_v11  ;;  %2310 = vmatprep.subr.bf16.mxu0 %v2597_v12  ;;  %v2094_v38 = vcombine.low %v396_v34, %v400_v37  ;;  %v2095_v39 = vcombine.high %v396_v34, %v400_v37  ;;  %v2617_v40 = vld [vmem:[%s2725_s22 + $0x140] sm:$0xff]   ;;  %v404_v47 = vld [vmem:[%s2762_s25 + $0x48] sm:$0xff]  ;;  %v2625_v62 = vld [vmem:[%s2725_s22 + $0x150] sm:$0xff]  }
  0x1e   : > { %2374 = vmatprep.subr.bf16.mxu1 %v2598_v13  ;;  %1323 = vmatprep.mubr.bf16.mxu0 %v2093_v36  ;;  %v2618_v41 = vld [vmem:[%s2725_s22 + $0x100] sm:$0xff]   ;;  %v408_v48 = vld [vmem:[%s2762_s25 + $0x68] sm:$0xff]  ;;  %v2626_v63 = vld [vmem:[%s2725_s22 + $0x110] sm:$0xff]  }
  0x1f   : > { %1420 = vmatprep.mubr.bf16.mxu1 %v2095_v39  ;;  %v2619_v42 = vld [vmem:[%s2725_s22 + $0x1c0] sm:$0xff]   ;;  %v2103_v49 = vcombine.high %v404_v47, %v408_v48  ;;  %v2621_v50 = vld [vmem:[%s2725_s22 + $0x148] sm:$0xff]   ;;  %v2102_v53 = vcombine.low %v404_v47, %v408_v48  ;;  %v2627_v0 = vld [vmem:[%s2725_s22 + $0x1d0] sm:$0xff]  }
  0x20   : > { %2311 = vmatpush3.bf16.msra.mxu0 %v2599_v14  ;;  %v2620_v43 = vld [vmem:[%s2725_s22 + $0x180] sm:$0xff]   ;;  %v2622_v52 = vld [vmem:[%s2725_s22 + $0x108] sm:$0xff]   ;;  %v2628_v1 = vld [vmem:[%s2725_s22 + $0x190] sm:$0xff]  }
  0x21   : > { %2375 = vmatpush3.bf16.msra.mxu1 %v2600_v15  ;;  %2312 = vmatprep.subr.bf16.mxu0 %v2601_v16  ;;  %v403_v44 = vld [vmem:[%s2762_s25 + $0x40] sm:$0xff]  ;;  %v2623_v54 = vld [vmem:[%s2725_s22 + $0x1c8] sm:$0xff]   ;;  %v2629_v10 = vld [vmem:[%s2725_s22 + $0x158] sm:$0xff]  }
  0x22   : > { %2376 = vmatprep.subr.bf16.mxu1 %v2602_v17  ;;  %v407_v45 = vld [vmem:[%s2762_s25 + $0x60] sm:$0xff]  ;;  %v2624_v55 = vld [vmem:[%s2725_s22 + $0x188] sm:$0xff]   ;;  %v2630_v11 = vld [vmem:[%s2725_s22 + $0x118] sm:$0xff]  }
  0x23   : > { %v2101_v46 = vcombine.high %v403_v44, %v407_v45  ;;  %v2100_v51 = vcombine.low %v403_v44, %v407_v45  ;;  %v411_v56 = vld [vmem:[%s2762_s25 + $0x80] sm:$0xff]  ;;  %v412_v58 = vld [vmem:[%s2762_s25 + $0x88] sm:$0xff]  ;;  %v2631_v12 = vld [vmem:[%s2725_s22 + $0x1d8] sm:$0xff]  }
  0x24   : > { %2313 = vmatpush3.bf16.msra.mxu0 %v2603_v18  ;;  %v415_v57 = vld [vmem:[%s2762_s25 + $0xa0] sm:$0xff]  ;;  %v416_v59 = vld [vmem:[%s2762_s25 + $0xa8] sm:$0xff]  ;;  %v2632_v13 = vld [vmem:[%s2725_s22 + $0x198] sm:$0xff]  }
  0x25   : > { %2377 = vmatpush3.bf16.msra.mxu1 %v2604_v19  ;;  %2314 = vmatprep.subr.bf16.mxu0 %v2605_v20  ;;  %v2109_v60 = vcombine.high %v411_v56, %v415_v57  ;;  %v2111_v61 = vcombine.high %v412_v58, %v416_v59  ;;  %v2108_v2 = vcombine.low %v411_v56, %v415_v57  ;;  %v419_v3 = vld [vmem:[%s2762_s25 + $0xc0] sm:$0xff]  ;;  %v420_v5 = vld [vmem:[%s2762_s25 + $0xc8] sm:$0xff]  ;;  %v2642_v39 = vld [vmem:[%s2725_s22 + $0x130] sm:$0xff]  }
  0x26   : > { %2378 = vmatprep.subr.bf16.mxu1 %v2606_v21  ;;  %v423_v4 = vld [vmem:[%s2762_s25 + $0xe0] sm:$0xff]  ;;  %v2110_v6 = vcombine.low %v412_v58, %v416_v59  ;;  %v424_v8 = vld [vmem:[%s2762_s25 + $0xe8] sm:$0xff]  ;;  %v2646_v48 = vld [vmem:[%s2725_s22 + $0x138] sm:$0xff]  }
  0x27   : > { %v2117_v7 = vcombine.high %v419_v3, %v423_v4  ;;  %v2119_v9 = vcombine.high %v420_v5, %v424_v8  ;;  %v427_v14 = vld [vmem:[%s2762_s25 + $0x100] sm:$0xff]  ;;  %v428_v16 = vld [vmem:[%s2762_s25 + $0x108] sm:$0xff]  ;;  %v2116_v19 = vcombine.low %v419_v3, %v423_v4  ;;  %v2118_v21 = vcombine.low %v420_v5, %v424_v8  ;;  %v406_v8 = vld [vmem:[%s2762_s25 + $0x58] sm:$0xff] }
  0x28   : > { %2315 = vmatpush3.bf16.msra.mxu0 %v2607_v22  ;;  %v431_v15 = vld [vmem:[%s2762_s25 + $0x120] sm:$0xff]  ;;  %v432_v17 = vld [vmem:[%s2762_s25 + $0x128] sm:$0xff] }
  0x29   : > { %2379 = vmatpush3.bf16.msra.mxu1 %v2608_v23  ;;  %2316 = vmatprep.subr.bf16.mxu0 %v2609_v24  ;;  %v2633_v18 = vld [vmem:[%s2725_s22 + $0x160] sm:$0xff]   ;;  %v2125_v22 = vcombine.high %v427_v14, %v431_v15  ;;  %v2127_v24 = vcombine.high %v428_v16, %v432_v17  ;;  %v2639_v32 = vld [vmem:[%s2725_s22 + $0x1e8] sm:$0xff]   ;;  %v2124_v34 = vcombine.low %v427_v14, %v431_v15  ;;  %v413_v14 = vld [vmem:[%s2762_s25 + $0x90] sm:$0xff] }
  0x2a   : > { %2380 = vmatprep.subr.bf16.mxu1 %v2610_v25  ;;  %v2634_v20 = vld [vmem:[%s2725_s22 + $0x120] sm:$0xff]   ;;  %v2640_v33 = vld [vmem:[%s2725_s22 + $0x1a8] sm:$0xff]   ;;  %v417_v15 = vld [vmem:[%s2762_s25 + $0xb0] sm:$0xff] }
  0x2b   : > { %v2635_v23 = vld [vmem:[%s2725_s22 + $0x1e0] sm:$0xff]   ;;  %v444_v44 = vld [vmem:[%s2762_s25 + $0x188] sm:$0xff] }
  0x2c   : > { %2317 = vmatpush3.bf16.msra.mxu0 %v2611_v26  ;;  %v2636_v25 = vld [vmem:[%s2725_s22 + $0x1a0] sm:$0xff]   ;;  %v448_v45 = vld [vmem:[%s2762_s25 + $0x1a8] sm:$0xff] }
  0x2d   : > { %2381 = vmatpush3.bf16.msra.mxu1 %v2612_v27  ;;  %2318 = vmatprep.subr.bf16.mxu0 %v2613_v28  ;;  %v435_v26 = vld [vmem:[%s2762_s25 + $0x140] sm:$0xff]  ;;  %v2637_v28 = vld [vmem:[%s2725_s22 + $0x168] sm:$0xff]   ;;  %v2142_v59 = vcombine.low %v444_v44, %v448_v45 }
  0x2e   : > { %2382 = vmatprep.subr.bf16.mxu1 %v2614_v29  ;;  %v439_v27 = vld [vmem:[%s2762_s25 + $0x160] sm:$0xff]  ;;  %v436_v29 = vld [vmem:[%s2762_s25 + $0x148] sm:$0xff] }
  0x2f   : > { %v2133_v36 = vcombine.high %v435_v26, %v439_v27  ;;  %v2132_v47 = vcombine.low %v435_v26, %v439_v27  ;;  %v452_v56 = vld [vmem:[%s2762_s25 + $0x1c8] sm:$0xff]  ;;  %v2112_v26 = vcombine.low %v413_v14, %v417_v15 }
  0x30   : > { %2319 = vmatpush3.bf16.msra.mxu0 %v2615_v30  ;;  %v440_v30 = vld [vmem:[%s2762_s25 + $0x168] sm:$0xff] }
  0x31   : > { %2383 = vmatpush3.bf16.msra.mxu1 %v2616_v31  ;;  %2432 = vmatprep.subr.bf16.mxu0 %v2617_v40  ;;  %v2638_v31 = vld [vmem:[%s2725_s22 + $0x128] sm:$0xff]   ;;  %v2135_v37 = vcombine.high %v436_v29, %v440_v30  ;;  %v2643_v40 = vld [vmem:[%s2725_s22 + $0x1f0] sm:$0xff]  }
  0x32   : > { %2496 = vmatprep.subr.bf16.mxu1 %v2619_v42  ;;  %v447_v42 = vld [vmem:[%s2762_s25 + $0x1a0] sm:$0xff]  ;;  %v456_v57 = vld [vmem:[%s2762_s25 + $0x1e8] sm:$0xff] }
  0x33   : > { %1324 = vmatmul.mubr.bf16.vlgmr.msra.gmra.mrb[0].mxu0 %v2092_v35  ;;  %v2126_v35 = vcombine.low %v428_v16, %v432_v17  ;;  %v2150_v3 = vcombine.low %v452_v56, %v456_v57  ;;  %v414_v16 = vld [vmem:[%s2762_s25 + $0x98] sm:$0xff] }
  0x34   : > { %1421 = vmatmul.mubr.bf16.vlgmr.msra.gmra.mrb[0].mxu1 %v2094_v38  ;;  %2433 = vmatpush3.bf16.msra.mxu0 %v2618_v41  ;;  %v2641_v38 = vld [vmem:[%s2725_s22 + $0x170] sm:$0xff]   ;;  %v443_v41 = vld [vmem:[%s2762_s25 + $0x180] sm:$0xff]  ;;  %v418_v17 = vld [vmem:[%s2762_s25 + $0xb8] sm:$0xff] }
  0x35   : > { %2497 = vmatpush3.bf16.msra.mxu1 %v2620_v43  ;;  %1331 = vmatprep.mubr.bf16.mxu0 %v2101_v46  ;;  %v2644_v43 = vld [vmem:[%s2725_s22 + $0x1b0] sm:$0xff]   ;;  %v2645_v46 = vld [vmem:[%s2725_s22 + $0x178] sm:$0xff]   ;;  %v2140_v58 = vcombine.low %v443_v41, %v447_v42  ;;  %v2114_v27 = vcombine.low %v414_v16, %v418_v17 }
  0x36   : > { %1428 = vmatprep.mubr.bf16.mxu1 %v2103_v49  ;;  %2434 = vmatprep.subr.bf16.mxu0 %v2621_v50  ;;  %v2134_v49 = vcombine.low %v436_v29, %v440_v30  ;;  %v2141_v50 = vcombine.high %v443_v41, %v447_v42  ;;  %v429_v30 = vld [vmem:[%s2762_s25 + $0x110] sm:$0xff]  ;;  %v442_v41 = vld [vmem:[%s2762_s25 + $0x178] sm:$0xff] }
  0x37   : > { %2498 = vmatprep.subr.bf16.mxu1 %v2623_v54  ;;  %v451_v54 = vld [vmem:[%s2762_s25 + $0x1c0] sm:$0xff] }
  0x38   : > { %2435 = vmatpush3.bf16.msra.mxu0 %v2622_v52  ;;  %v2143_v52 = vcombine.high %v444_v44, %v448_v45 }
  0x39   : > { %2499 = vmatpush3.bf16.msra.mxu1 %v2624_v55  ;;  %2436 = vmatprep.subr.bf16.mxu0 %v2625_v62  ;;  %v455_v55 = vld [vmem:[%s2762_s25 + $0x1e0] sm:$0xff]  ;;  %v397_v62 = vld [vmem:[%s2762_s25 + $0x10] sm:$0xff] }
  0x3a   : > { %2500 = vmatprep.subr.bf16.mxu1 %v2627_v0  ;;  %v398_v0 = vld [vmem:[%s2762_s25 + $0x18] sm:$0xff] }
  0x3b   : > { %1332 = vmatmul.mubr.bf16.gmra.mrb[4].mxu0 %v2100_v51  ;;  %v2647_v51 = vld [vmem:[%s2725_s22 + $0x1f8] sm:$0xff]  }
  0x3c   : > { %1429 = vmatmul.mubr.bf16.gmra.mrb[4].mxu1 %v2102_v53  ;;  %1339 = vmatprep.mubr.bf16.mxu0 %v2109_v60  ;;  %v2648_v53 = vld [vmem:[%s2725_s22 + $0x1b8] sm:$0xff]   ;;  %v2149_v60 = vcombine.high %v451_v54, %v455_v55 }
  0x3d   : > { %1436 = vmatprep.mubr.bf16.mxu1 %v2111_v61  ;;  %2437 = vmatpush3.bf16.msra.mxu0 %v2626_v63  ;;  %v2151_v61 = vcombine.high %v452_v56, %v456_v57  ;;  %v401_v63 = vld [vmem:[%s2762_s25 + $0x30] sm:$0xff]  ;;  %v454_v56 = vld [vmem:[%s2762_s25 + $0x1d8] sm:$0xff] }
  0x3e   : > { %2501 = vmatpush3.bf16.msra.mxu1 %v2628_v1  ;;  %2438 = vmatprep.subr.bf16.mxu0 %v2629_v10  ;;  %v402_v1 = vld [vmem:[%s2762_s25 + $0x38] sm:$0xff]  ;;  %v2097_v4 = vcombine.high %v397_v62, %v401_v63  ;;  %v2096_v10 = vcombine.low %v397_v62, %v401_v63 }
  0x3f   : > { %2502 = vmatprep.subr.bf16.mxu1 %v2631_v12  ;;  %v2099_v5 = vcombine.high %v398_v0, %v402_v1  ;;  %v458_v57 = vld [vmem:[%s2762_s25 + $0x1f8] sm:$0xff] }
  0x40   : > { %v2154_v63 = vcombine.low %v454_v56, %v458_v57 }
  0x41   : > { %2439 = vmatpush3.bf16.msra.mxu0 %v2630_v11  ;;  %v2098_v11 = vcombine.low %v398_v0, %v402_v1 }
  0x42   : > { %2503 = vmatpush3.bf16.msra.mxu1 %v2632_v13  ;;  %2440 = vmatprep.subr.bf16.mxu0 %v2633_v18 }
  0x43   : > { %1340 = vmatmul.mubr.bf16.gmra.mrb[8].mxu0 %v2108_v2  ;;  %2504 = vmatprep.subr.bf16.mxu1 %v2635_v23  ;;  %v2148_v2 = vcombine.low %v451_v54, %v455_v55  ;;  %v425_v23 = vld [vmem:[%s2762_s25 + $0xf0] sm:$0xff] }
  0x44   : > { %1437 = vmatmul.mubr.bf16.gmra.mrb[8].mxu1 %v2110_v6  ;;  %1347 = vmatprep.mubr.bf16.mxu0 %v2117_v7  ;;  %v405_v6 = vld [vmem:[%s2762_s25 + $0x50] sm:$0xff] }
  0x45   : > { %1444 = vmatprep.mubr.bf16.mxu1 %v2119_v9  ;;  %2441 = vmatpush3.bf16.msra.mxu0 %v2634_v20  ;;  %v409_v7 = vld [vmem:[%s2762_s25 + $0x70] sm:$0xff]  ;;  %v410_v9 = vld [vmem:[%s2762_s25 + $0x78] sm:$0xff]  ;;  %v2113_v20 = vcombine.high %v413_v14, %v417_v15 }
  0x46   : > { %2505 = vmatpush3.bf16.msra.mxu1 %v2636_v25  ;;  %2442 = vmatprep.subr.bf16.mxu0 %v2637_v28  ;;  %v2105_v12 = vcombine.high %v405_v6, %v409_v7  ;;  %v2107_v13 = vcombine.high %v406_v8, %v410_v9  ;;  %v2104_v18 = vcombine.low %v405_v6, %v409_v7  ;;  %v426_v25 = vld [vmem:[%s2762_s25 + $0xf8] sm:$0xff]  ;;  %v453_v54 = vld [vmem:[%s2762_s25 + $0x1d0] sm:$0xff] }
  0x47   : > { %2506 = vmatprep.subr.bf16.mxu1 %v2639_v32  ;;  %v430_v32 = vld [vmem:[%s2762_s25 + $0x118] sm:$0xff]  ;;  %v457_v55 = vld [vmem:[%s2762_s25 + $0x1f0] sm:$0xff] }
  0x48   : > { %v2152_v62 = vcombine.low %v453_v54, %v457_v55 }
  0x49   : > { %2443 = vmatpush3.bf16.msra.mxu0 %v2638_v31  ;;  %v433_v31 = vld [vmem:[%s2762_s25 + $0x130] sm:$0xff] }
  0x4a   : > { %2507 = vmatpush3.bf16.msra.mxu1 %v2640_v33  ;;  %2444 = vmatprep.subr.bf16.mxu0 %v2641_v38  ;;  %v434_v33 = vld [vmem:[%s2762_s25 + $0x138] sm:$0xff]  ;;  %v437_v38 = vld [vmem:[%s2762_s25 + $0x150] sm:$0xff]  ;;  %v2128_v42 = vcombine.low %v429_v30, %v433_v31 }
  0x4b   : > { %1348 = vmatmul.mubr.bf16.gmra.mrb[12].mxu0 %v2116_v19  ;;  %2508 = vmatprep.subr.bf16.mxu1 %v2643_v40  ;;  %v2106_v19 = vcombine.low %v406_v8, %v410_v9  ;;  %v438_v40 = vld [vmem:[%s2762_s25 + $0x158] sm:$0xff]  ;;  %v2673_v9 = vmov 0.0  }
  0x4c   : > { %1445 = vmatmul.mubr.bf16.gmra.mrb[12].mxu1 %v2118_v21  ;;  %1355 = vmatprep.mubr.bf16.mxu0 %v2125_v22  ;;  %v2115_v21 = vcombine.high %v414_v16, %v418_v17  ;;  %v421_v22 = vld [vmem:[%s2762_s25 + $0xd0] sm:$0xff]  ;;  %v2139_v45 = vcombine.high %v438_v40, %v442_v41  ;;  %1716 = vst [vmem:[%s2866_s28] sm:$0x1] %v2673_v9  ;;  %1717 = vst [vmem:[%s2872_s5] sm:$0x1] %v2673_v9 }
  0x4d   : > { %1452 = vmatprep.mubr.bf16.mxu1 %v2127_v24  ;;  %2445 = vmatpush3.bf16.msra.mxu0 %v2642_v39  ;;  %v422_v24 = vld [vmem:[%s2762_s25 + $0xd8] sm:$0xff]  ;;  %v2121_v28 = vcombine.high %v421_v22, %v425_v23  ;;  %v441_v39 = vld [vmem:[%s2762_s25 + $0x170] sm:$0xff] }
  0x4e   : > { %2509 = vmatpush3.bf16.msra.mxu1 %v2644_v43  ;;  %2446 = vmatprep.subr.bf16.mxu0 %v2645_v46  ;;  %v2123_v29 = vcombine.high %v422_v24, %v426_v25  ;;  %v2130_v43 = vcombine.low %v430_v32, %v434_v33  ;;  %v2137_v44 = vcombine.high %v437_v38, %v441_v39  ;;  %v445_v46 = vld [vmem:[%s2762_s25 + $0x190] sm:$0xff] }
  0x4f   : > { %2510 = vmatprep.subr.bf16.mxu1 %v2647_v51  ;;  %v2138_v51 = vcombine.low %v438_v40, %v442_v41 }
  0x51   : > { %2447 = vmatpush3.bf16.msra.mxu0 %v2646_v48  ;;  %v446_v48 = vld [vmem:[%s2762_s25 + $0x198] sm:$0xff] }
  0x52   : > { %2511 = vmatpush3.bf16.msra.mxu1 %v2648_v53 }
  0x53   : > { %1356 = vmatmul.mubr.bf16.gmra.mrb[16].mxu0 %v2124_v34  ;;  %v2120_v34 = vcombine.low %v421_v22, %v425_v23 }
  0x54   : > { %1453 = vmatmul.mubr.bf16.gmra.mrb[16].mxu1 %v2126_v35  ;;  %1363 = vmatprep.mubr.bf16.mxu0 %v2133_v36  ;;  %v2122_v35 = vcombine.low %v422_v24, %v426_v25  ;;  %v2129_v36 = vcombine.high %v429_v30, %v433_v31 }
  0x55   : > { %1460 = vmatprep.mubr.bf16.mxu1 %v2135_v37  ;;  %v2131_v37 = vcombine.high %v430_v32, %v434_v33 }
  0x5b   : > { %1364 = vmatmul.mubr.bf16.gmra.mrb[20].mxu0 %v2132_v47  ;;  %v449_v47 = vld [vmem:[%s2762_s25 + $0x1b0] sm:$0xff] }
  0x5c   : > { %1461 = vmatmul.mubr.bf16.gmra.mrb[20].mxu1 %v2134_v49  ;;  %1371 = vmatprep.mubr.bf16.mxu0 %v2141_v50  ;;  %v450_v49 = vld [vmem:[%s2762_s25 + $0x1b8] sm:$0xff]  ;;  %v2136_v50 = vcombine.low %v437_v38, %v441_v39 }
  0x5d   : > { %1468 = vmatprep.mubr.bf16.mxu1 %v2143_v52  ;;  %v2145_v52 = vcombine.high %v445_v46, %v449_v47  ;;  %v2147_v53 = vcombine.high %v446_v48, %v450_v49 }
  0x63   : > { %1372 = vmatmul.mubr.bf16.gmra.mrb[24].mxu0 %v2140_v58  ;;  %v2144_v58 = vcombine.low %v445_v46, %v449_v47 }
  0x64   : > { %1469 = vmatmul.mubr.bf16.gmra.mrb[24].mxu1 %v2142_v59  ;;  %1379 = vmatprep.mubr.bf16.mxu0 %v2149_v60  ;;  %v2146_v59 = vcombine.low %v446_v48, %v450_v49  ;;  %v2153_v60 = vcombine.high %v453_v54, %v457_v55 }
  0x65   : > { %1476 = vmatprep.mubr.bf16.mxu1 %v2151_v61  ;;  %v2155_v61 = vcombine.high %v454_v56, %v458_v57 }
  0x6b   : > { %1380 = vmatmul.mubr.bf16.gmra.mrb[28].mxu0 %v2148_v2 }
  0x6c   : > { %1477 = vmatmul.mubr.bf16.gmra.mrb[28].mxu1 %v2150_v3  ;;  %1517 = vmatprep.mubr.bf16.mxu0 %v2097_v4 }
  0x6d   : > { %1614 = vmatprep.mubr.bf16.mxu1 %v2099_v5 }
  0x73   : > { %1518 = vmatmul.mubr.bf16.vlgmr.msra.gmra.mrb[32].mxu0 %v2096_v10 }
  0x74   : > { %1615 = vmatmul.mubr.bf16.vlgmr.msra.gmra.mrb[32].mxu1 %v2098_v11  ;;  %1525 = vmatprep.mubr.bf16.mxu0 %v2105_v12 }
  0x75   : > { %1622 = vmatprep.mubr.bf16.mxu1 %v2107_v13 }
  0x7b   : > { %1526 = vmatmul.mubr.bf16.gmra.mrb[36].mxu0 %v2104_v18 }
  0x7c   : > { %1623 = vmatmul.mubr.bf16.gmra.mrb[36].mxu1 %v2106_v19  ;;  %1533 = vmatprep.mubr.bf16.mxu0 %v2113_v20 }
  0x7d   : > { %1630 = vmatprep.mubr.bf16.mxu1 %v2115_v21 }
  0x83   : > { %1534 = vmatmul.mubr.bf16.gmra.mrb[40].mxu0 %v2112_v26 }
  0x84   : > { %1631 = vmatmul.mubr.bf16.gmra.mrb[40].mxu1 %v2114_v27  ;;  %1541 = vmatprep.mubr.bf16.mxu0 %v2121_v28 }
  0x85   : > { %1638 = vmatprep.mubr.bf16.mxu1 %v2123_v29 }
  0x8b   : > { %1542 = vmatmul.mubr.bf16.gmra.mrb[44].mxu0 %v2120_v34 }
  0x8c   : > { %1639 = vmatmul.mubr.bf16.gmra.mrb[44].mxu1 %v2122_v35  ;;  %1549 = vmatprep.mubr.bf16.mxu0 %v2129_v36 }
  0x8d   : > { %1646 = vmatprep.mubr.bf16.mxu1 %v2131_v37 }
  0x93   : > { %1550 = vmatmul.mubr.bf16.gmra.mrb[48].mxu0 %v2128_v42 }
  0x94   : > { %1647 = vmatmul.mubr.bf16.gmra.mrb[48].mxu1 %v2130_v43  ;;  %1557 = vmatprep.mubr.bf16.mxu0 %v2137_v44 }
  0x95   : > { %1654 = vmatprep.mubr.bf16.mxu1 %v2139_v45 }
  0x9b   : > { %1558 = vmatmul.mubr.bf16.gmra.mrb[52].mxu0 %v2136_v50 }
  0x9c   : > { %1655 = vmatmul.mubr.bf16.gmra.mrb[52].mxu1 %v2138_v51  ;;  %1565 = vmatprep.mubr.bf16.mxu0 %v2145_v52 }
  0x9d   : > { %1662 = vmatprep.mubr.bf16.mxu1 %v2147_v53 }
  0xa3   : > { %1566 = vmatmul.mubr.bf16.gmra.mrb[56].mxu0 %v2144_v58 }
  0xa4   : > { %1663 = vmatmul.mubr.bf16.gmra.mrb[56].mxu1 %v2146_v59  ;;  %1573 = vmatprep.mubr.bf16.mxu0 %v2153_v60 }
  0xa5   : > { %1670 = vmatprep.mubr.bf16.mxu1 %v2155_v61 }
  0xab   : > { %1574 = vmatmul.mubr.bf16.gmra.mrb[60].mxu0 %v2152_v62 }
  0xac   : > { %1671 = vmatmul.mubr.bf16.gmra.mrb[60].mxu1 %v2154_v63 }
 0x106   : > { %v2320_v0 = vpop.f32.mrb[0].mxu0 }
 0x107   : > { %v2384_v1 = vpop.f32.mrb[0].mxu1  ;;  %v2321_v2 = vpop.f32.mrb[1].mxu0 }
 0x108   : > { %v2322_v3 = vadd.f32 %v2321_v2, %v2320_v0  ;;  %v2385_v4 = vpop.f32.mrb[1].mxu1  ;;  %v2323_v5 = vpop.f32.mrb[2].mxu0 }
 0x109   : > { %v2386_v6 = vadd.f32 %v2385_v4, %v2384_v1  ;;  %v2387_v7 = vpop.f32.mrb[2].mxu1  ;;  %v2324_v8 = vpop.f32.mrb[3].mxu0 }
 0x10a   : > { %v2325_v10 = vadd.f32 %v2324_v8, %v2323_v5  ;;  %v2388_v11 = vpop.f32.mrb[3].mxu1 }
 0x10b   : > { %v2876_v12 = vadd.f32 %v2386_v6, %v2322_v3  ;;  %v2389_v13 = vadd.f32 %v2388_v11, %v2387_v7 }
 0x10d   : > { %v2878_v14 = vadd.f32 %v2389_v13, %v2325_v10 }
 0x10e   : > { %v2326_v15 = vpop.f32.mrb[4].mxu0 }
 0x10f   : > { %v2390_v16 = vpop.f32.mrb[4].mxu1  ;;  %v2327_v17 = vpop.f32.mrb[5].mxu0 }
 0x110   : > { %v2328_v18 = vadd.f32 %v2327_v17, %v2326_v15  ;;  %v2391_v19 = vpop.f32.mrb[5].mxu1  ;;  %v2329_v20 = vpop.f32.mrb[6].mxu0 }
 0x111   : > { %v2392_v21 = vadd.f32 %v2391_v19, %v2390_v16  ;;  %v2393_v22 = vpop.f32.mrb[6].mxu1  ;;  %v2330_v23 = vpop.f32.mrb[7].mxu0 }
 0x112   : > { %v2331_v24 = vadd.f32 %v2330_v23, %v2329_v20  ;;  %v2394_v25 = vpop.f32.mrb[7].mxu1 }
 0x113   : > { %v2880_v26 = vadd.f32 %v2392_v21, %v2328_v18  ;;  %v2395_v27 = vadd.f32 %v2394_v25, %v2393_v22 }
 0x115   : > { %v2882_v28 = vadd.f32 %v2395_v27, %v2331_v24 }
 0x116   : > { %v2332_v29 = vpop.f32.mrb[8].mxu0 }
 0x117   : > { %v2396_v30 = vpop.f32.mrb[8].mxu1  ;;  %v2333_v31 = vpop.f32.mrb[9].mxu0 }
 0x118   : > { %v2334_v32 = vadd.f32 %v2333_v31, %v2332_v29  ;;  %v2397_v33 = vpop.f32.mrb[9].mxu1  ;;  %v2335_v34 = vpop.f32.mrb[10].mxu0 }
 0x119   : > { %v2398_v35 = vadd.f32 %v2397_v33, %v2396_v30  ;;  %v2399_v36 = vpop.f32.mrb[10].mxu1  ;;  %v2336_v37 = vpop.f32.mrb[11].mxu0 }
 0x11a   : > { %v2337_v38 = vadd.f32 %v2336_v37, %v2335_v34  ;;  %v2400_v39 = vpop.f32.mrb[11].mxu1 }
 0x11b   : > { %v2884_v40 = vadd.f32 %v2398_v35, %v2334_v32  ;;  %v2401_v41 = vadd.f32 %v2400_v39, %v2399_v36 }
 0x11d   : > { %v2886_v42 = vadd.f32 %v2401_v41, %v2337_v38 }
 0x11e   : > { %v2338_v43 = vpop.f32.mrb[12].mxu0 }
 0x11f   : > { %v2402_v44 = vpop.f32.mrb[12].mxu1  ;;  %v2339_v45 = vpop.f32.mrb[13].mxu0 }
 0x120   : > { %v2340_v46 = vadd.f32 %v2339_v45, %v2338_v43  ;;  %v2403_v47 = vpop.f32.mrb[13].mxu1  ;;  %v2341_v48 = vpop.f32.mrb[14].mxu0 }
 0x121   : > { %v2404_v49 = vadd.f32 %v2403_v47, %v2402_v44  ;;  %v2405_v50 = vpop.f32.mrb[14].mxu1  ;;  %v2342_v51 = vpop.f32.mrb[15].mxu0 }
 0x122   : > { %v2343_v52 = vadd.f32 %v2342_v51, %v2341_v48  ;;  %v2406_v53 = vpop.f32.mrb[15].mxu1 }
 0x123   : > { %v2888_v54 = vadd.f32 %v2404_v49, %v2340_v46  ;;  %v2407_v55 = vadd.f32 %v2406_v53, %v2405_v50 }
 0x125   : > { %v2890_v56 = vadd.f32 %v2407_v55, %v2343_v52 }
 0x126   : > { %v2344_v57 = vpop.f32.mrb[16].mxu0 }
 0x127   : > { %v2408_v58 = vpop.f32.mrb[16].mxu1  ;;  %v2345_v59 = vpop.f32.mrb[17].mxu0 }
 0x128   : > { %v2346_v60 = vadd.f32 %v2345_v59, %v2344_v57  ;;  %v2409_v61 = vpop.f32.mrb[17].mxu1  ;;  %v2347_v62 = vpop.f32.mrb[18].mxu0 }
 0x129   : > { %v2410_v63 = vadd.f32 %v2409_v61, %v2408_v58  ;;  %v2411_v0 = vpop.f32.mrb[18].mxu1  ;;  %v2348_v1 = vpop.f32.mrb[19].mxu0 }
 0x12a   : > { %v2349_v2 = vadd.f32 %v2348_v1, %v2347_v62  ;;  %v2412_v3 = vpop.f32.mrb[19].mxu1 }
 0x12b   : > { %v2892_v4 = vadd.f32 %v2410_v63, %v2346_v60  ;;  %v2413_v5 = vadd.f32 %v2412_v3, %v2411_v0 }
 0x12d   : > { %v2894_v6 = vadd.f32 %v2413_v5, %v2349_v2 }
 0x12e   : > { %v2350_v7 = vpop.f32.mrb[20].mxu0 }
 0x12f   : > { %v2414_v8 = vpop.f32.mrb[20].mxu1  ;;  %v2351_v9 = vpop.f32.mrb[21].mxu0 }
 0x130   : > { %v2352_v10 = vadd.f32 %v2351_v9, %v2350_v7  ;;  %v2415_v11 = vpop.f32.mrb[21].mxu1  ;;  %v2353_v13 = vpop.f32.mrb[22].mxu0 }
 0x131   : > { %v2416_v15 = vadd.f32 %v2415_v11, %v2414_v8  ;;  %v2417_v16 = vpop.f32.mrb[22].mxu1  ;;  %v2354_v17 = vpop.f32.mrb[23].mxu0 }
 0x132   : > { %v2355_v18 = vadd.f32 %v2354_v17, %v2353_v13  ;;  %v2418_v19 = vpop.f32.mrb[23].mxu1 }
 0x133   : > { %v2896_v20 = vadd.f32 %v2416_v15, %v2352_v10  ;;  %v2419_v21 = vadd.f32 %v2418_v19, %v2417_v16 }
 0x135   : > { %v2898_v22 = vadd.f32 %v2419_v21, %v2355_v18 }
 0x136   : > { %v2356_v23 = vpop.f32.mrb[24].mxu0 }
 0x137   : > { %v2420_v24 = vpop.f32.mrb[24].mxu1  ;;  %v2357_v25 = vpop.f32.mrb[25].mxu0 }
 0x138   : > { %v2358_v27 = vadd.f32 %v2357_v25, %v2356_v23  ;;  %v2421_v29 = vpop.f32.mrb[25].mxu1  ;;  %v2359_v30 = vpop.f32.mrb[26].mxu0 }
 0x139   : > { %v2422_v31 = vadd.f32 %v2421_v29, %v2420_v24  ;;  %v2423_v32 = vpop.f32.mrb[26].mxu1  ;;  %v2360_v33 = vpop.f32.mrb[27].mxu0 }
 0x13a   : > { %v2361_v34 = vadd.f32 %v2360_v33, %v2359_v30  ;;  %v2424_v35 = vpop.f32.mrb[27].mxu1 }
 0x13b   : > { %v2900_v36 = vadd.f32 %v2422_v31, %v2358_v27  ;;  %v2425_v37 = vadd.f32 %v2424_v35, %v2423_v32 }
 0x13d   : > { %v2902_v38 = vadd.f32 %v2425_v37, %v2361_v34 }
 0x13e   : > { %v2362_v39 = vpop.f32.mrb[28].mxu0 }
 0x13f   : > { %v2426_v41 = vpop.f32.mrb[28].mxu1  ;;  %v2363_v43 = vpop.f32.mrb[29].mxu0 }
 0x140   : > { %v2364_v44 = vadd.f32 %v2363_v43, %v2362_v39  ;;  %v2427_v45 = vpop.f32.mrb[29].mxu1  ;;  %v2365_v46 = vpop.f32.mrb[30].mxu0 }
 0x141   : > { %v2428_v47 = vadd.f32 %v2427_v45, %v2426_v41  ;;  %v2429_v48 = vpop.f32.mrb[30].mxu1  ;;  %v2366_v49 = vpop.f32.mrb[31].mxu0 }
 0x142   : > { %v2367_v50 = vadd.f32 %v2366_v49, %v2365_v46  ;;  %v2430_v51 = vpop.f32.mrb[31].mxu1 }
 0x143   : > { %v2904_v52 = vadd.f32 %v2428_v47, %v2364_v44  ;;  %v2431_v53 = vadd.f32 %v2430_v51, %v2429_v48 }
 0x145   : > { %v2906_v55 = vadd.f32 %v2431_v53, %v2367_v50 }
 0x146   : > { %v2448_v57 = vpop.f32.mrb[32].mxu0 }
 0x147   : > { %v2512_v58 = vpop.f32.mrb[32].mxu1  ;;  %v2449_v59 = vpop.f32.mrb[33].mxu0 }
 0x148   : > { %v2450_v60 = vadd.f32 %v2449_v59, %v2448_v57  ;;  %v2513_v61 = vpop.f32.mrb[33].mxu1  ;;  %v2451_v62 = vpop.f32.mrb[34].mxu0 }
 0x149   : > { %v2514_v63 = vadd.f32 %v2513_v61, %v2512_v58  ;;  %v2515_v0 = vpop.f32.mrb[34].mxu1  ;;  %v2452_v1 = vpop.f32.mrb[35].mxu0 }
 0x14a   : > { %v1520_v2 = vadd.f32 %v2450_v60, %v2876_v12  ;;  %v2453_v3 = vadd.f32 %v2452_v1, %v2451_v62  ;;  %v2516_v5 = vpop.f32.mrb[35].mxu1 }
 0x14b   : > { %v2517_v7 = vadd.f32 %v2516_v5, %v2515_v0 }
 0x14c   : > { %v1617_v8 = vadd.f32 %v2514_v63, %v1520_v2  ;;  %v1523_v9 = vadd.f32 %v2453_v3, %v2878_v14 }
 0x14e   : > { %v1620_v10 = vadd.f32 %v2517_v7, %v1523_v9  ;;  %v2454_v11 = vpop.f32.mrb[36].mxu0  ;;  %v1842_v13 = vmul.f32 %v1617_v8, %v1617_v8 }
 0x14f   : > { %v2518_v15 = vpop.f32.mrb[36].mxu1  ;;  %v2455_v16 = vpop.f32.mrb[37].mxu0 }
 0x150   : > { %v2260_v17 = vpack.c.bf16 %v1620_v10, %v1617_v8  ;;  %v1818_v12 = vadd.f32 %v1620_v10, %v1617_v8  ;;  %v1843_v18 = vmul.f32 %v1620_v10, %v1620_v10  ;;  %v2456_v19 = vadd.f32 %v2455_v16, %v2454_v11  ;;  %v2519_v21 = vpop.f32.mrb[37].mxu1  ;;  %v2457_v23 = vpop.f32.mrb[38].mxu0 }
 0x151   : > { %v2520_v24 = vadd.f32 %v2519_v21, %v2518_v15  ;;  %v2521_v14 = vpop.f32.mrb[38].mxu1  ;;  %v2458_v25 = vpop.f32.mrb[39].mxu0 }
 0x152   : > { %2261 = vst [vmem:[%s2914_s9] sm:$0xff] %v2260_v17   ;;  %v1858_v27 = vadd.f32 %v1843_v18, %v1842_v13  ;;  %v1528_v29 = vadd.f32 %v2456_v19, %v2880_v26  ;;  %v2459_v30 = vadd.f32 %v2458_v25, %v2457_v23  ;;  %v2522_v31 = vpop.f32.mrb[39].mxu1 }
 0x153   : > { %v2523_v32 = vadd.f32 %v2522_v31, %v2521_v14 }
 0x154   : > { %v1625_v33 = vadd.f32 %v2520_v24, %v1528_v29  ;;  %v1531_v34 = vadd.f32 %v2459_v30, %v2882_v28 }
 0x156   : > { %v1819_v35 = vadd.f32 %v1818_v12, %v1625_v33  ;;  %v1844_v37 = vmul.f32 %v1625_v33, %v1625_v33  ;;  %v1628_v39 = vadd.f32 %v2523_v32, %v1531_v34  ;;  %v2460_v41 = vpop.f32.mrb[40].mxu0 }
 0x157   : > { %v2524_v43 = vpop.f32.mrb[40].mxu1  ;;  %v2461_v44 = vpop.f32.mrb[41].mxu0 }
 0x158   : > { %v1859_v45 = vadd.f32 %v1858_v27, %v1844_v37  ;;  %v2265_v46 = vpack.c.bf16 %v1628_v39, %v1625_v33  ;;  %v1820_v47 = vadd.f32 %v1819_v35, %v1628_v39  ;;  %v1845_v48 = vmul.f32 %v1628_v39, %v1628_v39  ;;  %v2525_v49 = vpop.f32.mrb[41].mxu1  ;;  %v2463_v50 = vpop.f32.mrb[42].mxu0 }
 0x159   : > { %v2462_v26 = vadd.f32 %v2461_v44, %v2460_v41  ;;  %v2526_v51 = vadd.f32 %v2525_v49, %v2524_v43  ;;  %v2527_v53 = vpop.f32.mrb[42].mxu1  ;;  %v2464_v57 = vpop.f32.mrb[43].mxu0 }
 0x15a   : > { %2297 = vst [vmem:[%s2914_s9 + $0x8] sm:$0xff] %v2265_v46   ;;  %v1860_v58 = vadd.f32 %v1859_v45, %v1845_v48  ;;  %v2465_v28 = vadd.f32 %v2464_v57, %v2463_v50  ;;  %v2528_v59 = vpop.f32.mrb[43].mxu1 }
 0x15b   : > { %v1536_v60 = vadd.f32 %v2462_v26, %v2884_v40  ;;  %v2529_v61 = vadd.f32 %v2528_v59, %v2527_v53 }
 0x15c   : > { %v1539_v62 = vadd.f32 %v2465_v28, %v2886_v42 }
 0x15d   : > { %v1633_v63 = vadd.f32 %v2526_v51, %v1536_v60 }
 0x15e   : > { %v1636_v0 = vadd.f32 %v2529_v61, %v1539_v62  ;;  %v2466_v1 = vpop.f32.mrb[44].mxu0 }
 0x15f   : > { %v1821_v2 = vadd.f32 %v1820_v47, %v1633_v63  ;;  %v1846_v3 = vmul.f32 %v1633_v63, %v1633_v63  ;;  %v2530_v5 = vpop.f32.mrb[44].mxu1  ;;  %v2467_v7 = vpop.f32.mrb[45].mxu0 }
 0x160   : > { %v2270_v8 = vpack.c.bf16 %v1636_v0, %v1633_v63  ;;  %v1847_v9 = vmul.f32 %v1636_v0, %v1636_v0  ;;  %v2468_v10 = vadd.f32 %v2467_v7, %v2466_v1  ;;  %v2531_v11 = vpop.f32.mrb[45].mxu1  ;;  %v2469_v13 = vpop.f32.mrb[46].mxu0 }
 0x161   : > { %v1861_v15 = vadd.f32 %v1860_v58, %v1846_v3  ;;  %v1822_v16 = vadd.f32 %v1821_v2, %v1636_v0  ;;  %v2532_v17 = vadd.f32 %v2531_v11, %v2530_v5  ;;  %v2533_v40 = vpop.f32.mrb[46].mxu1  ;;  %v2470_v12 = vpop.f32.mrb[47].mxu0 }
 0x162   : > { %2298 = vst [vmem:[%s2914_s9 + $0x10] sm:$0xff] %v2270_v8   ;;  %v1544_v42 = vadd.f32 %v2468_v10, %v2888_v54  ;;  %v2471_v18 = vadd.f32 %v2470_v12, %v2469_v13  ;;  %v2534_v19 = vpop.f32.mrb[47].mxu1 }
 0x163   : > { %v1862_v21 = vadd.f32 %v1861_v15, %v1847_v9  ;;  %v2535_v23 = vadd.f32 %v2534_v19, %v2533_v40 }
 0x164   : > { %v1641_v24 = vadd.f32 %v2532_v17, %v1544_v42  ;;  %v1547_v14 = vadd.f32 %v2471_v18, %v2890_v56 }
 0x166   : > { %v1823_v25 = vadd.f32 %v1822_v16, %v1641_v24  ;;  %v1848_v27 = vmul.f32 %v1641_v24, %v1641_v24  ;;  %v1644_v29 = vadd.f32 %v2535_v23, %v1547_v14  ;;  %v2472_v30 = vpop.f32.mrb[48].mxu0 }
 0x167   : > { %v2536_v31 = vpop.f32.mrb[48].mxu1  ;;  %v2473_v32 = vpop.f32.mrb[49].mxu0 }
 0x168   : > { %v1863_v33 = vadd.f32 %v1862_v21, %v1848_v27  ;;  %v2275_v34 = vpack.c.bf16 %v1644_v29, %v1641_v24  ;;  %v1824_v35 = vadd.f32 %v1823_v25, %v1644_v29  ;;  %v1849_v37 = vmul.f32 %v1644_v29, %v1644_v29  ;;  %v2537_v39 = vpop.f32.mrb[49].mxu1  ;;  %v2475_v54 = vpop.f32.mrb[50].mxu0 }
 0x169   : > { %v2474_v41 = vadd.f32 %v2473_v32, %v2472_v30  ;;  %v2538_v43 = vadd.f32 %v2537_v39, %v2536_v31  ;;  %v2539_v44 = vpop.f32.mrb[50].mxu1  ;;  %v2476_v45 = vpop.f32.mrb[51].mxu0 }
 0x16a   : > { %2299 = vst [vmem:[%s2914_s9 + $0x18] sm:$0xff] %v2275_v34   ;;  %v1864_v46 = vadd.f32 %v1863_v33, %v1849_v37  ;;  %v2477_v56 = vadd.f32 %v2476_v45, %v2475_v54  ;;  %v2540_v47 = vpop.f32.mrb[51].mxu1 }
 0x16b   : > { %v1552_v48 = vadd.f32 %v2474_v41, %v2892_v4  ;;  %v2541_v49 = vadd.f32 %v2540_v47, %v2539_v44 }
 0x16c   : > { %v1555_v50 = vadd.f32 %v2477_v56, %v2894_v6 }
 0x16d   : > { %v1649_v26 = vadd.f32 %v2538_v43, %v1552_v48 }
 0x16e   : > { %v1652_v51 = vadd.f32 %v2541_v49, %v1555_v50  ;;  %v2478_v53 = vpop.f32.mrb[52].mxu0 }
 0x16f   : > { %v1825_v57 = vadd.f32 %v1824_v35, %v1649_v26  ;;  %v1850_v58 = vmul.f32 %v1649_v26, %v1649_v26  ;;  %v2542_v28 = vpop.f32.mrb[52].mxu1  ;;  %v2479_v59 = vpop.f32.mrb[53].mxu0 }
 0x170   : > { %v2280_v60 = vpack.c.bf16 %v1652_v51, %v1649_v26  ;;  %v1851_v61 = vmul.f32 %v1652_v51, %v1652_v51  ;;  %v2480_v62 = vadd.f32 %v2479_v59, %v2478_v53  ;;  %v2543_v63 = vpop.f32.mrb[53].mxu1  ;;  %v2481_v0 = vpop.f32.mrb[54].mxu0 }
 0x171   : > { %v1865_v1 = vadd.f32 %v1864_v46, %v1850_v58  ;;  %v1826_v2 = vadd.f32 %v1825_v57, %v1652_v51  ;;  %v2544_v3 = vadd.f32 %v2543_v63, %v2542_v28  ;;  %v2545_v4 = vpop.f32.mrb[54].mxu1  ;;  %v2482_v5 = vpop.f32.mrb[55].mxu0 }
 0x172   : > { %2300 = vst [vmem:[%s2914_s9 + $0x20] sm:$0xff] %v2280_v60   ;;  %v1560_v6 = vadd.f32 %v2480_v62, %v2896_v20  ;;  %v2483_v7 = vadd.f32 %v2482_v5, %v2481_v0  ;;  %v2546_v8 = vpop.f32.mrb[55].mxu1 }
 0x173   : > { %v1866_v9 = vadd.f32 %v1865_v1, %v1851_v61  ;;  %v2547_v10 = vadd.f32 %v2546_v8, %v2545_v4 }
 0x174   : > { %v1657_v11 = vadd.f32 %v2544_v3, %v1560_v6  ;;  %v1563_v13 = vadd.f32 %v2483_v7, %v2898_v22 }
 0x176   : > { %v1827_v15 = vadd.f32 %v1826_v2, %v1657_v11  ;;  %v1852_v16 = vmul.f32 %v1657_v11, %v1657_v11  ;;  %v1660_v17 = vadd.f32 %v2547_v10, %v1563_v13  ;;  %v2484_v40 = vpop.f32.mrb[56].mxu0  ;;  %v1817_v13 = vld [vmem:[%s2866_s28] sm:$0x1] }
 0x177   : > { %v2548_v12 = vpop.f32.mrb[56].mxu1  ;;  %v2485_v42 = vpop.f32.mrb[57].mxu0 }
 0x178   : > { %v1867_v18 = vadd.f32 %v1866_v9, %v1852_v16  ;;  %v2285_v19 = vpack.c.bf16 %v1660_v17, %v1657_v11  ;;  %v1828_v21 = vadd.f32 %v1827_v15, %v1660_v17  ;;  %v1853_v23 = vmul.f32 %v1660_v17, %v1660_v17  ;;  %v2549_v24 = vpop.f32.mrb[57].mxu1  ;;  %v2487_v20 = vpop.f32.mrb[58].mxu0  ;;  %v1841_v17 = vld [vmem:[%s2872_s5] sm:$0x1] }
 0x179   : > { %v2486_v14 = vadd.f32 %v2485_v42, %v2484_v40  ;;  %v2550_v25 = vadd.f32 %v2549_v24, %v2548_v12  ;;  %v2551_v27 = vpop.f32.mrb[58].mxu1  ;;  %v2488_v29 = vpop.f32.mrb[59].mxu0 }
 0x17a   : > { %2301 = vst [vmem:[%s2914_s9 + $0x28] sm:$0xff] %v2285_v19   ;;  %v1868_v30 = vadd.f32 %v1867_v18, %v1853_v23  ;;  %v2489_v22 = vadd.f32 %v2488_v29, %v2487_v20  ;;  %v2552_v31 = vpop.f32.mrb[59].mxu1 }
 0x17b   : > { %v1568_v32 = vadd.f32 %v2486_v14, %v2900_v36  ;;  %v2553_v33 = vadd.f32 %v2552_v31, %v2551_v27 }
 0x17c   : > { %v1571_v34 = vadd.f32 %v2489_v22, %v2902_v38 }
 0x17d   : > { %v1665_v35 = vadd.f32 %v2550_v25, %v1568_v32 }
 0x17e   : > { %v1668_v37 = vadd.f32 %v2553_v33, %v1571_v34  ;;  %v2490_v39 = vpop.f32.mrb[60].mxu0 }
 0x17f   : > { %v1829_v54 = vadd.f32 %v1828_v21, %v1665_v35  ;;  %v1854_v41 = vmul.f32 %v1665_v35, %v1665_v35  ;;  %v2554_v43 = vpop.f32.mrb[60].mxu1  ;;  %v2491_v44 = vpop.f32.mrb[61].mxu0 }
 0x180   : > { %v2290_v45 = vpack.c.bf16 %v1668_v37, %v1665_v35  ;;  %v1855_v46 = vmul.f32 %v1668_v37, %v1668_v37  ;;  %v2492_v56 = vadd.f32 %v2491_v44, %v2490_v39  ;;  %v2555_v47 = vpop.f32.mrb[61].mxu1  ;;  %v2493_v48 = vpop.f32.mrb[62].mxu0 }
 0x181   : > { %v1869_v49 = vadd.f32 %v1868_v30, %v1854_v41  ;;  %v1830_v50 = vadd.f32 %v1829_v54, %v1668_v37  ;;  %v2556_v26 = vadd.f32 %v2555_v47, %v2554_v43  ;;  %v2557_v36 = vpop.f32.mrb[62].mxu1  ;;  %v2494_v51 = vpop.f32.mrb[63].mxu0 }
 0x182   : > { %2302 = vst [vmem:[%s2914_s9 + $0x30] sm:$0xff] %v2290_v45   ;;  %v1576_v38 = vadd.f32 %v2492_v56, %v2904_v52  ;;  %v2495_v53 = vadd.f32 %v2494_v51, %v2493_v48  ;;  %v2558_v57 = vpop.f32.mrb[63].mxu1 }
 0x183   : > { %v1870_v58 = vadd.f32 %v1869_v49, %v1855_v46  ;;  %v2559_v28 = vadd.f32 %v2558_v57, %v2557_v36 }
 0x184   : > { %v1673_v59 = vadd.f32 %v2556_v26, %v1576_v38  ;;  %v1579_v60 = vadd.f32 %v2495_v53, %v2906_v55 }
 0x186   : > { %v1831_v61 = vadd.f32 %v1830_v50, %v1673_v59  ;;  %v1856_v62 = vmul.f32 %v1673_v59, %v1673_v59  ;;  %v1676_v63 = vadd.f32 %v2559_v28, %v1579_v60 }
 0x188   : > { %v1871_v0 = vadd.f32 %v1870_v58, %v1856_v62  ;;  %v2295_v1 = vpack.c.bf16 %v1676_v63, %v1673_v59  ;;  %v1832_v2 = vadd.f32 %v1831_v61, %v1676_v63  ;;  %v1857_v3 = vmul.f32 %v1676_v63, %v1676_v63 }
 0x18a   : > { %2303 = vst [vmem:[%s2914_s9 + $0x38] sm:$0xff] %v2295_v1   ;;  %v1833_v4 = vrot.slane %v1832_v2, 4  ;;  %v1872_v52 = vadd.f32 %v1871_v0, %v1857_v3 }
 0x18c   : > { %v1834_v5 = vadd.f32 %v1833_v4, %v1832_v2  ;;  %v1873_v6 = vrot.slane %v1872_v52, 4 }
 0x18e   : > { %v1835_v7 = vrot.slane %v1834_v5, 2  ;;  %v1874_v8 = vadd.f32 %v1873_v6, %v1872_v52 }
 0x190   : > { %v1836_v9 = vadd.f32 %v1835_v7, %v1834_v5  ;;  %v1875_v55 = vrot.slane %v1874_v8, 2 }
 0x192   : > { %v1837_v10 = vrot.slane %v1836_v9, 1  ;;  %v1876_v11 = vadd.f32 %v1875_v55, %v1874_v8 }
 0x194   : > { %v1838_v15 = vadd.f32 %v1837_v10, %v1836_v9  ;;  %v1877_v16 = vrot.slane %v1876_v11, 1 }
 0x196   : > { %v1839_v40 = vadd.f32 %v1838_v15, %v1817_v13  ;;  %v1878_v12 = vadd.f32 %v1877_v16, %v1876_v11 }
 0x198   : > { %1840 = vst [vmem:[%s2866_s28] sm:$0x1] %v1839_v40  ;;  %v1879_v42 = vadd.f32 %v1878_v12, %v1841_v17 }
 0x19a   : > { %1880 = vst [vmem:[%s2872_s5] sm:$0x1] %v1879_v42 }
 0x19b PF: > { %s15_s17 = sadd.s32 1, %s2671_s17   ;;  %s2956_s15 = smov %s2667_s16 }
 0x19c   : > { %p12_p5 = scmp.ge.s32.totalorder %s15_s17, 6   ;;  %s2957_s16 = smov %s2959_s18 }
 0x19e   :  { %14 = sbr.rel (!%p12_p5) target bundleno = 2 (0x2), region = 97 }

// kernel: generator_forward.16
= control target key start
LH: loop header
LB: loop body
LE: loop exit
PB: predicated region body
PF: predicated region fallthrough
CT: control target
= control target key end

     0   :  { %s2151_s12 = smov 0   ;;  %s2775_s0 = inlined_call_operand.vmem [shape: bf16[2048,64], index: 0, kind: input, shape index: {}]   ;;  %s2776_s1 = inlined_call_operand.vmem [shape: f32[1,64], index: 1, kind: input, shape index: {}]   ;;  %s2777_s2 = inlined_call_operand.vmem [shape: f32[1,64], index: 2, kind: input, shape index: {}]   ;;  %s2778_s3 = inlined_call_operand.vmem [shape: bf16[2048,64], index: 3, kind: output, shape index: {}]  }
   0x1 LB: > { %s1525_s13 = sadd.s32 4294967295, %s2129_s12   ;;  %p1529_p0 = scmp.ge.s32.totalorder %s2129_s12, 1  ;;  %s2129_s12 = sphi %s2151_s12, %s13_s12  }
   0x2   : > { %p138_p1 = scmp.lt.s32.totalorder %s2129_s12, 3 }
   0x4   : > { %p139_p2 = pnand %p1529_p0, %p138_p1 }
   0x5   : > { %s1530_s14 = sshll.u32 (!%p139_p2), %s1525_s13, 7  ;;  %v2172_v0 = vld [vmem:[%s2776_s1] ss:$0 sm:$0xff] (!%p139_p2)  ;;  %vm1340_vm0 = vcmask (!%p139_p2), 519168  }
   0x6   : > { %142 = sbr.rel (%p139_p2) target bundleno = 181 (0xb5), region = 32  ;;  %p163_p3 = scmp.lt.s32.totalorder (!%p139_p2), %s1530_s14, 255  ;;  %v2181_v9 = vld [vmem:[%s2777_s2] ss:$0 sm:$0xff] (!%p139_p2) }
   0xd   : > { %s2780_s14 = smov (!%p163_p3, %s1530_s14), 255 }
   0xe   : > { %s1531_s15 = sshll.u32 %s2780_s14, 2 }
   0xf   : > { %s2167_s18 = scalar_lea.vmem %s2775_s0, %s1531_s15  ;;  %s2204_s25 = scalar_lea.vmem %s2778_s3, %s1531_s15 }
  0x10   : > { %v1795_v1 = vld [vmem:[%s2167_s18] sm:$0xff]   ;;  %v2050_v2 = vld [vmem:[%s2167_s18 + $0x8] sm:$0xff]   ;;  %v2051_v3 = vld [vmem:[%s2167_s18 + $0x10] sm:$0xff]  }
  0x11   : > { %v1796_v4 = vunpack.c.l.bf16 %v1795_v1  ;;  %v1797_v5 = vunpack.c.h.bf16 %v1795_v1  ;;  %v1800_v6 = vunpack.c.l.bf16 %v2050_v2  ;;  %v1801_v7 = vunpack.c.h.bf16 %v2050_v2  ;;  %v2052_v8 = vld [vmem:[%s2167_s18 + $0x18] sm:$0xff]   ;;  %v2053_v38 = vld [vmem:[%s2167_s18 + $0x20] sm:$0xff]   ;;  %v2054_v39 = vld [vmem:[%s2167_s18 + $0x28] sm:$0xff]  }
  0x12   : > { %v1804_v10 = vunpack.c.l.bf16 %v2051_v3  ;;  %v1805_v11 = vunpack.c.h.bf16 %v2051_v3  ;;  %v1808_v12 = vunpack.c.l.bf16 %v2052_v8  ;;  %v1809_v13 = vunpack.c.h.bf16 %v2052_v8  ;;  %v2055_v44 = vld [vmem:[%s2167_s18 + $0x30] sm:$0xff]   ;;  %v2056_v45 = vld [vmem:[%s2167_s18 + $0x38] sm:$0xff]  }
  0x13   : > { %v437_v14 = vmul.f32 %v1796_v4, %v2172_v0  ;;  %v438_v15 = vmul.f32 %v1797_v5, %v2172_v0  ;;  %v439_v16 = vmul.f32 %v1800_v6, %v2172_v0  ;;  %v440_v17 = vmul.f32 %v1801_v7, %v2172_v0 }
  0x14   : > { %v441_v18 = vmul.f32 %v1804_v10, %v2172_v0  ;;  %v442_v19 = vmul.f32 %v1805_v11, %v2172_v0  ;;  %v443_v20 = vmul.f32 %v1808_v12, %v2172_v0  ;;  %v444_v21 = vmul.f32 %v1809_v13, %v2172_v0 }
  0x15   : > { %v572_v22 = vadd.f32 %v2181_v9, %v437_v14  ;;  %v573_v23 = vadd.f32 %v2181_v9, %v438_v15  ;;  %v574_v24 = vadd.f32 %v2181_v9, %v439_v16  ;;  %v575_v25 = vadd.f32 %v2181_v9, %v440_v17 }
  0x16   : > { %v576_v26 = vadd.f32 %v2181_v9, %v441_v18  ;;  %v577_v27 = vadd.f32 %v2181_v9, %v442_v19  ;;  %v578_v28 = vadd.f32 %v2181_v9, %v443_v20  ;;  %v579_v29 = vadd.f32 %v2181_v9, %v444_v21  ;;  %v2057_v20 = vld [vmem:[%s2167_s18 + $0x40] sm:$0xff]   ;;  %v2058_v21 = vld [vmem:[%s2167_s18 + $0x48] sm:$0xff]  }
  0x17   : > { %v700_v30 = vmax.f32 %v572_v22, 0.0  ;;  %v701_v31 = vmax.f32 %v573_v23, 0.0  ;;  %v702_v32 = vmax.f32 %v574_v24, 0.0  ;;  %v703_v33 = vmax.f32 %v575_v25, 0.0 }
  0x18   : > { %v704_v34 = vmax.f32 %v576_v26, 0.0  ;;  %v705_v35 = vmax.f32 %v577_v27, 0.0  ;;  %v706_v36 = vmax.f32 %v578_v28, 0.0  ;;  %v707_v37 = vmax.f32 %v579_v29, 0.0  ;;  %v2059_v26 = vld [vmem:[%s2167_s18 + $0x50] sm:$0xff]   ;;  %v2060_v27 = vld [vmem:[%s2167_s18 + $0x58] sm:$0xff]  }
  0x19   : > { %v1666_v40 = vpack.c.bf16 %v700_v30, %v700_v30  ;;  %v1667_v41 = vpack.c.bf16 %v701_v31, %v701_v31  ;;  %v1668_v42 = vpack.c.bf16 %v702_v32, %v702_v32  ;;  %v1669_v43 = vpack.c.bf16 %v703_v33, %v703_v33 }
  0x1a   : > { %v1670_v46 = vpack.c.bf16 %v704_v34, %v704_v34  ;;  %v1671_v47 = vpack.c.bf16 %v705_v35, %v705_v35  ;;  %v1672_v48 = vpack.c.bf16 %v706_v36, %v706_v36  ;;  %v1673_v49 = vpack.c.bf16 %v707_v37, %v707_v37 }
  0x1b   : > { %1341 = vst.msk [vmem:[%s2204_s25] sm:$0xf] %vm1340_vm0, %v1666_v40  ;;  %1342 = vst.msk [vmem:[%s2204_s25 + $0x4] sm:$0xf] %vm1340_vm0, %v1667_v41  ;;  %v1812_v50 = vunpack.c.l.bf16 %v2053_v38  ;;  %v1813_v51 = vunpack.c.h.bf16 %v2053_v38  ;;  %v1816_v52 = vunpack.c.l.bf16 %v2054_v39  ;;  %v1817_v53 = vunpack.c.h.bf16 %v2054_v39 }
  0x1c   : > { %1343 = vst.msk [vmem:[%s2204_s25 + $0x8] sm:$0xf] %vm1340_vm0, %v1668_v42  ;;  %1344 = vst.msk [vmem:[%s2204_s25 + $0xc] sm:$0xf] %vm1340_vm0, %v1669_v43  ;;  %v1820_v54 = vunpack.c.l.bf16 %v2055_v44  ;;  %v1821_v55 = vunpack.c.h.bf16 %v2055_v44  ;;  %v1824_v56 = vunpack.c.l.bf16 %v2056_v45  ;;  %v1825_v57 = vunpack.c.h.bf16 %v2056_v45 }
  0x1d   : > { %1345 = vst.msk [vmem:[%s2204_s25 + $0x10] sm:$0xf] %vm1340_vm0, %v1670_v46  ;;  %1346 = vst.msk [vmem:[%s2204_s25 + $0x14] sm:$0xf] %vm1340_vm0, %v1671_v47  ;;  %v445_v58 = vmul.f32 %v1812_v50, %v2172_v0  ;;  %v446_v59 = vmul.f32 %v1813_v51, %v2172_v0  ;;  %v447_v60 = vmul.f32 %v1816_v52, %v2172_v0  ;;  %v1828_v32 = vunpack.c.l.bf16 %v2057_v20 }
  0x1e   : > { %1347 = vst.msk [vmem:[%s2204_s25 + $0x18] sm:$0xf] %vm1340_vm0, %v1672_v48  ;;  %1348 = vst.msk [vmem:[%s2204_s25 + $0x1c] sm:$0xf] %vm1340_vm0, %v1673_v49  ;;  %v448_v61 = vmul.f32 %v1817_v53, %v2172_v0  ;;  %v449_v62 = vmul.f32 %v1820_v54, %v2172_v0  ;;  %v450_v63 = vmul.f32 %v1821_v55, %v2172_v0  ;;  %v1829_v33 = vunpack.c.h.bf16 %v2057_v20 }
  0x1f   : > { %v451_v1 = vmul.f32 %v1824_v56, %v2172_v0  ;;  %v452_v2 = vmul.f32 %v1825_v57, %v2172_v0  ;;  %v580_v3 = vadd.f32 %v2181_v9, %v445_v58  ;;  %v581_v4 = vadd.f32 %v2181_v9, %v446_v59 }
  0x20   : > { %v582_v5 = vadd.f32 %v2181_v9, %v447_v60  ;;  %v583_v6 = vadd.f32 %v2181_v9, %v448_v61  ;;  %v584_v7 = vadd.f32 %v2181_v9, %v449_v62  ;;  %v585_v8 = vadd.f32 %v2181_v9, %v450_v63 }
  0x21   : > { %v586_v10 = vadd.f32 %v2181_v9, %v451_v1  ;;  %v587_v11 = vadd.f32 %v2181_v9, %v452_v2  ;;  %v708_v12 = vmax.f32 %v580_v3, 0.0  ;;  %v709_v13 = vmax.f32 %v581_v4, 0.0  ;;  %v2061_v1 = vld [vmem:[%s2167_s18 + $0x60] sm:$0xff]   ;;  %v2062_v2 = vld [vmem:[%s2167_s18 + $0x68] sm:$0xff]  }
  0x22   : > { %v710_v14 = vmax.f32 %v582_v5, 0.0  ;;  %v711_v15 = vmax.f32 %v583_v6, 0.0  ;;  %v712_v16 = vmax.f32 %v584_v7, 0.0  ;;  %v713_v17 = vmax.f32 %v585_v8, 0.0  ;;  %v2063_v7 = vld [vmem:[%s2167_s18 + $0x70] sm:$0xff]   ;;  %v2064_v8 = vld [vmem:[%s2167_s18 + $0x78] sm:$0xff]  }
  0x23   : > { %v714_v18 = vmax.f32 %v586_v10, 0.0  ;;  %v715_v19 = vmax.f32 %v587_v11, 0.0  ;;  %v1674_v22 = vpack.c.bf16 %v708_v12, %v708_v12  ;;  %v1675_v23 = vpack.c.bf16 %v709_v13, %v709_v13 }
  0x24   : > { %v1676_v24 = vpack.c.bf16 %v710_v14, %v710_v14  ;;  %v1677_v25 = vpack.c.bf16 %v711_v15, %v711_v15  ;;  %v1678_v28 = vpack.c.bf16 %v712_v16, %v712_v16  ;;  %v1679_v29 = vpack.c.bf16 %v713_v17, %v713_v17 }
  0x25   : > { %v1680_v30 = vpack.c.bf16 %v714_v18, %v714_v18  ;;  %v1681_v31 = vpack.c.bf16 %v715_v19, %v715_v19  ;;  %1349 = vst.msk [vmem:[%s2204_s25 + $0x20] sm:$0xf] %vm1340_vm0, %v1674_v22  ;;  %1350 = vst.msk [vmem:[%s2204_s25 + $0x24] sm:$0xf] %vm1340_vm0, %v1675_v23  ;;  %v1832_v34 = vunpack.c.l.bf16 %v2058_v21  ;;  %v1833_v35 = vunpack.c.h.bf16 %v2058_v21 }
  0x26   : > { %1351 = vst.msk [vmem:[%s2204_s25 + $0x28] sm:$0xf] %vm1340_vm0, %v1676_v24  ;;  %1352 = vst.msk [vmem:[%s2204_s25 + $0x2c] sm:$0xf] %vm1340_vm0, %v1677_v25  ;;  %v1836_v36 = vunpack.c.l.bf16 %v2059_v26  ;;  %v1837_v37 = vunpack.c.h.bf16 %v2059_v26  ;;  %v1840_v38 = vunpack.c.l.bf16 %v2060_v27  ;;  %v1841_v39 = vunpack.c.h.bf16 %v2060_v27 }
  0x27   : > { %1353 = vst.msk [vmem:[%s2204_s25 + $0x30] sm:$0xf] %vm1340_vm0, %v1678_v28  ;;  %1354 = vst.msk [vmem:[%s2204_s25 + $0x34] sm:$0xf] %vm1340_vm0, %v1679_v29  ;;  %v453_v40 = vmul.f32 %v1828_v32, %v2172_v0  ;;  %v454_v41 = vmul.f32 %v1829_v33, %v2172_v0  ;;  %v455_v42 = vmul.f32 %v1832_v34, %v2172_v0  ;;  %v1844_v14 = vunpack.c.l.bf16 %v2061_v1 }
  0x28   : > { %1355 = vst.msk [vmem:[%s2204_s25 + $0x38] sm:$0xf] %vm1340_vm0, %v1680_v30  ;;  %1356 = vst.msk [vmem:[%s2204_s25 + $0x3c] sm:$0xf] %vm1340_vm0, %v1681_v31  ;;  %v456_v43 = vmul.f32 %v1833_v35, %v2172_v0  ;;  %v457_v44 = vmul.f32 %v1836_v36, %v2172_v0  ;;  %v458_v45 = vmul.f32 %v1837_v37, %v2172_v0  ;;  %v1845_v15 = vunpack.c.h.bf16 %v2061_v1 }
  0x29   : > { %v459_v46 = vmul.f32 %v1840_v38, %v2172_v0  ;;  %v460_v47 = vmul.f32 %v1841_v39, %v2172_v0  ;;  %v588_v48 = vadd.f32 %v2181_v9, %v453_v40  ;;  %v589_v49 = vadd.f32 %v2181_v9, %v454_v41 }
  0x2a   : > { %v590_v50 = vadd.f32 %v2181_v9, %v455_v42  ;;  %v591_v51 = vadd.f32 %v2181_v9, %v456_v43  ;;  %v592_v52 = vadd.f32 %v2181_v9, %v457_v44  ;;  %v593_v53 = vadd.f32 %v2181_v9, %v458_v45 }
  0x2b   : > { %v594_v54 = vadd.f32 %v2181_v9, %v459_v46  ;;  %v595_v55 = vadd.f32 %v2181_v9, %v460_v47  ;;  %v716_v56 = vmax.f32 %v588_v48, 0.0  ;;  %v717_v57 = vmax.f32 %v589_v49, 0.0  ;;  %v2065_v46 = vld [vmem:[%s2167_s18 + $0x80] sm:$0xff]   ;;  %v2066_v47 = vld [vmem:[%s2167_s18 + $0x88] sm:$0xff]  }
  0x2c   : > { %v718_v58 = vmax.f32 %v590_v50, 0.0  ;;  %v719_v59 = vmax.f32 %v591_v51, 0.0  ;;  %v720_v60 = vmax.f32 %v592_v52, 0.0  ;;  %v721_v61 = vmax.f32 %v593_v53, 0.0  ;;  %v2067_v52 = vld [vmem:[%s2167_s18 + $0x90] sm:$0xff]   ;;  %v2068_v53 = vld [vmem:[%s2167_s18 + $0x98] sm:$0xff]  }
  0x2d   : > { %v722_v62 = vmax.f32 %v594_v54, 0.0  ;;  %v723_v63 = vmax.f32 %v595_v55, 0.0  ;;  %v1682_v3 = vpack.c.bf16 %v716_v56, %v716_v56  ;;  %v1683_v4 = vpack.c.bf16 %v717_v57, %v717_v57 }
  0x2e   : > { %v1684_v5 = vpack.c.bf16 %v718_v58, %v718_v58  ;;  %v1685_v6 = vpack.c.bf16 %v719_v59, %v719_v59  ;;  %v1686_v10 = vpack.c.bf16 %v720_v60, %v720_v60  ;;  %v1687_v11 = vpack.c.bf16 %v721_v61, %v721_v61 }
  0x2f   : > { %v1688_v12 = vpack.c.bf16 %v722_v62, %v722_v62  ;;  %v1689_v13 = vpack.c.bf16 %v723_v63, %v723_v63  ;;  %1357 = vst.msk [vmem:[%s2204_s25 + $0x40] sm:$0xf] %vm1340_vm0, %v1682_v3  ;;  %1358 = vst.msk [vmem:[%s2204_s25 + $0x44] sm:$0xf] %vm1340_vm0, %v1683_v4  ;;  %v1848_v16 = vunpack.c.l.bf16 %v2062_v2  ;;  %v1849_v17 = vunpack.c.h.bf16 %v2062_v2 }
  0x30   : > { %1359 = vst.msk [vmem:[%s2204_s25 + $0x48] sm:$0xf] %vm1340_vm0, %v1684_v5  ;;  %1360 = vst.msk [vmem:[%s2204_s25 + $0x4c] sm:$0xf] %vm1340_vm0, %v1685_v6  ;;  %v1852_v18 = vunpack.c.l.bf16 %v2063_v7  ;;  %v1853_v19 = vunpack.c.h.bf16 %v2063_v7  ;;  %v1856_v20 = vunpack.c.l.bf16 %v2064_v8  ;;  %v1857_v21 = vunpack.c.h.bf16 %v2064_v8 }
  0x31   : > { %1361 = vst.msk [vmem:[%s2204_s25 + $0x50] sm:$0xf] %vm1340_vm0, %v1686_v10  ;;  %1362 = vst.msk [vmem:[%s2204_s25 + $0x54] sm:$0xf] %vm1340_vm0, %v1687_v11  ;;  %v461_v22 = vmul.f32 %v1844_v14, %v2172_v0  ;;  %v462_v23 = vmul.f32 %v1845_v15, %v2172_v0  ;;  %v463_v24 = vmul.f32 %v1848_v16, %v2172_v0  ;;  %v1860_v58 = vunpack.c.l.bf16 %v2065_v46 }
  0x32   : > { %1363 = vst.msk [vmem:[%s2204_s25 + $0x58] sm:$0xf] %vm1340_vm0, %v1688_v12  ;;  %1364 = vst.msk [vmem:[%s2204_s25 + $0x5c] sm:$0xf] %vm1340_vm0, %v1689_v13  ;;  %v464_v25 = vmul.f32 %v1849_v17, %v2172_v0  ;;  %v465_v26 = vmul.f32 %v1852_v18, %v2172_v0  ;;  %v466_v27 = vmul.f32 %v1853_v19, %v2172_v0  ;;  %v1861_v59 = vunpack.c.h.bf16 %v2065_v46 }
  0x33   : > { %v467_v28 = vmul.f32 %v1856_v20, %v2172_v0  ;;  %v468_v29 = vmul.f32 %v1857_v21, %v2172_v0  ;;  %v596_v30 = vadd.f32 %v2181_v9, %v461_v22  ;;  %v597_v31 = vadd.f32 %v2181_v9, %v462_v23 }
  0x34   : > { %v598_v32 = vadd.f32 %v2181_v9, %v463_v24  ;;  %v599_v33 = vadd.f32 %v2181_v9, %v464_v25  ;;  %v600_v34 = vadd.f32 %v2181_v9, %v465_v26  ;;  %v601_v35 = vadd.f32 %v2181_v9, %v466_v27 }
  0x35   : > { %v602_v36 = vadd.f32 %v2181_v9, %v467_v28  ;;  %v603_v37 = vadd.f32 %v2181_v9, %v468_v29  ;;  %v724_v38 = vmax.f32 %v596_v30, 0.0  ;;  %v725_v39 = vmax.f32 %v597_v31, 0.0  ;;  %v2069_v28 = vld [vmem:[%s2167_s18 + $0xa0] sm:$0xff]   ;;  %v2070_v29 = vld [vmem:[%s2167_s18 + $0xa8] sm:$0xff]  }
  0x36   : > { %v726_v40 = vmax.f32 %v598_v32, 0.0  ;;  %v727_v41 = vmax.f32 %v599_v33, 0.0  ;;  %v728_v42 = vmax.f32 %v600_v34, 0.0  ;;  %v729_v43 = vmax.f32 %v601_v35, 0.0  ;;  %v2071_v34 = vld [vmem:[%s2167_s18 + $0xb0] sm:$0xff]   ;;  %v2072_v35 = vld [vmem:[%s2167_s18 + $0xb8] sm:$0xff]  }
  0x37   : > { %v730_v44 = vmax.f32 %v602_v36, 0.0  ;;  %v731_v45 = vmax.f32 %v603_v37, 0.0  ;;  %v1690_v48 = vpack.c.bf16 %v724_v38, %v724_v38  ;;  %v1691_v49 = vpack.c.bf16 %v725_v39, %v725_v39 }
  0x38   : > { %v1692_v50 = vpack.c.bf16 %v726_v40, %v726_v40  ;;  %v1693_v51 = vpack.c.bf16 %v727_v41, %v727_v41  ;;  %v1694_v54 = vpack.c.bf16 %v728_v42, %v728_v42  ;;  %v1695_v55 = vpack.c.bf16 %v729_v43, %v729_v43 }
  0x39   : > { %v1696_v56 = vpack.c.bf16 %v730_v44, %v730_v44  ;;  %v1697_v57 = vpack.c.bf16 %v731_v45, %v731_v45  ;;  %1365 = vst.msk [vmem:[%s2204_s25 + $0x60] sm:$0xf] %vm1340_vm0, %v1690_v48  ;;  %1366 = vst.msk [vmem:[%s2204_s25 + $0x64] sm:$0xf] %vm1340_vm0, %v1691_v49  ;;  %v1864_v60 = vunpack.c.l.bf16 %v2066_v47  ;;  %v1865_v61 = vunpack.c.h.bf16 %v2066_v47 }
  0x3a   : > { %1367 = vst.msk [vmem:[%s2204_s25 + $0x68] sm:$0xf] %vm1340_vm0, %v1692_v50  ;;  %1368 = vst.msk [vmem:[%s2204_s25 + $0x6c] sm:$0xf] %vm1340_vm0, %v1693_v51  ;;  %v1868_v62 = vunpack.c.l.bf16 %v2067_v52  ;;  %v1869_v63 = vunpack.c.h.bf16 %v2067_v52  ;;  %v1872_v1 = vunpack.c.l.bf16 %v2068_v53  ;;  %v1873_v2 = vunpack.c.h.bf16 %v2068_v53 }
  0x3b   : > { %1369 = vst.msk [vmem:[%s2204_s25 + $0x70] sm:$0xf] %vm1340_vm0, %v1694_v54  ;;  %1370 = vst.msk [vmem:[%s2204_s25 + $0x74] sm:$0xf] %vm1340_vm0, %v1695_v55  ;;  %v469_v3 = vmul.f32 %v1860_v58, %v2172_v0  ;;  %v470_v4 = vmul.f32 %v1861_v59, %v2172_v0  ;;  %v471_v5 = vmul.f32 %v1864_v60, %v2172_v0  ;;  %v1876_v40 = vunpack.c.l.bf16 %v2069_v28 }
  0x3c   : > { %1371 = vst.msk [vmem:[%s2204_s25 + $0x78] sm:$0xf] %vm1340_vm0, %v1696_v56  ;;  %1372 = vst.msk [vmem:[%s2204_s25 + $0x7c] sm:$0xf] %vm1340_vm0, %v1697_v57  ;;  %v472_v6 = vmul.f32 %v1865_v61, %v2172_v0  ;;  %v473_v7 = vmul.f32 %v1868_v62, %v2172_v0  ;;  %v474_v8 = vmul.f32 %v1869_v63, %v2172_v0  ;;  %v1877_v41 = vunpack.c.h.bf16 %v2069_v28 }
  0x3d   : > { %v475_v10 = vmul.f32 %v1872_v1, %v2172_v0  ;;  %v476_v11 = vmul.f32 %v1873_v2, %v2172_v0  ;;  %v604_v12 = vadd.f32 %v2181_v9, %v469_v3  ;;  %v605_v13 = vadd.f32 %v2181_v9, %v470_v4 }
  0x3e   : > { %v606_v14 = vadd.f32 %v2181_v9, %v471_v5  ;;  %v607_v15 = vadd.f32 %v2181_v9, %v472_v6  ;;  %v608_v16 = vadd.f32 %v2181_v9, %v473_v7  ;;  %v609_v17 = vadd.f32 %v2181_v9, %v474_v8 }
  0x3f   : > { %v610_v18 = vadd.f32 %v2181_v9, %v475_v10  ;;  %v611_v19 = vadd.f32 %v2181_v9, %v476_v11  ;;  %v732_v20 = vmax.f32 %v604_v12, 0.0  ;;  %v733_v21 = vmax.f32 %v605_v13, 0.0  ;;  %v2073_v10 = vld [vmem:[%s2167_s18 + $0xc0] sm:$0xff]   ;;  %v2074_v11 = vld [vmem:[%s2167_s18 + $0xc8] sm:$0xff]  }
  0x40   : > { %v734_v22 = vmax.f32 %v606_v14, 0.0  ;;  %v735_v23 = vmax.f32 %v607_v15, 0.0  ;;  %v736_v24 = vmax.f32 %v608_v16, 0.0  ;;  %v737_v25 = vmax.f32 %v609_v17, 0.0  ;;  %v2075_v16 = vld [vmem:[%s2167_s18 + $0xd0] sm:$0xff]   ;;  %v2076_v17 = vld [vmem:[%s2167_s18 + $0xd8] sm:$0xff]  }
  0x41   : > { %v738_v26 = vmax.f32 %v610_v18, 0.0  ;;  %v739_v27 = vmax.f32 %v611_v19, 0.0  ;;  %v1698_v30 = vpack.c.bf16 %v732_v20, %v732_v20  ;;  %v1699_v31 = vpack.c.bf16 %v733_v21, %v733_v21 }
  0x42   : > { %v1700_v32 = vpack.c.bf16 %v734_v22, %v734_v22  ;;  %v1701_v33 = vpack.c.bf16 %v735_v23, %v735_v23  ;;  %v1702_v36 = vpack.c.bf16 %v736_v24, %v736_v24  ;;  %v1703_v37 = vpack.c.bf16 %v737_v25, %v737_v25 }
  0x43   : > { %v1704_v38 = vpack.c.bf16 %v738_v26, %v738_v26  ;;  %v1705_v39 = vpack.c.bf16 %v739_v27, %v739_v27  ;;  %1373 = vst.msk [vmem:[%s2204_s25 + $0x80] sm:$0xf] %vm1340_vm0, %v1698_v30  ;;  %1374 = vst.msk [vmem:[%s2204_s25 + $0x84] sm:$0xf] %vm1340_vm0, %v1699_v31  ;;  %v1880_v42 = vunpack.c.l.bf16 %v2070_v29  ;;  %v1881_v43 = vunpack.c.h.bf16 %v2070_v29 }
  0x44   : > { %1375 = vst.msk [vmem:[%s2204_s25 + $0x88] sm:$0xf] %vm1340_vm0, %v1700_v32  ;;  %1376 = vst.msk [vmem:[%s2204_s25 + $0x8c] sm:$0xf] %vm1340_vm0, %v1701_v33  ;;  %v1884_v44 = vunpack.c.l.bf16 %v2071_v34  ;;  %v1885_v45 = vunpack.c.h.bf16 %v2071_v34  ;;  %v1888_v46 = vunpack.c.l.bf16 %v2072_v35  ;;  %v1889_v47 = vunpack.c.h.bf16 %v2072_v35 }
  0x45   : > { %1377 = vst.msk [vmem:[%s2204_s25 + $0x90] sm:$0xf] %vm1340_vm0, %v1702_v36  ;;  %1378 = vst.msk [vmem:[%s2204_s25 + $0x94] sm:$0xf] %vm1340_vm0, %v1703_v37  ;;  %v477_v48 = vmul.f32 %v1876_v40, %v2172_v0  ;;  %v478_v49 = vmul.f32 %v1877_v41, %v2172_v0  ;;  %v479_v50 = vmul.f32 %v1880_v42, %v2172_v0  ;;  %v1892_v22 = vunpack.c.l.bf16 %v2073_v10 }
  0x46   : > { %1379 = vst.msk [vmem:[%s2204_s25 + $0x98] sm:$0xf] %vm1340_vm0, %v1704_v38  ;;  %1380 = vst.msk [vmem:[%s2204_s25 + $0x9c] sm:$0xf] %vm1340_vm0, %v1705_v39  ;;  %v480_v51 = vmul.f32 %v1881_v43, %v2172_v0  ;;  %v481_v52 = vmul.f32 %v1884_v44, %v2172_v0  ;;  %v482_v53 = vmul.f32 %v1885_v45, %v2172_v0  ;;  %v1893_v23 = vunpack.c.h.bf16 %v2073_v10 }
  0x47   : > { %v483_v54 = vmul.f32 %v1888_v46, %v2172_v0  ;;  %v484_v55 = vmul.f32 %v1889_v47, %v2172_v0  ;;  %v612_v56 = vadd.f32 %v2181_v9, %v477_v48  ;;  %v613_v57 = vadd.f32 %v2181_v9, %v478_v49 }
  0x48   : > { %v614_v58 = vadd.f32 %v2181_v9, %v479_v50  ;;  %v615_v59 = vadd.f32 %v2181_v9, %v480_v51  ;;  %v616_v60 = vadd.f32 %v2181_v9, %v481_v52  ;;  %v617_v61 = vadd.f32 %v2181_v9, %v482_v53 }
  0x49   : > { %v618_v62 = vadd.f32 %v2181_v9, %v483_v54  ;;  %v619_v63 = vadd.f32 %v2181_v9, %v484_v55  ;;  %v740_v1 = vmax.f32 %v612_v56, 0.0  ;;  %v741_v2 = vmax.f32 %v613_v57, 0.0  ;;  %v2077_v54 = vld [vmem:[%s2167_s18 + $0xe0] sm:$0xff]   ;;  %v2078_v55 = vld [vmem:[%s2167_s18 + $0xe8] sm:$0xff]  }
  0x4a   : > { %v742_v3 = vmax.f32 %v614_v58, 0.0  ;;  %v743_v4 = vmax.f32 %v615_v59, 0.0  ;;  %v744_v5 = vmax.f32 %v616_v60, 0.0  ;;  %v745_v6 = vmax.f32 %v617_v61, 0.0  ;;  %v2079_v60 = vld [vmem:[%s2167_s18 + $0xf0] sm:$0xff]   ;;  %v2080_v61 = vld [vmem:[%s2167_s18 + $0xf8] sm:$0xff]  }
  0x4b   : > { %v746_v7 = vmax.f32 %v618_v62, 0.0  ;;  %v747_v8 = vmax.f32 %v619_v63, 0.0  ;;  %v1706_v12 = vpack.c.bf16 %v740_v1, %v740_v1  ;;  %v1707_v13 = vpack.c.bf16 %v741_v2, %v741_v2 }
  0x4c   : > { %v1708_v14 = vpack.c.bf16 %v742_v3, %v742_v3  ;;  %v1709_v15 = vpack.c.bf16 %v743_v4, %v743_v4  ;;  %v1710_v18 = vpack.c.bf16 %v744_v5, %v744_v5  ;;  %v1711_v19 = vpack.c.bf16 %v745_v6, %v745_v6 }
  0x4d   : > { %v1712_v20 = vpack.c.bf16 %v746_v7, %v746_v7  ;;  %v1713_v21 = vpack.c.bf16 %v747_v8, %v747_v8  ;;  %1381 = vst.msk [vmem:[%s2204_s25 + $0xa0] sm:$0xf] %vm1340_vm0, %v1706_v12  ;;  %1382 = vst.msk [vmem:[%s2204_s25 + $0xa4] sm:$0xf] %vm1340_vm0, %v1707_v13  ;;  %v1896_v24 = vunpack.c.l.bf16 %v2074_v11  ;;  %v1897_v25 = vunpack.c.h.bf16 %v2074_v11 }
  0x4e   : > { %1383 = vst.msk [vmem:[%s2204_s25 + $0xa8] sm:$0xf] %vm1340_vm0, %v1708_v14  ;;  %1384 = vst.msk [vmem:[%s2204_s25 + $0xac] sm:$0xf] %vm1340_vm0, %v1709_v15  ;;  %v1900_v26 = vunpack.c.l.bf16 %v2075_v16  ;;  %v1901_v27 = vunpack.c.h.bf16 %v2075_v16  ;;  %v1904_v28 = vunpack.c.l.bf16 %v2076_v17  ;;  %v1905_v29 = vunpack.c.h.bf16 %v2076_v17 }
  0x4f   : > { %1385 = vst.msk [vmem:[%s2204_s25 + $0xb0] sm:$0xf] %vm1340_vm0, %v1710_v18  ;;  %1386 = vst.msk [vmem:[%s2204_s25 + $0xb4] sm:$0xf] %vm1340_vm0, %v1711_v19  ;;  %v485_v30 = vmul.f32 %v1892_v22, %v2172_v0  ;;  %v486_v31 = vmul.f32 %v1893_v23, %v2172_v0  ;;  %v487_v32 = vmul.f32 %v1896_v24, %v2172_v0  ;;  %v1908_v3 = vunpack.c.l.bf16 %v2077_v54 }
  0x50   : > { %1387 = vst.msk [vmem:[%s2204_s25 + $0xb8] sm:$0xf] %vm1340_vm0, %v1712_v20  ;;  %1388 = vst.msk [vmem:[%s2204_s25 + $0xbc] sm:$0xf] %vm1340_vm0, %v1713_v21  ;;  %v488_v33 = vmul.f32 %v1897_v25, %v2172_v0  ;;  %v489_v34 = vmul.f32 %v1900_v26, %v2172_v0  ;;  %v490_v35 = vmul.f32 %v1901_v27, %v2172_v0  ;;  %v1909_v4 = vunpack.c.h.bf16 %v2077_v54 }
  0x51   : > { %v491_v36 = vmul.f32 %v1904_v28, %v2172_v0  ;;  %v492_v37 = vmul.f32 %v1905_v29, %v2172_v0  ;;  %v620_v38 = vadd.f32 %v2181_v9, %v485_v30  ;;  %v621_v39 = vadd.f32 %v2181_v9, %v486_v31 }
  0x52   : > { %v622_v40 = vadd.f32 %v2181_v9, %v487_v32  ;;  %v623_v41 = vadd.f32 %v2181_v9, %v488_v33  ;;  %v624_v42 = vadd.f32 %v2181_v9, %v489_v34  ;;  %v625_v43 = vadd.f32 %v2181_v9, %v490_v35 }
  0x53   : > { %v626_v44 = vadd.f32 %v2181_v9, %v491_v36  ;;  %v627_v45 = vadd.f32 %v2181_v9, %v492_v37  ;;  %v748_v46 = vmax.f32 %v620_v38, 0.0  ;;  %v749_v47 = vmax.f32 %v621_v39, 0.0  ;;  %v2081_v36 = vld [vmem:[%s2167_s18 + $0x100] sm:$0xff]   ;;  %v2082_v37 = vld [vmem:[%s2167_s18 + $0x108] sm:$0xff]  }
  0x54   : > { %v750_v48 = vmax.f32 %v622_v40, 0.0  ;;  %v751_v49 = vmax.f32 %v623_v41, 0.0  ;;  %v752_v50 = vmax.f32 %v624_v42, 0.0  ;;  %v753_v51 = vmax.f32 %v625_v43, 0.0  ;;  %v2083_v42 = vld [vmem:[%s2167_s18 + $0x110] sm:$0xff]   ;;  %v2084_v43 = vld [vmem:[%s2167_s18 + $0x118] sm:$0xff]  }
  0x55   : > { %v754_v52 = vmax.f32 %v626_v44, 0.0  ;;  %v755_v53 = vmax.f32 %v627_v45, 0.0  ;;  %v1714_v56 = vpack.c.bf16 %v748_v46, %v748_v46  ;;  %v1715_v57 = vpack.c.bf16 %v749_v47, %v749_v47 }
  0x56   : > { %v1716_v58 = vpack.c.bf16 %v750_v48, %v750_v48  ;;  %v1717_v59 = vpack.c.bf16 %v751_v49, %v751_v49  ;;  %v1718_v62 = vpack.c.bf16 %v752_v50, %v752_v50  ;;  %v1719_v63 = vpack.c.bf16 %v753_v51, %v753_v51 }
  0x57   : > { %v1720_v1 = vpack.c.bf16 %v754_v52, %v754_v52  ;;  %v1721_v2 = vpack.c.bf16 %v755_v53, %v755_v53  ;;  %1389 = vst.msk [vmem:[%s2204_s25 + $0xc0] sm:$0xf] %vm1340_vm0, %v1714_v56  ;;  %1390 = vst.msk [vmem:[%s2204_s25 + $0xc4] sm:$0xf] %vm1340_vm0, %v1715_v57  ;;  %v1912_v5 = vunpack.c.l.bf16 %v2078_v55  ;;  %v1913_v6 = vunpack.c.h.bf16 %v2078_v55 }
  0x58   : > { %1391 = vst.msk [vmem:[%s2204_s25 + $0xc8] sm:$0xf] %vm1340_vm0, %v1716_v58  ;;  %1392 = vst.msk [vmem:[%s2204_s25 + $0xcc] sm:$0xf] %vm1340_vm0, %v1717_v59  ;;  %v1916_v7 = vunpack.c.l.bf16 %v2079_v60  ;;  %v1917_v8 = vunpack.c.h.bf16 %v2079_v60  ;;  %v1920_v10 = vunpack.c.l.bf16 %v2080_v61  ;;  %v1921_v11 = vunpack.c.h.bf16 %v2080_v61 }
  0x59   : > { %1393 = vst.msk [vmem:[%s2204_s25 + $0xd0] sm:$0xf] %vm1340_vm0, %v1718_v62  ;;  %1394 = vst.msk [vmem:[%s2204_s25 + $0xd4] sm:$0xf] %vm1340_vm0, %v1719_v63  ;;  %v493_v12 = vmul.f32 %v1908_v3, %v2172_v0  ;;  %v494_v13 = vmul.f32 %v1909_v4, %v2172_v0  ;;  %v495_v14 = vmul.f32 %v1912_v5, %v2172_v0  ;;  %v1924_v48 = vunpack.c.l.bf16 %v2081_v36 }
  0x5a   : > { %1395 = vst.msk [vmem:[%s2204_s25 + $0xd8] sm:$0xf] %vm1340_vm0, %v1720_v1  ;;  %1396 = vst.msk [vmem:[%s2204_s25 + $0xdc] sm:$0xf] %vm1340_vm0, %v1721_v2  ;;  %v496_v15 = vmul.f32 %v1913_v6, %v2172_v0  ;;  %v497_v16 = vmul.f32 %v1916_v7, %v2172_v0  ;;  %v498_v17 = vmul.f32 %v1917_v8, %v2172_v0  ;;  %v1925_v49 = vunpack.c.h.bf16 %v2081_v36 }
  0x5b   : > { %v499_v18 = vmul.f32 %v1920_v10, %v2172_v0  ;;  %v500_v19 = vmul.f32 %v1921_v11, %v2172_v0  ;;  %v628_v20 = vadd.f32 %v2181_v9, %v493_v12  ;;  %v629_v21 = vadd.f32 %v2181_v9, %v494_v13 }
  0x5c   : > { %v630_v22 = vadd.f32 %v2181_v9, %v495_v14  ;;  %v631_v23 = vadd.f32 %v2181_v9, %v496_v15  ;;  %v632_v24 = vadd.f32 %v2181_v9, %v497_v16  ;;  %v633_v25 = vadd.f32 %v2181_v9, %v498_v17 }
  0x5d   : > { %v634_v26 = vadd.f32 %v2181_v9, %v499_v18  ;;  %v635_v27 = vadd.f32 %v2181_v9, %v500_v19  ;;  %v756_v28 = vmax.f32 %v628_v20, 0.0  ;;  %v757_v29 = vmax.f32 %v629_v21, 0.0  ;;  %v2085_v18 = vld [vmem:[%s2167_s18 + $0x120] sm:$0xff]   ;;  %v2086_v19 = vld [vmem:[%s2167_s18 + $0x128] sm:$0xff]  }
  0x5e   : > { %v758_v30 = vmax.f32 %v630_v22, 0.0  ;;  %v759_v31 = vmax.f32 %v631_v23, 0.0  ;;  %v760_v32 = vmax.f32 %v632_v24, 0.0  ;;  %v761_v33 = vmax.f32 %v633_v25, 0.0  ;;  %v2087_v24 = vld [vmem:[%s2167_s18 + $0x130] sm:$0xff]   ;;  %v2088_v25 = vld [vmem:[%s2167_s18 + $0x138] sm:$0xff]  }
  0x5f   : > { %v762_v34 = vmax.f32 %v634_v26, 0.0  ;;  %v763_v35 = vmax.f32 %v635_v27, 0.0  ;;  %v1722_v38 = vpack.c.bf16 %v756_v28, %v756_v28  ;;  %v1723_v39 = vpack.c.bf16 %v757_v29, %v757_v29 }
  0x60   : > { %v1724_v40 = vpack.c.bf16 %v758_v30, %v758_v30  ;;  %v1725_v41 = vpack.c.bf16 %v759_v31, %v759_v31  ;;  %v1726_v44 = vpack.c.bf16 %v760_v32, %v760_v32  ;;  %v1727_v45 = vpack.c.bf16 %v761_v33, %v761_v33 }
  0x61   : > { %v1728_v46 = vpack.c.bf16 %v762_v34, %v762_v34  ;;  %v1729_v47 = vpack.c.bf16 %v763_v35, %v763_v35  ;;  %1397 = vst.msk [vmem:[%s2204_s25 + $0xe0] sm:$0xf] %vm1340_vm0, %v1722_v38  ;;  %1398 = vst.msk [vmem:[%s2204_s25 + $0xe4] sm:$0xf] %vm1340_vm0, %v1723_v39  ;;  %v1928_v50 = vunpack.c.l.bf16 %v2082_v37  ;;  %v1929_v51 = vunpack.c.h.bf16 %v2082_v37 }
  0x62   : > { %1399 = vst.msk [vmem:[%s2204_s25 + $0xe8] sm:$0xf] %vm1340_vm0, %v1724_v40  ;;  %1400 = vst.msk [vmem:[%s2204_s25 + $0xec] sm:$0xf] %vm1340_vm0, %v1725_v41  ;;  %v1932_v52 = vunpack.c.l.bf16 %v2083_v42  ;;  %v1933_v53 = vunpack.c.h.bf16 %v2083_v42  ;;  %v1936_v54 = vunpack.c.l.bf16 %v2084_v43  ;;  %v1937_v55 = vunpack.c.h.bf16 %v2084_v43 }
  0x63   : > { %1401 = vst.msk [vmem:[%s2204_s25 + $0xf0] sm:$0xf] %vm1340_vm0, %v1726_v44  ;;  %1402 = vst.msk [vmem:[%s2204_s25 + $0xf4] sm:$0xf] %vm1340_vm0, %v1727_v45  ;;  %v501_v56 = vmul.f32 %v1924_v48, %v2172_v0  ;;  %v502_v57 = vmul.f32 %v1925_v49, %v2172_v0  ;;  %v503_v58 = vmul.f32 %v1928_v50, %v2172_v0  ;;  %v1940_v30 = vunpack.c.l.bf16 %v2085_v18 }
  0x64   : > { %1403 = vst.msk [vmem:[%s2204_s25 + $0xf8] sm:$0xf] %vm1340_vm0, %v1728_v46  ;;  %1404 = vst.msk [vmem:[%s2204_s25 + $0xfc] sm:$0xf] %vm1340_vm0, %v1729_v47  ;;  %v504_v59 = vmul.f32 %v1929_v51, %v2172_v0  ;;  %v505_v60 = vmul.f32 %v1932_v52, %v2172_v0  ;;  %v506_v61 = vmul.f32 %v1933_v53, %v2172_v0  ;;  %v1941_v31 = vunpack.c.h.bf16 %v2085_v18  ;;  %v2553_v18 = vld [vmem:[%s2776_s1] ss:$0 sm:$0xff] }
  0x65   : > { %v507_v62 = vmul.f32 %v1936_v54, %v2172_v0  ;;  %v508_v63 = vmul.f32 %v1937_v55, %v2172_v0  ;;  %v636_v1 = vadd.f32 %v2181_v9, %v501_v56  ;;  %v637_v2 = vadd.f32 %v2181_v9, %v502_v57 }
  0x66   : > { %v638_v3 = vadd.f32 %v2181_v9, %v503_v58  ;;  %v639_v4 = vadd.f32 %v2181_v9, %v504_v59  ;;  %v640_v5 = vadd.f32 %v2181_v9, %v505_v60  ;;  %v641_v6 = vadd.f32 %v2181_v9, %v506_v61  ;;  %v2089_v61 = vld [vmem:[%s2167_s18 + $0x140] sm:$0xff]  }
  0x67   : > { %v642_v7 = vadd.f32 %v2181_v9, %v507_v62  ;;  %v643_v8 = vadd.f32 %v2181_v9, %v508_v63  ;;  %v764_v10 = vmax.f32 %v636_v1, 0.0  ;;  %v765_v11 = vmax.f32 %v637_v2, 0.0  ;;  %v2090_v62 = vld [vmem:[%s2167_s18 + $0x148] sm:$0xff]  }
  0x68   : > { %v766_v12 = vmax.f32 %v638_v3, 0.0  ;;  %v767_v13 = vmax.f32 %v639_v4, 0.0  ;;  %v768_v14 = vmax.f32 %v640_v5, 0.0  ;;  %v769_v15 = vmax.f32 %v641_v6, 0.0  ;;  %v2091_v3 = vld [vmem:[%s2167_s18 + $0x150] sm:$0xff]   ;;  %v2092_v4 = vld [vmem:[%s2167_s18 + $0x158] sm:$0xff]  }
  0x69   : > { %v770_v16 = vmax.f32 %v642_v7, 0.0  ;;  %v771_v17 = vmax.f32 %v643_v8, 0.0  ;;  %v1730_v20 = vpack.c.bf16 %v764_v10, %v764_v10  ;;  %v1731_v21 = vpack.c.bf16 %v765_v11, %v765_v11 }
  0x6a   : > { %v1732_v22 = vpack.c.bf16 %v766_v12, %v766_v12  ;;  %v1733_v23 = vpack.c.bf16 %v767_v13, %v767_v13  ;;  %v1734_v26 = vpack.c.bf16 %v768_v14, %v768_v14  ;;  %v1735_v27 = vpack.c.bf16 %v769_v15, %v769_v15 }
  0x6b   : > { %v1736_v28 = vpack.c.bf16 %v770_v16, %v770_v16  ;;  %v1737_v29 = vpack.c.bf16 %v771_v17, %v771_v17  ;;  %1405 = vst.msk [vmem:[%s2204_s25 + $0x100] sm:$0xf] %vm1340_vm0, %v1730_v20  ;;  %1406 = vst.msk [vmem:[%s2204_s25 + $0x104] sm:$0xf] %vm1340_vm0, %v1731_v21  ;;  %v1944_v32 = vunpack.c.l.bf16 %v2086_v19  ;;  %v1945_v33 = vunpack.c.h.bf16 %v2086_v19 }
  0x6c   : > { %1407 = vst.msk [vmem:[%s2204_s25 + $0x108] sm:$0xf] %vm1340_vm0, %v1732_v22  ;;  %1408 = vst.msk [vmem:[%s2204_s25 + $0x10c] sm:$0xf] %vm1340_vm0, %v1733_v23  ;;  %v1948_v34 = vunpack.c.l.bf16 %v2087_v24  ;;  %v1949_v35 = vunpack.c.h.bf16 %v2087_v24  ;;  %v1952_v36 = vunpack.c.l.bf16 %v2088_v25  ;;  %v1953_v37 = vunpack.c.h.bf16 %v2088_v25 }
  0x6d   : > { %1409 = vst.msk [vmem:[%s2204_s25 + $0x110] sm:$0xf] %vm1340_vm0, %v1734_v26  ;;  %1410 = vst.msk [vmem:[%s2204_s25 + $0x114] sm:$0xf] %vm1340_vm0, %v1735_v27  ;;  %v509_v38 = vmul.f32 %v1940_v30, %v2172_v0  ;;  %v510_v39 = vmul.f32 %v1941_v31, %v2172_v0  ;;  %v511_v40 = vmul.f32 %v1944_v32, %v2172_v0  ;;  %v1956_v10 = vunpack.c.l.bf16 %v2089_v61  ;;  %v2566_v27 = vld [vmem:[%s2777_s2] ss:$0 sm:$0xff] }
  0x6e   : > { %1411 = vst.msk [vmem:[%s2204_s25 + $0x118] sm:$0xf] %vm1340_vm0, %v1736_v28  ;;  %1412 = vst.msk [vmem:[%s2204_s25 + $0x11c] sm:$0xf] %vm1340_vm0, %v1737_v29  ;;  %v512_v41 = vmul.f32 %v1945_v33, %v2172_v0  ;;  %v513_v42 = vmul.f32 %v1948_v34, %v2172_v0  ;;  %v514_v43 = vmul.f32 %v1949_v35, %v2172_v0  ;;  %v1957_v11 = vunpack.c.h.bf16 %v2089_v61 }
  0x6f   : > { %v515_v44 = vmul.f32 %v1952_v36, %v2172_v0  ;;  %v516_v45 = vmul.f32 %v1953_v37, %v2172_v0  ;;  %v644_v46 = vadd.f32 %v2181_v9, %v509_v38  ;;  %v645_v47 = vadd.f32 %v2181_v9, %v510_v39 }
  0x70   : > { %v646_v48 = vadd.f32 %v2181_v9, %v511_v40  ;;  %v647_v49 = vadd.f32 %v2181_v9, %v512_v41  ;;  %v648_v50 = vadd.f32 %v2181_v9, %v513_v42  ;;  %v649_v51 = vadd.f32 %v2181_v9, %v514_v43 }
  0x71   : > { %v650_v52 = vadd.f32 %v2181_v9, %v515_v44  ;;  %v651_v53 = vadd.f32 %v2181_v9, %v516_v45  ;;  %v772_v0 = vmax.f32 %v644_v46, 0.0  ;;  %v773_v54 = vmax.f32 %v645_v47, 0.0  ;;  %v2093_v44 = vld [vmem:[%s2167_s18 + $0x160] sm:$0xff]   ;;  %v2094_v45 = vld [vmem:[%s2167_s18 + $0x168] sm:$0xff]  }
  0x72   : > { %v774_v55 = vmax.f32 %v646_v48, 0.0  ;;  %v775_v56 = vmax.f32 %v647_v49, 0.0  ;;  %v776_v57 = vmax.f32 %v648_v50, 0.0  ;;  %v777_v58 = vmax.f32 %v649_v51, 0.0  ;;  %v2095_v50 = vld [vmem:[%s2167_s18 + $0x170] sm:$0xff]   ;;  %v2096_v51 = vld [vmem:[%s2167_s18 + $0x178] sm:$0xff]  }
  0x73   : > { %v778_v59 = vmax.f32 %v650_v52, 0.0  ;;  %v779_v60 = vmax.f32 %v651_v53, 0.0  ;;  %v1738_v63 = vpack.c.bf16 %v772_v0, %v772_v0  ;;  %v1739_v1 = vpack.c.bf16 %v773_v54, %v773_v54 }
  0x74   : > { %v1740_v2 = vpack.c.bf16 %v774_v55, %v774_v55  ;;  %v1741_v9 = vpack.c.bf16 %v775_v56, %v775_v56  ;;  %v1742_v5 = vpack.c.bf16 %v776_v57, %v776_v57  ;;  %v1743_v6 = vpack.c.bf16 %v777_v58, %v777_v58 }
  0x75   : > { %v1744_v7 = vpack.c.bf16 %v778_v59, %v778_v59  ;;  %v1745_v8 = vpack.c.bf16 %v779_v60, %v779_v60  ;;  %1413 = vst.msk [vmem:[%s2204_s25 + $0x120] sm:$0xf] %vm1340_vm0, %v1738_v63  ;;  %1414 = vst.msk [vmem:[%s2204_s25 + $0x124] sm:$0xf] %vm1340_vm0, %v1739_v1  ;;  %v1960_v12 = vunpack.c.l.bf16 %v2090_v62  ;;  %v1961_v13 = vunpack.c.h.bf16 %v2090_v62 }
  0x76   : > { %1415 = vst.msk [vmem:[%s2204_s25 + $0x128] sm:$0xf] %vm1340_vm0, %v1740_v2  ;;  %1416 = vst.msk [vmem:[%s2204_s25 + $0x12c] sm:$0xf] %vm1340_vm0, %v1741_v9  ;;  %v1964_v14 = vunpack.c.l.bf16 %v2091_v3  ;;  %v1965_v15 = vunpack.c.h.bf16 %v2091_v3  ;;  %v1968_v16 = vunpack.c.l.bf16 %v2092_v4  ;;  %v1969_v17 = vunpack.c.h.bf16 %v2092_v4 }
  0x77   : > { %1417 = vst.msk [vmem:[%s2204_s25 + $0x130] sm:$0xf] %vm1340_vm0, %v1742_v5  ;;  %1418 = vst.msk [vmem:[%s2204_s25 + $0x134] sm:$0xf] %vm1340_vm0, %v1743_v6  ;;  %v517_v19 = vmul.f32 %v2553_v18, %v1956_v10  ;;  %v518_v20 = vmul.f32 %v2553_v18, %v1957_v11  ;;  %v519_v21 = vmul.f32 %v2553_v18, %v1960_v12  ;;  %v1972_v55 = vunpack.c.l.bf16 %v2093_v44 }
  0x78   : > { %1419 = vst.msk [vmem:[%s2204_s25 + $0x138] sm:$0xf] %vm1340_vm0, %v1744_v7  ;;  %1420 = vst.msk [vmem:[%s2204_s25 + $0x13c] sm:$0xf] %vm1340_vm0, %v1745_v8  ;;  %v520_v22 = vmul.f32 %v2553_v18, %v1961_v13  ;;  %v521_v23 = vmul.f32 %v2553_v18, %v1964_v14  ;;  %v522_v24 = vmul.f32 %v2553_v18, %v1965_v15  ;;  %v1973_v56 = vunpack.c.h.bf16 %v2093_v44 }
  0x79   : > { %v523_v25 = vmul.f32 %v2553_v18, %v1968_v16  ;;  %v524_v26 = vmul.f32 %v2553_v18, %v1969_v17  ;;  %v652_v28 = vadd.f32 %v2566_v27, %v517_v19  ;;  %v653_v29 = vadd.f32 %v2566_v27, %v518_v20 }
  0x7a   : > { %v654_v30 = vadd.f32 %v2566_v27, %v519_v21  ;;  %v655_v31 = vadd.f32 %v2566_v27, %v520_v22  ;;  %v656_v32 = vadd.f32 %v2566_v27, %v521_v23  ;;  %v657_v33 = vadd.f32 %v2566_v27, %v522_v24 }
  0x7b   : > { %v658_v34 = vadd.f32 %v2566_v27, %v523_v25  ;;  %v659_v35 = vadd.f32 %v2566_v27, %v524_v26  ;;  %v780_v36 = vmax.f32 %v652_v28, 0.0  ;;  %v781_v37 = vmax.f32 %v653_v29, 0.0  ;;  %v2097_v25 = vld [vmem:[%s2167_s18 + $0x180] sm:$0xff]   ;;  %v2098_v26 = vld [vmem:[%s2167_s18 + $0x188] sm:$0xff]  }
  0x7c   : > { %v782_v38 = vmax.f32 %v654_v30, 0.0  ;;  %v783_v39 = vmax.f32 %v655_v31, 0.0  ;;  %v784_v40 = vmax.f32 %v656_v32, 0.0  ;;  %v785_v41 = vmax.f32 %v657_v33, 0.0  ;;  %v2099_v32 = vld [vmem:[%s2167_s18 + $0x190] sm:$0xff]   ;;  %v2100_v33 = vld [vmem:[%s2167_s18 + $0x198] sm:$0xff]  }
  0x7d   : > { %v786_v42 = vmax.f32 %v658_v34, 0.0  ;;  %v787_v43 = vmax.f32 %v659_v35, 0.0  ;;  %v1746_v46 = vpack.c.bf16 %v780_v36, %v780_v36  ;;  %v1747_v47 = vpack.c.bf16 %v781_v37, %v781_v37 }
  0x7e   : > { %v1748_v48 = vpack.c.bf16 %v782_v38, %v782_v38  ;;  %v1749_v49 = vpack.c.bf16 %v783_v39, %v783_v39  ;;  %v1750_v52 = vpack.c.bf16 %v784_v40, %v784_v40  ;;  %v1751_v53 = vpack.c.bf16 %v785_v41, %v785_v41 }
  0x7f   : > { %v1752_v0 = vpack.c.bf16 %v786_v42, %v786_v42  ;;  %v1753_v54 = vpack.c.bf16 %v787_v43, %v787_v43  ;;  %1421 = vst.msk [vmem:[%s2204_s25 + $0x140] sm:$0xf] %vm1340_vm0, %v1746_v46  ;;  %1422 = vst.msk [vmem:[%s2204_s25 + $0x144] sm:$0xf] %vm1340_vm0, %v1747_v47  ;;  %v1976_v57 = vunpack.c.l.bf16 %v2094_v45  ;;  %v1977_v58 = vunpack.c.h.bf16 %v2094_v45 }
  0x80   : > { %1423 = vst.msk [vmem:[%s2204_s25 + $0x148] sm:$0xf] %vm1340_vm0, %v1748_v48  ;;  %1424 = vst.msk [vmem:[%s2204_s25 + $0x14c] sm:$0xf] %vm1340_vm0, %v1749_v49  ;;  %v1980_v59 = vunpack.c.l.bf16 %v2095_v50  ;;  %v1981_v60 = vunpack.c.h.bf16 %v2095_v50  ;;  %v1984_v61 = vunpack.c.l.bf16 %v2096_v51  ;;  %v1985_v62 = vunpack.c.h.bf16 %v2096_v51 }
  0x81   : > { %1425 = vst.msk [vmem:[%s2204_s25 + $0x150] sm:$0xf] %vm1340_vm0, %v1750_v52  ;;  %1426 = vst.msk [vmem:[%s2204_s25 + $0x154] sm:$0xf] %vm1340_vm0, %v1751_v53  ;;  %v525_v63 = vmul.f32 %v2553_v18, %v1972_v55  ;;  %v526_v1 = vmul.f32 %v2553_v18, %v1973_v56  ;;  %v527_v2 = vmul.f32 %v2553_v18, %v1976_v57  ;;  %v1988_v38 = vunpack.c.l.bf16 %v2097_v25 }
  0x82   : > { %1427 = vst.msk [vmem:[%s2204_s25 + $0x158] sm:$0xf] %vm1340_vm0, %v1752_v0  ;;  %1428 = vst.msk [vmem:[%s2204_s25 + $0x15c] sm:$0xf] %vm1340_vm0, %v1753_v54  ;;  %v528_v9 = vmul.f32 %v2553_v18, %v1977_v58  ;;  %v529_v3 = vmul.f32 %v2553_v18, %v1980_v59  ;;  %v530_v4 = vmul.f32 %v2553_v18, %v1981_v60  ;;  %v1989_v39 = vunpack.c.h.bf16 %v2097_v25 }
  0x83   : > { %v531_v5 = vmul.f32 %v2553_v18, %v1984_v61  ;;  %v532_v6 = vmul.f32 %v2553_v18, %v1985_v62  ;;  %v660_v7 = vadd.f32 %v2566_v27, %v525_v63  ;;  %v661_v8 = vadd.f32 %v2566_v27, %v526_v1 }
  0x84   : > { %v662_v10 = vadd.f32 %v2566_v27, %v527_v2  ;;  %v663_v11 = vadd.f32 %v2566_v27, %v528_v9  ;;  %v664_v12 = vadd.f32 %v2566_v27, %v529_v3  ;;  %v665_v13 = vadd.f32 %v2566_v27, %v530_v4 }
  0x85   : > { %v666_v14 = vadd.f32 %v2566_v27, %v531_v5  ;;  %v667_v15 = vadd.f32 %v2566_v27, %v532_v6  ;;  %v788_v16 = vmax.f32 %v660_v7, 0.0  ;;  %v789_v17 = vmax.f32 %v661_v8, 0.0  ;;  %v2101_v5 = vld [vmem:[%s2167_s18 + $0x1a0] sm:$0xff]   ;;  %v2102_v6 = vld [vmem:[%s2167_s18 + $0x1a8] sm:$0xff]  }
  0x86   : > { %v790_v19 = vmax.f32 %v662_v10, 0.0  ;;  %v791_v20 = vmax.f32 %v663_v11, 0.0  ;;  %v792_v21 = vmax.f32 %v664_v12, 0.0  ;;  %v793_v22 = vmax.f32 %v665_v13, 0.0  ;;  %v2103_v12 = vld [vmem:[%s2167_s18 + $0x1b0] sm:$0xff]   ;;  %v2104_v13 = vld [vmem:[%s2167_s18 + $0x1b8] sm:$0xff]  }
  0x87   : > { %v794_v23 = vmax.f32 %v666_v14, 0.0  ;;  %v795_v24 = vmax.f32 %v667_v15, 0.0  ;;  %v1754_v28 = vpack.c.bf16 %v788_v16, %v788_v16  ;;  %v1755_v29 = vpack.c.bf16 %v789_v17, %v789_v17 }
  0x88   : > { %v1756_v30 = vpack.c.bf16 %v790_v19, %v790_v19  ;;  %v1757_v31 = vpack.c.bf16 %v791_v20, %v791_v20  ;;  %v1758_v34 = vpack.c.bf16 %v792_v21, %v792_v21  ;;  %v1759_v35 = vpack.c.bf16 %v793_v22, %v793_v22 }
  0x89   : > { %v1760_v36 = vpack.c.bf16 %v794_v23, %v794_v23  ;;  %v1761_v37 = vpack.c.bf16 %v795_v24, %v795_v24  ;;  %1429 = vst.msk [vmem:[%s2204_s25 + $0x160] sm:$0xf] %vm1340_vm0, %v1754_v28  ;;  %1430 = vst.msk [vmem:[%s2204_s25 + $0x164] sm:$0xf] %vm1340_vm0, %v1755_v29  ;;  %v1992_v40 = vunpack.c.l.bf16 %v2098_v26  ;;  %v1993_v41 = vunpack.c.h.bf16 %v2098_v26 }
  0x8a   : > { %1431 = vst.msk [vmem:[%s2204_s25 + $0x168] sm:$0xf] %vm1340_vm0, %v1756_v30  ;;  %1432 = vst.msk [vmem:[%s2204_s25 + $0x16c] sm:$0xf] %vm1340_vm0, %v1757_v31  ;;  %v1996_v42 = vunpack.c.l.bf16 %v2099_v32  ;;  %v1997_v43 = vunpack.c.h.bf16 %v2099_v32  ;;  %v2000_v44 = vunpack.c.l.bf16 %v2100_v33  ;;  %v2001_v45 = vunpack.c.h.bf16 %v2100_v33 }
  0x8b   : > { %1433 = vst.msk [vmem:[%s2204_s25 + $0x170] sm:$0xf] %vm1340_vm0, %v1758_v34  ;;  %1434 = vst.msk [vmem:[%s2204_s25 + $0x174] sm:$0xf] %vm1340_vm0, %v1759_v35  ;;  %v533_v46 = vmul.f32 %v2553_v18, %v1988_v38  ;;  %v534_v47 = vmul.f32 %v2553_v18, %v1989_v39  ;;  %v535_v48 = vmul.f32 %v2553_v18, %v1992_v40  ;;  %v2004_v19 = vunpack.c.l.bf16 %v2101_v5 }
  0x8c   : > { %1435 = vst.msk [vmem:[%s2204_s25 + $0x178] sm:$0xf] %vm1340_vm0, %v1760_v36  ;;  %1436 = vst.msk [vmem:[%s2204_s25 + $0x17c] sm:$0xf] %vm1340_vm0, %v1761_v37  ;;  %v536_v49 = vmul.f32 %v2553_v18, %v1993_v41  ;;  %v537_v50 = vmul.f32 %v2553_v18, %v1996_v42  ;;  %v538_v51 = vmul.f32 %v2553_v18, %v1997_v43  ;;  %v2005_v20 = vunpack.c.h.bf16 %v2101_v5 }
  0x8d   : > { %v539_v52 = vmul.f32 %v2553_v18, %v2000_v44  ;;  %v540_v53 = vmul.f32 %v2553_v18, %v2001_v45  ;;  %v668_v0 = vadd.f32 %v2566_v27, %v533_v46  ;;  %v669_v54 = vadd.f32 %v2566_v27, %v534_v47 }
  0x8e   : > { %v670_v55 = vadd.f32 %v2566_v27, %v535_v48  ;;  %v671_v56 = vadd.f32 %v2566_v27, %v536_v49  ;;  %v672_v57 = vadd.f32 %v2566_v27, %v537_v50  ;;  %v673_v58 = vadd.f32 %v2566_v27, %v538_v51 }
  0x8f   : > { %v674_v59 = vadd.f32 %v2566_v27, %v539_v52  ;;  %v675_v60 = vadd.f32 %v2566_v27, %v540_v53  ;;  %v796_v61 = vmax.f32 %v668_v0, 0.0  ;;  %v797_v62 = vmax.f32 %v669_v54, 0.0  ;;  %v2105_v52 = vld [vmem:[%s2167_s18 + $0x1c0] sm:$0xff]   ;;  %v2106_v53 = vld [vmem:[%s2167_s18 + $0x1c8] sm:$0xff]  }
  0x90   : > { %v798_v63 = vmax.f32 %v670_v55, 0.0  ;;  %v799_v1 = vmax.f32 %v671_v56, 0.0  ;;  %v800_v2 = vmax.f32 %v672_v57, 0.0  ;;  %v801_v9 = vmax.f32 %v673_v58, 0.0  ;;  %v2107_v57 = vld [vmem:[%s2167_s18 + $0x1d0] sm:$0xff]   ;;  %v2108_v58 = vld [vmem:[%s2167_s18 + $0x1d8] sm:$0xff]  }
  0x91   : > { %v802_v3 = vmax.f32 %v674_v59, 0.0  ;;  %v803_v4 = vmax.f32 %v675_v60, 0.0  ;;  %v1762_v7 = vpack.c.bf16 %v796_v61, %v796_v61  ;;  %v1763_v8 = vpack.c.bf16 %v797_v62, %v797_v62 }
  0x92   : > { %v1764_v10 = vpack.c.bf16 %v798_v63, %v798_v63  ;;  %v1765_v11 = vpack.c.bf16 %v799_v1, %v799_v1  ;;  %v1766_v14 = vpack.c.bf16 %v800_v2, %v800_v2  ;;  %v1767_v15 = vpack.c.bf16 %v801_v9, %v801_v9 }
  0x93   : > { %v1768_v16 = vpack.c.bf16 %v802_v3, %v802_v3  ;;  %v1769_v17 = vpack.c.bf16 %v803_v4, %v803_v4  ;;  %1437 = vst.msk [vmem:[%s2204_s25 + $0x180] sm:$0xf] %vm1340_vm0, %v1762_v7  ;;  %1438 = vst.msk [vmem:[%s2204_s25 + $0x184] sm:$0xf] %vm1340_vm0, %v1763_v8  ;;  %v2008_v21 = vunpack.c.l.bf16 %v2102_v6  ;;  %v2009_v22 = vunpack.c.h.bf16 %v2102_v6 }
  0x94   : > { %1439 = vst.msk [vmem:[%s2204_s25 + $0x188] sm:$0xf] %vm1340_vm0, %v1764_v10  ;;  %1440 = vst.msk [vmem:[%s2204_s25 + $0x18c] sm:$0xf] %vm1340_vm0, %v1765_v11  ;;  %v2012_v23 = vunpack.c.l.bf16 %v2103_v12  ;;  %v2013_v24 = vunpack.c.h.bf16 %v2103_v12  ;;  %v2016_v25 = vunpack.c.l.bf16 %v2104_v13  ;;  %v2017_v26 = vunpack.c.h.bf16 %v2104_v13 }
  0x95   : > { %1441 = vst.msk [vmem:[%s2204_s25 + $0x190] sm:$0xf] %vm1340_vm0, %v1766_v14  ;;  %1442 = vst.msk [vmem:[%s2204_s25 + $0x194] sm:$0xf] %vm1340_vm0, %v1767_v15  ;;  %v541_v28 = vmul.f32 %v2553_v18, %v2004_v19  ;;  %v542_v29 = vmul.f32 %v2553_v18, %v2005_v20  ;;  %v543_v30 = vmul.f32 %v2553_v18, %v2008_v21  ;;  %v2020_v63 = vunpack.c.l.bf16 %v2105_v52 }
  0x96   : > { %1443 = vst.msk [vmem:[%s2204_s25 + $0x198] sm:$0xf] %vm1340_vm0, %v1768_v16  ;;  %1444 = vst.msk [vmem:[%s2204_s25 + $0x19c] sm:$0xf] %vm1340_vm0, %v1769_v17  ;;  %v544_v31 = vmul.f32 %v2553_v18, %v2009_v22  ;;  %v545_v32 = vmul.f32 %v2553_v18, %v2012_v23  ;;  %v546_v33 = vmul.f32 %v2553_v18, %v2013_v24  ;;  %v2021_v1 = vunpack.c.h.bf16 %v2105_v52 }
  0x97   : > { %v547_v34 = vmul.f32 %v2553_v18, %v2016_v25  ;;  %v548_v35 = vmul.f32 %v2553_v18, %v2017_v26  ;;  %v676_v36 = vadd.f32 %v2566_v27, %v541_v28  ;;  %v677_v37 = vadd.f32 %v2566_v27, %v542_v29 }
  0x98   : > { %v678_v38 = vadd.f32 %v2566_v27, %v543_v30  ;;  %v679_v39 = vadd.f32 %v2566_v27, %v544_v31  ;;  %v680_v40 = vadd.f32 %v2566_v27, %v545_v32  ;;  %v681_v41 = vadd.f32 %v2566_v27, %v546_v33 }
  0x99   : > { %v682_v42 = vadd.f32 %v2566_v27, %v547_v34  ;;  %v683_v43 = vadd.f32 %v2566_v27, %v548_v35  ;;  %v804_v44 = vmax.f32 %v676_v36, 0.0  ;;  %v805_v45 = vmax.f32 %v677_v37, 0.0  ;;  %v2109_v34 = vld [vmem:[%s2167_s18 + $0x1e0] sm:$0xff]   ;;  %v2110_v35 = vld [vmem:[%s2167_s18 + $0x1e8] sm:$0xff]  }
  0x9a   : > { %v806_v46 = vmax.f32 %v678_v38, 0.0  ;;  %v807_v47 = vmax.f32 %v679_v39, 0.0  ;;  %v808_v48 = vmax.f32 %v680_v40, 0.0  ;;  %v809_v49 = vmax.f32 %v681_v41, 0.0  ;;  %v2111_v40 = vld [vmem:[%s2167_s18 + $0x1f0] sm:$0xff]   ;;  %v2112_v41 = vld [vmem:[%s2167_s18 + $0x1f8] sm:$0xff]  }
  0x9b   : > { %v810_v50 = vmax.f32 %v682_v42, 0.0  ;;  %v811_v51 = vmax.f32 %v683_v43, 0.0  ;;  %v1770_v0 = vpack.c.bf16 %v804_v44, %v804_v44  ;;  %v1771_v54 = vpack.c.bf16 %v805_v45, %v805_v45 }
  0x9c   : > { %v1772_v55 = vpack.c.bf16 %v806_v46, %v806_v46  ;;  %v1773_v56 = vpack.c.bf16 %v807_v47, %v807_v47  ;;  %v1774_v59 = vpack.c.bf16 %v808_v48, %v808_v48  ;;  %v1775_v60 = vpack.c.bf16 %v809_v49, %v809_v49 }
  0x9d   : > { %v1776_v61 = vpack.c.bf16 %v810_v50, %v810_v50  ;;  %v1777_v62 = vpack.c.bf16 %v811_v51, %v811_v51  ;;  %1445 = vst.msk [vmem:[%s2204_s25 + $0x1a0] sm:$0xf] %vm1340_vm0, %v1770_v0  ;;  %1446 = vst.msk [vmem:[%s2204_s25 + $0x1a4] sm:$0xf] %vm1340_vm0, %v1771_v54  ;;  %v2024_v2 = vunpack.c.l.bf16 %v2106_v53  ;;  %v2025_v9 = vunpack.c.h.bf16 %v2106_v53 }
  0x9e   : > { %1447 = vst.msk [vmem:[%s2204_s25 + $0x1a8] sm:$0xf] %vm1340_vm0, %v1772_v55  ;;  %1448 = vst.msk [vmem:[%s2204_s25 + $0x1ac] sm:$0xf] %vm1340_vm0, %v1773_v56  ;;  %v2028_v3 = vunpack.c.l.bf16 %v2107_v57  ;;  %v2029_v4 = vunpack.c.h.bf16 %v2107_v57  ;;  %v2032_v5 = vunpack.c.l.bf16 %v2108_v58  ;;  %v2033_v6 = vunpack.c.h.bf16 %v2108_v58 }
  0x9f   : > { %1449 = vst.msk [vmem:[%s2204_s25 + $0x1b0] sm:$0xf] %vm1340_vm0, %v1774_v59  ;;  %1450 = vst.msk [vmem:[%s2204_s25 + $0x1b4] sm:$0xf] %vm1340_vm0, %v1775_v60  ;;  %v549_v7 = vmul.f32 %v2553_v18, %v2020_v63  ;;  %v550_v8 = vmul.f32 %v2553_v18, %v2021_v1  ;;  %v551_v10 = vmul.f32 %v2553_v18, %v2024_v2  ;;  %v2036_v46 = vunpack.c.l.bf16 %v2109_v34 }
  0xa0   : > { %1451 = vst.msk [vmem:[%s2204_s25 + $0x1b8] sm:$0xf] %vm1340_vm0, %v1776_v61  ;;  %1452 = vst.msk [vmem:[%s2204_s25 + $0x1bc] sm:$0xf] %vm1340_vm0, %v1777_v62  ;;  %v552_v11 = vmul.f32 %v2553_v18, %v2025_v9  ;;  %v553_v12 = vmul.f32 %v2553_v18, %v2028_v3  ;;  %v554_v13 = vmul.f32 %v2553_v18, %v2029_v4  ;;  %v2037_v47 = vunpack.c.h.bf16 %v2109_v34 }
  0xa1   : > { %v555_v14 = vmul.f32 %v2553_v18, %v2032_v5  ;;  %v556_v15 = vmul.f32 %v2553_v18, %v2033_v6  ;;  %v684_v16 = vadd.f32 %v2566_v27, %v549_v7  ;;  %v685_v17 = vadd.f32 %v2566_v27, %v550_v8 }
  0xa2   : > { %v686_v19 = vadd.f32 %v2566_v27, %v551_v10  ;;  %v687_v20 = vadd.f32 %v2566_v27, %v552_v11  ;;  %v688_v21 = vadd.f32 %v2566_v27, %v553_v12  ;;  %v689_v22 = vadd.f32 %v2566_v27, %v554_v13 }
  0xa3   : > { %v690_v23 = vadd.f32 %v2566_v27, %v555_v14  ;;  %v691_v24 = vadd.f32 %v2566_v27, %v556_v15  ;;  %v812_v25 = vmax.f32 %v684_v16, 0.0  ;;  %v813_v26 = vmax.f32 %v685_v17, 0.0 }
  0xa4   : > { %v814_v28 = vmax.f32 %v686_v19, 0.0  ;;  %v815_v29 = vmax.f32 %v687_v20, 0.0  ;;  %v816_v30 = vmax.f32 %v688_v21, 0.0  ;;  %v817_v31 = vmax.f32 %v689_v22, 0.0 }
  0xa5   : > { %v818_v32 = vmax.f32 %v690_v23, 0.0  ;;  %v819_v33 = vmax.f32 %v691_v24, 0.0  ;;  %v1778_v36 = vpack.c.bf16 %v812_v25, %v812_v25  ;;  %v1779_v37 = vpack.c.bf16 %v813_v26, %v813_v26 }
  0xa6   : > { %v1780_v38 = vpack.c.bf16 %v814_v28, %v814_v28  ;;  %v1781_v39 = vpack.c.bf16 %v815_v29, %v815_v29  ;;  %v1782_v42 = vpack.c.bf16 %v816_v30, %v816_v30  ;;  %v1783_v43 = vpack.c.bf16 %v817_v31, %v817_v31 }
  0xa7   : > { %v1784_v44 = vpack.c.bf16 %v818_v32, %v818_v32  ;;  %v1785_v45 = vpack.c.bf16 %v819_v33, %v819_v33  ;;  %1453 = vst.msk [vmem:[%s2204_s25 + $0x1c0] sm:$0xf] %vm1340_vm0, %v1778_v36  ;;  %1454 = vst.msk [vmem:[%s2204_s25 + $0x1c4] sm:$0xf] %vm1340_vm0, %v1779_v37  ;;  %v2040_v48 = vunpack.c.l.bf16 %v2110_v35  ;;  %v2041_v49 = vunpack.c.h.bf16 %v2110_v35 }
  0xa8   : > { %1455 = vst.msk [vmem:[%s2204_s25 + $0x1c8] sm:$0xf] %vm1340_vm0, %v1780_v38  ;;  %1456 = vst.msk [vmem:[%s2204_s25 + $0x1cc] sm:$0xf] %vm1340_vm0, %v1781_v39  ;;  %v2044_v50 = vunpack.c.l.bf16 %v2111_v40  ;;  %v2045_v51 = vunpack.c.h.bf16 %v2111_v40  ;;  %v2048_v52 = vunpack.c.l.bf16 %v2112_v41  ;;  %v2049_v53 = vunpack.c.h.bf16 %v2112_v41 }
  0xa9   : > { %1457 = vst.msk [vmem:[%s2204_s25 + $0x1d0] sm:$0xf] %vm1340_vm0, %v1782_v42  ;;  %1458 = vst.msk [vmem:[%s2204_s25 + $0x1d4] sm:$0xf] %vm1340_vm0, %v1783_v43  ;;  %v557_v0 = vmul.f32 %v2553_v18, %v2036_v46  ;;  %v558_v54 = vmul.f32 %v2553_v18, %v2037_v47  ;;  %v559_v55 = vmul.f32 %v2553_v18, %v2040_v48 }
  0xaa   : > { %1459 = vst.msk [vmem:[%s2204_s25 + $0x1d8] sm:$0xf] %vm1340_vm0, %v1784_v44  ;;  %1460 = vst.msk [vmem:[%s2204_s25 + $0x1dc] sm:$0xf] %vm1340_vm0, %v1785_v45  ;;  %v560_v56 = vmul.f32 %v2553_v18, %v2041_v49  ;;  %v561_v57 = vmul.f32 %v2553_v18, %v2044_v50  ;;  %v562_v58 = vmul.f32 %v2553_v18, %v2045_v51 }
  0xab   : > { %v563_v59 = vmul.f32 %v2553_v18, %v2048_v52  ;;  %v564_v60 = vmul.f32 %v2553_v18, %v2049_v53  ;;  %v692_v61 = vadd.f32 %v2566_v27, %v557_v0  ;;  %v693_v62 = vadd.f32 %v2566_v27, %v558_v54 }
  0xac   : > { %v694_v63 = vadd.f32 %v2566_v27, %v559_v55  ;;  %v695_v1 = vadd.f32 %v2566_v27, %v560_v56  ;;  %v696_v2 = vadd.f32 %v2566_v27, %v561_v57  ;;  %v697_v9 = vadd.f32 %v2566_v27, %v562_v58 }
  0xad   : > { %v698_v3 = vadd.f32 %v2566_v27, %v563_v59  ;;  %v699_v4 = vadd.f32 %v2566_v27, %v564_v60  ;;  %v820_v5 = vmax.f32 %v692_v61, 0.0  ;;  %v821_v6 = vmax.f32 %v693_v62, 0.0 }
  0xae   : > { %v822_v18 = vmax.f32 %v694_v63, 0.0  ;;  %v823_v7 = vmax.f32 %v695_v1, 0.0  ;;  %v824_v8 = vmax.f32 %v696_v2, 0.0  ;;  %v825_v10 = vmax.f32 %v697_v9, 0.0 }
  0xaf   : > { %v826_v11 = vmax.f32 %v698_v3, 0.0  ;;  %v827_v12 = vmax.f32 %v699_v4, 0.0  ;;  %v1786_v13 = vpack.c.bf16 %v820_v5, %v820_v5  ;;  %v1787_v14 = vpack.c.bf16 %v821_v6, %v821_v6 }
  0xb0   : > { %v1788_v15 = vpack.c.bf16 %v822_v18, %v822_v18  ;;  %v1789_v27 = vpack.c.bf16 %v823_v7, %v823_v7  ;;  %v1790_v16 = vpack.c.bf16 %v824_v8, %v824_v8  ;;  %v1791_v17 = vpack.c.bf16 %v825_v10, %v825_v10 }
  0xb1   : > { %v1792_v19 = vpack.c.bf16 %v826_v11, %v826_v11  ;;  %v1793_v20 = vpack.c.bf16 %v827_v12, %v827_v12  ;;  %1461 = vst.msk [vmem:[%s2204_s25 + $0x1e0] sm:$0xf] %vm1340_vm0, %v1786_v13  ;;  %1462 = vst.msk [vmem:[%s2204_s25 + $0x1e4] sm:$0xf] %vm1340_vm0, %v1787_v14 }
  0xb2   : > { %1463 = vst.msk [vmem:[%s2204_s25 + $0x1e8] sm:$0xf] %vm1340_vm0, %v1788_v15  ;;  %1464 = vst.msk [vmem:[%s2204_s25 + $0x1ec] sm:$0xf] %vm1340_vm0, %v1789_v27 }
  0xb3   : > { %1465 = vst.msk [vmem:[%s2204_s25 + $0x1f0] sm:$0xf] %vm1340_vm0, %v1790_v16  ;;  %1466 = vst.msk [vmem:[%s2204_s25 + $0x1f4] sm:$0xf] %vm1340_vm0, %v1791_v17 }
  0xb4   : > { %1467 = vst.msk [vmem:[%s2204_s25 + $0x1f8] sm:$0xf] %vm1340_vm0, %v1792_v19  ;;  %1468 = vst.msk [vmem:[%s2204_s25 + $0x1fc] sm:$0xf] %vm1340_vm0, %v1793_v20 }
  0xb5 PF: > { %s13_s12 = sadd.s32 1, %s2129_s12  }
  0xb6   : > { %p10_p4 = scmp.ge.s32.totalorder %s13_s12, 4  }
  0xb8   :  { %12 = sbr.rel (!%p10_p4) target bundleno = 1 (0x1), region = 62 }

// kernel: generator_forward.15
= control target key start
LH: loop header
LB: loop body
LE: loop exit
PB: predicated region body
PF: predicated region fallthrough
CT: control target
= control target key end

     0   :  { %s3761_s15 = smov 0   ;;  %s3763_s16 = smov 0   ;;  %s4612_s0 = inlined_call_operand.vmem [shape: bf16[4,512,512], index: 0, kind: input, shape index: {}]   ;;  %s4613_s1 = inlined_call_operand.vmem [shape: bf16[4,512,64], index: 1, kind: input, shape index: {}]   ;;  %s4614_s2 = inlined_call_operand.vmem [shape: bf16[4,512,64], index: 2, kind: output, shape index: {0}]   ;;  %s4615_s3 = inlined_call_operand.vmem [shape: f32[4,1,64], index: 3, kind: output, shape index: {1}]   ;;  %s4616_s4 = inlined_call_operand.vmem [shape: f32[4,1,64], index: 4, kind: output, shape index: {2}]  }
   0x1   :  { %s3765_s17 = smov 0  }
   0x2 LB: > { %s41_s18 = sadd.s32 1, %s3728_s16  ;;  %p3160_p0 = scmp.ge.s32.totalorder %s3732_s17, 1  ;;  %s3732_s17 = sphi %s3765_s17, %s15_s17   ;;  %s3728_s16 = sphi %s3763_s16, %s4618_s16   ;;  %s3724_s15 = sphi %s3761_s15, %s4617_s15  }
   0x3   : > { %p43_p1 = scmp.ge.s32.totalorder %s41_s18, 4  ;;  %p238_p2 = scmp.lt.s32.totalorder %s3732_s17, 5 }
   0x5   : > { %s4620_s18 = smov (%p43_p1, %s41_s18), 0  ;;  %p239_p3 = pnand %p3160_p0, %p238_p2 }
   0x6   : > { %p306_p4 = scmp.lt.s32.totalorder (!%p239_p3), %s3724_s15, 3  ;;  %v3734_v0 = vmov (!%p239_p3), 0   ;;  %vm363_vm0 = vcmask (!%p239_p3), 523264   ;;  %vm2554_vm1 = vcmask (!%p239_p3), 519168   ;;  %vm2228_vm2 = vcmask (!%p239_p3), 516096  }
   0x7   : > { %242 = sbr.rel (%p239_p3) target bundleno = 577 (0x241), region = 28  ;;  %1516 = vmatprep.subr.bf16.mxu0 (!%p239_p3), %v3734_v0  ;;  %1805 = vmatprep.subr.bf16.mxu1 (!%p239_p3), %v3734_v0 }
   0xe   : > { %s4622_s15 = smov (!%p306_p4, %s3724_s15), 3 }
   0xf   : > { %s3394_s19 = sshll.u32 %s4622_s15, 8  ;;  %s3393_s23 = sshll.u32 %s4622_s15, 10 }
  0x10   : > { %s3789_s22 = scalar_lea.vmem %s4613_s1, %s3394_s19  ;;  %s3825_s26 = scalar_lea.vmem %s4612_s0, %s3393_s23 }
  0x11   : > { %v3486_v1 = vld [vmem:[%s3789_s22] sm:$0xff]   ;;  %v3488_v3 = vld [vmem:[%s3789_s22 + $0x8] sm:$0xff]   ;;  %v3490_v5 = vld [vmem:[%s3789_s22 + $0x10] sm:$0xff]   ;;  %s4124_s29 = scalar_lea.vmem %s4614_s2, %s3394_s19  ;;  %s4299_s6 = scalar_lea.vmem %s4615_s3, %s4622_s15 }
  0x12   : > { %v3487_v2 = vld [vmem:[%s3789_s22 + $0x80] sm:$0xff]   ;;  %1517 = vmatpush1.bf16.msra.mxu0 %v3486_v1  ;;  %v3489_v4 = vld [vmem:[%s3789_s22 + $0x88] sm:$0xff]   ;;  %v3491_v6 = vld [vmem:[%s3789_s22 + $0x90] sm:$0xff]   ;;  %s4305_s9 = scalar_lea.vmem %s4616_s4, %s4622_s15 }
  0x13   : > { %1806 = vmatpush1.bf16.msra.mxu1 %v3487_v2  ;;  %1518 = vmatprep.subr.bf16.mxu0 %v3734_v0  ;;  %v3492_v7 = vld [vmem:[%s3789_s22 + $0x18] sm:$0xff]   ;;  %v3494_v9 = vld [vmem:[%s3789_s22 + $0x20] sm:$0xff]   ;;  %v3496_v11 = vld [vmem:[%s3789_s22 + $0x28] sm:$0xff]  }
  0x14   : > { %1807 = vmatprep.subr.bf16.mxu1 %v3734_v0  ;;  %v3493_v8 = vld [vmem:[%s3789_s22 + $0x98] sm:$0xff]   ;;  %v3495_v10 = vld [vmem:[%s3789_s22 + $0xa0] sm:$0xff]   ;;  %v3497_v12 = vld [vmem:[%s3789_s22 + $0xa8] sm:$0xff]  }
  0x15   : > { %v3498_v13 = vld [vmem:[%s3789_s22 + $0x30] sm:$0xff]   ;;  %v3500_v15 = vld [vmem:[%s3789_s22 + $0x38] sm:$0xff]   ;;  %v3502_v17 = vld [vmem:[%s3789_s22 + $0x40] sm:$0xff]  }
  0x16   : > { %1519 = vmatpush1.bf16.msra.mxu0 %v3488_v3  ;;  %v3499_v14 = vld [vmem:[%s3789_s22 + $0xb0] sm:$0xff]   ;;  %v3501_v16 = vld [vmem:[%s3789_s22 + $0xb8] sm:$0xff]   ;;  %v3503_v18 = vld [vmem:[%s3789_s22 + $0xc0] sm:$0xff]  }
  0x17   : > { %1808 = vmatpush1.bf16.msra.mxu1 %v3489_v4  ;;  %1520 = vmatprep.subr.bf16.mxu0 %v3734_v0  ;;  %v3520_v19 = vld [vmem:[%s3825_s26 + $0x4] ss:$16 sps:$4 sm:$0xff]   ;;  %v3504_v20 = vld [vmem:[%s3789_s22 + $0x48] sm:$0xff]   ;;  %v3508_v25 = vld [vmem:[%s3789_s22 + $0x58] sm:$0xff]  }
  0x18   : > { %1809 = vmatprep.subr.bf16.mxu1 %v3734_v0  ;;  %v3523_v21 = vld [vmem:[%s3825_s26 + $0xc] ss:$16 sps:$4 sm:$0xff]   ;;  %1548 = vmatprep.mubr.bf16.mxu0 %v3520_v19  ;;  %v3506_v23 = vld [vmem:[%s3789_s22 + $0x50] sm:$0xff]   ;;  %v3510_v27 = vld [vmem:[%s3789_s22 + $0x60] sm:$0xff]  }
  0x19   : > { %v3505_v22 = vld [vmem:[%s3789_s22 + $0xc8] sm:$0xff]   ;;  %1837 = vmatprep.mubr.bf16.mxu1 %v3523_v21  ;;  %v3507_v24 = vld [vmem:[%s3789_s22 + $0xd0] sm:$0xff]   ;;  %v3509_v26 = vld [vmem:[%s3789_s22 + $0xd8] sm:$0xff]  }
  0x1a   : > { %1521 = vmatpush1.bf16.msra.mxu0 %v3490_v5  ;;  %v3511_v28 = vld [vmem:[%s3789_s22 + $0xe0] sm:$0xff]   ;;  %v3512_v29 = vld [vmem:[%s3789_s22 + $0x68] sm:$0xff]   ;;  %v3514_v31 = vld [vmem:[%s3789_s22 + $0x70] sm:$0xff]  }
  0x1b   : > { %1810 = vmatpush1.bf16.msra.mxu1 %v3491_v6  ;;  %1522 = vmatprep.subr.bf16.mxu0 %v3734_v0  ;;  %v3513_v30 = vld [vmem:[%s3789_s22 + $0xe8] sm:$0xff]   ;;  %v3515_v32 = vld [vmem:[%s3789_s22 + $0xf0] sm:$0xff]   ;;  %v3516_v33 = vld [vmem:[%s3789_s22 + $0x78] sm:$0xff]  }
  0x1c   : > { %1811 = vmatprep.subr.bf16.mxu1 %v3734_v0  ;;  %v3517_v34 = vld [vmem:[%s3789_s22 + $0xf8] sm:$0xff]   ;;  %v3518_v35 = vld [vmem:[%s3825_s26] ss:$16 sps:$4 sm:$0xff]   ;;  %v3524_v37 = vld [vmem:[%s3825_s26 + $0x24] ss:$16 sps:$4 sm:$0xff]  }
  0x1d   : > { %v3521_v36 = vld [vmem:[%s3825_s26 + $0x8] ss:$16 sps:$4 sm:$0xff]   ;;  %v3526_v38 = vld [vmem:[%s3825_s26 + $0x2c] ss:$16 sps:$4 sm:$0xff]   ;;  %v3528_v39 = vld [vmem:[%s3825_s26 + $0x20] ss:$16 sps:$4 sm:$0xff]  }
  0x1e   : > { %1523 = vmatpush1.bf16.msra.mxu0 %v3492_v7  ;;  %v3529_v40 = vld [vmem:[%s3825_s26 + $0x28] ss:$16 sps:$4 sm:$0xff]   ;;  %v3530_v41 = vld [vmem:[%s3825_s26 + $0x44] ss:$16 sps:$4 sm:$0xff]   ;;  %v3532_v42 = vld [vmem:[%s3825_s26 + $0x4c] ss:$16 sps:$4 sm:$0xff]  }
  0x1f   : > { %1812 = vmatpush1.bf16.msra.mxu1 %v3493_v8  ;;  %1524 = vmatprep.subr.bf16.mxu0 %v3734_v0  ;;  %v3534_v43 = vld [vmem:[%s3825_s26 + $0x40] ss:$16 sps:$4 sm:$0xff]   ;;  %v3535_v44 = vld [vmem:[%s3825_s26 + $0x48] ss:$16 sps:$4 sm:$0xff]   ;;  %v3536_v45 = vld [vmem:[%s3825_s26 + $0x64] ss:$16 sps:$4 sm:$0xff]  }
  0x20   : > { %1813 = vmatprep.subr.bf16.mxu1 %v3734_v0  ;;  %v3538_v46 = vld [vmem:[%s3825_s26 + $0x6c] ss:$16 sps:$4 sm:$0xff]   ;;  %v3540_v47 = vld [vmem:[%s3825_s26 + $0x60] ss:$16 sps:$4 sm:$0xff]   ;;  %v3541_v48 = vld [vmem:[%s3825_s26 + $0x68] ss:$16 sps:$4 sm:$0xff]  }
  0x21   : > { %v3542_v49 = vld [vmem:[%s3825_s26 + $0x84] ss:$16 sps:$4 sm:$0xff]   ;;  %v3544_v50 = vld [vmem:[%s3825_s26 + $0x8c] ss:$16 sps:$4 sm:$0xff]   ;;  %v3546_v51 = vld [vmem:[%s3825_s26 + $0x80] ss:$16 sps:$4 sm:$0xff]  }
  0x22   : > { %1525 = vmatpush1.bf16.msra.mxu0 %v3494_v9  ;;  %v3547_v52 = vld [vmem:[%s3825_s26 + $0x88] ss:$16 sps:$4 sm:$0xff]   ;;  %v3548_v53 = vld [vmem:[%s3825_s26 + $0xa4] ss:$16 sps:$4 sm:$0xff]   ;;  %v3550_v54 = vld [vmem:[%s3825_s26 + $0xac] ss:$16 sps:$4 sm:$0xff]  }
  0x23   : > { %1814 = vmatpush1.bf16.msra.mxu1 %v3495_v10  ;;  %1526 = vmatprep.subr.bf16.mxu0 %v3734_v0  ;;  %v3552_v55 = vld [vmem:[%s3825_s26 + $0xa0] ss:$16 sps:$4 sm:$0xff]   ;;  %v3553_v56 = vld [vmem:[%s3825_s26 + $0xa8] ss:$16 sps:$4 sm:$0xff]   ;;  %v3554_v57 = vld [vmem:[%s3825_s26 + $0xc4] ss:$16 sps:$4 sm:$0xff]  }
  0x24   : > { %1815 = vmatprep.subr.bf16.mxu1 %v3734_v0  ;;  %v3556_v58 = vld [vmem:[%s3825_s26 + $0xcc] ss:$16 sps:$4 sm:$0xff]   ;;  %v3558_v59 = vld [vmem:[%s3825_s26 + $0xc0] ss:$16 sps:$4 sm:$0xff]   ;;  %v3559_v60 = vld [vmem:[%s3825_s26 + $0xc8] ss:$16 sps:$4 sm:$0xff]  }
  0x25   : > { %v3560_v61 = vld [vmem:[%s3825_s26 + $0xe4] ss:$16 sps:$4 sm:$0xff]   ;;  %v3562_v62 = vld [vmem:[%s3825_s26 + $0xec] ss:$16 sps:$4 sm:$0xff]   ;;  %v3564_v63 = vld [vmem:[%s3825_s26 + $0xe0] ss:$16 sps:$4 sm:$0xff]  }
  0x26   : > { %1527 = vmatpush1.bf16.msra.mxu0 %v3496_v11  ;;  %v3566_v1 = vld [vmem:[%s3825_s26 + $0x104] ss:$16 sps:$4 sm:$0xff]   ;;  %v3568_v2 = vld [vmem:[%s3825_s26 + $0x10c] ss:$16 sps:$4 sm:$0xff]   ;;  %v3570_v3 = vld [vmem:[%s3825_s26 + $0x100] ss:$16 sps:$4 sm:$0xff]  }
  0x27   : > { %1816 = vmatpush1.bf16.msra.mxu1 %v3497_v12  ;;  %1528 = vmatprep.subr.bf16.mxu0 %v3734_v0  ;;  %v3571_v4 = vld [vmem:[%s3825_s26 + $0x108] ss:$16 sps:$4 sm:$0xff]   ;;  %v3572_v5 = vld [vmem:[%s3825_s26 + $0x124] ss:$16 sps:$4 sm:$0xff]   ;;  %v3574_v6 = vld [vmem:[%s3825_s26 + $0x12c] ss:$16 sps:$4 sm:$0xff]  }
  0x28   : > { %1817 = vmatprep.subr.bf16.mxu1 %v3734_v0  ;;  %v3576_v7 = vld [vmem:[%s3825_s26 + $0x120] ss:$16 sps:$4 sm:$0xff]   ;;  %v3577_v8 = vld [vmem:[%s3825_s26 + $0x128] ss:$16 sps:$4 sm:$0xff]   ;;  %v3578_v9 = vld [vmem:[%s3825_s26 + $0x144] ss:$16 sps:$4 sm:$0xff]  }
  0x29   : > { %v3580_v10 = vld [vmem:[%s3825_s26 + $0x14c] ss:$16 sps:$4 sm:$0xff]   ;;  %v3902_v11 = vld [vmem:[%s3825_s26 + $0x140] ss:$16 sps:$4 sm:$0xff]   ;;  %v3905_v12 = vld [vmem:[%s3825_s26 + $0x148] ss:$16 sps:$4 sm:$0xff]  }
  0x2a   : > { %1529 = vmatpush1.bf16.msra.mxu0 %v3498_v13  ;;  %v3908_v13 = vld [vmem:[%s3825_s26 + $0x164] ss:$16 sps:$4 sm:$0xff]   ;;  %v3592_v19 = vld [vmem:[%s3825_s26 + $0x18c] ss:$16 sps:$4 sm:$0xff]   ;;  %v3595_v21 = vld [vmem:[%s3825_s26 + $0x188] ss:$16 sps:$4 sm:$0xff]  }
  0x2b   : > { %1818 = vmatpush1.bf16.msra.mxu1 %v3499_v14  ;;  %1530 = vmatprep.subr.bf16.mxu0 %v3734_v0  ;;  %v3911_v14 = vld [vmem:[%s3825_s26 + $0x16c] ss:$16 sps:$4 sm:$0xff]  }
  0x2c   : > { %1819 = vmatprep.subr.bf16.mxu1 %v3734_v0 }
  0x2e   : > { %1531 = vmatpush1.bf16.msra.mxu0 %v3500_v15  ;;  %v3735_v15 = vmov 0.0  }
  0x2f   : > { %1820 = vmatpush1.bf16.msra.mxu1 %v3501_v16  ;;  %1532 = vmatprep.subr.bf16.mxu0 %v3734_v0  ;;  %364 = vst.msk [vmem:[#allocation2] sm:$0xff] %vm363_vm0, %v3735_v15  ;;  %365 = vst.msk [vmem:[#allocation2 + $0x8] sm:$0xff] %vm363_vm0, %v3735_v15  ;;  %v3588_v16 = vld [vmem:[%s3825_s26 + $0x160] ss:$16 sps:$4 sm:$0xff]  }
  0x30   : > { %1821 = vmatprep.subr.bf16.mxu1 %v3734_v0  ;;  %366 = vst.msk [vmem:[#allocation2 + $0x10] sm:$0xff] %vm363_vm0, %v3735_v15  ;;  %367 = vst.msk [vmem:[#allocation2 + $0x18] sm:$0xff] %vm363_vm0, %v3735_v15 }
  0x31   : > { %368 = vst.msk [vmem:[#allocation2 + $0x20] sm:$0xff] %vm363_vm0, %v3735_v15  ;;  %369 = vst.msk [vmem:[#allocation2 + $0x28] sm:$0xff] %vm363_vm0, %v3735_v15 }
  0x32   : > { %1533 = vmatpush1.bf16.msra.mxu0 %v3502_v17  ;;  %370 = vst.msk [vmem:[#allocation2 + $0x30] sm:$0xff] %vm363_vm0, %v3735_v15  ;;  %371 = vst.msk [vmem:[#allocation2 + $0x38] sm:$0xff] %vm363_vm0, %v3735_v15  ;;  %v3589_v17 = vld [vmem:[%s3825_s26 + $0x168] ss:$16 sps:$4 sm:$0xff]  }
  0x33   : > { %1822 = vmatpush1.bf16.msra.mxu1 %v3503_v18  ;;  %1534 = vmatprep.subr.bf16.mxu0 %v3734_v0  ;;  %372 = vst.msk [vmem:[#allocation2 + $0x40] sm:$0xff] %vm363_vm0, %v3735_v15  ;;  %373 = vst.msk [vmem:[#allocation2 + $0x48] sm:$0xff] %vm363_vm0, %v3735_v15  ;;  %v3590_v18 = vld [vmem:[%s3825_s26 + $0x184] ss:$16 sps:$4 sm:$0xff]  }
  0x34   : > { %1823 = vmatprep.subr.bf16.mxu1 %v3734_v0  ;;  %374 = vst.msk [vmem:[#allocation2 + $0x50] sm:$0xff] %vm363_vm0, %v3735_v15  ;;  %375 = vst.msk [vmem:[#allocation2 + $0x58] sm:$0xff] %vm363_vm0, %v3735_v15 }
  0x35   : > { %376 = vst.msk [vmem:[#allocation2 + $0x60] sm:$0xff] %vm363_vm0, %v3735_v15  ;;  %377 = vst.msk [vmem:[#allocation2 + $0x68] sm:$0xff] %vm363_vm0, %v3735_v15 }
  0x36   : > { %1535 = vmatpush1.bf16.msra.mxu0 %v3504_v20  ;;  %378 = vst.msk [vmem:[#allocation2 + $0x70] sm:$0xff] %vm363_vm0, %v3735_v15  ;;  %379 = vst.msk [vmem:[#allocation2 + $0x78] sm:$0xff] %vm363_vm0, %v3735_v15  ;;  %v3594_v20 = vld [vmem:[%s3825_s26 + $0x180] ss:$16 sps:$4 sm:$0xff]  }
  0x37   : > { %1824 = vmatpush1.bf16.msra.mxu1 %v3505_v22  ;;  %1536 = vmatprep.subr.bf16.mxu0 %v3734_v0  ;;  %380 = vst.msk [vmem:[#allocation2 + $0x80] sm:$0xff] %vm363_vm0, %v3735_v15  ;;  %381 = vst.msk [vmem:[#allocation2 + $0x88] sm:$0xff] %vm363_vm0, %v3735_v15  ;;  %v3596_v22 = vld [vmem:[%s3825_s26 + $0x1a4] ss:$16 sps:$4 sm:$0xff]  }
  0x38   : > { %1825 = vmatprep.subr.bf16.mxu1 %v3734_v0  ;;  %382 = vst.msk [vmem:[#allocation2 + $0x90] sm:$0xff] %vm363_vm0, %v3735_v15  ;;  %383 = vst.msk [vmem:[#allocation2 + $0x98] sm:$0xff] %vm363_vm0, %v3735_v15 }
  0x39   : > { %384 = vst.msk [vmem:[#allocation2 + $0xa0] sm:$0xff] %vm363_vm0, %v3735_v15  ;;  %385 = vst.msk [vmem:[#allocation2 + $0xa8] sm:$0xff] %vm363_vm0, %v3735_v15 }
  0x3a   : > { %1537 = vmatpush1.bf16.msra.mxu0 %v3506_v23  ;;  %386 = vst.msk [vmem:[#allocation2 + $0xb0] sm:$0xff] %vm363_vm0, %v3735_v15  ;;  %387 = vst.msk [vmem:[#allocation2 + $0xb8] sm:$0xff] %vm363_vm0, %v3735_v15  ;;  %v3598_v23 = vld [vmem:[%s3825_s26 + $0x1ac] ss:$16 sps:$4 sm:$0xff]  }
  0x3b   : > { %1826 = vmatpush1.bf16.msra.mxu1 %v3507_v24  ;;  %1538 = vmatprep.subr.bf16.mxu0 %v3734_v0  ;;  %388 = vst.msk [vmem:[#allocation2 + $0xc0] sm:$0xff] %vm363_vm0, %v3735_v15  ;;  %389 = vst.msk [vmem:[#allocation2 + $0xc8] sm:$0xff] %vm363_vm0, %v3735_v15  ;;  %v3600_v24 = vld [vmem:[%s3825_s26 + $0x1a0] ss:$16 sps:$4 sm:$0xff]  }
  0x3c   : > { %1827 = vmatprep.subr.bf16.mxu1 %v3734_v0  ;;  %390 = vst.msk [vmem:[#allocation2 + $0xd0] sm:$0xff] %vm363_vm0, %v3735_v15  ;;  %391 = vst.msk [vmem:[#allocation2 + $0xd8] sm:$0xff] %vm363_vm0, %v3735_v15 }
  0x3d   : > { %392 = vst.msk [vmem:[#allocation2 + $0xe0] sm:$0xff] %vm363_vm0, %v3735_v15  ;;  %393 = vst.msk [vmem:[#allocation2 + $0xe8] sm:$0xff] %vm363_vm0, %v3735_v15 }
  0x3e   : > { %1539 = vmatpush1.bf16.msra.mxu0 %v3508_v25  ;;  %394 = vst.msk [vmem:[#allocation2 + $0xf0] sm:$0xff] %vm363_vm0, %v3735_v15  ;;  %395 = vst.msk [vmem:[#allocation2 + $0xf8] sm:$0xff] %vm363_vm0, %v3735_v15  ;;  %v3601_v25 = vld [vmem:[%s3825_s26 + $0x1a8] ss:$16 sps:$4 sm:$0xff]  }
  0x3f   : > { %1828 = vmatpush1.bf16.msra.mxu1 %v3509_v26  ;;  %1540 = vmatprep.subr.bf16.mxu0 %v3734_v0  ;;  %396 = vst.msk [vmem:[#allocation2 + $0x100] sm:$0xff] %vm363_vm0, %v3735_v15  ;;  %397 = vst.msk [vmem:[#allocation2 + $0x108] sm:$0xff] %vm363_vm0, %v3735_v15  ;;  %v3602_v26 = vld [vmem:[%s3825_s26 + $0x1c4] ss:$16 sps:$4 sm:$0xff]  }
  0x40   : > { %1829 = vmatprep.subr.bf16.mxu1 %v3734_v0  ;;  %398 = vst.msk [vmem:[#allocation2 + $0x110] sm:$0xff] %vm363_vm0, %v3735_v15  ;;  %399 = vst.msk [vmem:[#allocation2 + $0x118] sm:$0xff] %vm363_vm0, %v3735_v15 }
  0x41   : > { %400 = vst.msk [vmem:[#allocation2 + $0x120] sm:$0xff] %vm363_vm0, %v3735_v15  ;;  %401 = vst.msk [vmem:[#allocation2 + $0x128] sm:$0xff] %vm363_vm0, %v3735_v15 }
  0x42   : > { %1541 = vmatpush1.bf16.msra.mxu0 %v3510_v27  ;;  %402 = vst.msk [vmem:[#allocation2 + $0x130] sm:$0xff] %vm363_vm0, %v3735_v15  ;;  %403 = vst.msk [vmem:[#allocation2 + $0x138] sm:$0xff] %vm363_vm0, %v3735_v15  ;;  %v3604_v27 = vld [vmem:[%s3825_s26 + $0x1cc] ss:$16 sps:$4 sm:$0xff]  }
  0x43   : > { %1830 = vmatpush1.bf16.msra.mxu1 %v3511_v28  ;;  %1542 = vmatprep.subr.bf16.mxu0 %v3734_v0  ;;  %404 = vst.msk [vmem:[#allocation2 + $0x140] sm:$0xff] %vm363_vm0, %v3735_v15  ;;  %405 = vst.msk [vmem:[#allocation2 + $0x148] sm:$0xff] %vm363_vm0, %v3735_v15  ;;  %v3606_v28 = vld [vmem:[%s3825_s26 + $0x1c0] ss:$16 sps:$4 sm:$0xff]  }
  0x44   : > { %1831 = vmatprep.subr.bf16.mxu1 %v3734_v0  ;;  %406 = vst.msk [vmem:[#allocation2 + $0x150] sm:$0xff] %vm363_vm0, %v3735_v15  ;;  %407 = vst.msk [vmem:[#allocation2 + $0x158] sm:$0xff] %vm363_vm0, %v3735_v15 }
  0x45   : > { %408 = vst.msk [vmem:[#allocation2 + $0x160] sm:$0xff] %vm363_vm0, %v3735_v15  ;;  %409 = vst.msk [vmem:[#allocation2 + $0x168] sm:$0xff] %vm363_vm0, %v3735_v15 }
  0x46   : > { %1543 = vmatpush1.bf16.msra.mxu0 %v3512_v29  ;;  %410 = vst.msk [vmem:[#allocation2 + $0x170] sm:$0xff] %vm363_vm0, %v3735_v15  ;;  %411 = vst.msk [vmem:[#allocation2 + $0x178] sm:$0xff] %vm363_vm0, %v3735_v15  ;;  %v3607_v29 = vld [vmem:[%s3825_s26 + $0x1c8] ss:$16 sps:$4 sm:$0xff]  }
  0x47   : > { %1832 = vmatpush1.bf16.msra.mxu1 %v3513_v30  ;;  %1544 = vmatprep.subr.bf16.mxu0 %v3734_v0  ;;  %412 = vst.msk [vmem:[#allocation2 + $0x180] sm:$0xff] %vm363_vm0, %v3735_v15  ;;  %413 = vst.msk [vmem:[#allocation2 + $0x188] sm:$0xff] %vm363_vm0, %v3735_v15  ;;  %v3608_v30 = vld [vmem:[%s3825_s26 + $0x1e4] ss:$16 sps:$4 sm:$0xff]  }
  0x48   : > { %1833 = vmatprep.subr.bf16.mxu1 %v3734_v0  ;;  %414 = vst.msk [vmem:[#allocation2 + $0x190] sm:$0xff] %vm363_vm0, %v3735_v15  ;;  %415 = vst.msk [vmem:[#allocation2 + $0x198] sm:$0xff] %vm363_vm0, %v3735_v15 }
  0x49   : > { %416 = vst.msk [vmem:[#allocation2 + $0x1a0] sm:$0xff] %vm363_vm0, %v3735_v15  ;;  %417 = vst.msk [vmem:[#allocation2 + $0x1a8] sm:$0xff] %vm363_vm0, %v3735_v15 }
  0x4a   : > { %1545 = vmatpush1.bf16.msra.mxu0 %v3514_v31  ;;  %418 = vst.msk [vmem:[#allocation2 + $0x1b0] sm:$0xff] %vm363_vm0, %v3735_v15  ;;  %419 = vst.msk [vmem:[#allocation2 + $0x1b8] sm:$0xff] %vm363_vm0, %v3735_v15  ;;  %v3610_v31 = vld [vmem:[%s3825_s26 + $0x1ec] ss:$16 sps:$4 sm:$0xff]  }
  0x4b   : > { %1834 = vmatpush1.bf16.msra.mxu1 %v3515_v32  ;;  %1546 = vmatprep.subr.bf16.mxu0 %v3734_v0  ;;  %420 = vst.msk [vmem:[#allocation2 + $0x1c0] sm:$0xff] %vm363_vm0, %v3735_v15  ;;  %421 = vst.msk [vmem:[#allocation2 + $0x1c8] sm:$0xff] %vm363_vm0, %v3735_v15  ;;  %v3612_v32 = vld [vmem:[%s3825_s26 + $0x1e0] ss:$16 sps:$4 sm:$0xff]  }
  0x4c   : > { %1835 = vmatprep.subr.bf16.mxu1 %v3734_v0  ;;  %v3565_v0 = vld [vmem:[%s3825_s26 + $0xe8] ss:$16 sps:$4 sm:$0xff]   ;;  %422 = vst.msk [vmem:[#allocation2 + $0x1d0] sm:$0xff] %vm363_vm0, %v3735_v15  ;;  %423 = vst.msk [vmem:[#allocation2 + $0x1d8] sm:$0xff] %vm363_vm0, %v3735_v15 }
  0x4d   : > { %424 = vst.msk [vmem:[#allocation2 + $0x1e0] sm:$0xff] %vm363_vm0, %v3735_v15  ;;  %425 = vst.msk [vmem:[#allocation2 + $0x1e8] sm:$0xff] %vm363_vm0, %v3735_v15 }
  0x4e   : > { %1547 = vmatpush1.bf16.msra.mxu0 %v3516_v33  ;;  %426 = vst.msk [vmem:[#allocation2 + $0x1f0] sm:$0xff] %vm363_vm0, %v3735_v15  ;;  %427 = vst.msk [vmem:[#allocation2 + $0x1f8] sm:$0xff] %vm363_vm0, %v3735_v15  ;;  %v3613_v33 = vld [vmem:[%s3825_s26 + $0x1e8] ss:$16 sps:$4 sm:$0xff]  }
  0x4f   : > { %1836 = vmatpush1.bf16.msra.mxu1 %v3517_v34  ;;  %v3614_v34 = vld [vmem:[%s3825_s26 + $0x204] ss:$16 sps:$4 sm:$0xff]   ;;  %2229 = vst.msk [vmem:[%s4299_s6] sm:$0x1] %vm2228_vm2, %v3735_v15  ;;  %2230 = vst.msk [vmem:[%s4305_s9] sm:$0x1] %vm2228_vm2, %v3735_v15 }
  0x51   : > { %1549 = vmatmul.mubr.bf16.vlgmr.msra.gmra.mrb[0].mxu0 %v3518_v35  ;;  %v3616_v35 = vld [vmem:[%s3825_s26 + $0x20c] ss:$16 sps:$4 sm:$0xff]  }
  0x52   : > { %1838 = vmatmul.mubr.bf16.vlgmr.msra.gmra.mrb[0].mxu1 %v3521_v36  ;;  %1556 = vmatprep.mubr.bf16.mxu0 %v3524_v37  ;;  %v3618_v36 = vld [vmem:[%s3825_s26 + $0x200] ss:$16 sps:$4 sm:$0xff]   ;;  %v3619_v37 = vld [vmem:[%s3825_s26 + $0x208] ss:$16 sps:$4 sm:$0xff]  }
  0x53   : > { %1845 = vmatprep.mubr.bf16.mxu1 %v3526_v38  ;;  %v3620_v38 = vld [vmem:[%s3825_s26 + $0x224] ss:$16 sps:$4 sm:$0xff]  }
  0x59   : > { %1557 = vmatmul.mubr.bf16.gmra.mrb[4].mxu0 %v3528_v39  ;;  %v3622_v39 = vld [vmem:[%s3825_s26 + $0x22c] ss:$16 sps:$4 sm:$0xff]  }
  0x5a   : > { %1846 = vmatmul.mubr.bf16.gmra.mrb[4].mxu1 %v3529_v40  ;;  %1564 = vmatprep.mubr.bf16.mxu0 %v3530_v41  ;;  %v3624_v40 = vld [vmem:[%s3825_s26 + $0x220] ss:$16 sps:$4 sm:$0xff]   ;;  %v3625_v41 = vld [vmem:[%s3825_s26 + $0x228] ss:$16 sps:$4 sm:$0xff]  }
  0x5b   : > { %1853 = vmatprep.mubr.bf16.mxu1 %v3532_v42  ;;  %v3626_v42 = vld [vmem:[%s3825_s26 + $0x244] ss:$16 sps:$4 sm:$0xff]  }
  0x61   : > { %1565 = vmatmul.mubr.bf16.gmra.mrb[8].mxu0 %v3534_v43  ;;  %v3628_v43 = vld [vmem:[%s3825_s26 + $0x24c] ss:$16 sps:$4 sm:$0xff]  }
  0x62   : > { %1854 = vmatmul.mubr.bf16.gmra.mrb[8].mxu1 %v3535_v44  ;;  %1572 = vmatprep.mubr.bf16.mxu0 %v3536_v45  ;;  %v3630_v44 = vld [vmem:[%s3825_s26 + $0x240] ss:$16 sps:$4 sm:$0xff]   ;;  %v3631_v45 = vld [vmem:[%s3825_s26 + $0x248] ss:$16 sps:$4 sm:$0xff]  }
  0x63   : > { %1861 = vmatprep.mubr.bf16.mxu1 %v3538_v46  ;;  %v3632_v46 = vld [vmem:[%s3825_s26 + $0x264] ss:$16 sps:$4 sm:$0xff]  }
  0x69   : > { %1573 = vmatmul.mubr.bf16.gmra.mrb[12].mxu0 %v3540_v47  ;;  %v3634_v47 = vld [vmem:[%s3825_s26 + $0x26c] ss:$16 sps:$4 sm:$0xff]  }
  0x6a   : > { %1862 = vmatmul.mubr.bf16.gmra.mrb[12].mxu1 %v3541_v48  ;;  %1580 = vmatprep.mubr.bf16.mxu0 %v3542_v49  ;;  %v3636_v48 = vld [vmem:[%s3825_s26 + $0x260] ss:$16 sps:$4 sm:$0xff]   ;;  %v3637_v49 = vld [vmem:[%s3825_s26 + $0x268] ss:$16 sps:$4 sm:$0xff]  }
  0x6b   : > { %1869 = vmatprep.mubr.bf16.mxu1 %v3544_v50  ;;  %v3638_v50 = vld [vmem:[%s3825_s26 + $0x284] ss:$16 sps:$4 sm:$0xff]  }
  0x71   : > { %1581 = vmatmul.mubr.bf16.gmra.mrb[16].mxu0 %v3546_v51  ;;  %v3640_v51 = vld [vmem:[%s3825_s26 + $0x28c] ss:$16 sps:$4 sm:$0xff]  }
  0x72   : > { %1870 = vmatmul.mubr.bf16.gmra.mrb[16].mxu1 %v3547_v52  ;;  %1588 = vmatprep.mubr.bf16.mxu0 %v3548_v53  ;;  %v3642_v52 = vld [vmem:[%s3825_s26 + $0x280] ss:$16 sps:$4 sm:$0xff]   ;;  %v3643_v53 = vld [vmem:[%s3825_s26 + $0x288] ss:$16 sps:$4 sm:$0xff]  }
  0x73   : > { %1877 = vmatprep.mubr.bf16.mxu1 %v3550_v54  ;;  %v3644_v54 = vld [vmem:[%s3825_s26 + $0x2a4] ss:$16 sps:$4 sm:$0xff]  }
  0x79   : > { %1589 = vmatmul.mubr.bf16.gmra.mrb[20].mxu0 %v3552_v55  ;;  %v3646_v55 = vld [vmem:[%s3825_s26 + $0x2ac] ss:$16 sps:$4 sm:$0xff]  }
  0x7a   : > { %1878 = vmatmul.mubr.bf16.gmra.mrb[20].mxu1 %v3553_v56  ;;  %1596 = vmatprep.mubr.bf16.mxu0 %v3554_v57  ;;  %v3648_v56 = vld [vmem:[%s3825_s26 + $0x2a0] ss:$16 sps:$4 sm:$0xff]   ;;  %v3649_v57 = vld [vmem:[%s3825_s26 + $0x2a8] ss:$16 sps:$4 sm:$0xff]  }
  0x7b   : > { %1885 = vmatprep.mubr.bf16.mxu1 %v3556_v58  ;;  %v3650_v58 = vld [vmem:[%s3825_s26 + $0x2c4] ss:$16 sps:$4 sm:$0xff]  }
  0x81   : > { %1597 = vmatmul.mubr.bf16.gmra.mrb[24].mxu0 %v3558_v59  ;;  %v3652_v59 = vld [vmem:[%s3825_s26 + $0x2cc] ss:$16 sps:$4 sm:$0xff]  }
  0x82   : > { %1886 = vmatmul.mubr.bf16.gmra.mrb[24].mxu1 %v3559_v60  ;;  %1604 = vmatprep.mubr.bf16.mxu0 %v3560_v61  ;;  %v3654_v60 = vld [vmem:[%s3825_s26 + $0x2c0] ss:$16 sps:$4 sm:$0xff]   ;;  %v3655_v61 = vld [vmem:[%s3825_s26 + $0x2c8] ss:$16 sps:$4 sm:$0xff]  }
  0x83   : > { %1893 = vmatprep.mubr.bf16.mxu1 %v3562_v62  ;;  %v3656_v62 = vld [vmem:[%s3825_s26 + $0x2e4] ss:$16 sps:$4 sm:$0xff]  }
  0x89   : > { %1605 = vmatmul.mubr.bf16.gmra.mrb[28].mxu0 %v3564_v63  ;;  %v3658_v63 = vld [vmem:[%s3825_s26 + $0x2ec] ss:$16 sps:$4 sm:$0xff]  }
  0x8a   : > { %1894 = vmatmul.mubr.bf16.gmra.mrb[28].mxu1 %v3565_v0  ;;  %1612 = vmatprep.mubr.bf16.mxu0 %v3566_v1  ;;  %v3660_v0 = vld [vmem:[%s3825_s26 + $0x2e0] ss:$16 sps:$4 sm:$0xff]   ;;  %v3661_v1 = vld [vmem:[%s3825_s26 + $0x2e8] ss:$16 sps:$4 sm:$0xff]  }
  0x8b   : > { %1901 = vmatprep.mubr.bf16.mxu1 %v3568_v2  ;;  %v3662_v2 = vld [vmem:[%s3825_s26 + $0x304] ss:$16 sps:$4 sm:$0xff]  }
  0x91   : > { %1613 = vmatmul.mubr.bf16.gmra.mrb[32].mxu0 %v3570_v3  ;;  %v3664_v3 = vld [vmem:[%s3825_s26 + $0x30c] ss:$16 sps:$4 sm:$0xff]  }
  0x92   : > { %1902 = vmatmul.mubr.bf16.gmra.mrb[32].mxu1 %v3571_v4  ;;  %1620 = vmatprep.mubr.bf16.mxu0 %v3572_v5  ;;  %v3666_v4 = vld [vmem:[%s3825_s26 + $0x300] ss:$16 sps:$4 sm:$0xff]   ;;  %v3667_v5 = vld [vmem:[%s3825_s26 + $0x308] ss:$16 sps:$4 sm:$0xff]  }
  0x93   : > { %1909 = vmatprep.mubr.bf16.mxu1 %v3574_v6  ;;  %v3668_v6 = vld [vmem:[%s3825_s26 + $0x324] ss:$16 sps:$4 sm:$0xff]  }
  0x99   : > { %1621 = vmatmul.mubr.bf16.gmra.mrb[36].mxu0 %v3576_v7  ;;  %v3670_v7 = vld [vmem:[%s3825_s26 + $0x32c] ss:$16 sps:$4 sm:$0xff]  }
  0x9a   : > { %1910 = vmatmul.mubr.bf16.gmra.mrb[36].mxu1 %v3577_v8  ;;  %1628 = vmatprep.mubr.bf16.mxu0 %v3578_v9  ;;  %v3672_v8 = vld [vmem:[%s3825_s26 + $0x320] ss:$16 sps:$4 sm:$0xff]   ;;  %v3673_v9 = vld [vmem:[%s3825_s26 + $0x328] ss:$16 sps:$4 sm:$0xff]  }
  0x9b   : > { %1917 = vmatprep.mubr.bf16.mxu1 %v3580_v10  ;;  %v3674_v10 = vld [vmem:[%s3825_s26 + $0x344] ss:$16 sps:$4 sm:$0xff]  }
  0xa1   : > { %1629 = vmatmul.mubr.bf16.gmra.mrb[40].mxu0 %v3902_v11  ;;  %v3676_v11 = vld [vmem:[%s3825_s26 + $0x34c] ss:$16 sps:$4 sm:$0xff]  }
  0xa2   : > { %1918 = vmatmul.mubr.bf16.gmra.mrb[40].mxu1 %v3905_v12  ;;  %1636 = vmatprep.mubr.bf16.mxu0 %v3908_v13  ;;  %v3678_v12 = vld [vmem:[%s3825_s26 + $0x340] ss:$16 sps:$4 sm:$0xff]   ;;  %v3679_v13 = vld [vmem:[%s3825_s26 + $0x348] ss:$16 sps:$4 sm:$0xff]  }
  0xa3   : > { %1925 = vmatprep.mubr.bf16.mxu1 %v3911_v14  ;;  %v3680_v14 = vld [vmem:[%s3825_s26 + $0x364] ss:$16 sps:$4 sm:$0xff]  }
  0xa9   : > { %1637 = vmatmul.mubr.bf16.gmra.mrb[44].mxu0 %v3588_v16  ;;  %v3682_v16 = vld [vmem:[%s3825_s26 + $0x36c] ss:$16 sps:$4 sm:$0xff]  }
  0xaa   : > { %1926 = vmatmul.mubr.bf16.gmra.mrb[44].mxu1 %v3589_v17  ;;  %1644 = vmatprep.mubr.bf16.mxu0 %v3590_v18  ;;  %v428_v18 = vld [vmem:[#allocation2] sm:$0xff] }
  0xab   : > { %1933 = vmatprep.mubr.bf16.mxu1 %v3592_v19 }
  0xb1   : > { %1645 = vmatmul.mubr.bf16.gmra.mrb[48].mxu0 %v3594_v20 }
  0xb2   : > { %1934 = vmatmul.mubr.bf16.gmra.mrb[48].mxu1 %v3595_v21  ;;  %1652 = vmatprep.mubr.bf16.mxu0 %v3596_v22  ;;  %v3684_v21 = vld [vmem:[%s3825_s26 + $0x360] ss:$16 sps:$4 sm:$0xff]  }
  0xb3   : > { %1941 = vmatprep.mubr.bf16.mxu1 %v3598_v23 }
  0xb9   : > { %1653 = vmatmul.mubr.bf16.gmra.mrb[52].mxu0 %v3600_v24 }
  0xba   : > { %1942 = vmatmul.mubr.bf16.gmra.mrb[52].mxu1 %v3601_v25  ;;  %1660 = vmatprep.mubr.bf16.mxu0 %v3602_v26  ;;  %v3685_v25 = vld [vmem:[%s3825_s26 + $0x368] ss:$16 sps:$4 sm:$0xff]   ;;  %v3686_v26 = vld [vmem:[%s3825_s26 + $0x384] ss:$16 sps:$4 sm:$0xff]  }
  0xbb   : > { %1949 = vmatprep.mubr.bf16.mxu1 %v3604_v27  ;;  %v429_v27 = vld [vmem:[#allocation2 + $0x8] sm:$0xff] }
  0xc1   : > { %1661 = vmatmul.mubr.bf16.gmra.mrb[56].mxu0 %v3606_v28 }
  0xc2   : > { %1950 = vmatmul.mubr.bf16.gmra.mrb[56].mxu1 %v3607_v29  ;;  %1668 = vmatprep.mubr.bf16.mxu0 %v3608_v30  ;;  %v3688_v30 = vld [vmem:[%s3825_s26 + $0x38c] ss:$16 sps:$4 sm:$0xff]  }
  0xc3   : > { %1957 = vmatprep.mubr.bf16.mxu1 %v3610_v31 }
  0xc9   : > { %1669 = vmatmul.mubr.bf16.gmra.mrb[60].mxu0 %v3612_v32 }
  0xca   : > { %1958 = vmatmul.mubr.bf16.gmra.mrb[60].mxu1 %v3613_v33  ;;  %1676 = vmatprep.mubr.bf16.mxu0 %v3614_v34 }
  0xcb   : > { %1965 = vmatprep.mubr.bf16.mxu1 %v3616_v35 }
  0xd1   : > { %1677 = vmatmul.mubr.bf16.gmra.mrb[64].mxu0 %v3618_v36  ;;  %v430_v36 = vld [vmem:[#allocation2 + $0x10] sm:$0xff] }
  0xd2   : > { %1966 = vmatmul.mubr.bf16.gmra.mrb[64].mxu1 %v3619_v37  ;;  %1684 = vmatprep.mubr.bf16.mxu0 %v3620_v38 }
  0xd3   : > { %1973 = vmatprep.mubr.bf16.mxu1 %v3622_v39  ;;  %v3690_v39 = vld [vmem:[%s3825_s26 + $0x380] ss:$16 sps:$4 sm:$0xff]  }
  0xd9   : > { %1685 = vmatmul.mubr.bf16.gmra.mrb[68].mxu0 %v3624_v40 }
  0xda   : > { %1974 = vmatmul.mubr.bf16.gmra.mrb[68].mxu1 %v3625_v41  ;;  %1692 = vmatprep.mubr.bf16.mxu0 %v3626_v42 }
  0xdb   : > { %1981 = vmatprep.mubr.bf16.mxu1 %v3628_v43  ;;  %v3691_v43 = vld [vmem:[%s3825_s26 + $0x388] ss:$16 sps:$4 sm:$0xff]  }
  0xe1   : > { %1693 = vmatmul.mubr.bf16.gmra.mrb[72].mxu0 %v3630_v44  ;;  %v3692_v44 = vld [vmem:[%s3825_s26 + $0x3a4] ss:$16 sps:$4 sm:$0xff]  }
  0xe2   : > { %1982 = vmatmul.mubr.bf16.gmra.mrb[72].mxu1 %v3631_v45  ;;  %1700 = vmatprep.mubr.bf16.mxu0 %v3632_v46  ;;  %v431_v45 = vld [vmem:[#allocation2 + $0x18] sm:$0xff] }
  0xe3   : > { %1989 = vmatprep.mubr.bf16.mxu1 %v3634_v47 }
  0xe9   : > { %1701 = vmatmul.mubr.bf16.gmra.mrb[76].mxu0 %v3636_v48  ;;  %v3694_v48 = vld [vmem:[%s3825_s26 + $0x3ac] ss:$16 sps:$4 sm:$0xff]  }
  0xea   : > { %1990 = vmatmul.mubr.bf16.gmra.mrb[76].mxu1 %v3637_v49  ;;  %1708 = vmatprep.mubr.bf16.mxu0 %v3638_v50 }
  0xeb   : > { %1997 = vmatprep.mubr.bf16.mxu1 %v3640_v51 }
  0xf1   : > { %1709 = vmatmul.mubr.bf16.gmra.mrb[80].mxu0 %v3642_v52 }
  0xf2   : > { %1998 = vmatmul.mubr.bf16.gmra.mrb[80].mxu1 %v3643_v53  ;;  %1716 = vmatprep.mubr.bf16.mxu0 %v3644_v54 }
  0xf3   : > { %2005 = vmatprep.mubr.bf16.mxu1 %v3646_v55 }
  0xf9   : > { %1717 = vmatmul.mubr.bf16.gmra.mrb[84].mxu0 %v3648_v56 }
  0xfa   : > { %2006 = vmatmul.mubr.bf16.gmra.mrb[84].mxu1 %v3649_v57  ;;  %1724 = vmatprep.mubr.bf16.mxu0 %v3650_v58 }
  0xfb   : > { %2013 = vmatprep.mubr.bf16.mxu1 %v3652_v59 }
 0x101   : > { %1725 = vmatmul.mubr.bf16.gmra.mrb[88].mxu0 %v3654_v60 }
 0x102   : > { %2014 = vmatmul.mubr.bf16.gmra.mrb[88].mxu1 %v3655_v61  ;;  %1732 = vmatprep.mubr.bf16.mxu0 %v3656_v62  ;;  %v432_v62 = vld [vmem:[#allocation2 + $0x20] sm:$0xff] }
 0x103   : > { %2021 = vmatprep.mubr.bf16.mxu1 %v3658_v63 }
 0x109   : > { %1733 = vmatmul.mubr.bf16.gmra.mrb[92].mxu0 %v3660_v0 }
 0x10a   : > { %2022 = vmatmul.mubr.bf16.gmra.mrb[92].mxu1 %v3661_v1  ;;  %1740 = vmatprep.mubr.bf16.mxu0 %v3662_v2  ;;  %v3696_v2 = vld [vmem:[%s3825_s26 + $0x3a0] ss:$16 sps:$4 sm:$0xff]  }
 0x10b   : > { %2029 = vmatprep.mubr.bf16.mxu1 %v3664_v3  ;;  %v3697_v3 = vld [vmem:[%s3825_s26 + $0x3a8] ss:$16 sps:$4 sm:$0xff]  }
 0x111   : > { %1741 = vmatmul.mubr.bf16.gmra.mrb[96].mxu0 %v3666_v4 }
 0x112   : > { %2030 = vmatmul.mubr.bf16.gmra.mrb[96].mxu1 %v3667_v5  ;;  %1748 = vmatprep.mubr.bf16.mxu0 %v3668_v6 }
 0x113   : > { %2037 = vmatprep.mubr.bf16.mxu1 %v3670_v7 }
 0x119   : > { %1749 = vmatmul.mubr.bf16.gmra.mrb[100].mxu0 %v3672_v8 }
 0x11a   : > { %2038 = vmatmul.mubr.bf16.gmra.mrb[100].mxu1 %v3673_v9  ;;  %1756 = vmatprep.mubr.bf16.mxu0 %v3674_v10  ;;  %v3698_v9 = vld [vmem:[%s3825_s26 + $0x3c4] ss:$16 sps:$4 sm:$0xff]  }
 0x11b   : > { %2045 = vmatprep.mubr.bf16.mxu1 %v3676_v11  ;;  %v433_v11 = vld [vmem:[#allocation2 + $0x28] sm:$0xff] }
 0x121   : > { %1757 = vmatmul.mubr.bf16.gmra.mrb[104].mxu0 %v3678_v12 }
 0x122   : > { %2046 = vmatmul.mubr.bf16.gmra.mrb[104].mxu1 %v3679_v13  ;;  %1764 = vmatprep.mubr.bf16.mxu0 %v3680_v14  ;;  %v3700_v14 = vld [vmem:[%s3825_s26 + $0x3cc] ss:$16 sps:$4 sm:$0xff]  }
 0x123   : > { %2053 = vmatprep.mubr.bf16.mxu1 %v3682_v16 }
 0x124   : > { %v1550_v17 = vpop.f32.mrb[0].mxu0 }
 0x125   : > { %v1839_v19 = vpop.f32.mrb[0].mxu1  ;;  %v1552_v20 = vpop.f32.mrb[1].mxu0 }
 0x126   : > { %v1840_v22 = vadd.f32 %v1839_v19, %v1550_v17  ;;  %v1841_v23 = vpop.f32.mrb[1].mxu1  ;;  %v1553_v24 = vpop.f32.mrb[2].mxu0 }
 0x127   : > { %v1842_v28 = vpop.f32.mrb[2].mxu1  ;;  %v1555_v29 = vpop.f32.mrb[3].mxu0 }
 0x128   : > { %v2094_v31 = vadd.f32 %v1840_v22, %v428_v18  ;;  %v1843_v32 = vadd.f32 %v1842_v28, %v1553_v24  ;;  %v1844_v33 = vpop.f32.mrb[3].mxu1 }
 0x129   : > { %1765 = vmatmul.mubr.bf16.gmra.mrb[108].mxu0 %v3684_v21 }
 0x12a   : > { %2159 = vst.msk [vmem:[#allocation2] sm:$0xff] %vm363_vm0, %v2094_v31  ;;  %v2095_v34 = vadd.f32 %v1843_v32, %v429_v27  ;;  %2054 = vmatmul.mubr.bf16.gmra.mrb[108].mxu1 %v3685_v25  ;;  %1772 = vmatprep.mubr.bf16.mxu0 %v3686_v26  ;;  %v434_v31 = vld [vmem:[#allocation2 + $0x30] sm:$0xff] }
 0x12b   : > { %2061 = vmatprep.mubr.bf16.mxu1 %v3688_v30 }
 0x12c   : > { %2160 = vst.msk [vmem:[#allocation2 + $0x8] sm:$0xff] %vm363_vm0, %v2095_v34  ;;  %v1558_v35 = vpop.f32.mrb[4].mxu0 }
 0x12d   : > { %v1847_v37 = vpop.f32.mrb[4].mxu1  ;;  %v1560_v38 = vpop.f32.mrb[5].mxu0 }
 0x12e   : > { %v1848_v40 = vadd.f32 %v1847_v37, %v1558_v35  ;;  %v1849_v41 = vpop.f32.mrb[5].mxu1  ;;  %v1561_v42 = vpop.f32.mrb[6].mxu0  ;;  %v3703_v37 = vld [vmem:[%s3825_s26 + $0x3c8] ss:$16 sps:$4 sm:$0xff]  }
 0x12f   : > { %v1850_v46 = vpop.f32.mrb[6].mxu1  ;;  %v1563_v47 = vpop.f32.mrb[7].mxu0 }
 0x130   : > { %v2096_v49 = vadd.f32 %v1848_v40, %v430_v36  ;;  %v1851_v50 = vadd.f32 %v1850_v46, %v1561_v42  ;;  %v1852_v51 = vpop.f32.mrb[7].mxu1  ;;  %v3702_v36 = vld [vmem:[%s3825_s26 + $0x3c0] ss:$16 sps:$4 sm:$0xff]   ;;  %v3704_v42 = vld [vmem:[%s3825_s26 + $0x3e4] ss:$16 sps:$4 sm:$0xff]  }
 0x131   : > { %v2234_v52 = vld [vmem:[#allocation2] sm:$0xff]  ;;  %1773 = vmatmul.mubr.bf16.gmra.mrb[112].mxu0 %v3690_v39  ;;  %v3706_v47 = vld [vmem:[%s3825_s26 + $0x3ec] ss:$16 sps:$4 sm:$0xff]  }
 0x132   : > { %v3396_v53 = vpack.c.bf16 %v2234_v52, %v2234_v52  ;;  %v2757_v54 = vmul.f32 %v2234_v52, %v2234_v52  ;;  %2161 = vst.msk [vmem:[#allocation2 + $0x10] sm:$0xff] %vm363_vm0, %v2096_v49  ;;  %v2097_v55 = vadd.f32 %v1851_v50, %v431_v45  ;;  %2062 = vmatmul.mubr.bf16.gmra.mrb[112].mxu1 %v3691_v43  ;;  %v2620_v57 = vsel %vm363_vm0, %v2234_v52, 0.0 }
 0x133   : > { %1780 = vmatprep.mubr.bf16.mxu0 %v3692_v44  ;;  %v2235_v56 = vld [vmem:[#allocation2 + $0x8] sm:$0xff]  ;;  %2069 = vmatprep.mubr.bf16.mxu1 %v3694_v48  ;;  %v435_v44 = vld [vmem:[#allocation2 + $0x38] sm:$0xff] }
 0x134   : > { %2555 = vst.msk [vmem:[%s4124_s29] sm:$0xf] %vm2554_vm1, %v3396_v53  ;;  %v3397_v58 = vpack.c.bf16 %v2235_v56, %v2235_v56  ;;  %v2621_v59 = vsel %vm363_vm0, %v2235_v56, 0.0  ;;  %v2758_v60 = vmul.f32 %v2235_v56, %v2235_v56  ;;  %v1566_v61 = vpop.f32.mrb[8].mxu0  ;;  %v2821_v4 = vsel %vm363_vm0, %v2757_v54, 0.0 }
 0x135   : > { %2162 = vst.msk [vmem:[#allocation2 + $0x18] sm:$0xff] %vm363_vm0, %v2097_v55  ;;  %v2622_v63 = vadd.f32 %v2621_v59, %v2620_v57  ;;  %v1855_v0 = vpop.f32.mrb[8].mxu1  ;;  %v1568_v1 = vpop.f32.mrb[9].mxu0 }
 0x136   : > { %2556 = vst.msk [vmem:[%s4124_s29 + $0x4] sm:$0xf] %vm2554_vm1, %v3397_v58  ;;  %v2822_v5 = vsel %vm363_vm0, %v2758_v60, 0.0  ;;  %v1856_v6 = vadd.f32 %v1855_v0, %v1566_v61  ;;  %v1857_v7 = vpop.f32.mrb[9].mxu1  ;;  %v1569_v8 = vpop.f32.mrb[10].mxu0  ;;  %v436_v1 = vld [vmem:[#allocation2 + $0x40] sm:$0xff] }
 0x137   : > { %v2823_v10 = vadd.f32 %v2822_v5, %v2821_v4  ;;  %v1858_v12 = vpop.f32.mrb[10].mxu1  ;;  %v1571_v13 = vpop.f32.mrb[11].mxu0  ;;  %v3708_v4 = vld [vmem:[%s3825_s26 + $0x3e0] ss:$16 sps:$4 sm:$0xff]  }
 0x138   : > { %v2098_v16 = vadd.f32 %v1856_v6, %v432_v62  ;;  %v1859_v17 = vadd.f32 %v1858_v12, %v1569_v8  ;;  %v1860_v18 = vpop.f32.mrb[11].mxu1 }
 0x139   : > { %v2236_v19 = vld [vmem:[#allocation2 + $0x10] sm:$0xff]  ;;  %1781 = vmatmul.mubr.bf16.gmra.mrb[116].mxu0 %v3696_v2 }
 0x13a   : > { %v3398_v20 = vpack.c.bf16 %v2236_v19, %v2236_v19  ;;  %v2623_v21 = vsel %vm363_vm0, %v2236_v19, 0.0  ;;  %v2759_v22 = vmul.f32 %v2236_v19, %v2236_v19  ;;  %2163 = vst.msk [vmem:[#allocation2 + $0x20] sm:$0xff] %vm363_vm0, %v2098_v16  ;;  %v2099_v23 = vadd.f32 %v1859_v17, %v433_v11  ;;  %2070 = vmatmul.mubr.bf16.gmra.mrb[116].mxu1 %v3697_v3  ;;  %v437_v11 = vld [vmem:[#allocation2 + $0x48] sm:$0xff] }
 0x13b   : > { %1788 = vmatprep.mubr.bf16.mxu0 %v3698_v9  ;;  %v2624_v24 = vadd.f32 %v2623_v21, %v2622_v63  ;;  %2077 = vmatprep.mubr.bf16.mxu1 %v3700_v14  ;;  %v3709_v9 = vld [vmem:[%s3825_s26 + $0x3e8] ss:$16 sps:$4 sm:$0xff]  }
 0x13c   : > { %v2237_v25 = vld [vmem:[#allocation2 + $0x18] sm:$0xff]  ;;  %2557 = vst.msk [vmem:[%s4124_s29 + $0x8] sm:$0xf] %vm2554_vm1, %v3398_v20  ;;  %v2824_v26 = vsel %vm363_vm0, %v2759_v22, 0.0  ;;  %v1574_v30 = vpop.f32.mrb[12].mxu0 }
 0x13d   : > { %v3399_v27 = vpack.c.bf16 %v2237_v25, %v2237_v25  ;;  %v2625_v28 = vsel %vm363_vm0, %v2237_v25, 0.0  ;;  %v2760_v29 = vmul.f32 %v2237_v25, %v2237_v25  ;;  %2164 = vst.msk [vmem:[#allocation2 + $0x28] sm:$0xff] %vm363_vm0, %v2099_v23  ;;  %v2825_v32 = vadd.f32 %v2824_v26, %v2823_v10  ;;  %v1863_v34 = vpop.f32.mrb[12].mxu1  ;;  %v1576_v35 = vpop.f32.mrb[13].mxu0 }
 0x13e   : > { %v2626_v33 = vadd.f32 %v2625_v28, %v2624_v24  ;;  %v1864_v39 = vadd.f32 %v1863_v34, %v1574_v30  ;;  %v1865_v40 = vpop.f32.mrb[13].mxu1  ;;  %v1577_v41 = vpop.f32.mrb[14].mxu0 }
 0x13f   : > { %2558 = vst.msk [vmem:[%s4124_s29 + $0xc] sm:$0xf] %vm2554_vm1, %v3399_v27  ;;  %v2826_v38 = vsel %vm363_vm0, %v2760_v29, 0.0  ;;  %v1866_v45 = vpop.f32.mrb[14].mxu1  ;;  %v1579_v46 = vpop.f32.mrb[15].mxu0  ;;  %v439_v40 = vld [vmem:[#allocation2 + $0x58] sm:$0xff] }
 0x140   : > { %v2827_v43 = vadd.f32 %v2826_v38, %v2825_v32  ;;  %v2100_v48 = vadd.f32 %v1864_v39, %v434_v31  ;;  %v1867_v49 = vadd.f32 %v1866_v45, %v1577_v41  ;;  %v1868_v50 = vpop.f32.mrb[15].mxu1  ;;  %v438_v32 = vld [vmem:[#allocation2 + $0x50] sm:$0xff] }
 0x141   : > { %v2238_v51 = vld [vmem:[#allocation2 + $0x20] sm:$0xff]  ;;  %1789 = vmatmul.mubr.bf16.gmra.mrb[120].mxu0 %v3702_v36 }
 0x142   : > { %v3400_v52 = vpack.c.bf16 %v2238_v51, %v2238_v51  ;;  %v2627_v53 = vsel %vm363_vm0, %v2238_v51, 0.0  ;;  %v2761_v54 = vmul.f32 %v2238_v51, %v2238_v51  ;;  %2165 = vst.msk [vmem:[#allocation2 + $0x30] sm:$0xff] %vm363_vm0, %v2100_v48  ;;  %v2101_v55 = vadd.f32 %v1867_v49, %v435_v44  ;;  %2078 = vmatmul.mubr.bf16.gmra.mrb[120].mxu1 %v3703_v37 }
 0x143   : > { %1796 = vmatprep.mubr.bf16.mxu0 %v3704_v42  ;;  %v2628_v56 = vadd.f32 %v2627_v53, %v2626_v33  ;;  %2085 = vmatprep.mubr.bf16.mxu1 %v3706_v47 }
 0x144   : > { %v2239_v57 = vld [vmem:[#allocation2 + $0x28] sm:$0xff]  ;;  %2559 = vst.msk [vmem:[%s4124_s29 + $0x10] sm:$0xf] %vm2554_vm1, %v3400_v52  ;;  %v2828_v58 = vsel %vm363_vm0, %v2761_v54, 0.0  ;;  %v1582_v62 = vpop.f32.mrb[16].mxu0 }
 0x145   : > { %v3401_v59 = vpack.c.bf16 %v2239_v57, %v2239_v57  ;;  %v2629_v60 = vsel %vm363_vm0, %v2239_v57, 0.0  ;;  %v2762_v61 = vmul.f32 %v2239_v57, %v2239_v57  ;;  %2166 = vst.msk [vmem:[#allocation2 + $0x38] sm:$0xff] %vm363_vm0, %v2101_v55  ;;  %v2829_v63 = vadd.f32 %v2828_v58, %v2827_v43  ;;  %v1871_v2 = vpop.f32.mrb[16].mxu1  ;;  %v1584_v3 = vpop.f32.mrb[17].mxu0 }
 0x146   : > { %v2630_v0 = vadd.f32 %v2629_v60, %v2628_v56  ;;  %v1872_v6 = vadd.f32 %v1871_v2, %v1582_v62  ;;  %v1873_v7 = vpop.f32.mrb[17].mxu1  ;;  %v1585_v8 = vpop.f32.mrb[18].mxu0  ;;  %v440_v60 = vld [vmem:[#allocation2 + $0x60] sm:$0xff] }
 0x147   : > { %2560 = vst.msk [vmem:[%s4124_s29 + $0x14] sm:$0xf] %vm2554_vm1, %v3401_v59  ;;  %v2830_v5 = vsel %vm363_vm0, %v2762_v61, 0.0  ;;  %v1874_v12 = vpop.f32.mrb[18].mxu1  ;;  %v1587_v13 = vpop.f32.mrb[19].mxu0 }
 0x148   : > { %v2831_v10 = vadd.f32 %v2830_v5, %v2829_v63  ;;  %v2102_v14 = vadd.f32 %v1872_v6, %v436_v1  ;;  %v1875_v16 = vadd.f32 %v1874_v12, %v1585_v8  ;;  %v1876_v17 = vpop.f32.mrb[19].mxu1 }
 0x149   : > { %v2240_v18 = vld [vmem:[#allocation2 + $0x30] sm:$0xff]  ;;  %1797 = vmatmul.mubr.bf16.gmra.mrb[124].mxu0 %v3708_v4  ;;  %v441_v4 = vld [vmem:[#allocation2 + $0x68] sm:$0xff] }
 0x14a   : > { %v3402_v19 = vpack.c.bf16 %v2240_v18, %v2240_v18  ;;  %v2631_v20 = vsel %vm363_vm0, %v2240_v18, 0.0  ;;  %v2763_v21 = vmul.f32 %v2240_v18, %v2240_v18  ;;  %2167 = vst.msk [vmem:[#allocation2 + $0x40] sm:$0xff] %vm363_vm0, %v2102_v14  ;;  %v2103_v22 = vadd.f32 %v1875_v16, %v437_v11  ;;  %2086 = vmatmul.mubr.bf16.gmra.mrb[124].mxu1 %v3709_v9 }
 0x14b   : > { %v2632_v23 = vadd.f32 %v2631_v20, %v2630_v0 }
 0x14c   : > { %v2241_v24 = vld [vmem:[#allocation2 + $0x38] sm:$0xff]  ;;  %2561 = vst.msk [vmem:[%s4124_s29 + $0x18] sm:$0xf] %vm2554_vm1, %v3402_v19  ;;  %v2832_v25 = vsel %vm363_vm0, %v2763_v21, 0.0  ;;  %v1590_v29 = vpop.f32.mrb[20].mxu0 }
 0x14d   : > { %v3403_v26 = vpack.c.bf16 %v2241_v24, %v2241_v24  ;;  %v2633_v27 = vsel %vm363_vm0, %v2241_v24, 0.0  ;;  %v2764_v28 = vmul.f32 %v2241_v24, %v2241_v24  ;;  %2168 = vst.msk [vmem:[#allocation2 + $0x48] sm:$0xff] %vm363_vm0, %v2103_v22  ;;  %v2833_v30 = vadd.f32 %v2832_v25, %v2831_v10  ;;  %v1879_v33 = vpop.f32.mrb[20].mxu1  ;;  %v1592_v34 = vpop.f32.mrb[21].mxu0  ;;  %v442_v25 = vld [vmem:[#allocation2 + $0x70] sm:$0xff] }
 0x14e   : > { %v2634_v31 = vadd.f32 %v2633_v27, %v2632_v23  ;;  %v1880_v36 = vadd.f32 %v1879_v33, %v1590_v29  ;;  %v1881_v37 = vpop.f32.mrb[21].mxu1  ;;  %v1593_v38 = vpop.f32.mrb[22].mxu0  ;;  %v443_v33 = vld [vmem:[#allocation2 + $0x78] sm:$0xff] }
 0x14f   : > { %2562 = vst.msk [vmem:[%s4124_s29 + $0x1c] sm:$0xf] %vm2554_vm1, %v3403_v26  ;;  %v2834_v35 = vsel %vm363_vm0, %v2764_v28, 0.0  ;;  %v1882_v41 = vpop.f32.mrb[22].mxu1  ;;  %v1595_v42 = vpop.f32.mrb[23].mxu0 }
 0x150   : > { %v2835_v39 = vadd.f32 %v2834_v35, %v2833_v30  ;;  %v2104_v43 = vadd.f32 %v1880_v36, %v438_v32  ;;  %v1883_v44 = vadd.f32 %v1882_v41, %v1593_v38  ;;  %v1884_v45 = vpop.f32.mrb[23].mxu1 }
 0x151   : > { %v2242_v46 = vld [vmem:[#allocation2 + $0x40] sm:$0xff] }
 0x152   : > { %v3404_v47 = vpack.c.bf16 %v2242_v46, %v2242_v46  ;;  %v2635_v48 = vsel %vm363_vm0, %v2242_v46, 0.0  ;;  %v2765_v49 = vmul.f32 %v2242_v46, %v2242_v46  ;;  %2169 = vst.msk [vmem:[#allocation2 + $0x50] sm:$0xff] %vm363_vm0, %v2104_v43  ;;  %v2105_v50 = vadd.f32 %v1883_v44, %v439_v40 }
 0x153   : > { %v2636_v51 = vadd.f32 %v2635_v48, %v2634_v31 }
 0x154   : > { %v2243_v52 = vld [vmem:[#allocation2 + $0x48] sm:$0xff]  ;;  %2563 = vst.msk [vmem:[%s4124_s29 + $0x20] sm:$0xf] %vm2554_vm1, %v3404_v47  ;;  %v2836_v53 = vsel %vm363_vm0, %v2765_v49, 0.0  ;;  %v1598_v57 = vpop.f32.mrb[24].mxu0 }
 0x155   : > { %v3405_v54 = vpack.c.bf16 %v2243_v52, %v2243_v52  ;;  %v2637_v55 = vsel %vm363_vm0, %v2243_v52, 0.0  ;;  %v2766_v56 = vmul.f32 %v2243_v52, %v2243_v52  ;;  %2170 = vst.msk [vmem:[#allocation2 + $0x58] sm:$0xff] %vm363_vm0, %v2105_v50  ;;  %v2837_v58 = vadd.f32 %v2836_v53, %v2835_v39  ;;  %v1887_v61 = vpop.f32.mrb[24].mxu1  ;;  %v1600_v62 = vpop.f32.mrb[25].mxu0  ;;  %v444_v53 = vld [vmem:[#allocation2 + $0x80] sm:$0xff] }
 0x156   : > { %v2638_v59 = vadd.f32 %v2637_v55, %v2636_v51  ;;  %v1888_v0 = vadd.f32 %v1887_v61, %v1598_v57  ;;  %v1889_v1 = vpop.f32.mrb[25].mxu1  ;;  %v1601_v2 = vpop.f32.mrb[26].mxu0  ;;  %v445_v61 = vld [vmem:[#allocation2 + $0x88] sm:$0xff] }
 0x157   : > { %2564 = vst.msk [vmem:[%s4124_s29 + $0x24] sm:$0xf] %vm2554_vm1, %v3405_v54  ;;  %v2838_v63 = vsel %vm363_vm0, %v2766_v56, 0.0  ;;  %v1890_v5 = vpop.f32.mrb[26].mxu1  ;;  %v1603_v6 = vpop.f32.mrb[27].mxu0 }
 0x158   : > { %v2839_v3 = vadd.f32 %v2838_v63, %v2837_v58  ;;  %v2106_v7 = vadd.f32 %v1888_v0, %v440_v60  ;;  %v1891_v8 = vadd.f32 %v1890_v5, %v1601_v2  ;;  %v1892_v9 = vpop.f32.mrb[27].mxu1 }
 0x159   : > { %v2244_v10 = vld [vmem:[#allocation2 + $0x50] sm:$0xff] }
 0x15a   : > { %v3406_v11 = vpack.c.bf16 %v2244_v10, %v2244_v10  ;;  %v2639_v12 = vsel %vm363_vm0, %v2244_v10, 0.0  ;;  %v2767_v13 = vmul.f32 %v2244_v10, %v2244_v10  ;;  %2171 = vst.msk [vmem:[#allocation2 + $0x60] sm:$0xff] %vm363_vm0, %v2106_v7  ;;  %v2107_v14 = vadd.f32 %v1891_v8, %v441_v4 }
 0x15b   : > { %v2640_v16 = vadd.f32 %v2639_v12, %v2638_v59 }
 0x15c   : > { %v2245_v17 = vld [vmem:[#allocation2 + $0x58] sm:$0xff]  ;;  %2565 = vst.msk [vmem:[%s4124_s29 + $0x28] sm:$0xf] %vm2554_vm1, %v3406_v11  ;;  %v2840_v18 = vsel %vm363_vm0, %v2767_v13, 0.0  ;;  %v1606_v22 = vpop.f32.mrb[28].mxu0 }
 0x15d   : > { %v3407_v19 = vpack.c.bf16 %v2245_v17, %v2245_v17  ;;  %v2641_v20 = vsel %vm363_vm0, %v2245_v17, 0.0  ;;  %v2768_v21 = vmul.f32 %v2245_v17, %v2245_v17  ;;  %2172 = vst.msk [vmem:[#allocation2 + $0x68] sm:$0xff] %vm363_vm0, %v2107_v14  ;;  %v2841_v23 = vadd.f32 %v2840_v18, %v2839_v3  ;;  %v1895_v26 = vpop.f32.mrb[28].mxu1  ;;  %v1608_v27 = vpop.f32.mrb[29].mxu0  ;;  %v446_v18 = vld [vmem:[#allocation2 + $0x90] sm:$0xff] }
 0x15e   : > { %v2642_v24 = vadd.f32 %v2641_v20, %v2640_v16  ;;  %v1896_v29 = vadd.f32 %v1895_v26, %v1606_v22  ;;  %v1897_v30 = vpop.f32.mrb[29].mxu1  ;;  %v1609_v31 = vpop.f32.mrb[30].mxu0  ;;  %v447_v26 = vld [vmem:[#allocation2 + $0x98] sm:$0xff] }
 0x15f   : > { %2566 = vst.msk [vmem:[%s4124_s29 + $0x2c] sm:$0xf] %vm2554_vm1, %v3407_v19  ;;  %v2842_v28 = vsel %vm363_vm0, %v2768_v21, 0.0  ;;  %v1898_v34 = vpop.f32.mrb[30].mxu1  ;;  %v1611_v35 = vpop.f32.mrb[31].mxu0 }
 0x160   : > { %v2843_v32 = vadd.f32 %v2842_v28, %v2841_v23  ;;  %v2108_v36 = vadd.f32 %v1896_v29, %v442_v25  ;;  %v1899_v37 = vadd.f32 %v1898_v34, %v1609_v31  ;;  %v1900_v38 = vpop.f32.mrb[31].mxu1 }
 0x161   : > { %v2246_v39 = vld [vmem:[#allocation2 + $0x60] sm:$0xff] }
 0x162   : > { %v3408_v40 = vpack.c.bf16 %v2246_v39, %v2246_v39  ;;  %v2643_v41 = vsel %vm363_vm0, %v2246_v39, 0.0  ;;  %v2769_v42 = vmul.f32 %v2246_v39, %v2246_v39  ;;  %2173 = vst.msk [vmem:[#allocation2 + $0x70] sm:$0xff] %vm363_vm0, %v2108_v36  ;;  %v2109_v43 = vadd.f32 %v1899_v37, %v443_v33 }
 0x163   : > { %v2644_v44 = vadd.f32 %v2643_v41, %v2642_v24 }
 0x164   : > { %v2247_v45 = vld [vmem:[#allocation2 + $0x68] sm:$0xff]  ;;  %2567 = vst.msk [vmem:[%s4124_s29 + $0x30] sm:$0xf] %vm2554_vm1, %v3408_v40  ;;  %v2844_v46 = vsel %vm363_vm0, %v2769_v42, 0.0  ;;  %v1614_v50 = vpop.f32.mrb[32].mxu0 }
 0x165   : > { %v3409_v47 = vpack.c.bf16 %v2247_v45, %v2247_v45  ;;  %v2645_v48 = vsel %vm363_vm0, %v2247_v45, 0.0  ;;  %v2770_v49 = vmul.f32 %v2247_v45, %v2247_v45  ;;  %2174 = vst.msk [vmem:[#allocation2 + $0x78] sm:$0xff] %vm363_vm0, %v2109_v43  ;;  %v2845_v51 = vadd.f32 %v2844_v46, %v2843_v32  ;;  %v1903_v54 = vpop.f32.mrb[32].mxu1  ;;  %v1616_v55 = vpop.f32.mrb[33].mxu0  ;;  %v448_v46 = vld [vmem:[#allocation2 + $0xa0] sm:$0xff] }
 0x166   : > { %v2646_v52 = vadd.f32 %v2645_v48, %v2644_v44  ;;  %v1904_v57 = vadd.f32 %v1903_v54, %v1614_v50  ;;  %v1905_v58 = vpop.f32.mrb[33].mxu1  ;;  %v1617_v59 = vpop.f32.mrb[34].mxu0  ;;  %v449_v54 = vld [vmem:[#allocation2 + $0xa8] sm:$0xff] }
 0x167   : > { %2568 = vst.msk [vmem:[%s4124_s29 + $0x34] sm:$0xf] %vm2554_vm1, %v3409_v47  ;;  %v2846_v56 = vsel %vm363_vm0, %v2770_v49, 0.0  ;;  %v1906_v62 = vpop.f32.mrb[34].mxu1  ;;  %v1619_v63 = vpop.f32.mrb[35].mxu0 }
 0x168   : > { %v2847_v60 = vadd.f32 %v2846_v56, %v2845_v51  ;;  %v2110_v0 = vadd.f32 %v1904_v57, %v444_v53  ;;  %v1907_v1 = vadd.f32 %v1906_v62, %v1617_v59  ;;  %v1908_v2 = vpop.f32.mrb[35].mxu1 }
 0x169   : > { %v2248_v3 = vld [vmem:[#allocation2 + $0x70] sm:$0xff] }
 0x16a   : > { %v3410_v4 = vpack.c.bf16 %v2248_v3, %v2248_v3  ;;  %v2647_v5 = vsel %vm363_vm0, %v2248_v3, 0.0  ;;  %v2771_v6 = vmul.f32 %v2248_v3, %v2248_v3  ;;  %2175 = vst.msk [vmem:[#allocation2 + $0x80] sm:$0xff] %vm363_vm0, %v2110_v0  ;;  %v2111_v7 = vadd.f32 %v1907_v1, %v445_v61 }
 0x16b   : > { %v2648_v8 = vadd.f32 %v2647_v5, %v2646_v52 }
 0x16c   : > { %v2249_v9 = vld [vmem:[#allocation2 + $0x78] sm:$0xff]  ;;  %2569 = vst.msk [vmem:[%s4124_s29 + $0x38] sm:$0xf] %vm2554_vm1, %v3410_v4  ;;  %v2848_v10 = vsel %vm363_vm0, %v2771_v6, 0.0  ;;  %v1622_v14 = vpop.f32.mrb[36].mxu0 }
 0x16d   : > { %v3411_v11 = vpack.c.bf16 %v2249_v9, %v2249_v9  ;;  %v2649_v12 = vsel %vm363_vm0, %v2249_v9, 0.0  ;;  %v2772_v13 = vmul.f32 %v2249_v9, %v2249_v9  ;;  %2176 = vst.msk [vmem:[#allocation2 + $0x88] sm:$0xff] %vm363_vm0, %v2111_v7  ;;  %v2849_v16 = vadd.f32 %v2848_v10, %v2847_v60  ;;  %v1911_v19 = vpop.f32.mrb[36].mxu1  ;;  %v1624_v20 = vpop.f32.mrb[37].mxu0  ;;  %v450_v10 = vld [vmem:[#allocation2 + $0xb0] sm:$0xff] }
 0x16e   : > { %v2650_v17 = vadd.f32 %v2649_v12, %v2648_v8  ;;  %v1912_v22 = vadd.f32 %v1911_v19, %v1622_v14  ;;  %v1913_v23 = vpop.f32.mrb[37].mxu1  ;;  %v1625_v24 = vpop.f32.mrb[38].mxu0  ;;  %v451_v19 = vld [vmem:[#allocation2 + $0xb8] sm:$0xff] }
 0x16f   : > { %2570 = vst.msk [vmem:[%s4124_s29 + $0x3c] sm:$0xf] %vm2554_vm1, %v3411_v11  ;;  %v2850_v21 = vsel %vm363_vm0, %v2772_v13, 0.0  ;;  %v1914_v27 = vpop.f32.mrb[38].mxu1  ;;  %v1627_v28 = vpop.f32.mrb[39].mxu0 }
 0x170   : > { %v2851_v25 = vadd.f32 %v2850_v21, %v2849_v16  ;;  %v2112_v29 = vadd.f32 %v1912_v22, %v446_v18  ;;  %v1915_v30 = vadd.f32 %v1914_v27, %v1625_v24  ;;  %v1916_v31 = vpop.f32.mrb[39].mxu1 }
 0x171   : > { %v2250_v32 = vld [vmem:[#allocation2 + $0x80] sm:$0xff] }
 0x172   : > { %v3412_v33 = vpack.c.bf16 %v2250_v32, %v2250_v32  ;;  %v2651_v34 = vsel %vm363_vm0, %v2250_v32, 0.0  ;;  %v2773_v35 = vmul.f32 %v2250_v32, %v2250_v32  ;;  %2177 = vst.msk [vmem:[#allocation2 + $0x90] sm:$0xff] %vm363_vm0, %v2112_v29  ;;  %v2113_v36 = vadd.f32 %v1915_v30, %v447_v26 }
 0x173   : > { %v2652_v37 = vadd.f32 %v2651_v34, %v2650_v17 }
 0x174   : > { %v2251_v38 = vld [vmem:[#allocation2 + $0x88] sm:$0xff]  ;;  %2571 = vst.msk [vmem:[%s4124_s29 + $0x40] sm:$0xf] %vm2554_vm1, %v3412_v33  ;;  %v2852_v39 = vsel %vm363_vm0, %v2773_v35, 0.0  ;;  %v1630_v43 = vpop.f32.mrb[40].mxu0 }
 0x175   : > { %v3413_v40 = vpack.c.bf16 %v2251_v38, %v2251_v38  ;;  %v2653_v41 = vsel %vm363_vm0, %v2251_v38, 0.0  ;;  %v2774_v42 = vmul.f32 %v2251_v38, %v2251_v38  ;;  %2178 = vst.msk [vmem:[#allocation2 + $0x98] sm:$0xff] %vm363_vm0, %v2113_v36  ;;  %v2853_v44 = vadd.f32 %v2852_v39, %v2851_v25  ;;  %v1919_v47 = vpop.f32.mrb[40].mxu1  ;;  %v1632_v48 = vpop.f32.mrb[41].mxu0  ;;  %v452_v39 = vld [vmem:[#allocation2 + $0xc0] sm:$0xff] }
 0x176   : > { %v2654_v45 = vadd.f32 %v2653_v41, %v2652_v37  ;;  %v1920_v50 = vadd.f32 %v1919_v47, %v1630_v43  ;;  %v1921_v51 = vpop.f32.mrb[41].mxu1  ;;  %v1633_v52 = vpop.f32.mrb[42].mxu0  ;;  %v453_v47 = vld [vmem:[#allocation2 + $0xc8] sm:$0xff] }
 0x177   : > { %2572 = vst.msk [vmem:[%s4124_s29 + $0x44] sm:$0xf] %vm2554_vm1, %v3413_v40  ;;  %v2854_v49 = vsel %vm363_vm0, %v2774_v42, 0.0  ;;  %v1922_v55 = vpop.f32.mrb[42].mxu1  ;;  %v1635_v56 = vpop.f32.mrb[43].mxu0 }
 0x178   : > { %v2855_v53 = vadd.f32 %v2854_v49, %v2853_v44  ;;  %v2114_v57 = vadd.f32 %v1920_v50, %v448_v46  ;;  %v1923_v58 = vadd.f32 %v1922_v55, %v1633_v52  ;;  %v1924_v59 = vpop.f32.mrb[43].mxu1 }
 0x179   : > { %v2252_v60 = vld [vmem:[#allocation2 + $0x90] sm:$0xff] }
 0x17a   : > { %v3414_v61 = vpack.c.bf16 %v2252_v60, %v2252_v60  ;;  %v2655_v62 = vsel %vm363_vm0, %v2252_v60, 0.0  ;;  %v2775_v63 = vmul.f32 %v2252_v60, %v2252_v60  ;;  %2179 = vst.msk [vmem:[#allocation2 + $0xa0] sm:$0xff] %vm363_vm0, %v2114_v57  ;;  %v2115_v0 = vadd.f32 %v1923_v58, %v449_v54 }
 0x17b   : > { %v2656_v1 = vadd.f32 %v2655_v62, %v2654_v45 }
 0x17c   : > { %v2253_v2 = vld [vmem:[#allocation2 + $0x98] sm:$0xff]  ;;  %2573 = vst.msk [vmem:[%s4124_s29 + $0x48] sm:$0xf] %vm2554_vm1, %v3414_v61  ;;  %v2856_v3 = vsel %vm363_vm0, %v2775_v63, 0.0  ;;  %v1638_v7 = vpop.f32.mrb[44].mxu0 }
 0x17d   : > { %v3415_v4 = vpack.c.bf16 %v2253_v2, %v2253_v2  ;;  %v2657_v5 = vsel %vm363_vm0, %v2253_v2, 0.0  ;;  %v2776_v6 = vmul.f32 %v2253_v2, %v2253_v2  ;;  %2180 = vst.msk [vmem:[#allocation2 + $0xa8] sm:$0xff] %vm363_vm0, %v2115_v0  ;;  %v2857_v8 = vadd.f32 %v2856_v3, %v2855_v53  ;;  %v1927_v11 = vpop.f32.mrb[44].mxu1  ;;  %v1640_v12 = vpop.f32.mrb[45].mxu0  ;;  %v454_v3 = vld [vmem:[#allocation2 + $0xd0] sm:$0xff] }
 0x17e   : > { %v2658_v9 = vadd.f32 %v2657_v5, %v2656_v1  ;;  %v1928_v14 = vadd.f32 %v1927_v11, %v1638_v7  ;;  %v1929_v16 = vpop.f32.mrb[45].mxu1  ;;  %v1641_v17 = vpop.f32.mrb[46].mxu0  ;;  %v455_v11 = vld [vmem:[#allocation2 + $0xd8] sm:$0xff] }
 0x17f   : > { %2574 = vst.msk [vmem:[%s4124_s29 + $0x4c] sm:$0xf] %vm2554_vm1, %v3415_v4  ;;  %v2858_v13 = vsel %vm363_vm0, %v2776_v6, 0.0  ;;  %v1930_v20 = vpop.f32.mrb[46].mxu1  ;;  %v1643_v21 = vpop.f32.mrb[47].mxu0 }
 0x180   : > { %v2859_v18 = vadd.f32 %v2858_v13, %v2857_v8  ;;  %v2116_v22 = vadd.f32 %v1928_v14, %v450_v10  ;;  %v1931_v23 = vadd.f32 %v1930_v20, %v1641_v17  ;;  %v1932_v24 = vpop.f32.mrb[47].mxu1 }
 0x181   : > { %v2254_v25 = vld [vmem:[#allocation2 + $0xa0] sm:$0xff] }
 0x182   : > { %v3416_v26 = vpack.c.bf16 %v2254_v25, %v2254_v25  ;;  %v2659_v27 = vsel %vm363_vm0, %v2254_v25, 0.0  ;;  %v2777_v28 = vmul.f32 %v2254_v25, %v2254_v25  ;;  %2181 = vst.msk [vmem:[#allocation2 + $0xb0] sm:$0xff] %vm363_vm0, %v2116_v22  ;;  %v2117_v29 = vadd.f32 %v1931_v23, %v451_v19 }
 0x183   : > { %v2660_v30 = vadd.f32 %v2659_v27, %v2658_v9 }
 0x184   : > { %v2255_v31 = vld [vmem:[#allocation2 + $0xa8] sm:$0xff]  ;;  %2575 = vst.msk [vmem:[%s4124_s29 + $0x50] sm:$0xf] %vm2554_vm1, %v3416_v26  ;;  %v2860_v32 = vsel %vm363_vm0, %v2777_v28, 0.0  ;;  %v1646_v36 = vpop.f32.mrb[48].mxu0 }
 0x185   : > { %v3417_v33 = vpack.c.bf16 %v2255_v31, %v2255_v31  ;;  %v2661_v34 = vsel %vm363_vm0, %v2255_v31, 0.0  ;;  %v2778_v35 = vmul.f32 %v2255_v31, %v2255_v31  ;;  %2182 = vst.msk [vmem:[#allocation2 + $0xb8] sm:$0xff] %vm363_vm0, %v2117_v29  ;;  %v2861_v37 = vadd.f32 %v2860_v32, %v2859_v18  ;;  %v1935_v40 = vpop.f32.mrb[48].mxu1  ;;  %v1648_v41 = vpop.f32.mrb[49].mxu0  ;;  %v456_v32 = vld [vmem:[#allocation2 + $0xe0] sm:$0xff] }
 0x186   : > { %v2662_v38 = vadd.f32 %v2661_v34, %v2660_v30  ;;  %v1936_v43 = vadd.f32 %v1935_v40, %v1646_v36  ;;  %v1937_v44 = vpop.f32.mrb[49].mxu1  ;;  %v1649_v45 = vpop.f32.mrb[50].mxu0  ;;  %v457_v40 = vld [vmem:[#allocation2 + $0xe8] sm:$0xff] }
 0x187   : > { %2576 = vst.msk [vmem:[%s4124_s29 + $0x54] sm:$0xf] %vm2554_vm1, %v3417_v33  ;;  %v2862_v42 = vsel %vm363_vm0, %v2778_v35, 0.0  ;;  %v1938_v48 = vpop.f32.mrb[50].mxu1  ;;  %v1651_v49 = vpop.f32.mrb[51].mxu0 }
 0x188   : > { %v2863_v46 = vadd.f32 %v2862_v42, %v2861_v37  ;;  %v2118_v50 = vadd.f32 %v1936_v43, %v452_v39  ;;  %v1939_v51 = vadd.f32 %v1938_v48, %v1649_v45  ;;  %v1940_v52 = vpop.f32.mrb[51].mxu1 }
 0x189   : > { %v2256_v53 = vld [vmem:[#allocation2 + $0xb0] sm:$0xff] }
 0x18a   : > { %v3418_v54 = vpack.c.bf16 %v2256_v53, %v2256_v53  ;;  %v2663_v55 = vsel %vm363_vm0, %v2256_v53, 0.0  ;;  %v2779_v56 = vmul.f32 %v2256_v53, %v2256_v53  ;;  %2183 = vst.msk [vmem:[#allocation2 + $0xc0] sm:$0xff] %vm363_vm0, %v2118_v50  ;;  %v2119_v57 = vadd.f32 %v1939_v51, %v453_v47 }
 0x18b   : > { %v2664_v58 = vadd.f32 %v2663_v55, %v2662_v38 }
 0x18c   : > { %v2257_v59 = vld [vmem:[#allocation2 + $0xb8] sm:$0xff]  ;;  %2577 = vst.msk [vmem:[%s4124_s29 + $0x58] sm:$0xf] %vm2554_vm1, %v3418_v54  ;;  %v2864_v60 = vsel %vm363_vm0, %v2779_v56, 0.0  ;;  %v1654_v0 = vpop.f32.mrb[52].mxu0 }
 0x18d   : > { %v3419_v61 = vpack.c.bf16 %v2257_v59, %v2257_v59  ;;  %v2665_v62 = vsel %vm363_vm0, %v2257_v59, 0.0  ;;  %v2780_v63 = vmul.f32 %v2257_v59, %v2257_v59  ;;  %2184 = vst.msk [vmem:[#allocation2 + $0xc8] sm:$0xff] %vm363_vm0, %v2119_v57  ;;  %v2865_v1 = vadd.f32 %v2864_v60, %v2863_v46  ;;  %v1943_v4 = vpop.f32.mrb[52].mxu1  ;;  %v1656_v5 = vpop.f32.mrb[53].mxu0  ;;  %v458_v60 = vld [vmem:[#allocation2 + $0xf0] sm:$0xff] }
 0x18e   : > { %v2666_v2 = vadd.f32 %v2665_v62, %v2664_v58  ;;  %v1944_v7 = vadd.f32 %v1943_v4, %v1654_v0  ;;  %v1945_v8 = vpop.f32.mrb[53].mxu1  ;;  %v1657_v9 = vpop.f32.mrb[54].mxu0  ;;  %v459_v4 = vld [vmem:[#allocation2 + $0xf8] sm:$0xff] }
 0x18f   : > { %2578 = vst.msk [vmem:[%s4124_s29 + $0x5c] sm:$0xf] %vm2554_vm1, %v3419_v61  ;;  %v2866_v6 = vsel %vm363_vm0, %v2780_v63, 0.0  ;;  %v1946_v12 = vpop.f32.mrb[54].mxu1  ;;  %v1659_v13 = vpop.f32.mrb[55].mxu0 }
 0x190   : > { %v2867_v10 = vadd.f32 %v2866_v6, %v2865_v1  ;;  %v2120_v14 = vadd.f32 %v1944_v7, %v454_v3  ;;  %v1947_v16 = vadd.f32 %v1946_v12, %v1657_v9  ;;  %v1948_v17 = vpop.f32.mrb[55].mxu1 }
 0x191   : > { %v2258_v18 = vld [vmem:[#allocation2 + $0xc0] sm:$0xff] }
 0x192   : > { %v3420_v19 = vpack.c.bf16 %v2258_v18, %v2258_v18  ;;  %v2667_v20 = vsel %vm363_vm0, %v2258_v18, 0.0  ;;  %v2781_v21 = vmul.f32 %v2258_v18, %v2258_v18  ;;  %2185 = vst.msk [vmem:[#allocation2 + $0xd0] sm:$0xff] %vm363_vm0, %v2120_v14  ;;  %v2121_v22 = vadd.f32 %v1947_v16, %v455_v11 }
 0x193   : > { %v2668_v23 = vadd.f32 %v2667_v20, %v2666_v2 }
 0x194   : > { %v2259_v24 = vld [vmem:[#allocation2 + $0xc8] sm:$0xff]  ;;  %2579 = vst.msk [vmem:[%s4124_s29 + $0x60] sm:$0xf] %vm2554_vm1, %v3420_v19  ;;  %v2868_v25 = vsel %vm363_vm0, %v2781_v21, 0.0  ;;  %v1662_v29 = vpop.f32.mrb[56].mxu0 }
 0x195   : > { %v3421_v26 = vpack.c.bf16 %v2259_v24, %v2259_v24  ;;  %v2669_v27 = vsel %vm363_vm0, %v2259_v24, 0.0  ;;  %v2782_v28 = vmul.f32 %v2259_v24, %v2259_v24  ;;  %2186 = vst.msk [vmem:[#allocation2 + $0xd8] sm:$0xff] %vm363_vm0, %v2121_v22  ;;  %v2869_v30 = vadd.f32 %v2868_v25, %v2867_v10  ;;  %v1951_v33 = vpop.f32.mrb[56].mxu1  ;;  %v1664_v34 = vpop.f32.mrb[57].mxu0  ;;  %v460_v25 = vld [vmem:[#allocation2 + $0x100] sm:$0xff] }
 0x196   : > { %v2670_v31 = vadd.f32 %v2669_v27, %v2668_v23  ;;  %v1952_v36 = vadd.f32 %v1951_v33, %v1662_v29  ;;  %v1953_v37 = vpop.f32.mrb[57].mxu1  ;;  %v1665_v38 = vpop.f32.mrb[58].mxu0  ;;  %v461_v33 = vld [vmem:[#allocation2 + $0x108] sm:$0xff] }
 0x197   : > { %2580 = vst.msk [vmem:[%s4124_s29 + $0x64] sm:$0xf] %vm2554_vm1, %v3421_v26  ;;  %v2870_v35 = vsel %vm363_vm0, %v2782_v28, 0.0  ;;  %v1954_v41 = vpop.f32.mrb[58].mxu1  ;;  %v1667_v42 = vpop.f32.mrb[59].mxu0 }
 0x198   : > { %v2871_v39 = vadd.f32 %v2870_v35, %v2869_v30  ;;  %v2122_v43 = vadd.f32 %v1952_v36, %v456_v32  ;;  %v1955_v44 = vadd.f32 %v1954_v41, %v1665_v38  ;;  %v1956_v45 = vpop.f32.mrb[59].mxu1 }
 0x199   : > { %v2260_v46 = vld [vmem:[#allocation2 + $0xd0] sm:$0xff] }
 0x19a   : > { %v3422_v47 = vpack.c.bf16 %v2260_v46, %v2260_v46  ;;  %v2671_v48 = vsel %vm363_vm0, %v2260_v46, 0.0  ;;  %v2783_v49 = vmul.f32 %v2260_v46, %v2260_v46  ;;  %2187 = vst.msk [vmem:[#allocation2 + $0xe0] sm:$0xff] %vm363_vm0, %v2122_v43  ;;  %v2123_v50 = vadd.f32 %v1955_v44, %v457_v40 }
 0x19b   : > { %v2672_v51 = vadd.f32 %v2671_v48, %v2670_v31 }
 0x19c   : > { %v2261_v52 = vld [vmem:[#allocation2 + $0xd8] sm:$0xff]  ;;  %2581 = vst.msk [vmem:[%s4124_s29 + $0x68] sm:$0xf] %vm2554_vm1, %v3422_v47  ;;  %v2872_v53 = vsel %vm363_vm0, %v2783_v49, 0.0  ;;  %v1670_v57 = vpop.f32.mrb[60].mxu0 }
 0x19d   : > { %v3423_v54 = vpack.c.bf16 %v2261_v52, %v2261_v52  ;;  %v2673_v55 = vsel %vm363_vm0, %v2261_v52, 0.0  ;;  %v2784_v56 = vmul.f32 %v2261_v52, %v2261_v52  ;;  %2188 = vst.msk [vmem:[#allocation2 + $0xe8] sm:$0xff] %vm363_vm0, %v2123_v50  ;;  %v2873_v58 = vadd.f32 %v2872_v53, %v2871_v39  ;;  %v1959_v61 = vpop.f32.mrb[60].mxu1  ;;  %v1672_v62 = vpop.f32.mrb[61].mxu0  ;;  %v462_v53 = vld [vmem:[#allocation2 + $0x110] sm:$0xff] }
 0x19e   : > { %v2674_v59 = vadd.f32 %v2673_v55, %v2672_v51  ;;  %v1960_v0 = vadd.f32 %v1959_v61, %v1670_v57  ;;  %v1961_v1 = vpop.f32.mrb[61].mxu1  ;;  %v1673_v2 = vpop.f32.mrb[62].mxu0  ;;  %v463_v61 = vld [vmem:[#allocation2 + $0x118] sm:$0xff] }
 0x19f   : > { %2582 = vst.msk [vmem:[%s4124_s29 + $0x6c] sm:$0xf] %vm2554_vm1, %v3423_v54  ;;  %v2874_v63 = vsel %vm363_vm0, %v2784_v56, 0.0  ;;  %v1962_v5 = vpop.f32.mrb[62].mxu1  ;;  %v1675_v6 = vpop.f32.mrb[63].mxu0 }
 0x1a0   : > { %v2875_v3 = vadd.f32 %v2874_v63, %v2873_v58  ;;  %v2124_v7 = vadd.f32 %v1960_v0, %v458_v60  ;;  %v1963_v8 = vadd.f32 %v1962_v5, %v1673_v2  ;;  %v1964_v9 = vpop.f32.mrb[63].mxu1 }
 0x1a1   : > { %v2262_v10 = vld [vmem:[#allocation2 + $0xe0] sm:$0xff] }
 0x1a2   : > { %v3424_v11 = vpack.c.bf16 %v2262_v10, %v2262_v10  ;;  %v2675_v12 = vsel %vm363_vm0, %v2262_v10, 0.0  ;;  %v2785_v13 = vmul.f32 %v2262_v10, %v2262_v10  ;;  %2189 = vst.msk [vmem:[#allocation2 + $0xf0] sm:$0xff] %vm363_vm0, %v2124_v7  ;;  %v2125_v14 = vadd.f32 %v1963_v8, %v459_v4  ;;  %v464_v8 = vld [vmem:[#allocation2 + $0x120] sm:$0xff] }
 0x1a3   : > { %v2676_v16 = vadd.f32 %v2675_v12, %v2674_v59 }
 0x1a4   : > { %v2263_v17 = vld [vmem:[#allocation2 + $0xe8] sm:$0xff]  ;;  %2583 = vst.msk [vmem:[%s4124_s29 + $0x70] sm:$0xf] %vm2554_vm1, %v3424_v11  ;;  %v2876_v18 = vsel %vm363_vm0, %v2785_v13, 0.0  ;;  %v1678_v22 = vpop.f32.mrb[64].mxu0 }
 0x1a5   : > { %v3425_v19 = vpack.c.bf16 %v2263_v17, %v2263_v17  ;;  %v2677_v20 = vsel %vm363_vm0, %v2263_v17, 0.0  ;;  %v2786_v21 = vmul.f32 %v2263_v17, %v2263_v17  ;;  %2190 = vst.msk [vmem:[#allocation2 + $0xf8] sm:$0xff] %vm363_vm0, %v2125_v14  ;;  %v2877_v23 = vadd.f32 %v2876_v18, %v2875_v3  ;;  %v1967_v26 = vpop.f32.mrb[64].mxu1  ;;  %v1680_v27 = vpop.f32.mrb[65].mxu0  ;;  %v465_v14 = vld [vmem:[#allocation2 + $0x128] sm:$0xff] }
 0x1a6   : > { %v2678_v24 = vadd.f32 %v2677_v20, %v2676_v16  ;;  %v1968_v29 = vadd.f32 %v1967_v26, %v1678_v22  ;;  %v1969_v30 = vpop.f32.mrb[65].mxu1  ;;  %v1681_v31 = vpop.f32.mrb[66].mxu0  ;;  %v466_v27 = vld [vmem:[#allocation2 + $0x130] sm:$0xff] }
 0x1a7   : > { %2584 = vst.msk [vmem:[%s4124_s29 + $0x74] sm:$0xf] %vm2554_vm1, %v3425_v19  ;;  %v2878_v28 = vsel %vm363_vm0, %v2786_v21, 0.0  ;;  %v1970_v34 = vpop.f32.mrb[66].mxu1  ;;  %v1683_v35 = vpop.f32.mrb[67].mxu0 }
 0x1a8   : > { %v2879_v32 = vadd.f32 %v2878_v28, %v2877_v23  ;;  %v2126_v36 = vadd.f32 %v1968_v29, %v460_v25  ;;  %v1971_v37 = vadd.f32 %v1970_v34, %v1681_v31  ;;  %v1972_v38 = vpop.f32.mrb[67].mxu1 }
 0x1a9   : > { %v2264_v39 = vld [vmem:[#allocation2 + $0xf0] sm:$0xff] }
 0x1aa   : > { %v3426_v40 = vpack.c.bf16 %v2264_v39, %v2264_v39  ;;  %v2679_v41 = vsel %vm363_vm0, %v2264_v39, 0.0  ;;  %v2787_v42 = vmul.f32 %v2264_v39, %v2264_v39  ;;  %2191 = vst.msk [vmem:[#allocation2 + $0x100] sm:$0xff] %vm363_vm0, %v2126_v36  ;;  %v2127_v43 = vadd.f32 %v1971_v37, %v461_v33  ;;  %v467_v33 = vld [vmem:[#allocation2 + $0x138] sm:$0xff] }
 0x1ab   : > { %v2680_v44 = vadd.f32 %v2679_v41, %v2678_v24 }
 0x1ac   : > { %v2265_v45 = vld [vmem:[#allocation2 + $0xf8] sm:$0xff]  ;;  %2585 = vst.msk [vmem:[%s4124_s29 + $0x78] sm:$0xf] %vm2554_vm1, %v3426_v40  ;;  %v2880_v46 = vsel %vm363_vm0, %v2787_v42, 0.0  ;;  %v1686_v50 = vpop.f32.mrb[68].mxu0 }
 0x1ad   : > { %v3427_v47 = vpack.c.bf16 %v2265_v45, %v2265_v45  ;;  %v2681_v48 = vsel %vm363_vm0, %v2265_v45, 0.0  ;;  %v2788_v49 = vmul.f32 %v2265_v45, %v2265_v45  ;;  %2192 = vst.msk [vmem:[#allocation2 + $0x108] sm:$0xff] %vm363_vm0, %v2127_v43  ;;  %v2881_v51 = vadd.f32 %v2880_v46, %v2879_v32  ;;  %v1975_v54 = vpop.f32.mrb[68].mxu1  ;;  %v1688_v55 = vpop.f32.mrb[69].mxu0  ;;  %v468_v45 = vld [vmem:[#allocation2 + $0x140] sm:$0xff] }
 0x1ae   : > { %v4293_v52 = vadd.f32 %v2681_v48, %v2680_v44  ;;  %v1976_v57 = vadd.f32 %v1975_v54, %v1686_v50  ;;  %v1977_v58 = vpop.f32.mrb[69].mxu1  ;;  %v1689_v59 = vpop.f32.mrb[70].mxu0 }
 0x1af   : > { %2586 = vst.msk [vmem:[%s4124_s29 + $0x7c] sm:$0xf] %vm2554_vm1, %v3427_v47  ;;  %v2882_v56 = vsel %vm363_vm0, %v2788_v49, 0.0  ;;  %v1978_v62 = vpop.f32.mrb[70].mxu1  ;;  %v1691_v63 = vpop.f32.mrb[71].mxu0 }
 0x1b0   : > { %v4316_v60 = vadd.f32 %v2882_v56, %v2881_v51  ;;  %v2128_v0 = vadd.f32 %v1976_v57, %v462_v53  ;;  %v1979_v1 = vadd.f32 %v1978_v62, %v1689_v59  ;;  %v1980_v2 = vpop.f32.mrb[71].mxu1  ;;  %v469_v51 = vld [vmem:[#allocation2 + $0x148] sm:$0xff] }
 0x1b1   : > { %v4318_v3 = vld [vmem:[#allocation2 + $0x100] sm:$0xff]  ;;  %v470_v2 = vld [vmem:[#allocation2 + $0x150] sm:$0xff] }
 0x1b2   : > { %v3428_v4 = vpack.c.bf16 %v4318_v3, %v4318_v3  ;;  %2193 = vst.msk [vmem:[#allocation2 + $0x110] sm:$0xff] %vm363_vm0, %v2128_v0  ;;  %v2129_v5 = vadd.f32 %v1979_v1, %v463_v61  ;;  %v2789_v63 = vmul.f32 %v4318_v3, %v4318_v3 }
 0x1b4   : > { %v4323_v6 = vld [vmem:[#allocation2 + $0x108] sm:$0xff]  ;;  %2587 = vst.msk [vmem:[%s4124_s29 + $0x80] sm:$0xf] %vm2554_vm1, %v3428_v4  ;;  %v1694_v7 = vpop.f32.mrb[72].mxu0 }
 0x1b5   : > { %v3429_v15 = vpack.c.bf16 %v4323_v6, %v4323_v6  ;;  %2194 = vst.msk [vmem:[#allocation2 + $0x118] sm:$0xff] %vm363_vm0, %v2129_v5  ;;  %v1983_v9 = vpop.f32.mrb[72].mxu1  ;;  %v1696_v10 = vpop.f32.mrb[73].mxu0 }
 0x1b6   : > { %v1984_v11 = vadd.f32 %v1983_v9, %v1694_v7  ;;  %v1985_v12 = vpop.f32.mrb[73].mxu1  ;;  %v1697_v13 = vpop.f32.mrb[74].mxu0  ;;  %v471_v10 = vld [vmem:[#allocation2 + $0x158] sm:$0xff] }
 0x1b7   : > { %2588 = vst.msk [vmem:[%s4124_s29 + $0x84] sm:$0xf] %vm2554_vm1, %v3429_v15  ;;  %v1986_v16 = vpop.f32.mrb[74].mxu1  ;;  %v1699_v17 = vpop.f32.mrb[75].mxu0  ;;  %v2683_v15 = vsel %vm363_vm0, %v4318_v3, 0.0 }
 0x1b8   : > { %v2130_v18 = vadd.f32 %v1984_v11, %v464_v8  ;;  %v1987_v19 = vadd.f32 %v1986_v16, %v1697_v13  ;;  %v1988_v20 = vpop.f32.mrb[75].mxu1  ;;  %v2884_v13 = vsel %vm363_vm0, %v2789_v63, 0.0 }
 0x1b9   : > { %v4332_v21 = vld [vmem:[#allocation2 + $0x110] sm:$0xff]  ;;  %v2685_v20 = vsel %vm363_vm0, %v4323_v6, 0.0 }
 0x1ba   : > { %v3430_v22 = vpack.c.bf16 %v4332_v21, %v4332_v21  ;;  %2195 = vst.msk [vmem:[#allocation2 + $0x120] sm:$0xff] %vm363_vm0, %v2130_v18  ;;  %v2131_v23 = vadd.f32 %v1987_v19, %v465_v14  ;;  %v2790_v14 = vmul.f32 %v4323_v6, %v4323_v6  ;;  %v2684_v19 = vadd.f32 %v2683_v15, %v4293_v52 }
 0x1bc   : > { %v4337_v24 = vld [vmem:[#allocation2 + $0x118] sm:$0xff]  ;;  %2589 = vst.msk [vmem:[%s4124_s29 + $0x88] sm:$0xf] %vm2554_vm1, %v3430_v22  ;;  %v1702_v26 = vpop.f32.mrb[76].mxu0  ;;  %v2791_v22 = vmul.f32 %v4332_v21, %v4332_v21  ;;  %v2886_v52 = vsel %vm363_vm0, %v2790_v14, 0.0 }
 0x1bd   : > { %v3431_v25 = vpack.c.bf16 %v4337_v24, %v4337_v24  ;;  %2196 = vst.msk [vmem:[#allocation2 + $0x128] sm:$0xff] %vm363_vm0, %v2131_v23  ;;  %v1991_v28 = vpop.f32.mrb[76].mxu1  ;;  %v1704_v29 = vpop.f32.mrb[77].mxu0 }
 0x1be   : > { %v1992_v30 = vadd.f32 %v1991_v28, %v1702_v26  ;;  %v1993_v31 = vpop.f32.mrb[77].mxu1  ;;  %v1705_v32 = vpop.f32.mrb[78].mxu0  ;;  %v2885_v26 = vadd.f32 %v2884_v13, %v4316_v60  ;;  %v2687_v28 = vsel %vm363_vm0, %v4332_v21, 0.0  ;;  %v2888_v60 = vsel %vm363_vm0, %v2791_v22, 0.0 }
 0x1bf   : > { %2590 = vst.msk [vmem:[%s4124_s29 + $0x8c] sm:$0xf] %vm2554_vm1, %v3431_v25  ;;  %v1994_v34 = vpop.f32.mrb[78].mxu1  ;;  %v1707_v35 = vpop.f32.mrb[79].mxu0  ;;  %v472_v31 = vld [vmem:[#allocation2 + $0x160] sm:$0xff] }
 0x1c0   : > { %v2132_v36 = vadd.f32 %v1992_v30, %v466_v27  ;;  %v1995_v37 = vadd.f32 %v1994_v34, %v1705_v32  ;;  %v1996_v38 = vpop.f32.mrb[79].mxu1  ;;  %v2686_v30 = vadd.f32 %v2685_v20, %v2684_v19  ;;  %v2792_v34 = vmul.f32 %v4337_v24, %v4337_v24 }
 0x1c1   : > { %v4346_v39 = vld [vmem:[#allocation2 + $0x120] sm:$0xff] }
 0x1c2   : > { %v3432_v40 = vpack.c.bf16 %v4346_v39, %v4346_v39  ;;  %2197 = vst.msk [vmem:[#allocation2 + $0x130] sm:$0xff] %vm363_vm0, %v2132_v36  ;;  %v2133_v41 = vadd.f32 %v1995_v37, %v467_v33  ;;  %v2887_v37 = vadd.f32 %v2886_v52, %v2885_v26  ;;  %v2688_v38 = vadd.f32 %v2687_v28, %v2686_v30 }
 0x1c4   : > { %v4351_v42 = vld [vmem:[#allocation2 + $0x128] sm:$0xff]  ;;  %2591 = vst.msk [vmem:[%s4124_s29 + $0x90] sm:$0xf] %vm2554_vm1, %v3432_v40  ;;  %v1710_v44 = vpop.f32.mrb[80].mxu0 }
 0x1c5   : > { %v3433_v43 = vpack.c.bf16 %v4351_v42, %v4351_v42  ;;  %2198 = vst.msk [vmem:[#allocation2 + $0x138] sm:$0xff] %vm363_vm0, %v2133_v41  ;;  %v1999_v46 = vpop.f32.mrb[80].mxu1  ;;  %v1712_v47 = vpop.f32.mrb[81].mxu0  ;;  %v473_v40 = vld [vmem:[#allocation2 + $0x168] sm:$0xff] }
 0x1c6   : > { %v2000_v48 = vadd.f32 %v1999_v46, %v1710_v44  ;;  %v2001_v49 = vpop.f32.mrb[81].mxu1  ;;  %v1713_v50 = vpop.f32.mrb[82].mxu0  ;;  %v2689_v44 = vsel %vm363_vm0, %v4337_v24, 0.0 }
 0x1c7   : > { %2592 = vst.msk [vmem:[%s4124_s29 + $0x94] sm:$0xf] %vm2554_vm1, %v3433_v43  ;;  %v2002_v53 = vpop.f32.mrb[82].mxu1  ;;  %v1715_v54 = vpop.f32.mrb[83].mxu0  ;;  %v2889_v49 = vadd.f32 %v2888_v60, %v2887_v37 }
 0x1c8   : > { %v2134_v55 = vadd.f32 %v2000_v48, %v468_v45  ;;  %v2003_v56 = vadd.f32 %v2002_v53, %v1713_v50  ;;  %v2004_v57 = vpop.f32.mrb[83].mxu1  ;;  %v2793_v45 = vmul.f32 %v4346_v39, %v4346_v39  ;;  %v2691_v53 = vsel %vm363_vm0, %v4346_v39, 0.0 }
 0x1c9   : > { %v4360_v58 = vld [vmem:[#allocation2 + $0x130] sm:$0xff] }
 0x1ca   : > { %v3434_v59 = vpack.c.bf16 %v4360_v58, %v4360_v58  ;;  %2199 = vst.msk [vmem:[#allocation2 + $0x140] sm:$0xff] %vm363_vm0, %v2134_v55  ;;  %v2135_v61 = vadd.f32 %v2003_v56, %v469_v51  ;;  %v2890_v51 = vsel %vm363_vm0, %v2792_v34, 0.0  ;;  %v2690_v55 = vadd.f32 %v2689_v44, %v2688_v38 }
 0x1cb   : > { %v2892_v57 = vsel %vm363_vm0, %v2793_v45, 0.0  ;;  %v2891_v63 = vadd.f32 %v2890_v51, %v2889_v49  ;;  %v2795_v15 = vmul.f32 %v4360_v58, %v4360_v58 }
 0x1cc   : > { %v4365_v62 = vld [vmem:[#allocation2 + $0x138] sm:$0xff]  ;;  %2593 = vst.msk [vmem:[%s4124_s29 + $0x98] sm:$0xf] %vm2554_vm1, %v3434_v59  ;;  %v1718_v1 = vpop.f32.mrb[84].mxu0  ;;  %v2794_v59 = vmul.f32 %v4351_v42, %v4351_v42 }
 0x1cd   : > { %v3435_v0 = vpack.c.bf16 %v4365_v62, %v4365_v62  ;;  %2200 = vst.msk [vmem:[#allocation2 + $0x148] sm:$0xff] %vm363_vm0, %v2135_v61  ;;  %v2007_v4 = vpop.f32.mrb[84].mxu1  ;;  %v1720_v5 = vpop.f32.mrb[85].mxu0  ;;  %v2896_v22 = vsel %vm363_vm0, %v2795_v15, 0.0 }
 0x1ce   : > { %v2008_v7 = vadd.f32 %v2007_v4, %v1718_v1  ;;  %v2009_v8 = vpop.f32.mrb[85].mxu1  ;;  %v1721_v9 = vpop.f32.mrb[86].mxu0  ;;  %v474_v1 = vld [vmem:[#allocation2 + $0x170] sm:$0xff]  ;;  %v2693_v5 = vsel %vm363_vm0, %v4351_v42, 0.0  ;;  %v2894_v14 = vsel %vm363_vm0, %v2794_v59, 0.0 }
 0x1cf   : > { %2594 = vst.msk [vmem:[%s4124_s29 + $0x9c] sm:$0xf] %vm2554_vm1, %v3435_v0  ;;  %v2010_v11 = vpop.f32.mrb[86].mxu1  ;;  %v1723_v12 = vpop.f32.mrb[87].mxu0  ;;  %v2692_v0 = vadd.f32 %v2691_v53, %v2690_v55 }
 0x1d0   : > { %v2136_v16 = vadd.f32 %v2008_v7, %v470_v2  ;;  %v2011_v17 = vadd.f32 %v2010_v11, %v1721_v9  ;;  %v2012_v18 = vpop.f32.mrb[87].mxu1  ;;  %v475_v11 = vld [vmem:[#allocation2 + $0x178] sm:$0xff] }
 0x1d1   : > { %v4382_v3 = vld [vmem:[#allocation2 + $0x140] sm:$0xff]  ;;  %v2694_v19 = vadd.f32 %v2693_v5, %v2692_v0 }
 0x1d2   : > { %v3436_v23 = vpack.c.bf16 %v4382_v3, %v4382_v3  ;;  %2201 = vst.msk [vmem:[#allocation2 + $0x150] sm:$0xff] %vm363_vm0, %v2136_v16  ;;  %v2137_v25 = vadd.f32 %v2011_v17, %v471_v10  ;;  %v2893_v10 = vadd.f32 %v2892_v57, %v2891_v63  ;;  %v2695_v16 = vsel %vm363_vm0, %v4360_v58, 0.0 }
 0x1d3   : > { %v2696_v52 = vadd.f32 %v2695_v16, %v2694_v19 }
 0x1d4   : > { %v4392_v27 = vld [vmem:[#allocation2 + $0x148] sm:$0xff]  ;;  %2595 = vst.msk [vmem:[%s4124_s29 + $0xa0] sm:$0xf] %vm2554_vm1, %v3436_v23  ;;  %v1726_v29 = vpop.f32.mrb[88].mxu0  ;;  %v2796_v23 = vmul.f32 %v4365_v62, %v4365_v62  ;;  %v2895_v58 = vadd.f32 %v2894_v14, %v2893_v10 }
 0x1d5   : > { %v3437_v6 = vpack.c.bf16 %v4392_v27, %v4392_v27  ;;  %2202 = vst.msk [vmem:[#allocation2 + $0x158] sm:$0xff] %vm363_vm0, %v2137_v25  ;;  %v2015_v32 = vpop.f32.mrb[88].mxu1  ;;  %v1728_v33 = vpop.f32.mrb[89].mxu0  ;;  %v2798_v45 = vmul.f32 %v4392_v27, %v4392_v27  ;;  %v2701_v53 = vsel %vm363_vm0, %v4392_v27, 0.0 }
 0x1d6   : > { %v2016_v21 = vadd.f32 %v2015_v32, %v1726_v29  ;;  %v2017_v35 = vpop.f32.mrb[89].mxu1  ;;  %v1729_v36 = vpop.f32.mrb[90].mxu0  ;;  %v2797_v29 = vmul.f32 %v4382_v3, %v4382_v3  ;;  %v2897_v32 = vadd.f32 %v2896_v22, %v2895_v58  ;;  %v476_v33 = vld [vmem:[#allocation2 + $0x180] sm:$0xff] }
 0x1d7   : > { %2596 = vst.msk [vmem:[%s4124_s29 + $0xa4] sm:$0xf] %vm2554_vm1, %v3437_v6  ;;  %v2018_v41 = vpop.f32.mrb[90].mxu1  ;;  %v1731_v43 = vpop.f32.mrb[91].mxu0  ;;  %v2697_v6 = vsel %vm363_vm0, %v4365_v62, 0.0  ;;  %v2699_v62 = vsel %vm363_vm0, %v4382_v3, 0.0 }
 0x1d8   : > { %v2138_v46 = vadd.f32 %v2016_v21, %v472_v31  ;;  %v2019_v47 = vadd.f32 %v2018_v41, %v1729_v36  ;;  %v2020_v48 = vpop.f32.mrb[91].mxu1  ;;  %v2898_v21 = vsel %vm363_vm0, %v2796_v23, 0.0  ;;  %v2698_v38 = vadd.f32 %v2697_v6, %v2696_v52 }
 0x1d9   : > { %v4411_v50 = vld [vmem:[#allocation2 + $0x150] sm:$0xff]  ;;  %v2900_v44 = vsel %vm363_vm0, %v2797_v29, 0.0  ;;  %v2899_v49 = vadd.f32 %v2898_v21, %v2897_v32 }
 0x1da   : > { %v3438_v54 = vpack.c.bf16 %v4411_v50, %v4411_v50  ;;  %2203 = vst.msk [vmem:[#allocation2 + $0x160] sm:$0xff] %vm363_vm0, %v2138_v46  ;;  %v2139_v24 = vadd.f32 %v2019_v47, %v473_v40  ;;  %v477_v40 = vld [vmem:[#allocation2 + $0x188] sm:$0xff]  ;;  %v2700_v3 = vadd.f32 %v2699_v62, %v2698_v38 }
 0x1db   : > { %v2901_v57 = vadd.f32 %v2900_v44, %v2899_v49 }
 0x1dc   : > { %v4419_v56 = vld [vmem:[#allocation2 + $0x158] sm:$0xff]  ;;  %2597 = vst.msk [vmem:[%s4124_s29 + $0xa8] sm:$0xf] %vm2554_vm1, %v3438_v54  ;;  %v1734_v61 = vpop.f32.mrb[92].mxu0  ;;  %v2799_v54 = vmul.f32 %v4411_v50, %v4411_v50  ;;  %v2702_v0 = vadd.f32 %v2701_v53, %v2700_v3 }
 0x1dd   : > { %v3439_v39 = vpack.c.bf16 %v4419_v56, %v4419_v56  ;;  %2204 = vst.msk [vmem:[#allocation2 + $0x168] sm:$0xff] %vm363_vm0, %v2139_v24  ;;  %v2023_v2 = vpop.f32.mrb[92].mxu1  ;;  %v1736_v4 = vpop.f32.mrb[93].mxu0  ;;  %v2800_v15 = vmul.f32 %v4419_v56, %v4419_v56  ;;  %v2705_v14 = vsel %vm363_vm0, %v4419_v56, 0.0 }
 0x1de   : > { %v2024_v7 = vadd.f32 %v2023_v2, %v1734_v61  ;;  %v2025_v8 = vpop.f32.mrb[93].mxu1  ;;  %v1737_v9 = vpop.f32.mrb[94].mxu0  ;;  %v2703_v61 = vsel %vm363_vm0, %v4411_v50, 0.0  ;;  %v2904_v5 = vsel %vm363_vm0, %v2799_v54, 0.0 }
 0x1df   : > { %2598 = vst.msk [vmem:[%s4124_s29 + $0xac] sm:$0xf] %vm2554_vm1, %v3439_v39  ;;  %v2026_v12 = vpop.f32.mrb[94].mxu1  ;;  %v1739_v13 = vpop.f32.mrb[95].mxu0  ;;  %v2902_v39 = vsel %vm363_vm0, %v2798_v45, 0.0  ;;  %v2704_v10 = vadd.f32 %v2703_v61, %v2702_v0  ;;  %v2906_v23 = vsel %vm363_vm0, %v2800_v15, 0.0 }
 0x1e0   : > { %v2140_v17 = vadd.f32 %v2024_v7, %v474_v1  ;;  %v2027_v42 = vadd.f32 %v2026_v12, %v1737_v9  ;;  %v2028_v18 = vpop.f32.mrb[95].mxu1  ;;  %v478_v1 = vld [vmem:[#allocation2 + $0x190] sm:$0xff]  ;;  %v2903_v9 = vadd.f32 %v2902_v39, %v2901_v57 }
 0x1e1   : > { %v4438_v20 = vld [vmem:[#allocation2 + $0x160] sm:$0xff]  ;;  %v2706_v56 = vadd.f32 %v2705_v14, %v2704_v10 }
 0x1e2   : > { %v3440_v25 = vpack.c.bf16 %v4438_v20, %v4438_v20  ;;  %2205 = vst.msk [vmem:[#allocation2 + $0x170] sm:$0xff] %vm363_vm0, %v2140_v17  ;;  %v2141_v26 = vadd.f32 %v2027_v42, %v475_v11  ;;  %v479_v11 = vld [vmem:[#allocation2 + $0x198] sm:$0xff]  ;;  %v2801_v16 = vmul.f32 %v4438_v20, %v4438_v20  ;;  %v2905_v19 = vadd.f32 %v2904_v5, %v2903_v9 }
 0x1e3   : > { %v483_v9 = vld [vmem:[#allocation2 + $0x1b8] sm:$0xff] }
 0x1e4   : > { %v4446_v28 = vld [vmem:[#allocation2 + $0x168] sm:$0xff]  ;;  %2599 = vst.msk [vmem:[%s4124_s29 + $0xb0] sm:$0xf] %vm2554_vm1, %v3440_v25  ;;  %v1742_v31 = vpop.f32.mrb[96].mxu0  ;;  %v2707_v25 = vsel %vm363_vm0, %v4438_v20, 0.0  ;;  %v2908_v6 = vsel %vm363_vm0, %v2801_v16, 0.0 }
 0x1e5   : > { %v3441_v30 = vpack.c.bf16 %v4446_v28, %v4446_v28  ;;  %2206 = vst.msk [vmem:[#allocation2 + $0x178] sm:$0xff] %vm363_vm0, %v2141_v26  ;;  %v2031_v60 = vpop.f32.mrb[96].mxu1  ;;  %v1744_v34 = vpop.f32.mrb[97].mxu0  ;;  %v2802_v29 = vmul.f32 %v4446_v28, %v4446_v28  ;;  %v2708_v32 = vadd.f32 %v2707_v25, %v2706_v56  ;;  %v2709_v21 = vsel %vm363_vm0, %v4446_v28, 0.0 }
 0x1e6   : > { %v2032_v35 = vadd.f32 %v2031_v60, %v1742_v31  ;;  %v2033_v36 = vpop.f32.mrb[97].mxu1  ;;  %v1745_v37 = vpop.f32.mrb[98].mxu0  ;;  %v2907_v31 = vadd.f32 %v2906_v23, %v2905_v19 }
 0x1e7   : > { %2600 = vst.msk [vmem:[%s4124_s29 + $0xb4] sm:$0xf] %vm2554_vm1, %v3441_v30  ;;  %v2034_v41 = vpop.f32.mrb[98].mxu1  ;;  %v1747_v43 = vpop.f32.mrb[99].mxu0  ;;  %v2910_v44 = vsel %vm363_vm0, %v2802_v29, 0.0 }
 0x1e8   : > { %v2142_v46 = vadd.f32 %v2032_v35, %v476_v33  ;;  %v2035_v47 = vadd.f32 %v2034_v41, %v1745_v37  ;;  %v2036_v48 = vpop.f32.mrb[99].mxu1  ;;  %v480_v33 = vld [vmem:[#allocation2 + $0x1a0] sm:$0xff]  ;;  %v2909_v38 = vadd.f32 %v2908_v6, %v2907_v31 }
 0x1e9   : > { %v4465_v51 = vld [vmem:[#allocation2 + $0x170] sm:$0xff]  ;;  %v2710_v48 = vadd.f32 %v2709_v21, %v2708_v32 }
 0x1ea   : > { %v3442_v24 = vpack.c.bf16 %v4465_v51, %v4465_v51  ;;  %2207 = vst.msk [vmem:[#allocation2 + $0x180] sm:$0xff] %vm363_vm0, %v2142_v46  ;;  %v2143_v55 = vadd.f32 %v2035_v47, %v477_v40  ;;  %v2803_v62 = vmul.f32 %v4465_v51, %v4465_v51  ;;  %v481_v40 = vld [vmem:[#allocation2 + $0x1a8] sm:$0xff]  ;;  %v2711_v45 = vsel %vm363_vm0, %v4465_v51, 0.0 }
 0x1eb   : > { %v2712_v57 = vadd.f32 %v2711_v45, %v2710_v48 }
 0x1ec   : > { %v4474_v59 = vld [vmem:[#allocation2 + $0x178] sm:$0xff]  ;;  %2601 = vst.msk [vmem:[%s4124_s29 + $0xb8] sm:$0xf] %vm2554_vm1, %v3442_v24  ;;  %v1750_v63 = vpop.f32.mrb[100].mxu0  ;;  %v2912_v3 = vsel %vm363_vm0, %v2803_v62, 0.0 }
 0x1ed   : > { %v3443_v27 = vpack.c.bf16 %v4474_v59, %v4474_v59  ;;  %2208 = vst.msk [vmem:[#allocation2 + $0x188] sm:$0xff] %vm363_vm0, %v2143_v55  ;;  %v2039_v2 = vpop.f32.mrb[100].mxu1  ;;  %v1752_v4 = vpop.f32.mrb[101].mxu0  ;;  %v2804_v53 = vmul.f32 %v4474_v59, %v4474_v59  ;;  %v2911_v55 = vadd.f32 %v2910_v44, %v2909_v38  ;;  %v2713_v51 = vsel %vm363_vm0, %v4474_v59, 0.0  ;;  %v485_v38 = vld [vmem:[#allocation2 + $0x1c8] sm:$0xff] }
 0x1ee   : > { %v2040_v50 = vadd.f32 %v2039_v2, %v1750_v63  ;;  %v2041_v7 = vpop.f32.mrb[101].mxu1  ;;  %v1753_v8 = vpop.f32.mrb[102].mxu0 }
 0x1ef   : > { %2602 = vst.msk [vmem:[%s4124_s29 + $0xbc] sm:$0xf] %vm2554_vm1, %v3443_v27  ;;  %v2042_v12 = vpop.f32.mrb[102].mxu1  ;;  %v1755_v13 = vpop.f32.mrb[103].mxu0  ;;  %v2913_v0 = vadd.f32 %v2912_v3, %v2911_v55  ;;  %v2914_v5 = vsel %vm363_vm0, %v2804_v53, 0.0 }
 0x1f0   : > { %v2144_v17 = vadd.f32 %v2040_v50, %v478_v1  ;;  %v2043_v42 = vadd.f32 %v2042_v12, %v1753_v8  ;;  %v2044_v18 = vpop.f32.mrb[103].mxu1  ;;  %v482_v1 = vld [vmem:[#allocation2 + $0x1b0] sm:$0xff]  ;;  %v2714_v8 = vadd.f32 %v2713_v51, %v2712_v57 }
 0x1f1   : > { %v2282_v22 = vld [vmem:[#allocation2 + $0x180] sm:$0xff] }
 0x1f2   : > { %v3444_v26 = vpack.c.bf16 %v2282_v22, %v2282_v22  ;;  %2209 = vst.msk [vmem:[#allocation2 + $0x190] sm:$0xff] %vm363_vm0, %v2144_v17  ;;  %v2145_v58 = vadd.f32 %v2043_v42, %v479_v11  ;;  %v2805_v61 = vmul.f32 %v2282_v22, %v2282_v22  ;;  %v2715_v15 = vsel %vm363_vm0, %v2282_v22, 0.0 }
 0x1f3   : > { %v2915_v42 = vadd.f32 %v2914_v5, %v2913_v0  ;;  %v2716_v18 = vadd.f32 %v2715_v15, %v2714_v8  ;;  %v486_v0 = vld [vmem:[#allocation2 + $0x1d0] sm:$0xff]  ;;  %v487_v8 = vld [vmem:[#allocation2 + $0x1d8] sm:$0xff] }
 0x1f4   : > { %v4497_v52 = vld [vmem:[#allocation2 + $0x188] sm:$0xff]  ;;  %2603 = vst.msk [vmem:[%s4124_s29 + $0xc0] sm:$0xf] %vm2554_vm1, %v3444_v26  ;;  %v1758_v20 = vpop.f32.mrb[104].mxu0  ;;  %v2916_v12 = vsel %vm363_vm0, %v2805_v61, 0.0 }
 0x1f5   : > { %v3445_v30 = vpack.c.bf16 %v4497_v52, %v4497_v52  ;;  %2210 = vst.msk [vmem:[#allocation2 + $0x198] sm:$0xff] %vm363_vm0, %v2145_v58  ;;  %v2047_v60 = vpop.f32.mrb[104].mxu1  ;;  %v1760_v34 = vpop.f32.mrb[105].mxu0  ;;  %v2806_v13 = vmul.f32 %v4497_v52, %v4497_v52  ;;  %v2717_v22 = vsel %vm363_vm0, %v4497_v52, 0.0  ;;  %v2917_v58 = vadd.f32 %v2916_v12, %v2915_v42  ;;  %v484_v52 = vld [vmem:[#allocation2 + $0x1c0] sm:$0xff] }
 0x1f6   : > { %v2048_v35 = vadd.f32 %v2047_v60, %v1758_v20  ;;  %v2049_v36 = vpop.f32.mrb[105].mxu1  ;;  %v1761_v37 = vpop.f32.mrb[106].mxu0  ;;  %v2718_v31 = vadd.f32 %v2717_v22, %v2716_v18 }
 0x1f7   : > { %2604 = vst.msk [vmem:[%s4124_s29 + $0xc4] sm:$0xf] %vm2554_vm1, %v3445_v30  ;;  %v2050_v41 = vpop.f32.mrb[106].mxu1  ;;  %v1763_v43 = vpop.f32.mrb[107].mxu0  ;;  %v2918_v6 = vsel %vm363_vm0, %v2806_v13, 0.0 }
 0x1f8   : > { %v2146_v46 = vadd.f32 %v2048_v35, %v480_v33  ;;  %v2051_v28 = vadd.f32 %v2050_v41, %v1761_v37  ;;  %v2052_v47 = vpop.f32.mrb[107].mxu1  ;;  %v2919_v36 = vadd.f32 %v2918_v6, %v2917_v58 }
 0x1f9   : > { %v2284_v49 = vld [vmem:[#allocation2 + $0x190] sm:$0xff] }
 0x1fa   : > { %v3446_v54 = vpack.c.bf16 %v2284_v49, %v2284_v49  ;;  %2211 = vst.msk [vmem:[#allocation2 + $0x1a0] sm:$0xff] %vm363_vm0, %v2146_v46  ;;  %v2147_v24 = vadd.f32 %v2051_v28, %v481_v40  ;;  %v2807_v23 = vmul.f32 %v2284_v49, %v2284_v49  ;;  %v2719_v29 = vsel %vm363_vm0, %v2284_v49, 0.0 }
 0x1fb   : > { %v2720_v37 = vadd.f32 %v2719_v29, %v2718_v31  ;;  %v488_v31 = vld [vmem:[#allocation2 + $0x1e0] sm:$0xff] }
 0x1fc   : > { %v2285_v39 = vld [vmem:[#allocation2 + $0x198] sm:$0xff]  ;;  %2605 = vst.msk [vmem:[%s4124_s29 + $0xc8] sm:$0xf] %vm2554_vm1, %v3446_v54  ;;  %v1766_v63 = vpop.f32.mrb[108].mxu0  ;;  %v2920_v60 = vsel %vm363_vm0, %v2807_v23, 0.0 }
 0x1fd   : > { %v3447_v27 = vpack.c.bf16 %v2285_v39, %v2285_v39  ;;  %2212 = vst.msk [vmem:[#allocation2 + $0x1a8] sm:$0xff] %vm363_vm0, %v2147_v24  ;;  %v2055_v2 = vpop.f32.mrb[108].mxu1  ;;  %v1768_v4 = vpop.f32.mrb[109].mxu0  ;;  %v2808_v34 = vmul.f32 %v2285_v39, %v2285_v39  ;;  %v2721_v43 = vsel %vm363_vm0, %v2285_v39, 0.0  ;;  %v2921_v47 = vadd.f32 %v2920_v60, %v2919_v36  ;;  %v489_v36 = vld [vmem:[#allocation2 + $0x1e8] sm:$0xff] }
 0x1fe   : > { %v2056_v50 = vadd.f32 %v2055_v2, %v1766_v63  ;;  %v2057_v7 = vpop.f32.mrb[109].mxu1  ;;  %v1769_v59 = vpop.f32.mrb[110].mxu0  ;;  %v2722_v24 = vadd.f32 %v2721_v43, %v2720_v37 }
 0x1ff   : > { %2606 = vst.msk [vmem:[%s4124_s29 + $0xcc] sm:$0xf] %vm2554_vm1, %v3447_v27  ;;  %v2058_v10 = vpop.f32.mrb[110].mxu1  ;;  %v1771_v11 = vpop.f32.mrb[111].mxu0  ;;  %v2922_v49 = vsel %vm363_vm0, %v2808_v34, 0.0 }
 0x200   : > { %v2148_v14 = vadd.f32 %v2056_v50, %v482_v1  ;;  %v2059_v16 = vadd.f32 %v2058_v10, %v1769_v59  ;;  %v2060_v17 = vpop.f32.mrb[111].mxu1  ;;  %v2923_v27 = vadd.f32 %v2922_v49, %v2921_v47 }
 0x201   : > { %v2286_v19 = vld [vmem:[#allocation2 + $0x1a0] sm:$0xff] }
 0x202   : > { %v3448_v25 = vpack.c.bf16 %v2286_v19, %v2286_v19  ;;  %2213 = vst.msk [vmem:[#allocation2 + $0x1b0] sm:$0xff] %vm363_vm0, %v2148_v14  ;;  %v2149_v26 = vadd.f32 %v2059_v16, %v483_v9  ;;  %v2809_v44 = vmul.f32 %v2286_v19, %v2286_v19  ;;  %v2723_v3 = vsel %vm363_vm0, %v2286_v19, 0.0 }
 0x203   : > { %v2724_v63 = vadd.f32 %v2723_v3, %v2722_v24 }
 0x204   : > { %v2287_v56 = vld [vmem:[#allocation2 + $0x1a8] sm:$0xff]  ;;  %2607 = vst.msk [vmem:[%s4124_s29 + $0xd0] sm:$0xf] %vm2554_vm1, %v3448_v25  ;;  %v1774_v20 = vpop.f32.mrb[112].mxu0  ;;  %v2924_v57 = vsel %vm363_vm0, %v2809_v44, 0.0 }
 0x205   : > { %v3449_v30 = vpack.c.bf16 %v2287_v56, %v2287_v56  ;;  %2214 = vst.msk [vmem:[#allocation2 + $0x1b8] sm:$0xff] %vm363_vm0, %v2149_v26  ;;  %v2063_v32 = vpop.f32.mrb[112].mxu1  ;;  %v1776_v33 = vpop.f32.mrb[113].mxu0  ;;  %v2810_v39 = vmul.f32 %v2287_v56, %v2287_v56  ;;  %v2725_v4 = vsel %vm363_vm0, %v2287_v56, 0.0  ;;  %v2925_v59 = vadd.f32 %v2924_v57, %v2923_v27 }
 0x206   : > { %v2064_v21 = vadd.f32 %v2063_v32, %v1774_v20  ;;  %v2065_v62 = vpop.f32.mrb[113].mxu1  ;;  %v1777_v35 = vpop.f32.mrb[114].mxu0  ;;  %v2726_v17 = vadd.f32 %v2725_v4, %v2724_v63  ;;  %v490_v63 = vld [vmem:[#allocation2 + $0x1f0] sm:$0xff] }
 0x207   : > { %2608 = vst.msk [vmem:[%s4124_s29 + $0xd4] sm:$0xf] %vm2554_vm1, %v3449_v30  ;;  %v2066_v40 = vpop.f32.mrb[114].mxu1  ;;  %v1779_v41 = vpop.f32.mrb[115].mxu0  ;;  %v2926_v11 = vsel %vm363_vm0, %v2810_v39, 0.0 }
 0x208   : > { %v2150_v45 = vadd.f32 %v2064_v21, %v484_v52  ;;  %v2067_v46 = vadd.f32 %v2066_v40, %v1777_v35  ;;  %v2068_v28 = vpop.f32.mrb[115].mxu1  ;;  %v2927_v25 = vadd.f32 %v2926_v11, %v2925_v59  ;;  %v491_v59 = vld [vmem:[#allocation2 + $0x1f8] sm:$0xff] }
 0x209   : > { %v2288_v48 = vld [vmem:[#allocation2 + $0x1b0] sm:$0xff] }
 0x20a   : > { %v3450_v53 = vpack.c.bf16 %v2288_v48, %v2288_v48  ;;  %2215 = vst.msk [vmem:[#allocation2 + $0x1c0] sm:$0xff] %vm363_vm0, %v2150_v45  ;;  %v2151_v54 = vadd.f32 %v2067_v46, %v485_v38  ;;  %v2811_v5 = vmul.f32 %v2288_v48, %v2288_v48  ;;  %v2727_v12 = vsel %vm363_vm0, %v2288_v48, 0.0 }
 0x20b   : > { %v2728_v26 = vadd.f32 %v2727_v12, %v2726_v17 }
 0x20c   : > { %v2289_v55 = vld [vmem:[#allocation2 + $0x1b8] sm:$0xff]  ;;  %2609 = vst.msk [vmem:[%s4124_s29 + $0xd8] sm:$0xf] %vm2554_vm1, %v3450_v53  ;;  %v1782_v61 = vpop.f32.mrb[116].mxu0  ;;  %v2928_v18 = vsel %vm363_vm0, %v2811_v5, 0.0 }
 0x20d   : > { %v3451_v51 = vpack.c.bf16 %v2289_v55, %v2289_v55  ;;  %2216 = vst.msk [vmem:[#allocation2 + $0x1c8] sm:$0xff] %vm363_vm0, %v2151_v54  ;;  %v2071_v1 = vpop.f32.mrb[116].mxu1  ;;  %v1784_v2 = vpop.f32.mrb[117].mxu0  ;;  %v2812_v19 = vmul.f32 %v2289_v55, %v2289_v55  ;;  %v2729_v56 = vsel %vm363_vm0, %v2289_v55, 0.0  ;;  %v2929_v20 = vadd.f32 %v2928_v18, %v2927_v25 }
 0x20e   : > { %v2072_v15 = vadd.f32 %v2071_v1, %v1782_v61  ;;  %v2073_v50 = vpop.f32.mrb[117].mxu1  ;;  %v1785_v7 = vpop.f32.mrb[118].mxu0  ;;  %v2730_v35 = vadd.f32 %v2729_v56, %v2728_v26 }
 0x20f   : > { %2610 = vst.msk [vmem:[%s4124_s29 + $0xdc] sm:$0xf] %vm2554_vm1, %v3451_v51  ;;  %v2074_v9 = vpop.f32.mrb[118].mxu1  ;;  %v1787_v10 = vpop.f32.mrb[119].mxu0  ;;  %v2930_v33 = vsel %vm363_vm0, %v2812_v19, 0.0 }
 0x210   : > { %v2152_v13 = vadd.f32 %v2072_v15, %v486_v0  ;;  %v2075_v14 = vadd.f32 %v2074_v9, %v1785_v7  ;;  %v2076_v16 = vpop.f32.mrb[119].mxu1  ;;  %v2931_v46 = vadd.f32 %v2930_v33, %v2929_v20 }
 0x211   : > { %v2290_v42 = vld [vmem:[#allocation2 + $0x1c0] sm:$0xff] }
 0x212   : > { %v3452_v22 = vpack.c.bf16 %v2290_v42, %v2290_v42  ;;  %2217 = vst.msk [vmem:[#allocation2 + $0x1d0] sm:$0xff] %vm363_vm0, %v2152_v13  ;;  %v2153_v23 = vadd.f32 %v2075_v14, %v487_v8  ;;  %v2813_v6 = vmul.f32 %v2290_v42, %v2290_v42  ;;  %v2731_v60 = vsel %vm363_vm0, %v2290_v42, 0.0 }
 0x213   : > { %v2732_v28 = vadd.f32 %v2731_v60, %v2730_v35 }
 0x214   : > { %v2291_v58 = vld [vmem:[#allocation2 + $0x1c8] sm:$0xff]  ;;  %2611 = vst.msk [vmem:[%s4124_s29 + $0xe0] sm:$0xf] %vm2554_vm1, %v3452_v22  ;;  %v1790_v30 = vpop.f32.mrb[120].mxu0  ;;  %v2932_v40 = vsel %vm363_vm0, %v2813_v6, 0.0 }
 0x215   : > { %v3453_v29 = vpack.c.bf16 %v2291_v58, %v2291_v58  ;;  %2218 = vst.msk [vmem:[#allocation2 + $0x1d8] sm:$0xff] %vm363_vm0, %v2153_v23  ;;  %v2079_v52 = vpop.f32.mrb[120].mxu1  ;;  %v1792_v32 = vpop.f32.mrb[121].mxu0  ;;  %v2814_v41 = vmul.f32 %v2291_v58, %v2291_v58  ;;  %v2733_v48 = vsel %vm363_vm0, %v2291_v58, 0.0  ;;  %v2933_v54 = vadd.f32 %v2932_v40, %v2931_v46 }
 0x216   : > { %v2080_v34 = vadd.f32 %v2079_v52, %v1790_v30  ;;  %v2081_v21 = vpop.f32.mrb[121].mxu1  ;;  %v1793_v62 = vpop.f32.mrb[122].mxu0  ;;  %v2734_v61 = vadd.f32 %v2733_v48, %v2732_v28 }
 0x217   : > { %2612 = vst.msk [vmem:[%s4124_s29 + $0xe4] sm:$0xf] %vm2554_vm1, %v3453_v29  ;;  %v2082_v37 = vpop.f32.mrb[122].mxu1  ;;  %v1795_v38 = vpop.f32.mrb[123].mxu0  ;;  %v2934_v55 = vsel %vm363_vm0, %v2814_v41, 0.0 }
 0x218   : > { %v2154_v43 = vadd.f32 %v2080_v34, %v488_v31  ;;  %v2083_v44 = vadd.f32 %v2082_v37, %v1793_v62  ;;  %v2084_v45 = vpop.f32.mrb[123].mxu1  ;;  %v2935_v50 = vadd.f32 %v2934_v55, %v2933_v54  ;;  %v2619_v55 = vld [vmem:[%s4299_s6] sm:$0x1] }
 0x219   : > { %v2292_v47 = vld [vmem:[#allocation2 + $0x1d0] sm:$0xff] }
 0x21a   : > { %v3454_v49 = vpack.c.bf16 %v2292_v47, %v2292_v47  ;;  %v2815_v3 = vmul.f32 %v2292_v47, %v2292_v47  ;;  %2219 = vst.msk [vmem:[#allocation2 + $0x1e0] sm:$0xff] %vm363_vm0, %v2154_v43  ;;  %v2155_v53 = vadd.f32 %v2083_v44, %v489_v36  ;;  %v2735_v57 = vsel %vm363_vm0, %v2292_v47, 0.0 }
 0x21b   : > { %v2736_v7 = vadd.f32 %v2735_v57, %v2734_v61 }
 0x21c   : > { %v2293_v24 = vld [vmem:[#allocation2 + $0x1d8] sm:$0xff]  ;;  %2613 = vst.msk [vmem:[%s4124_s29 + $0xe8] sm:$0xf] %vm2554_vm1, %v3454_v49  ;;  %v1798_v51 = vpop.f32.mrb[124].mxu0  ;;  %v2936_v2 = vsel %vm363_vm0, %v2815_v3, 0.0 }
 0x21d   : > { %v3455_v39 = vpack.c.bf16 %v2293_v24, %v2293_v24  ;;  %2220 = vst.msk [vmem:[#allocation2 + $0x1e8] sm:$0xff] %vm363_vm0, %v2155_v53  ;;  %v2816_v27 = vmul.f32 %v2293_v24, %v2293_v24  ;;  %v2087_v0 = vpop.f32.mrb[124].mxu1  ;;  %v1800_v1 = vpop.f32.mrb[125].mxu0  ;;  %v2737_v10 = vsel %vm363_vm0, %v2293_v24, 0.0  ;;  %v2937_v14 = vadd.f32 %v2936_v2, %v2935_v50 }
 0x21e   : > { %v2088_v4 = vadd.f32 %v2087_v0, %v1798_v51  ;;  %v2089_v5 = vpop.f32.mrb[125].mxu1  ;;  %v1801_v15 = vpop.f32.mrb[126].mxu0  ;;  %v2738_v23 = vadd.f32 %v2737_v10, %v2736_v7  ;;  %v2756_v51 = vld [vmem:[%s4305_s9] sm:$0x1] }
 0x21f   : > { %2614 = vst.msk [vmem:[%s4124_s29 + $0xec] sm:$0xf] %vm2554_vm1, %v3455_v39  ;;  %v2090_v8 = vpop.f32.mrb[126].mxu1  ;;  %v1803_v9 = vpop.f32.mrb[127].mxu0  ;;  %v2938_v16 = vsel %vm363_vm0, %v2816_v27, 0.0 }
 0x220   : > { %v2156_v11 = vadd.f32 %v2088_v4, %v490_v63  ;;  %v2091_v12 = vadd.f32 %v2090_v8, %v1801_v15  ;;  %v2092_v13 = vpop.f32.mrb[127].mxu1  ;;  %v2939_v6 = vadd.f32 %v2938_v16, %v2937_v14 }
 0x221   : > { %v2294_v17 = vld [vmem:[#allocation2 + $0x1e0] sm:$0xff] }
 0x222   : > { %v3456_v42 = vpack.c.bf16 %v2294_v17, %v2294_v17  ;;  %v2739_v18 = vsel %vm363_vm0, %v2294_v17, 0.0  ;;  %v2817_v19 = vmul.f32 %v2294_v17, %v2294_v17  ;;  %2221 = vst.msk [vmem:[#allocation2 + $0x1f0] sm:$0xff] %vm363_vm0, %v2156_v11  ;;  %v2157_v22 = vadd.f32 %v2091_v12, %v491_v59 }
 0x223   : > { %v2740_v29 = vadd.f32 %v2739_v18, %v2738_v23 }
 0x224   : > { %v2295_v25 = vld [vmem:[#allocation2 + $0x1e8] sm:$0xff]  ;;  %2615 = vst.msk [vmem:[%s4124_s29 + $0xf0] sm:$0xf] %vm2554_vm1, %v3456_v42  ;;  %v2940_v26 = vsel %vm363_vm0, %v2817_v19, 0.0 }
 0x225   : > { %v3457_v58 = vpack.c.bf16 %v2295_v25, %v2295_v25  ;;  %v2818_v56 = vmul.f32 %v2295_v25, %v2295_v25  ;;  %2222 = vst.msk [vmem:[#allocation2 + $0x1f8] sm:$0xff] %vm363_vm0, %v2157_v22  ;;  %v2741_v30 = vsel %vm363_vm0, %v2295_v25, 0.0  ;;  %v2941_v20 = vadd.f32 %v2940_v26, %v2939_v6 }
 0x226   : > { %v2742_v52 = vadd.f32 %v2741_v30, %v2740_v29 }
 0x227   : > { %2616 = vst.msk [vmem:[%s4124_s29 + $0xf4] sm:$0xf] %vm2554_vm1, %v3457_v58  ;;  %v2942_v31 = vsel %vm363_vm0, %v2818_v56, 0.0 }
 0x228   : > { %v2943_v21 = vadd.f32 %v2942_v31, %v2941_v20 }
 0x229   : > { %v2296_v32 = vld [vmem:[#allocation2 + $0x1f0] sm:$0xff] }
 0x22a   : > { %v3458_v33 = vpack.c.bf16 %v2296_v32, %v2296_v32  ;;  %v2743_v60 = vsel %vm363_vm0, %v2296_v32, 0.0  ;;  %v2819_v34 = vmul.f32 %v2296_v32, %v2296_v32 }
 0x22b   : > { %v2744_v62 = vadd.f32 %v2743_v60, %v2742_v52 }
 0x22c   : > { %v2297_v35 = vld [vmem:[#allocation2 + $0x1f8] sm:$0xff]  ;;  %2617 = vst.msk [vmem:[%s4124_s29 + $0xf8] sm:$0xf] %vm2554_vm1, %v3458_v33  ;;  %v2944_v36 = vsel %vm363_vm0, %v2819_v34, 0.0 }
 0x22d   : > { %v3459_v37 = vpack.c.bf16 %v2297_v35, %v2297_v35  ;;  %v2745_v38 = vsel %vm363_vm0, %v2297_v35, 0.0  ;;  %v2820_v40 = vmul.f32 %v2297_v35, %v2297_v35  ;;  %v2945_v41 = vadd.f32 %v2944_v36, %v2943_v21 }
 0x22e   : > { %v2746_v43 = vadd.f32 %v2745_v38, %v2744_v62 }
 0x22f   : > { %2618 = vst.msk [vmem:[%s4124_s29 + $0xfc] sm:$0xf] %vm2554_vm1, %v3459_v37  ;;  %v2946_v44 = vsel %vm363_vm0, %v2820_v40, 0.0 }
 0x230   : > { %v2747_v45 = vrot.slane %v2746_v43, 4  ;;  %v2947_v46 = vadd.f32 %v2946_v44, %v2945_v41 }
 0x232   : > { %v2748_v28 = vadd.f32 %v2747_v45, %v2746_v43  ;;  %v2948_v47 = vrot.slane %v2947_v46, 4 }
 0x234   : > { %v2749_v48 = vrot.slane %v2748_v28, 2  ;;  %v2949_v49 = vadd.f32 %v2948_v47, %v2947_v46 }
 0x236   : > { %v2750_v3 = vadd.f32 %v2749_v48, %v2748_v28  ;;  %v2950_v53 = vrot.slane %v2949_v49, 2 }
 0x238   : > { %v2751_v54 = vrot.slane %v2750_v3, 1  ;;  %v2951_v24 = vadd.f32 %v2950_v53, %v2949_v49 }
 0x23a   : > { %v2752_v57 = vadd.f32 %v2751_v54, %v2750_v3  ;;  %v2952_v39 = vrot.slane %v2951_v24, 1 }
 0x23c   : > { %v2753_v61 = vadd.f32 %v2752_v57, %v2619_v55  ;;  %v2953_v27 = vadd.f32 %v2952_v39, %v2951_v24 }
 0x23e   : > { %2755 = vst.msk [vmem:[%s4299_s6] sm:$0x1] %vm2228_vm2, %v2753_v61  ;;  %v2954_v63 = vadd.f32 %v2953_v27, %v2756_v51 }
 0x240   : > { %2955 = vst.msk [vmem:[%s4305_s9] sm:$0x1] %vm2228_vm2, %v2954_v63 }
 0x241 PF: > { %s15_s17 = sadd.s32 1, %s3732_s17   ;;  %s4617_s15 = smov %s3728_s16 }
 0x242   : > { %p12_p5 = scmp.ge.s32.totalorder %s15_s17, 6   ;;  %s4618_s16 = smov %s4620_s18 }
 0x244   :  { %14 = sbr.rel (!%p12_p5) target bundleno = 2 (0x2), region = 97 }

// kernel: generator_forward.17
= control target key start
LH: loop header
LB: loop body
LE: loop exit
PB: predicated region body
PF: predicated region fallthrough
CT: control target
= control target key end

     0   :  { %s2127_s9 = smov 0   ;;  %s2129_s10 = smov 0   ;;  %s2375_s0 = inlined_call_operand.vmem [shape: bf16[4,2048,256], index: 0, kind: input, shape index: {}]   ;;  %s2376_s1 = inlined_call_operand.vmem [shape: bf16[4,256,128], index: 1, kind: input, shape index: {}]   ;;  %s2377_s2 = inlined_call_operand.vmem [shape: f32[4,2048,128], index: 2, kind: output, shape index: {}]  }
   0x1   :  { %s2131_s11 = smov 0   ;;  %s2133_s12 = smov 0  }
   0x2   :  { %s2135_s13 = smov 0  }
   0x3 LB: > { %s30_s14 = sadd.s32 1, %s2101_s11  ;;  %s38_s15 = sadd.s32 1, %s2105_s12  ;;  %s2109_s13 = sphi %s2135_s13, %s12_s13   ;;  %s2105_s12 = sphi %s2133_s12, %s2381_s12   ;;  %s2101_s11 = sphi %s2131_s11, %s2380_s11   ;;  %s2097_s10 = sphi %s2129_s10, %s2379_s10   ;;  %s2093_s9 = sphi %s2127_s9, %s2378_s9  }
   0x4   : > { %p32_p0 = scmp.ge.s32.totalorder %s30_s14, 4  ;;  %p1665_p1 = scmp.ge.s32.totalorder %s2109_s13, 1 }
   0x5   : > { %p179_p2 = scmp.lt.s32.totalorder %s2109_s13, 17 }
   0x6   : > { %s2383_s14 = smov (%p32_p0, %s30_s14), 0  ;;  %s2385_s15 = smov (!%p32_p0, %s38_s15), %s2105_s12 }
   0x7   : > { %p180_p3 = pnand %p1665_p1, %p179_p2  ;;  %p40_p4 = scmp.ge.s32.totalorder %s2385_s15, 4 }
   0x8   : > { %p231_p5 = scmp.lt.s32.totalorder (!%p180_p3), %s2097_s10, 3  ;;  %s1666_s16 = sshll.u32 (!%p180_p3), %s2093_s9, 6  ;;  %v2111_v0 = vmov (!%p180_p3), 0  }
   0x9   : > { %s2387_s15 = smov (%p40_p4, %s2385_s15), 0  ;;  %183 = sbr.rel (%p180_p3) target bundleno = 430 (0x1ae), region = 28 }
   0xa   : > { %916 = vmatprep.subr.bf16.mxu0 (!%p180_p3), %v2111_v0  ;;  %1758 = vmatprep.subr.bf16.mxu1 (!%p180_p3), %v2111_v0  ;;  %p233_p6 = scmp.lt.s32.totalorder (!%p180_p3), %s1666_s16, 255 }
  0x10   : > { %s2389_s10 = smov (!%p231_p5, %s2097_s10), 3  ;;  %s2391_s16 = smov (!%p233_p6, %s1666_s16), 255 }
  0x11   : > { %s1757_s17 = sshll.u32 %s2389_s10, 7  ;;  %s1667_s21 = sshll.u32 %s2391_s16, 1 }
  0x12   : > { %s2165_s20 = scalar_lea.vmem %s2376_s1, %s1757_s17  ;;  %s1668_s22 = sshll.u32 %s2389_s10, 9 }
  0x13   : > { %v1831_v1 = vld [vmem:[%s2165_s20] sm:$0xff]   ;;  %v1832_v2 = vld [vmem:[%s2165_s20 + $0x8] sm:$0xff]   ;;  %v1833_v3 = vld [vmem:[%s2165_s20 + $0x10] sm:$0xff]   ;;  %s240_s23 = sadd.s32 %s1668_s22, %s1667_s21  ;;  %s1673_s28 = sshll.u32 %s2389_s10, 8 }
  0x14   : > { %917 = vmatpush1.bf16.msra.mxu0 %v1831_v1  ;;  %1774 = vmatpush1.bf16.msra.mxu1 %v1831_v1  ;;  %v1834_v4 = vld [vmem:[%s2165_s20 + $0x18] sm:$0xff]   ;;  %s1669_s24 = sshll.u32 %s240_s23, 2  ;;  %v1835_v5 = vld [vmem:[%s2165_s20 + $0x20] sm:$0xff]   ;;  %v1836_v7 = vld [vmem:[%s2165_s20 + $0x28] sm:$0xff]   ;;  %s2224_s29 = sadd.s32 %s1673_s28, %s2391_s16 }
  0x15   : > { %918 = vmatprep.subr.bf16.mxu0 %v2111_v0  ;;  %1759 = vmatprep.subr.bf16.mxu1 %v2111_v0  ;;  %s2185_s27 = scalar_lea.vmem %s2375_s0, %s1669_s24  ;;  %v1837_v9 = vld [vmem:[%s2165_s20 + $0x30] sm:$0xff]   ;;  %v1838_v10 = vld [vmem:[%s2165_s20 + $0x38] sm:$0xff]   ;;  %v1839_v11 = vld [vmem:[%s2165_s20 + $0x40] sm:$0xff]   ;;  %s1674_s30 = sshll.u32 %s2224_s29, 3 }
  0x16   : > { %v1849_v6 = vld [vmem:[%s2185_s27 + $0x4] ss:$8 sps:$4 sm:$0xff]   ;;  %v1841_v13 = vld [vmem:[%s2165_s20 + $0x50] sm:$0xff]   ;;  %v1842_v14 = vld [vmem:[%s2165_s20 + $0x58] sm:$0xff]   ;;  %s2294_s5 = scalar_lea.vmem %s2377_s2, %s1674_s30 }
  0x17   : > { %v1852_v8 = vld [vmem:[%s2185_s27 + $0x104] ss:$8 sps:$4 sm:$0xff]   ;;  %948 = vmatprep.mubr.bf16.mxu0 %v1849_v6  ;;  %v1845_v17 = vld [vmem:[%s2165_s20 + $0x70] sm:$0xff]   ;;  %v1846_v18 = vld [vmem:[%s2165_s20 + $0x78] sm:$0xff]  }
  0x18   : > { %919 = vmatpush1.bf16.msra.mxu0 %v1832_v2  ;;  %1775 = vmatpush1.bf16.msra.mxu1 %v1832_v2  ;;  %v1840_v12 = vld [vmem:[%s2165_s20 + $0x48] sm:$0xff]   ;;  %v1843_v15 = vld [vmem:[%s2165_s20 + $0x60] sm:$0xff]   ;;  %v1853_v21 = vld [vmem:[%s2185_s27 + $0x14] ss:$8 sps:$4 sm:$0xff]  }
  0x19   : > { %920 = vmatprep.subr.bf16.mxu0 %v2111_v0  ;;  %1760 = vmatprep.subr.bf16.mxu1 %v2111_v0  ;;  %v1844_v16 = vld [vmem:[%s2165_s20 + $0x68] sm:$0xff]   ;;  %v1855_v22 = vld [vmem:[%s2185_s27 + $0x114] ss:$8 sps:$4 sm:$0xff]   ;;  %v1857_v23 = vld [vmem:[%s2185_s27 + $0x10] ss:$8 sps:$4 sm:$0xff]  }
  0x1a   : > { %1076 = vmatprep.mubr.bf16.mxu1 %v1852_v8  ;;  %v1847_v19 = vld [vmem:[%s2185_s27] ss:$8 sps:$4 sm:$0xff]   ;;  %v1858_v24 = vld [vmem:[%s2185_s27 + $0x110] ss:$8 sps:$4 sm:$0xff]   ;;  %v1859_v25 = vld [vmem:[%s2185_s27 + $0x24] ss:$8 sps:$4 sm:$0xff]  }
  0x1b   : > { %v1850_v20 = vld [vmem:[%s2185_s27 + $0x100] ss:$8 sps:$4 sm:$0xff]   ;;  %v1861_v26 = vld [vmem:[%s2185_s27 + $0x124] ss:$8 sps:$4 sm:$0xff]   ;;  %v1865_v29 = vld [vmem:[%s2185_s27 + $0x34] ss:$8 sps:$4 sm:$0xff]  }
  0x1c   : > { %921 = vmatpush1.bf16.msra.mxu0 %v1833_v3  ;;  %1776 = vmatpush1.bf16.msra.mxu1 %v1833_v3  ;;  %v1863_v27 = vld [vmem:[%s2185_s27 + $0x20] ss:$8 sps:$4 sm:$0xff]   ;;  %v1867_v30 = vld [vmem:[%s2185_s27 + $0x134] ss:$8 sps:$4 sm:$0xff]   ;;  %v1869_v31 = vld [vmem:[%s2185_s27 + $0x30] ss:$8 sps:$4 sm:$0xff]  }
  0x1d   : > { %922 = vmatprep.subr.bf16.mxu0 %v2111_v0  ;;  %1761 = vmatprep.subr.bf16.mxu1 %v2111_v0  ;;  %v1864_v28 = vld [vmem:[%s2185_s27 + $0x120] ss:$8 sps:$4 sm:$0xff]   ;;  %v1870_v32 = vld [vmem:[%s2185_s27 + $0x130] ss:$8 sps:$4 sm:$0xff]   ;;  %v1871_v33 = vld [vmem:[%s2185_s27 + $0x44] ss:$8 sps:$4 sm:$0xff]  }
  0x1e   : > { %v1873_v34 = vld [vmem:[%s2185_s27 + $0x144] ss:$8 sps:$4 sm:$0xff]   ;;  %v1875_v35 = vld [vmem:[%s2185_s27 + $0x40] ss:$8 sps:$4 sm:$0xff]   ;;  %v1877_v37 = vld [vmem:[%s2185_s27 + $0x54] ss:$8 sps:$4 sm:$0xff]  }
  0x1f   : > { %v1876_v36 = vld [vmem:[%s2185_s27 + $0x140] ss:$8 sps:$4 sm:$0xff]   ;;  %v1879_v38 = vld [vmem:[%s2185_s27 + $0x154] ss:$8 sps:$4 sm:$0xff]   ;;  %v1881_v39 = vld [vmem:[%s2185_s27 + $0x50] ss:$8 sps:$4 sm:$0xff]  }
  0x20   : > { %923 = vmatpush1.bf16.msra.mxu0 %v1834_v4  ;;  %1777 = vmatpush1.bf16.msra.mxu1 %v1834_v4  ;;  %v1882_v40 = vld [vmem:[%s2185_s27 + $0x150] ss:$8 sps:$4 sm:$0xff]   ;;  %v1883_v41 = vld [vmem:[%s2185_s27 + $0x64] ss:$8 sps:$4 sm:$0xff]   ;;  %v1887_v43 = vld [vmem:[%s2185_s27 + $0x60] ss:$8 sps:$4 sm:$0xff]  }
  0x21   : > { %924 = vmatprep.subr.bf16.mxu0 %v2111_v0  ;;  %1762 = vmatprep.subr.bf16.mxu1 %v2111_v0  ;;  %v1885_v42 = vld [vmem:[%s2185_s27 + $0x164] ss:$8 sps:$4 sm:$0xff]   ;;  %v1888_v44 = vld [vmem:[%s2185_s27 + $0x160] ss:$8 sps:$4 sm:$0xff]   ;;  %v1889_v45 = vld [vmem:[%s2185_s27 + $0x74] ss:$8 sps:$4 sm:$0xff]  }
  0x22   : > { %v1891_v46 = vld [vmem:[%s2185_s27 + $0x174] ss:$8 sps:$4 sm:$0xff]   ;;  %v1893_v47 = vld [vmem:[%s2185_s27 + $0x70] ss:$8 sps:$4 sm:$0xff]   ;;  %v1895_v49 = vld [vmem:[%s2185_s27 + $0x84] ss:$8 sps:$4 sm:$0xff]  }
  0x23   : > { %v1894_v48 = vld [vmem:[%s2185_s27 + $0x170] ss:$8 sps:$4 sm:$0xff]   ;;  %v1897_v50 = vld [vmem:[%s2185_s27 + $0x184] ss:$8 sps:$4 sm:$0xff]   ;;  %v1899_v51 = vld [vmem:[%s2185_s27 + $0x80] ss:$8 sps:$4 sm:$0xff]  }
  0x24   : > { %925 = vmatpush1.bf16.msra.mxu0 %v1835_v5  ;;  %1778 = vmatpush1.bf16.msra.mxu1 %v1835_v5  ;;  %v1900_v52 = vld [vmem:[%s2185_s27 + $0x180] ss:$8 sps:$4 sm:$0xff]   ;;  %v1901_v53 = vld [vmem:[%s2185_s27 + $0x94] ss:$8 sps:$4 sm:$0xff]   ;;  %v1905_v55 = vld [vmem:[%s2185_s27 + $0x90] ss:$8 sps:$4 sm:$0xff]  }
  0x25   : > { %926 = vmatprep.subr.bf16.mxu0 %v2111_v0  ;;  %1763 = vmatprep.subr.bf16.mxu1 %v2111_v0  ;;  %v1903_v54 = vld [vmem:[%s2185_s27 + $0x194] ss:$8 sps:$4 sm:$0xff]   ;;  %v1906_v56 = vld [vmem:[%s2185_s27 + $0x190] ss:$8 sps:$4 sm:$0xff]   ;;  %v1907_v57 = vld [vmem:[%s2185_s27 + $0xa4] ss:$8 sps:$4 sm:$0xff]  }
  0x26   : > { %v1909_v58 = vld [vmem:[%s2185_s27 + $0x1a4] ss:$8 sps:$4 sm:$0xff]   ;;  %v1911_v59 = vld [vmem:[%s2185_s27 + $0xa0] ss:$8 sps:$4 sm:$0xff]   ;;  %v1913_v61 = vld [vmem:[%s2185_s27 + $0xb4] ss:$8 sps:$4 sm:$0xff]  }
  0x27   : > { %v1912_v60 = vld [vmem:[%s2185_s27 + $0x1a0] ss:$8 sps:$4 sm:$0xff]   ;;  %v1915_v62 = vld [vmem:[%s2185_s27 + $0x1b4] ss:$8 sps:$4 sm:$0xff]   ;;  %v1917_v63 = vld [vmem:[%s2185_s27 + $0xb0] ss:$8 sps:$4 sm:$0xff]  }
  0x28   : > { %927 = vmatpush1.bf16.msra.mxu0 %v1836_v7  ;;  %1779 = vmatpush1.bf16.msra.mxu1 %v1836_v7  ;;  %v1919_v1 = vld [vmem:[%s2185_s27 + $0xc4] ss:$8 sps:$4 sm:$0xff]   ;;  %v1923_v3 = vld [vmem:[%s2185_s27 + $0xc0] ss:$8 sps:$4 sm:$0xff]   ;;  %v1925_v5 = vld [vmem:[%s2185_s27 + $0xd4] ss:$8 sps:$4 sm:$0xff]  }
  0x29   : > { %928 = vmatprep.subr.bf16.mxu0 %v2111_v0  ;;  %1764 = vmatprep.subr.bf16.mxu1 %v2111_v0  ;;  %v1921_v2 = vld [vmem:[%s2185_s27 + $0x1c4] ss:$8 sps:$4 sm:$0xff]   ;;  %v1924_v4 = vld [vmem:[%s2185_s27 + $0x1c0] ss:$8 sps:$4 sm:$0xff]   ;;  %v1927_v6 = vld [vmem:[%s2185_s27 + $0x1d4] ss:$8 sps:$4 sm:$0xff]  }
  0x2a   : > { %v1929_v7 = vld [vmem:[%s2185_s27 + $0xd0] ss:$8 sps:$4 sm:$0xff]  }
  0x2b   : > { %v1930_v8 = vld [vmem:[%s2185_s27 + $0x1d0] ss:$8 sps:$4 sm:$0xff]  }
  0x2c   : > { %929 = vmatpush1.bf16.msra.mxu0 %v1837_v9  ;;  %1780 = vmatpush1.bf16.msra.mxu1 %v1837_v9  ;;  %v1931_v9 = vld [vmem:[%s2185_s27 + $0xe4] ss:$8 sps:$4 sm:$0xff]  }
  0x2d   : > { %930 = vmatprep.subr.bf16.mxu0 %v2111_v0  ;;  %1765 = vmatprep.subr.bf16.mxu1 %v2111_v0 }
  0x30   : > { %931 = vmatpush1.bf16.msra.mxu0 %v1838_v10  ;;  %1781 = vmatpush1.bf16.msra.mxu1 %v1838_v10  ;;  %v1933_v10 = vld [vmem:[%s2185_s27 + $0x1e4] ss:$8 sps:$4 sm:$0xff]  }
  0x31   : > { %932 = vmatprep.subr.bf16.mxu0 %v2111_v0  ;;  %1766 = vmatprep.subr.bf16.mxu1 %v2111_v0 }
  0x34   : > { %933 = vmatpush1.bf16.msra.mxu0 %v1839_v11  ;;  %1782 = vmatpush1.bf16.msra.mxu1 %v1839_v11  ;;  %v1935_v11 = vld [vmem:[%s2185_s27 + $0xe0] ss:$8 sps:$4 sm:$0xff]  }
  0x35   : > { %934 = vmatprep.subr.bf16.mxu0 %v2111_v0  ;;  %1767 = vmatprep.subr.bf16.mxu1 %v2111_v0 }
  0x38   : > { %935 = vmatpush1.bf16.msra.mxu0 %v1840_v12  ;;  %1783 = vmatpush1.bf16.msra.mxu1 %v1840_v12  ;;  %v1936_v12 = vld [vmem:[%s2185_s27 + $0x1e0] ss:$8 sps:$4 sm:$0xff]  }
  0x39   : > { %936 = vmatprep.subr.bf16.mxu0 %v2111_v0  ;;  %1768 = vmatprep.subr.bf16.mxu1 %v2111_v0 }
  0x3c   : > { %937 = vmatpush1.bf16.msra.mxu0 %v1841_v13  ;;  %1784 = vmatpush1.bf16.msra.mxu1 %v1841_v13  ;;  %v1937_v13 = vld [vmem:[%s2185_s27 + $0xf4] ss:$8 sps:$4 sm:$0xff]  }
  0x3d   : > { %938 = vmatprep.subr.bf16.mxu0 %v2111_v0  ;;  %1769 = vmatprep.subr.bf16.mxu1 %v2111_v0 }
  0x40   : > { %939 = vmatpush1.bf16.msra.mxu0 %v1842_v14  ;;  %1785 = vmatpush1.bf16.msra.mxu1 %v1842_v14  ;;  %v1939_v14 = vld [vmem:[%s2185_s27 + $0x1f4] ss:$8 sps:$4 sm:$0xff]  }
  0x41   : > { %940 = vmatprep.subr.bf16.mxu0 %v2111_v0  ;;  %1770 = vmatprep.subr.bf16.mxu1 %v2111_v0 }
  0x44   : > { %941 = vmatpush1.bf16.msra.mxu0 %v1843_v15  ;;  %1786 = vmatpush1.bf16.msra.mxu1 %v1843_v15  ;;  %v1941_v15 = vld [vmem:[%s2185_s27 + $0xf0] ss:$8 sps:$4 sm:$0xff]  }
  0x45   : > { %942 = vmatprep.subr.bf16.mxu0 %v2111_v0  ;;  %1771 = vmatprep.subr.bf16.mxu1 %v2111_v0 }
  0x48   : > { %943 = vmatpush1.bf16.msra.mxu0 %v1844_v16  ;;  %1787 = vmatpush1.bf16.msra.mxu1 %v1844_v16  ;;  %v1942_v16 = vld [vmem:[%s2185_s27 + $0x1f0] ss:$8 sps:$4 sm:$0xff]  }
  0x49   : > { %944 = vmatprep.subr.bf16.mxu0 %v2111_v0  ;;  %1772 = vmatprep.subr.bf16.mxu1 %v2111_v0 }
  0x4c   : > { %945 = vmatpush1.bf16.msra.mxu0 %v1845_v17  ;;  %1788 = vmatpush1.bf16.msra.mxu1 %v1845_v17 }
  0x4d   : > { %946 = vmatprep.subr.bf16.mxu0 %v2111_v0  ;;  %1773 = vmatprep.subr.bf16.mxu1 %v2111_v0  ;;  %v1918_v0 = vld [vmem:[%s2185_s27 + $0x1b0] ss:$8 sps:$4 sm:$0xff]  }
  0x50   : > { %947 = vmatpush1.bf16.msra.mxu0 %v1846_v18  ;;  %1789 = vmatpush1.bf16.msra.mxu1 %v1846_v18 }
  0x53   : > { %949 = vmatmul.mubr.bf16.vlgmr.msra.gmra.mrb[0].mxu0 %v1847_v19  ;;  %1077 = vmatmul.mubr.bf16.vlgmr.msra.gmra.mrb[0].mxu1 %v1850_v20 }
  0x54   : > { %956 = vmatprep.mubr.bf16.mxu0 %v1853_v21  ;;  %1084 = vmatprep.mubr.bf16.mxu1 %v1855_v22 }
  0x5b   : > { %957 = vmatmul.mubr.bf16.gmra.mrb[4].mxu0 %v1857_v23  ;;  %1085 = vmatmul.mubr.bf16.gmra.mrb[4].mxu1 %v1858_v24 }
  0x5c   : > { %964 = vmatprep.mubr.bf16.mxu0 %v1859_v25  ;;  %1092 = vmatprep.mubr.bf16.mxu1 %v1861_v26 }
  0x63   : > { %965 = vmatmul.mubr.bf16.gmra.mrb[8].mxu0 %v1863_v27  ;;  %1093 = vmatmul.mubr.bf16.gmra.mrb[8].mxu1 %v1864_v28 }
  0x64   : > { %972 = vmatprep.mubr.bf16.mxu0 %v1865_v29  ;;  %1100 = vmatprep.mubr.bf16.mxu1 %v1867_v30 }
  0x6b   : > { %973 = vmatmul.mubr.bf16.gmra.mrb[12].mxu0 %v1869_v31  ;;  %1101 = vmatmul.mubr.bf16.gmra.mrb[12].mxu1 %v1870_v32 }
  0x6c   : > { %980 = vmatprep.mubr.bf16.mxu0 %v1871_v33  ;;  %1108 = vmatprep.mubr.bf16.mxu1 %v1873_v34 }
  0x73   : > { %981 = vmatmul.mubr.bf16.gmra.mrb[16].mxu0 %v1875_v35  ;;  %1109 = vmatmul.mubr.bf16.gmra.mrb[16].mxu1 %v1876_v36 }
  0x74   : > { %988 = vmatprep.mubr.bf16.mxu0 %v1877_v37  ;;  %1116 = vmatprep.mubr.bf16.mxu1 %v1879_v38 }
  0x7b   : > { %989 = vmatmul.mubr.bf16.gmra.mrb[20].mxu0 %v1881_v39  ;;  %1117 = vmatmul.mubr.bf16.gmra.mrb[20].mxu1 %v1882_v40 }
  0x7c   : > { %996 = vmatprep.mubr.bf16.mxu0 %v1883_v41  ;;  %1124 = vmatprep.mubr.bf16.mxu1 %v1885_v42 }
  0x83   : > { %997 = vmatmul.mubr.bf16.gmra.mrb[24].mxu0 %v1887_v43  ;;  %1125 = vmatmul.mubr.bf16.gmra.mrb[24].mxu1 %v1888_v44 }
  0x84   : > { %1004 = vmatprep.mubr.bf16.mxu0 %v1889_v45  ;;  %1132 = vmatprep.mubr.bf16.mxu1 %v1891_v46 }
  0x8b   : > { %1005 = vmatmul.mubr.bf16.gmra.mrb[28].mxu0 %v1893_v47  ;;  %1133 = vmatmul.mubr.bf16.gmra.mrb[28].mxu1 %v1894_v48 }
  0x8c   : > { %1012 = vmatprep.mubr.bf16.mxu0 %v1895_v49  ;;  %1140 = vmatprep.mubr.bf16.mxu1 %v1897_v50 }
  0x93   : > { %1013 = vmatmul.mubr.bf16.gmra.mrb[32].mxu0 %v1899_v51  ;;  %1141 = vmatmul.mubr.bf16.gmra.mrb[32].mxu1 %v1900_v52 }
  0x94   : > { %1020 = vmatprep.mubr.bf16.mxu0 %v1901_v53  ;;  %1148 = vmatprep.mubr.bf16.mxu1 %v1903_v54 }
  0x9b   : > { %1021 = vmatmul.mubr.bf16.gmra.mrb[36].mxu0 %v1905_v55  ;;  %1149 = vmatmul.mubr.bf16.gmra.mrb[36].mxu1 %v1906_v56 }
  0x9c   : > { %1028 = vmatprep.mubr.bf16.mxu0 %v1907_v57  ;;  %1156 = vmatprep.mubr.bf16.mxu1 %v1909_v58 }
  0xa3   : > { %1029 = vmatmul.mubr.bf16.gmra.mrb[40].mxu0 %v1911_v59  ;;  %1157 = vmatmul.mubr.bf16.gmra.mrb[40].mxu1 %v1912_v60 }
  0xa4   : > { %1036 = vmatprep.mubr.bf16.mxu0 %v1913_v61  ;;  %1164 = vmatprep.mubr.bf16.mxu1 %v1915_v62 }
  0xab   : > { %1037 = vmatmul.mubr.bf16.gmra.mrb[44].mxu0 %v1917_v63  ;;  %1165 = vmatmul.mubr.bf16.gmra.mrb[44].mxu1 %v1918_v0 }
  0xac   : > { %1044 = vmatprep.mubr.bf16.mxu0 %v1919_v1  ;;  %1172 = vmatprep.mubr.bf16.mxu1 %v1921_v2 }
  0xb3   : > { %1045 = vmatmul.mubr.bf16.gmra.mrb[48].mxu0 %v1923_v3  ;;  %1173 = vmatmul.mubr.bf16.gmra.mrb[48].mxu1 %v1924_v4 }
  0xb4   : > { %1052 = vmatprep.mubr.bf16.mxu0 %v1925_v5  ;;  %1180 = vmatprep.mubr.bf16.mxu1 %v1927_v6 }
  0xbb   : > { %1053 = vmatmul.mubr.bf16.gmra.mrb[52].mxu0 %v1929_v7  ;;  %1181 = vmatmul.mubr.bf16.gmra.mrb[52].mxu1 %v1930_v8 }
  0xbc   : > { %1060 = vmatprep.mubr.bf16.mxu0 %v1931_v9  ;;  %1188 = vmatprep.mubr.bf16.mxu1 %v1933_v10 }
  0xc3   : > { %1061 = vmatmul.mubr.bf16.gmra.mrb[56].mxu0 %v1935_v11  ;;  %1189 = vmatmul.mubr.bf16.gmra.mrb[56].mxu1 %v1936_v12 }
  0xc4   : > { %1068 = vmatprep.mubr.bf16.mxu0 %v1937_v13  ;;  %1196 = vmatprep.mubr.bf16.mxu1 %v1939_v14 }
  0xcb   : > { %1069 = vmatmul.mubr.bf16.gmra.mrb[60].mxu0 %v1941_v15  ;;  %1197 = vmatmul.mubr.bf16.gmra.mrb[60].mxu1 %v1942_v16 }
 0x126   : > { %v950_v17 = vpop.f32.mrb[0].mxu0  ;;  %v1078_v18 = vpop.f32.mrb[0].mxu1 }
 0x127   : > { %1943 = vtanh.f32 %v950_v17  ;;  %v952_v19 = vpop.f32.mrb[1].mxu0  ;;  %v1080_v20 = vpop.f32.mrb[1].mxu1 }
 0x128   : > { %1945 = vtanh.f32 %v1078_v18  ;;  %v953_v21 = vpop.f32.mrb[2].mxu0  ;;  %v1081_v22 = vpop.f32.mrb[2].mxu1 }
 0x129   : > { %1947 = vtanh.f32 %v953_v21  ;;  %v955_v23 = vpop.f32.mrb[3].mxu0  ;;  %v1083_v24 = vpop.f32.mrb[3].mxu1 }
 0x12a   : > { %1949 = vtanh.f32 %v1081_v22 }
 0x12e   : > { %v958_v25 = vpop.f32.mrb[4].mxu0  ;;  %v1086_v26 = vpop.f32.mrb[4].mxu1 }
 0x12f   : > { %1951 = vtanh.f32 %v958_v25  ;;  %v960_v27 = vpop.f32.mrb[5].mxu0  ;;  %v1088_v28 = vpop.f32.mrb[5].mxu1 }
 0x130   : > { %1953 = vtanh.f32 %v1086_v26  ;;  %v961_v29 = vpop.f32.mrb[6].mxu0  ;;  %v1089_v30 = vpop.f32.mrb[6].mxu1 }
 0x131   : > { %v1944_v31 = vpop.eup %1943  ;;  %1955 = vtanh.f32 %v961_v29  ;;  %v963_v32 = vpop.f32.mrb[7].mxu0 }
 0x132   : > { %v1091_v33 = vpop.f32.mrb[7].mxu1  ;;  %v1946_v34 = vpop.eup %1945  ;;  %1464 = vst [vmem:[%s2294_s5] sm:$0xff] %v1944_v31  ;;  %1957 = vtanh.f32 %v1089_v30 }
 0x133   : > { %v1948_v35 = vpop.eup %1947  ;;  %1496 = vst [vmem:[%s2294_s5 + $0x100] sm:$0xff] %v1946_v34 }
 0x134   : > { %v1950_v36 = vpop.eup %1949  ;;  %1465 = vst [vmem:[%s2294_s5 + $0x8] sm:$0xff] %v1948_v35 }
 0x135   : > { %1497 = vst [vmem:[%s2294_s5 + $0x108] sm:$0xff] %v1950_v36 }
 0x136   : > { %v966_v37 = vpop.f32.mrb[8].mxu0  ;;  %v1094_v38 = vpop.f32.mrb[8].mxu1 }
 0x137   : > { %1959 = vtanh.f32 %v966_v37  ;;  %v968_v39 = vpop.f32.mrb[9].mxu0  ;;  %v1096_v40 = vpop.f32.mrb[9].mxu1 }
 0x138   : > { %1961 = vtanh.f32 %v1094_v38  ;;  %v969_v41 = vpop.f32.mrb[10].mxu0  ;;  %v1097_v42 = vpop.f32.mrb[10].mxu1 }
 0x139   : > { %v1952_v43 = vpop.eup %1951  ;;  %1963 = vtanh.f32 %v969_v41  ;;  %v971_v44 = vpop.f32.mrb[11].mxu0 }
 0x13a   : > { %v1099_v45 = vpop.f32.mrb[11].mxu1  ;;  %v1954_v46 = vpop.eup %1953  ;;  %1466 = vst [vmem:[%s2294_s5 + $0x10] sm:$0xff] %v1952_v43  ;;  %1965 = vtanh.f32 %v1097_v42 }
 0x13b   : > { %v1956_v47 = vpop.eup %1955  ;;  %1498 = vst [vmem:[%s2294_s5 + $0x110] sm:$0xff] %v1954_v46 }
 0x13c   : > { %v1958_v48 = vpop.eup %1957  ;;  %1467 = vst [vmem:[%s2294_s5 + $0x18] sm:$0xff] %v1956_v47 }
 0x13d   : > { %1499 = vst [vmem:[%s2294_s5 + $0x118] sm:$0xff] %v1958_v48 }
 0x13e   : > { %v974_v49 = vpop.f32.mrb[12].mxu0  ;;  %v1102_v50 = vpop.f32.mrb[12].mxu1 }
 0x13f   : > { %1967 = vtanh.f32 %v974_v49  ;;  %v976_v51 = vpop.f32.mrb[13].mxu0  ;;  %v1104_v52 = vpop.f32.mrb[13].mxu1 }
 0x140   : > { %1969 = vtanh.f32 %v1102_v50  ;;  %v977_v53 = vpop.f32.mrb[14].mxu0  ;;  %v1105_v54 = vpop.f32.mrb[14].mxu1 }
 0x141   : > { %v1960_v55 = vpop.eup %1959  ;;  %1971 = vtanh.f32 %v977_v53  ;;  %v979_v56 = vpop.f32.mrb[15].mxu0 }
 0x142   : > { %v1107_v57 = vpop.f32.mrb[15].mxu1  ;;  %v1962_v58 = vpop.eup %1961  ;;  %1468 = vst [vmem:[%s2294_s5 + $0x20] sm:$0xff] %v1960_v55  ;;  %1973 = vtanh.f32 %v1105_v54 }
 0x143   : > { %v1964_v59 = vpop.eup %1963  ;;  %1500 = vst [vmem:[%s2294_s5 + $0x120] sm:$0xff] %v1962_v58 }
 0x144   : > { %v1966_v60 = vpop.eup %1965  ;;  %1469 = vst [vmem:[%s2294_s5 + $0x28] sm:$0xff] %v1964_v59 }
 0x145   : > { %1501 = vst [vmem:[%s2294_s5 + $0x128] sm:$0xff] %v1966_v60 }
 0x146   : > { %v982_v61 = vpop.f32.mrb[16].mxu0  ;;  %v1110_v62 = vpop.f32.mrb[16].mxu1 }
 0x147   : > { %1975 = vtanh.f32 %v982_v61  ;;  %v984_v63 = vpop.f32.mrb[17].mxu0  ;;  %v1112_v0 = vpop.f32.mrb[17].mxu1 }
 0x148   : > { %1977 = vtanh.f32 %v1110_v62  ;;  %v985_v1 = vpop.f32.mrb[18].mxu0  ;;  %v1113_v2 = vpop.f32.mrb[18].mxu1 }
 0x149   : > { %v1968_v3 = vpop.eup %1967  ;;  %1979 = vtanh.f32 %v985_v1  ;;  %v987_v4 = vpop.f32.mrb[19].mxu0 }
 0x14a   : > { %v1115_v5 = vpop.f32.mrb[19].mxu1  ;;  %v1970_v6 = vpop.eup %1969  ;;  %1470 = vst [vmem:[%s2294_s5 + $0x30] sm:$0xff] %v1968_v3  ;;  %1981 = vtanh.f32 %v1113_v2 }
 0x14b   : > { %v1972_v7 = vpop.eup %1971  ;;  %1502 = vst [vmem:[%s2294_s5 + $0x130] sm:$0xff] %v1970_v6 }
 0x14c   : > { %v1974_v8 = vpop.eup %1973  ;;  %1471 = vst [vmem:[%s2294_s5 + $0x38] sm:$0xff] %v1972_v7 }
 0x14d   : > { %1503 = vst [vmem:[%s2294_s5 + $0x138] sm:$0xff] %v1974_v8 }
 0x14e   : > { %v990_v9 = vpop.f32.mrb[20].mxu0  ;;  %v1118_v10 = vpop.f32.mrb[20].mxu1 }
 0x14f   : > { %1983 = vtanh.f32 %v990_v9  ;;  %v992_v11 = vpop.f32.mrb[21].mxu0  ;;  %v1120_v12 = vpop.f32.mrb[21].mxu1 }
 0x150   : > { %1985 = vtanh.f32 %v1118_v10  ;;  %v993_v13 = vpop.f32.mrb[22].mxu0  ;;  %v1121_v14 = vpop.f32.mrb[22].mxu1 }
 0x151   : > { %v1976_v15 = vpop.eup %1975  ;;  %1987 = vtanh.f32 %v993_v13  ;;  %v995_v16 = vpop.f32.mrb[23].mxu0 }
 0x152   : > { %v1123_v17 = vpop.f32.mrb[23].mxu1  ;;  %v1978_v18 = vpop.eup %1977  ;;  %1472 = vst [vmem:[%s2294_s5 + $0x40] sm:$0xff] %v1976_v15  ;;  %1989 = vtanh.f32 %v1121_v14 }
 0x153   : > { %v1980_v19 = vpop.eup %1979  ;;  %1504 = vst [vmem:[%s2294_s5 + $0x140] sm:$0xff] %v1978_v18 }
 0x154   : > { %v1982_v20 = vpop.eup %1981  ;;  %1473 = vst [vmem:[%s2294_s5 + $0x48] sm:$0xff] %v1980_v19 }
 0x155   : > { %1505 = vst [vmem:[%s2294_s5 + $0x148] sm:$0xff] %v1982_v20 }
 0x156   : > { %v998_v21 = vpop.f32.mrb[24].mxu0  ;;  %v1126_v22 = vpop.f32.mrb[24].mxu1 }
 0x157   : > { %1991 = vtanh.f32 %v998_v21  ;;  %v1000_v23 = vpop.f32.mrb[25].mxu0  ;;  %v1128_v24 = vpop.f32.mrb[25].mxu1 }
 0x158   : > { %1993 = vtanh.f32 %v1126_v22  ;;  %v1001_v25 = vpop.f32.mrb[26].mxu0  ;;  %v1129_v26 = vpop.f32.mrb[26].mxu1 }
 0x159   : > { %v1984_v27 = vpop.eup %1983  ;;  %1995 = vtanh.f32 %v1001_v25  ;;  %v1003_v28 = vpop.f32.mrb[27].mxu0 }
 0x15a   : > { %v1131_v29 = vpop.f32.mrb[27].mxu1  ;;  %v1986_v30 = vpop.eup %1985  ;;  %1474 = vst [vmem:[%s2294_s5 + $0x50] sm:$0xff] %v1984_v27  ;;  %1997 = vtanh.f32 %v1129_v26 }
 0x15b   : > { %v1988_v31 = vpop.eup %1987  ;;  %1506 = vst [vmem:[%s2294_s5 + $0x150] sm:$0xff] %v1986_v30 }
 0x15c   : > { %v1990_v32 = vpop.eup %1989  ;;  %1475 = vst [vmem:[%s2294_s5 + $0x58] sm:$0xff] %v1988_v31 }
 0x15d   : > { %1507 = vst [vmem:[%s2294_s5 + $0x158] sm:$0xff] %v1990_v32 }
 0x15e   : > { %v1006_v33 = vpop.f32.mrb[28].mxu0  ;;  %v1134_v34 = vpop.f32.mrb[28].mxu1 }
 0x15f   : > { %1999 = vtanh.f32 %v1006_v33  ;;  %v1008_v35 = vpop.f32.mrb[29].mxu0  ;;  %v1136_v36 = vpop.f32.mrb[29].mxu1 }
 0x160   : > { %2001 = vtanh.f32 %v1134_v34  ;;  %v1009_v37 = vpop.f32.mrb[30].mxu0  ;;  %v1137_v38 = vpop.f32.mrb[30].mxu1 }
 0x161   : > { %v1992_v39 = vpop.eup %1991  ;;  %2003 = vtanh.f32 %v1009_v37  ;;  %v1011_v40 = vpop.f32.mrb[31].mxu0 }
 0x162   : > { %v1139_v41 = vpop.f32.mrb[31].mxu1  ;;  %v1994_v42 = vpop.eup %1993  ;;  %1476 = vst [vmem:[%s2294_s5 + $0x60] sm:$0xff] %v1992_v39  ;;  %2005 = vtanh.f32 %v1137_v38 }
 0x163   : > { %v1996_v43 = vpop.eup %1995  ;;  %1508 = vst [vmem:[%s2294_s5 + $0x160] sm:$0xff] %v1994_v42 }
 0x164   : > { %v1998_v44 = vpop.eup %1997  ;;  %1477 = vst [vmem:[%s2294_s5 + $0x68] sm:$0xff] %v1996_v43 }
 0x165   : > { %1509 = vst [vmem:[%s2294_s5 + $0x168] sm:$0xff] %v1998_v44 }
 0x166   : > { %v1014_v45 = vpop.f32.mrb[32].mxu0  ;;  %v1142_v46 = vpop.f32.mrb[32].mxu1 }
 0x167   : > { %2007 = vtanh.f32 %v1014_v45  ;;  %v1016_v47 = vpop.f32.mrb[33].mxu0  ;;  %v1144_v48 = vpop.f32.mrb[33].mxu1 }
 0x168   : > { %2009 = vtanh.f32 %v1142_v46  ;;  %v1017_v49 = vpop.f32.mrb[34].mxu0  ;;  %v1145_v50 = vpop.f32.mrb[34].mxu1 }
 0x169   : > { %v2000_v51 = vpop.eup %1999  ;;  %2011 = vtanh.f32 %v1017_v49  ;;  %v1019_v52 = vpop.f32.mrb[35].mxu0 }
 0x16a   : > { %v1147_v53 = vpop.f32.mrb[35].mxu1  ;;  %v2002_v54 = vpop.eup %2001  ;;  %1478 = vst [vmem:[%s2294_s5 + $0x70] sm:$0xff] %v2000_v51  ;;  %2013 = vtanh.f32 %v1145_v50 }
 0x16b   : > { %v2004_v55 = vpop.eup %2003  ;;  %1510 = vst [vmem:[%s2294_s5 + $0x170] sm:$0xff] %v2002_v54 }
 0x16c   : > { %v2006_v56 = vpop.eup %2005  ;;  %1479 = vst [vmem:[%s2294_s5 + $0x78] sm:$0xff] %v2004_v55 }
 0x16d   : > { %1511 = vst [vmem:[%s2294_s5 + $0x178] sm:$0xff] %v2006_v56 }
 0x16e   : > { %v1022_v57 = vpop.f32.mrb[36].mxu0  ;;  %v1150_v58 = vpop.f32.mrb[36].mxu1 }
 0x16f   : > { %2015 = vtanh.f32 %v1022_v57  ;;  %v1024_v59 = vpop.f32.mrb[37].mxu0  ;;  %v1152_v60 = vpop.f32.mrb[37].mxu1 }
 0x170   : > { %2017 = vtanh.f32 %v1150_v58  ;;  %v1025_v61 = vpop.f32.mrb[38].mxu0  ;;  %v1153_v62 = vpop.f32.mrb[38].mxu1 }
 0x171   : > { %v2008_v63 = vpop.eup %2007  ;;  %2019 = vtanh.f32 %v1025_v61  ;;  %v1027_v0 = vpop.f32.mrb[39].mxu0 }
 0x172   : > { %v1155_v1 = vpop.f32.mrb[39].mxu1  ;;  %v2010_v2 = vpop.eup %2009  ;;  %1480 = vst [vmem:[%s2294_s5 + $0x80] sm:$0xff] %v2008_v63  ;;  %2021 = vtanh.f32 %v1153_v62 }
 0x173   : > { %v2012_v3 = vpop.eup %2011  ;;  %1512 = vst [vmem:[%s2294_s5 + $0x180] sm:$0xff] %v2010_v2 }
 0x174   : > { %v2014_v4 = vpop.eup %2013  ;;  %1481 = vst [vmem:[%s2294_s5 + $0x88] sm:$0xff] %v2012_v3 }
 0x175   : > { %1513 = vst [vmem:[%s2294_s5 + $0x188] sm:$0xff] %v2014_v4 }
 0x176   : > { %v1030_v5 = vpop.f32.mrb[40].mxu0  ;;  %v1158_v6 = vpop.f32.mrb[40].mxu1 }
 0x177   : > { %2023 = vtanh.f32 %v1030_v5  ;;  %v1032_v7 = vpop.f32.mrb[41].mxu0  ;;  %v1160_v8 = vpop.f32.mrb[41].mxu1 }
 0x178   : > { %2025 = vtanh.f32 %v1158_v6  ;;  %v1033_v9 = vpop.f32.mrb[42].mxu0  ;;  %v1161_v10 = vpop.f32.mrb[42].mxu1 }
 0x179   : > { %v2016_v11 = vpop.eup %2015  ;;  %2027 = vtanh.f32 %v1033_v9  ;;  %v1035_v12 = vpop.f32.mrb[43].mxu0 }
 0x17a   : > { %v1163_v13 = vpop.f32.mrb[43].mxu1  ;;  %v2018_v14 = vpop.eup %2017  ;;  %1482 = vst [vmem:[%s2294_s5 + $0x90] sm:$0xff] %v2016_v11  ;;  %2029 = vtanh.f32 %v1161_v10 }
 0x17b   : > { %v2020_v15 = vpop.eup %2019  ;;  %1514 = vst [vmem:[%s2294_s5 + $0x190] sm:$0xff] %v2018_v14 }
 0x17c   : > { %v2022_v16 = vpop.eup %2021  ;;  %1483 = vst [vmem:[%s2294_s5 + $0x98] sm:$0xff] %v2020_v15 }
 0x17d   : > { %1515 = vst [vmem:[%s2294_s5 + $0x198] sm:$0xff] %v2022_v16 }
 0x17e   : > { %v1038_v17 = vpop.f32.mrb[44].mxu0  ;;  %v1166_v18 = vpop.f32.mrb[44].mxu1 }
 0x17f   : > { %2031 = vtanh.f32 %v1038_v17  ;;  %v1040_v19 = vpop.f32.mrb[45].mxu0  ;;  %v1168_v20 = vpop.f32.mrb[45].mxu1 }
 0x180   : > { %2033 = vtanh.f32 %v1166_v18  ;;  %v1041_v21 = vpop.f32.mrb[46].mxu0  ;;  %v1169_v22 = vpop.f32.mrb[46].mxu1 }
 0x181   : > { %v2024_v23 = vpop.eup %2023  ;;  %2035 = vtanh.f32 %v1041_v21  ;;  %v1043_v24 = vpop.f32.mrb[47].mxu0 }
 0x182   : > { %v1171_v25 = vpop.f32.mrb[47].mxu1  ;;  %v2026_v26 = vpop.eup %2025  ;;  %1484 = vst [vmem:[%s2294_s5 + $0xa0] sm:$0xff] %v2024_v23  ;;  %2037 = vtanh.f32 %v1169_v22 }
 0x183   : > { %v2028_v27 = vpop.eup %2027  ;;  %1516 = vst [vmem:[%s2294_s5 + $0x1a0] sm:$0xff] %v2026_v26 }
 0x184   : > { %v2030_v28 = vpop.eup %2029  ;;  %1485 = vst [vmem:[%s2294_s5 + $0xa8] sm:$0xff] %v2028_v27 }
 0x185   : > { %1517 = vst [vmem:[%s2294_s5 + $0x1a8] sm:$0xff] %v2030_v28 }
 0x186   : > { %v1046_v29 = vpop.f32.mrb[48].mxu0  ;;  %v1174_v30 = vpop.f32.mrb[48].mxu1 }
 0x187   : > { %2039 = vtanh.f32 %v1046_v29  ;;  %v1048_v31 = vpop.f32.mrb[49].mxu0  ;;  %v1176_v32 = vpop.f32.mrb[49].mxu1 }
 0x188   : > { %2041 = vtanh.f32 %v1174_v30  ;;  %v1049_v33 = vpop.f32.mrb[50].mxu0  ;;  %v1177_v34 = vpop.f32.mrb[50].mxu1 }
 0x189   : > { %v2032_v35 = vpop.eup %2031  ;;  %2043 = vtanh.f32 %v1049_v33  ;;  %v1051_v36 = vpop.f32.mrb[51].mxu0 }
 0x18a   : > { %v1179_v37 = vpop.f32.mrb[51].mxu1  ;;  %v2034_v38 = vpop.eup %2033  ;;  %1486 = vst [vmem:[%s2294_s5 + $0xb0] sm:$0xff] %v2032_v35  ;;  %2045 = vtanh.f32 %v1177_v34 }
 0x18b   : > { %v2036_v39 = vpop.eup %2035  ;;  %1518 = vst [vmem:[%s2294_s5 + $0x1b0] sm:$0xff] %v2034_v38 }
 0x18c   : > { %v2038_v40 = vpop.eup %2037  ;;  %1487 = vst [vmem:[%s2294_s5 + $0xb8] sm:$0xff] %v2036_v39 }
 0x18d   : > { %1519 = vst [vmem:[%s2294_s5 + $0x1b8] sm:$0xff] %v2038_v40 }
 0x18e   : > { %v1054_v41 = vpop.f32.mrb[52].mxu0  ;;  %v1182_v42 = vpop.f32.mrb[52].mxu1 }
 0x18f   : > { %2047 = vtanh.f32 %v1054_v41  ;;  %v1056_v43 = vpop.f32.mrb[53].mxu0  ;;  %v1184_v44 = vpop.f32.mrb[53].mxu1 }
 0x190   : > { %2049 = vtanh.f32 %v1182_v42  ;;  %v1057_v45 = vpop.f32.mrb[54].mxu0  ;;  %v1185_v46 = vpop.f32.mrb[54].mxu1 }
 0x191   : > { %v2040_v47 = vpop.eup %2039  ;;  %2051 = vtanh.f32 %v1057_v45  ;;  %v1059_v48 = vpop.f32.mrb[55].mxu0 }
 0x192   : > { %v1187_v49 = vpop.f32.mrb[55].mxu1  ;;  %v2042_v50 = vpop.eup %2041  ;;  %1488 = vst [vmem:[%s2294_s5 + $0xc0] sm:$0xff] %v2040_v47  ;;  %2053 = vtanh.f32 %v1185_v46 }
 0x193   : > { %v2044_v51 = vpop.eup %2043  ;;  %1520 = vst [vmem:[%s2294_s5 + $0x1c0] sm:$0xff] %v2042_v50 }
 0x194   : > { %v2046_v52 = vpop.eup %2045  ;;  %1489 = vst [vmem:[%s2294_s5 + $0xc8] sm:$0xff] %v2044_v51 }
 0x195   : > { %1521 = vst [vmem:[%s2294_s5 + $0x1c8] sm:$0xff] %v2046_v52 }
 0x196   : > { %v1062_v53 = vpop.f32.mrb[56].mxu0  ;;  %v1190_v54 = vpop.f32.mrb[56].mxu1 }
 0x197   : > { %2055 = vtanh.f32 %v1062_v53  ;;  %v1064_v55 = vpop.f32.mrb[57].mxu0  ;;  %v1192_v56 = vpop.f32.mrb[57].mxu1 }
 0x198   : > { %2057 = vtanh.f32 %v1190_v54  ;;  %v1065_v57 = vpop.f32.mrb[58].mxu0  ;;  %v1193_v58 = vpop.f32.mrb[58].mxu1 }
 0x199   : > { %v2048_v59 = vpop.eup %2047  ;;  %2059 = vtanh.f32 %v1065_v57  ;;  %v1067_v60 = vpop.f32.mrb[59].mxu0 }
 0x19a   : > { %v1195_v61 = vpop.f32.mrb[59].mxu1  ;;  %v2050_v62 = vpop.eup %2049  ;;  %1490 = vst [vmem:[%s2294_s5 + $0xd0] sm:$0xff] %v2048_v59  ;;  %2061 = vtanh.f32 %v1193_v58 }
 0x19b   : > { %v2052_v63 = vpop.eup %2051  ;;  %1522 = vst [vmem:[%s2294_s5 + $0x1d0] sm:$0xff] %v2050_v62 }
 0x19c   : > { %v2054_v0 = vpop.eup %2053  ;;  %1491 = vst [vmem:[%s2294_s5 + $0xd8] sm:$0xff] %v2052_v63 }
 0x19d   : > { %1523 = vst [vmem:[%s2294_s5 + $0x1d8] sm:$0xff] %v2054_v0 }
 0x19e   : > { %v1070_v1 = vpop.f32.mrb[60].mxu0  ;;  %v1198_v2 = vpop.f32.mrb[60].mxu1 }
 0x19f   : > { %2063 = vtanh.f32 %v1070_v1  ;;  %v1072_v3 = vpop.f32.mrb[61].mxu0  ;;  %v1200_v4 = vpop.f32.mrb[61].mxu1 }
 0x1a0   : > { %2065 = vtanh.f32 %v1198_v2  ;;  %v1073_v5 = vpop.f32.mrb[62].mxu0  ;;  %v1201_v6 = vpop.f32.mrb[62].mxu1 }
 0x1a1   : > { %v2056_v7 = vpop.eup %2055  ;;  %2067 = vtanh.f32 %v1073_v5  ;;  %v1075_v8 = vpop.f32.mrb[63].mxu0 }
 0x1a2   : > { %v1203_v9 = vpop.f32.mrb[63].mxu1  ;;  %v2058_v10 = vpop.eup %2057  ;;  %1492 = vst [vmem:[%s2294_s5 + $0xe0] sm:$0xff] %v2056_v7  ;;  %2069 = vtanh.f32 %v1201_v6 }
 0x1a3   : > { %v2060_v11 = vpop.eup %2059  ;;  %1524 = vst [vmem:[%s2294_s5 + $0x1e0] sm:$0xff] %v2058_v10 }
 0x1a4   : > { %v2062_v12 = vpop.eup %2061  ;;  %1493 = vst [vmem:[%s2294_s5 + $0xe8] sm:$0xff] %v2060_v11 }
 0x1a5   : > { %1525 = vst [vmem:[%s2294_s5 + $0x1e8] sm:$0xff] %v2062_v12 }
 0x1a9   : > { %v2064_v13 = vpop.eup %2063 }
 0x1aa   : > { %v2066_v14 = vpop.eup %2065  ;;  %1494 = vst [vmem:[%s2294_s5 + $0xf0] sm:$0xff] %v2064_v13 }
 0x1ab   : > { %v2068_v15 = vpop.eup %2067  ;;  %1526 = vst [vmem:[%s2294_s5 + $0x1f0] sm:$0xff] %v2066_v14 }
 0x1ac   : > { %v2070_v16 = vpop.eup %2069  ;;  %1495 = vst [vmem:[%s2294_s5 + $0xf8] sm:$0xff] %v2068_v15 }
 0x1ad   : > { %1527 = vst [vmem:[%s2294_s5 + $0x1f8] sm:$0xff] %v2070_v16 }
 0x1ae PF: > { %s12_s13 = sadd.s32 1, %s2109_s13   ;;  %s2378_s9 = smov %s2101_s11 }
 0x1af   : > { %p9_p7 = scmp.ge.s32.totalorder %s12_s13, 18   ;;  %s2379_s10 = smov %s2105_s12 }
 0x1b0   : > { %s2380_s11 = smov %s2383_s14  ;;  %s2381_s12 = smov %s2387_s15 }
 0x1b1   :  { %11 = sbr.rel (!%p9_p7) target bundleno = 3 (0x3), region = 69 }

</bundles_post_ra>
